<compile_context>
chip_gen: v6e
topology: v6e:2x2x1
jax: 0.10.0
libtpu: 0.0.40
codegen_flags: <defaults>
</compile_context>

<pallas_src>
import functools

import jax
import jax.numpy as jnp
from jax.experimental import pallas as pl
from jax.experimental.pallas import tpu as pltpu

EPS = 1e-5
LANE = 128


def _round_up(v, m):
    return (v + m - 1) // m * m


# ---------------------------------------------------------------------------
# in-kernel helpers
# ---------------------------------------------------------------------------

def _fill_padded(pad_ref, interior, Hd, Wd, Wpad):
    """Write `interior` (Hd, Wd, C) at offset (1, 1) of pad_ref and zero the
    1-pixel conv border (top/bottom as full-width dense slabs, narrow
    left/right column slabs).  Redone every grid step -> megacore safe."""
    C = interior.shape[-1]
    dt = pad_ref.dtype
    zrow = jnp.zeros((1, Wpad, C), dt)
    pad_ref[0:1, :, :] = zrow
    pad_ref[Hd + 1:Hd + 2, :, :] = zrow
    pad_ref[1:Hd + 1, 0:1, :] = jnp.zeros((Hd, 1, C), dt)
    pad_ref[1:Hd + 1, Wd + 1:Wpad, :] = jnp.zeros((Hd, Wpad - Wd - 1, C), dt)
    pad_ref[1:Hd + 1, 1:Wd + 1, :] = interior.astype(dt)


def _tap(pad_ref, kh, kw, Ho, Wo, stride):
    """Shifted (and, for stride>1, strided) window of the padded buffer."""
    if stride == 1:
        return pad_ref[kh:kh + Ho, kw:kw + Wo, :]
    return pad_ref[pl.ds(kh, Ho, stride=stride),
                   pl.ds(kw, Wo, stride=stride), :]


def _conv3x3(pad_ref, w_ref, Ho, Wo, Cin_p, Cout_p, stride):
    """3x3 conv as nine accumulating K=Cin_p MXU matmuls over shifted windows
    (no 9x-wide im2col patch scratch); bf16 operands, f32 accumulation."""
    acc = jnp.zeros((Ho * Wo, Cout_p), jnp.float32)
    for kh in range(3):
        for kw in range(3):
            lhs = _tap(pad_ref, kh, kw, Ho, Wo, stride)
            lhs = lhs.reshape(Ho * Wo, Cin_p).astype(jnp.bfloat16)
            acc = acc + jnp.dot(lhs, w_ref[kh * 3 + kw],
                                preferred_element_type=jnp.float32)
    return acc


def _write_stats(st_ref, acc):
    """Per-grid-step partial BN statistics: sum and sum-of-squares."""
    c = acc.shape[-1]
    st_ref[:, 0:1, :] = jnp.sum(acc, axis=0, keepdims=True).reshape(1, 1, c)
    st_ref[:, 1:2, :] = jnp.sum(acc * acc, axis=0, keepdims=True).reshape(1, 1, c)


# ---------------------------------------------------------------------------
# kernels
# ---------------------------------------------------------------------------

def _make_stage1_kernel(H, W, Ci, Cp, Ho, Wo, stride, Wpad, has_ds):
    def kernel(*refs):
        if has_ds:
            (x_ref, w1_ref, wd_ref,
             y1_ref, idn_ref, st1_ref, std_ref, pad_ref) = refs
        else:
            x_ref, w1_ref, y1_ref, st1_ref, pad_ref = refs

        # relu fused into the padded staging copy of this batch item.
        _fill_padded(pad_ref, jnp.maximum(x_ref[0], 0.0), H, W, Wpad)

        acc = _conv3x3(pad_ref, w1_ref, Ho, Wo, Ci, Cp, stride)
        y1_ref[...] = acc.reshape(1, Ho, Wo, Cp)
        _write_stats(st1_ref, acc)

        if has_ds:
            # 1x1/stride-s downsample conv fed from the centre tap of the
            # padded buffer (== relu(x)[::s, ::s, :], already staged).
            ctr = _tap(pad_ref, 1, 1, Ho, Wo, stride)
            idn = jnp.dot(ctr.reshape(Ho * Wo, Ci).astype(jnp.bfloat16),
                          wd_ref[...], preferred_element_type=jnp.float32)
            idn_ref[...] = idn.reshape(1, Ho, Wo, Cp)
            _write_stats(std_ref, idn)

    return kernel


def _make_stage2_kernel(Ho, Wo, Cp, Wpad):
    def kernel(y1_ref, sc_ref, of_ref, w2_ref, y2_ref, st2_ref, pad_ref):
        # bn1 affine + relu fused into the padded staging copy.
        h1 = jnp.maximum(y1_ref[0] * sc_ref[0] + of_ref[0], 0.0)
        _fill_padded(pad_ref, h1, Ho, Wo, Wpad)
        acc = _conv3x3(pad_ref, w2_ref, Ho, Wo, Cp, Cp, 1)
        y2_ref[...] = acc.reshape(1, Ho, Wo, Cp)
        _write_stats(st2_ref, acc)
    return kernel


def _make_stage3_ds_kernel():
    def kernel(y2_ref, sc2_ref, of2_ref, idn_ref, scd_ref, ofd_ref, out_ref):
        out_ref[...] = (y2_ref[...] * sc2_ref[0] + of2_ref[0]
                        + idn_ref[...] * scd_ref[0] + ofd_ref[0])
    return kernel


def _make_stage3_id_kernel():
    def kernel(y2_ref, sc2_ref, of2_ref, x_ref, out_ref):
        out_ref[...] = (y2_ref[...] * sc2_ref[0] + of2_ref[0]
                        + jnp.maximum(x_ref[...], 0.0))
    return kernel


# ---------------------------------------------------------------------------
# wrapper
# ---------------------------------------------------------------------------

def _call_params(step_bytes, flops, bytes_accessed):
    try:
        cap = int(getattr(pltpu.get_tpu_info(), "vmem_capacity_bytes",
                          64 * 1024 * 1024))
    except Exception:
        cap = 64 * 1024 * 1024
    # Headroom for double buffering + compiler temporaries, but never above
    # ~3/4 of this generation's physical VMEM (v7x: 64 MiB -> 48 MiB cap).
    limit = int(min(max(4 * step_bytes, 32 * 1024 * 1024), (cap * 3) // 4))
    return dict(
        compiler_params=pltpu.CompilerParams(
            dimension_semantics=("parallel",), vmem_limit_bytes=limit),
        cost_estimate=pl.CostEstimate(flops=int(flops), transcendentals=0,
                                      bytes_accessed=int(bytes_accessed)),
    )


@functools.partial(jax.jit, static_argnames=("stride",))
def basic_block_forward(x_nchw, params, stride=1):
    """Pallas BasicBlock forward. x_nchw: (N,Cin,H,W) f32 -> (N,planes,Ho,Wo)."""
    N, Cin, H, W = x_nchw.shape
    planes = params["w1"].shape[0]                 # w1 stored OIHW like PyTorch
    has_ds = (stride != 1) or (Cin != planes)
    Ho = (H + 2 - 3) // stride + 1
    Wo = (W + 2 - 3) // stride + 1
    Ci = _round_up(Cin, LANE)                      # lane-dense channel padding
    Cp = _round_up(planes, LANE)
    R = N * Ho * Wo
    Wp1 = _round_up(W + 2, 8)                      # sublane-dense staging width
    Wp2 = _round_up(Wo + 2, 8)
    f32, bf16 = jnp.float32, jnp.bfloat16

    # ---- plain-JAX glue: layout / packing only (no large compute) ----
    x = jnp.transpose(x_nchw, (0, 2, 3, 1)).astype(f32)
    x = jnp.pad(x, ((0, 0), (0, 0), (0, 0), (0, Ci - Cin)))

    def conv_w(w, cin, cin_p, cout_p):             # OIHW -> (9, cin_p, cout_p)
        hw = jnp.transpose(w, (2, 3, 1, 0))
        hw = jnp.pad(hw, ((0, 0), (0, 0), (0, cin_p - cin),
                          (0, cout_p - w.shape[0])))
        return hw.reshape(9, cin_p, cout_p).astype(bf16)

    def vec(v):
        return jnp.pad(v, (0, Cp - v.shape[0])).astype(f32)

    def bn_affine(partial_stats, gamma, beta):
        # Finalise BN from per-step partial sums: tiny (2, Cp) glue math.
        s = jnp.sum(partial_stats, axis=0)
        mean = s[0] / R
        var = jnp.maximum(s[1] / R - mean * mean, 0.0)
        scale = vec(gamma) * jax.lax.rsqrt(var + EPS)
        offset = vec(beta) - mean * scale
        return scale.reshape(1, Cp), offset.reshape(1, Cp)

    w1 = conv_w(params["w1"], Cin, Ci, Cp)
    w2 = conv_w(params["w2"], planes, Cp, Cp)

    act_in = pl.BlockSpec((1, H, W, Ci), lambda i: (i, 0, 0, 0))
    act_out = pl.BlockSpec((1, Ho, Wo, Cp), lambda i: (i, 0, 0, 0))
    st_spec = pl.BlockSpec((1, 2, Cp), lambda i: (i, 0, 0))
    vec_spec = pl.BlockSpec((1, Cp), lambda i: (0, 0))

    y_shape = jax.ShapeDtypeStruct((N, Ho, Wo, Cp), f32)
    st_shape = jax.ShapeDtypeStruct((N, 2, Cp), f32)

    # ---- stage 1: relu(x) -> conv1 (+ optional 1x1 downsample) + stats ----
    in1 = [x, w1]
    in_specs1 = [act_in, pl.BlockSpec((9, Ci, Cp), lambda i: (0, 0, 0))]
    if has_ds:
        wd = params["wd"].reshape(planes, Cin).T   # (Cin, planes)
        wd = jnp.pad(wd, ((0, Ci - Cin), (0, Cp - planes))).astype(bf16)
        in1.append(wd)
        in_specs1.append(pl.BlockSpec((Ci, Cp), lambda i: (0, 0)))
        out_shape1 = (y_shape, y_shape, st_shape, st_shape)
        out_specs1 = (act_out, act_out, st_spec, st_spec)
    else:
        out_shape1 = (y_shape, st_shape)
        out_specs1 = (act_out, st_spec)

    n_out1 = 2 if has_ds else 1
    ds_i = 1 if has_ds else 0
    step1 = (4 * H * W * Ci + 2 * 9 * Ci * Cp + ds_i * 2 * Ci * Cp
             + 4 * (H + 2) * Wp1 * Ci + 4 * Ho * Wo * Cp * n_out1
             + 4 * Ho * Wo * (Ci + Cp))
    flops1 = 2 * R * 9 * Ci * Cp + ds_i * 2 * R * Ci * Cp
    bytes1 = (4 * N * H * W * Ci + 2 * 9 * Ci * Cp + ds_i * 2 * Ci * Cp
              + 4 * N * Ho * Wo * Cp * n_out1 + 8 * N * 2 * Cp
              + 4 * N * (H + 2) * Wp1 * Ci               # staging writes
              + (9 + ds_i) * 4 * N * Ho * Wo * Ci)        # staged tap re-reads

    res1 = pl.pallas_call(
        _make_stage1_kernel(H, W, Ci, Cp, Ho, Wo, stride, Wp1, has_ds),
        grid=(N,),
        out_shape=out_shape1,
        in_specs=in_specs1,
        out_specs=out_specs1,
        scratch_shapes=[pltpu.VMEM((H + 2, Wp1, Ci), f32)],
        **_call_params(step1, flops1, bytes1),
    )(*in1)
    if has_ds:
        y1, idn, st1, std = res1
    else:
        y1, st1 = res1

    sc1, of1 = bn_affine(st1, params["g1"], params["b1"])

    # ---- stage 2: bn1 + relu -> conv2 + stats ----
    step2 = (4 * Ho * Wo * Cp + 2 * 9 * Cp * Cp + 4 * (Ho + 2) * Wp2 * Cp
             + 4 * Ho * Wo * Cp + 8 * Ho * Wo * Cp)
    flops2 = 2 * R * 9 * Cp * Cp
    bytes2 = (8 * N * Ho * Wo * Cp + 2 * 9 * Cp * Cp + 8 * N * 2 * Cp
              + 4 * N * (Ho + 2) * Wp2 * Cp + 9 * 4 * N * Ho * Wo * Cp)

    y2, st2 = pl.pallas_call(
        _make_stage2_kernel(Ho, Wo, Cp, Wp2),
        grid=(N,),
        out_shape=(y_shape, st_shape),
        in_specs=[act_out, vec_spec, vec_spec,
                  pl.BlockSpec((9, Cp, Cp), lambda i: (0, 0, 0))],
        out_specs=(act_out, st_spec),
        scratch_shapes=[pltpu.VMEM((Ho + 2, Wp2, Cp), f32)],
        **_call_params(step2, flops2, bytes2),
    )(y1, sc1, of1, w2)

    sc2, of2 = bn_affine(st2, params["g2"], params["b2"])

    # ---- stage 3: bn2 + identity / downsample-bn + residual add ----
    flops3 = 6 * R * Cp
    if has_ds:
        scd, ofd = bn_affine(std, params["gd"], params["bd"])
        step3 = 12 * Ho * Wo * Cp
        bytes3 = 12 * N * Ho * Wo * Cp
        out4 = pl.pallas_call(
            _make_stage3_ds_kernel(),
            grid=(N,),
            out_shape=y_shape,
            in_specs=[act_out, vec_spec, vec_spec, act_out, vec_spec, vec_spec],
            out_specs=act_out,
            **_call_params(step3, flops3, bytes3),
        )(y2, sc2, of2, idn, scd, ofd)
    else:
        step3 = 8 * Ho * Wo * Cp + 4 * H * W * Ci
        bytes3 = 8 * N * Ho * Wo * Cp + 4 * N * H * W * Ci
        out4 = pl.pallas_call(
            _make_stage3_id_kernel(),
            grid=(N,),
            out_shape=y_shape,
            in_specs=[act_out, vec_spec, vec_spec, act_in],
            out_specs=act_out,
            **_call_params(step3, flops3, bytes3),
        )(y2, sc2, of2, x)

    out = out4[:, :, :, :planes]
    return jnp.transpose(out, (0, 3, 1, 2))


# ---------------------------------------------------------------------------
# pure-JAX reference + params
# ---------------------------------------------------------------------------

def basic_block_reference(x_nchw, params, stride=1):
    """Pure-JAX (XLA, f32) reference with identical semantics, NCHW like PyTorch."""
    N, Cin, H, W = x_nchw.shape
    planes = params["w1"].shape[0]
    has_ds = (stride != 1) or (Cin != planes)

    def conv(x, w, s, pad):
        return jax.lax.conv_general_dilated(
            x, w, (s, s), [(pad, pad), (pad, pad)],
            dimension_numbers=("NCHW", "OIHW", "NCHW"))

    def bn(x, g, b):
        m = jnp.mean(x, axis=(0, 2, 3), keepdims=True)
        v = jnp.mean((x - m) ** 2, axis=(0, 2, 3), keepdims=True)
        return ((x - m) / jnp.sqrt(v + EPS) * g.reshape(1, -1, 1, 1)
                + b.reshape(1, -1, 1, 1))

    x = jnp.maximum(x_nchw, 0.0)
    out = conv(x, params["w1"], stride, 1)
    out = jnp.maximum(bn(out, params["g1"], params["b1"]), 0.0)
    out = conv(out, params["w2"], 1, 1)
    out = bn(out, params["g2"], params["b2"])
    if has_ds:
        idn = bn(conv(x, params["wd"], stride, 0), params["gd"], params["bd"])
    else:
        idn = x
    return out + idn


def init_params(key, inplanes, planes):
    ks = jax.random.split(key, 10)
    f32 = jnp.float32
    params = {
        "w1": 0.1 * jax.random.normal(ks[0], (planes, inplanes, 3, 3), f32),
        "g1": 1.0 + 0.1 * jax.random.normal(ks[1], (planes,), f32),
        "b1": 0.1 * jax.random.normal(ks[2], (planes,), f32),
        "w2": 0.1 * jax.random.normal(ks[3], (planes, planes, 3, 3), f32),
        "g2": 1.0 + 0.1 * jax.random.normal(ks[4], (planes,), f32),
        "b2": 0.1 * jax.random.normal(ks[5], (planes,), f32),
        # downsample (1x1 conv + BN) params, used iff stride!=1 or Cin!=planes
        "wd": 0.1 * jax.random.normal(ks[6], (planes, inplanes, 1, 1), f32),
        "gd": 1.0 + 0.1 * jax.random.normal(ks[7], (planes,), f32),
        "bd": 0.1 * jax.random.normal(ks[8], (planes,), f32),
    }
    return params, ks[9]


if __name__ == "__main__":
    key = jax.random.PRNGKey(0)

    # Small shapes consistent with the module; both residual branches are
    # exercised (1x1-conv+BN downsample via channel mismatch, and identity).
    configs = [
        # (inplanes, planes, stride, N, H, W)
        (4, 8, 1, 2, 16, 16),
        (8, 8, 1, 2, 16, 16),
    ]
    for inplanes, planes, stride, N, H, W in configs:
        params, key = init_params(key, inplanes, planes)
        key, sub = jax.random.split(key)
        x = jax.random.normal(sub, (N, inplanes, H, W), jnp.float32)

        out = jax.block_until_ready(basic_block_forward(x, params, stride=stride))
        ref = basic_block_reference(x, params, stride=stride)

        assert out.shape == (N, planes, H // stride, W // stride), out.shape
        err = float(jnp.max(jnp.abs(out - ref)))
        # bf16 MXU operands (f32 accumulation) -> tolerance loosened vs pure f32.
        assert err < 5e-2, f"cfg {(inplanes, planes, stride)}: max abs err {err}"

    print("KERNEL_OK")
</pallas_src>

<mosaic_0001>
module attributes {stable_mosaic.version = 11 : i64} {
  func.func @kernel(%arg0: i32, %arg1: memref<1x16x16x128xf32, #tpu.memory_space<vmem>>, %arg2: memref<9x128x128xbf16, #tpu.memory_space<vmem>>, %arg3: memref<128x128xbf16, #tpu.memory_space<vmem>>, %arg4: memref<1x16x16x128xf32, #tpu.memory_space<vmem>>, %arg5: memref<1x16x16x128xf32, #tpu.memory_space<vmem>>, %arg6: memref<1x2x128xf32, #tpu.memory_space<vmem>>, %arg7: memref<1x2x128xf32, #tpu.memory_space<vmem>>, %arg8: memref<18x24x128xf32, #tpu.memory_space<vmem>>) attributes {dimension_semantics = [#tpu.dimension_semantics<parallel>], iteration_bounds = array<i64: 2>, scalar_prefetch = 0 : i64, scratch_operands = 1 : i64, tpu.core_type = #tpu.core_type<tc>, window_params = [{transform_indices = @transform_0, window_bounds = array<i64: 1, 16, 16, 128>}, {pipeline_mode = #tpu.pipeline_mode<synchronous>, transform_indices = @transform_1, window_bounds = array<i64: 9, 128, 128>}, {pipeline_mode = #tpu.pipeline_mode<synchronous>, transform_indices = @transform_2, window_bounds = array<i64: 128, 128>}, {transform_indices = @transform_3, window_bounds = array<i64: 1, 16, 16, 128>}, {transform_indices = @transform_4, window_bounds = array<i64: 1, 16, 16, 128>}, {transform_indices = @transform_5, window_bounds = array<i64: 1, 2, 128>}, {transform_indices = @transform_6, window_bounds = array<i64: 1, 2, 128>}]} {
    %c0 = arith.constant 0 : index
    %c0_0 = arith.constant 0 : index
    %c0_1 = arith.constant 0 : index
    %c0_2 = arith.constant 0 : index
    %0 = vector.load %arg1[%c0, %c0_0, %c0_1, %c0_2] : memref<1x16x16x128xf32, #tpu.memory_space<vmem>>, vector<1x16x16x128xf32>
    %1 = vector.shape_cast %0 : vector<1x16x16x128xf32> to vector<16x16x128xf32>
    %cst = arith.constant 0.000000e+00 : f32
    %2 = vector.broadcast %cst : f32 to vector<16x16x128xf32>
    %3 = arith.maximumf %1, %2 : vector<16x16x128xf32>
    %cst_3 = arith.constant 0.000000e+00 : f32
    %4 = vector.broadcast %cst_3 : f32 to vector<1x24x128xf32>
    %c0_4 = arith.constant 0 : index
    %c0_5 = arith.constant 0 : index
    %c0_6 = arith.constant 0 : index
    %5 = vector.load %arg8[%c0_4, %c0_5, %c0_6] : memref<18x24x128xf32, #tpu.memory_space<vmem>>, vector<1x24x128xf32>
    tpu.vector_store %arg8[%c0_4, %c0_5, %c0_6], %4 {strides = array<i32>} : memref<18x24x128xf32, #tpu.memory_space<vmem>>, vector<1x24x128xf32>,
    %c17 = arith.constant 17 : index
    %c0_7 = arith.constant 0 : index
    %c0_8 = arith.constant 0 : index
    %6 = vector.load %arg8[%c17, %c0_7, %c0_8] : memref<18x24x128xf32, #tpu.memory_space<vmem>>, vector<1x24x128xf32>
    tpu.vector_store %arg8[%c17, %c0_7, %c0_8], %4 {strides = array<i32>} : memref<18x24x128xf32, #tpu.memory_space<vmem>>, vector<1x24x128xf32>,
    %cst_9 = arith.constant 0.000000e+00 : f32
    %7 = vector.broadcast %cst_9 : f32 to vector<16x1x128xf32>
    %c1 = arith.constant 1 : index
    %c0_10 = arith.constant 0 : index
    %c0_11 = arith.constant 0 : index
    %8 = vector.load %arg8[%c1, %c0_10, %c0_11] : memref<18x24x128xf32, #tpu.memory_space<vmem>>, vector<16x1x128xf32>
    tpu.vector_store %arg8[%c1, %c0_10, %c0_11], %7 {strides = array<i32>} : memref<18x24x128xf32, #tpu.memory_space<vmem>>, vector<16x1x128xf32>,
    %cst_12 = arith.constant 0.000000e+00 : f32
    %9 = vector.broadcast %cst_12 : f32 to vector<16x7x128xf32>
    %c1_13 = arith.constant 1 : index
    %c17_14 = arith.constant 17 : index
    %c0_15 = arith.constant 0 : index
    %10 = vector.load %arg8[%c1_13, %c17_14, %c0_15] : memref<18x24x128xf32, #tpu.memory_space<vmem>>, vector<16x7x128xf32>
    tpu.vector_store %arg8[%c1_13, %c17_14, %c0_15], %9 {strides = array<i32>} : memref<18x24x128xf32, #tpu.memory_space<vmem>>, vector<16x7x128xf32>,
    %c1_16 = arith.constant 1 : index
    %c1_17 = arith.constant 1 : index
    %c0_18 = arith.constant 0 : index
    %11 = vector.load %arg8[%c1_16, %c1_17, %c0_18] : memref<18x24x128xf32, #tpu.memory_space<vmem>>, vector<16x16x128xf32>
    tpu.vector_store %arg8[%c1_16, %c1_17, %c0_18], %3 {strides = array<i32>} : memref<18x24x128xf32, #tpu.memory_space<vmem>>, vector<16x16x128xf32>,
    %cst_19 = arith.constant 0.000000e+00 : f32
    %12 = vector.broadcast %cst_19 : f32 to vector<256x128xf32>
    %c0_20 = arith.constant 0 : index
    %c0_21 = arith.constant 0 : index
    %c0_22 = arith.constant 0 : index
    %13 = vector.load %arg8[%c0_20, %c0_21, %c0_22] : memref<18x24x128xf32, #tpu.memory_space<vmem>>, vector<16x16x128xf32>
    %14 = vector.shape_cast %13 : vector<16x16x128xf32> to vector<256x128xf32>
    %15 = arith.truncf %14 : vector<256x128xf32> to vector<256x128xbf16>
    %c0_23 = arith.constant 0 : index
    %c0_24 = arith.constant 0 : index
    %c0_25 = arith.constant 0 : index
    %16 = vector.load %arg2[%c0_23, %c0_24, %c0_25] : memref<9x128x128xbf16, #tpu.memory_space<vmem>>, vector<1x128x128xbf16>
    %17 = vector.shape_cast %16 : vector<1x128x128xbf16> to vector<128x128xbf16>
    %cst_26 = arith.constant dense<0.000000e+00> : vector<256x128xf32>
    %18 = tpu.matmul %15, %17, %cst_26 {dimension_numbers = #tpu.dot_dimension_numbers<[1], [0], [0], [1], [0, 0, 1, 1], [], []>} : vector<256x128xbf16>, vector<128x128xbf16>, vector<256x128xf32> -> vector<256x128xf32>
    %19 = arith.addf %12, %18 : vector<256x128xf32>
    %c0_27 = arith.constant 0 : index
    %c1_28 = arith.constant 1 : index
    %c0_29 = arith.constant 0 : index
    %20 = vector.load %arg8[%c0_27, %c1_28, %c0_29] : memref<18x24x128xf32, #tpu.memory_space<vmem>>, vector<16x16x128xf32>
    %21 = vector.shape_cast %20 : vector<16x16x128xf32> to vector<256x128xf32>
    %22 = arith.truncf %21 : vector<256x128xf32> to vector<256x128xbf16>
    %c1_30 = arith.constant 1 : index
    %c0_31 = arith.constant 0 : index
    %c0_32 = arith.constant 0 : index
    %23 = vector.load %arg2[%c1_30, %c0_31, %c0_32] : memref<9x128x128xbf16, #tpu.memory_space<vmem>>, vector<1x128x128xbf16>
    %24 = vector.shape_cast %23 : vector<1x128x128xbf16> to vector<128x128xbf16>
    %cst_33 = arith.constant dense<0.000000e+00> : vector<256x128xf32>
    %25 = tpu.matmul %22, %24, %cst_33 {dimension_numbers = #tpu.dot_dimension_numbers<[1], [0], [0], [1], [0, 0, 1, 1], [], []>} : vector<256x128xbf16>, vector<128x128xbf16>, vector<256x128xf32> -> vector<256x128xf32>
    %26 = arith.addf %19, %25 : vector<256x128xf32>
    %c0_34 = arith.constant 0 : index
    %c2 = arith.constant 2 : index
    %c0_35 = arith.constant 0 : index
    %27 = vector.load %arg8[%c0_34, %c2, %c0_35] : memref<18x24x128xf32, #tpu.memory_space<vmem>>, vector<16x16x128xf32>
    %28 = vector.shape_cast %27 : vector<16x16x128xf32> to vector<256x128xf32>
    %29 = arith.truncf %28 : vector<256x128xf32> to vector<256x128xbf16>
    %c2_36 = arith.constant 2 : index
    %c0_37 = arith.constant 0 : index
    %c0_38 = arith.constant 0 : index
    %30 = vector.load %arg2[%c2_36, %c0_37, %c0_38] : memref<9x128x128xbf16, #tpu.memory_space<vmem>>, vector<1x128x128xbf16>
    %31 = vector.shape_cast %30 : vector<1x128x128xbf16> to vector<128x128xbf16>
    %cst_39 = arith.constant dense<0.000000e+00> : vector<256x128xf32>
    %32 = tpu.matmul %29, %31, %cst_39 {dimension_numbers = #tpu.dot_dimension_numbers<[1], [0], [0], [1], [0, 0, 1, 1], [], []>} : vector<256x128xbf16>, vector<128x128xbf16>, vector<256x128xf32> -> vector<256x128xf32>
    %33 = arith.addf %26, %32 : vector<256x128xf32>
    %c1_40 = arith.constant 1 : index
    %c0_41 = arith.constant 0 : index
    %c0_42 = arith.constant 0 : index
    %34 = vector.load %arg8[%c1_40, %c0_41, %c0_42] : memref<18x24x128xf32, #tpu.memory_space<vmem>>, vector<16x16x128xf32>
    %35 = vector.shape_cast %34 : vector<16x16x128xf32> to vector<256x128xf32>
    %36 = arith.truncf %35 : vector<256x128xf32> to vector<256x128xbf16>
    %c3 = arith.constant 3 : index
    %c0_43 = arith.constant 0 : index
    %c0_44 = arith.constant 0 : index
    %37 = vector.load %arg2[%c3, %c0_43, %c0_44] : memref<9x128x128xbf16, #tpu.memory_space<vmem>>, vector<1x128x128xbf16>
    %38 = vector.shape_cast %37 : vector<1x128x128xbf16> to vector<128x128xbf16>
    %cst_45 = arith.constant dense<0.000000e+00> : vector<256x128xf32>
    %39 = tpu.matmul %36, %38, %cst_45 {dimension_numbers = #tpu.dot_dimension_numbers<[1], [0], [0], [1], [0, 0, 1, 1], [], []>} : vector<256x128xbf16>, vector<128x128xbf16>, vector<256x128xf32> -> vector<256x128xf32>
    %40 = arith.addf %33, %39 : vector<256x128xf32>
    %c1_46 = arith.constant 1 : index
    %c1_47 = arith.constant 1 : index
    %c0_48 = arith.constant 0 : index
    %41 = vector.load %arg8[%c1_46, %c1_47, %c0_48] : memref<18x24x128xf32, #tpu.memory_space<vmem>>, vector<16x16x128xf32>
    %42 = vector.shape_cast %41 : vector<16x16x128xf32> to vector<256x128xf32>
    %43 = arith.truncf %42 : vector<256x128xf32> to vector<256x128xbf16>
    %c4 = arith.constant 4 : index
    %c0_49 = arith.constant 0 : index
    %c0_50 = arith.constant 0 : index
    %44 = vector.load %arg2[%c4, %c0_49, %c0_50] : memref<9x128x128xbf16, #tpu.memory_space<vmem>>, vector<1x128x128xbf16>
    %45 = vector.shape_cast %44 : vector<1x128x128xbf16> to vector<128x128xbf16>
    %cst_51 = arith.constant dense<0.000000e+00> : vector<256x128xf32>
    %46 = tpu.matmul %43, %45, %cst_51 {dimension_numbers = #tpu.dot_dimension_numbers<[1], [0], [0], [1], [0, 0, 1, 1], [], []>} : vector<256x128xbf16>, vector<128x128xbf16>, vector<256x128xf32> -> vector<256x128xf32>
    %47 = arith.addf %40, %46 : vector<256x128xf32>
    %c1_52 = arith.constant 1 : index
    %c2_53 = arith.constant 2 : index
    %c0_54 = arith.constant 0 : index
    %48 = vector.load %arg8[%c1_52, %c2_53, %c0_54] : memref<18x24x128xf32, #tpu.memory_space<vmem>>, vector<16x16x128xf32>
    %49 = vector.shape_cast %48 : vector<16x16x128xf32> to vector<256x128xf32>
    %50 = arith.truncf %49 : vector<256x128xf32> to vector<256x128xbf16>
    %c5 = arith.constant 5 : index
    %c0_55 = arith.constant 0 : index
    %c0_56 = arith.constant 0 : index
    %51 = vector.load %arg2[%c5, %c0_55, %c0_56] : memref<9x128x128xbf16, #tpu.memory_space<vmem>>, vector<1x128x128xbf16>
    %52 = vector.shape_cast %51 : vector<1x128x128xbf16> to vector<128x128xbf16>
    %cst_57 = arith.constant dense<0.000000e+00> : vector<256x128xf32>
    %53 = tpu.matmul %50, %52, %cst_57 {dimension_numbers = #tpu.dot_dimension_numbers<[1], [0], [0], [1], [0, 0, 1, 1], [], []>} : vector<256x128xbf16>, vector<128x128xbf16>, vector<256x128xf32> -> vector<256x128xf32>
    %54 = arith.addf %47, %53 : vector<256x128xf32>
    %c2_58 = arith.constant 2 : index
    %c0_59 = arith.constant 0 : index
    %c0_60 = arith.constant 0 : index
    %55 = vector.load %arg8[%c2_58, %c0_59, %c0_60] : memref<18x24x128xf32, #tpu.memory_space<vmem>>, vector<16x16x128xf32>
    %56 = vector.shape_cast %55 : vector<16x16x128xf32> to vector<256x128xf32>
    %57 = arith.truncf %56 : vector<256x128xf32> to vector<256x128xbf16>
    %c6 = arith.constant 6 : index
    %c0_61 = arith.constant 0 : index
    %c0_62 = arith.constant 0 : index
    %58 = vector.load %arg2[%c6, %c0_61, %c0_62] : memref<9x128x128xbf16, #tpu.memory_space<vmem>>, vector<1x128x128xbf16>
    %59 = vector.shape_cast %58 : vector<1x128x128xbf16> to vector<128x128xbf16>
    %cst_63 = arith.constant dense<0.000000e+00> : vector<256x128xf32>
    %60 = tpu.matmul %57, %59, %cst_63 {dimension_numbers = #tpu.dot_dimension_numbers<[1], [0], [0], [1], [0, 0, 1, 1], [], []>} : vector<256x128xbf16>, vector<128x128xbf16>, vector<256x128xf32> -> vector<256x128xf32>
    %61 = arith.addf %54, %60 : vector<256x128xf32>
    %c2_64 = arith.constant 2 : index
    %c1_65 = arith.constant 1 : index
    %c0_66 = arith.constant 0 : index
    %62 = vector.load %arg8[%c2_64, %c1_65, %c0_66] : memref<18x24x128xf32, #tpu.memory_space<vmem>>, vector<16x16x128xf32>
    %63 = vector.shape_cast %62 : vector<16x16x128xf32> to vector<256x128xf32>
    %64 = arith.truncf %63 : vector<256x128xf32> to vector<256x128xbf16>
    %c7 = arith.constant 7 : index
    %c0_67 = arith.constant 0 : index
    %c0_68 = arith.constant 0 : index
    %65 = vector.load %arg2[%c7, %c0_67, %c0_68] : memref<9x128x128xbf16, #tpu.memory_space<vmem>>, vector<1x128x128xbf16>
    %66 = vector.shape_cast %65 : vector<1x128x128xbf16> to vector<128x128xbf16>
    %cst_69 = arith.constant dense<0.000000e+00> : vector<256x128xf32>
    %67 = tpu.matmul %64, %66, %cst_69 {dimension_numbers = #tpu.dot_dimension_numbers<[1], [0], [0], [1], [0, 0, 1, 1], [], []>} : vector<256x128xbf16>, vector<128x128xbf16>, vector<256x128xf32> -> vector<256x128xf32>
    %68 = arith.addf %61, %67 : vector<256x128xf32>
    %c2_70 = arith.constant 2 : index
    %c2_71 = arith.constant 2 : index
    %c0_72 = arith.constant 0 : index
    %69 = vector.load %arg8[%c2_70, %c2_71, %c0_72] : memref<18x24x128xf32, #tpu.memory_space<vmem>>, vector<16x16x128xf32>
    %70 = vector.shape_cast %69 : vector<16x16x128xf32> to vector<256x128xf32>
    %71 = arith.truncf %70 : vector<256x128xf32> to vector<256x128xbf16>
    %c8 = arith.constant 8 : index
    %c0_73 = arith.constant 0 : index
    %c0_74 = arith.constant 0 : index
    %72 = vector.load %arg2[%c8, %c0_73, %c0_74] : memref<9x128x128xbf16, #tpu.memory_space<vmem>>, vector<1x128x128xbf16>
    %73 = vector.shape_cast %72 : vector<1x128x128xbf16> to vector<128x128xbf16>
    %cst_75 = arith.constant dense<0.000000e+00> : vector<256x128xf32>
    %74 = tpu.matmul %71, %73, %cst_75 {dimension_numbers = #tpu.dot_dimension_numbers<[1], [0], [0], [1], [0, 0, 1, 1], [], []>} : vector<256x128xbf16>, vector<128x128xbf16>, vector<256x128xf32> -> vector<256x128xf32>
    %75 = arith.addf %68, %74 : vector<256x128xf32>
    %76 = vector.shape_cast %75 : vector<256x128xf32> to vector<1x16x16x128xf32>
    %c0_76 = arith.constant 0 : index
    %c0_77 = arith.constant 0 : index
    %c0_78 = arith.constant 0 : index
    %c0_79 = arith.constant 0 : index
    %77 = vector.load %arg4[%c0_76, %c0_77, %c0_78, %c0_79] : memref<1x16x16x128xf32, #tpu.memory_space<vmem>>, vector<1x16x16x128xf32>
    tpu.vector_store %arg4[%c0_76, %c0_77, %c0_78, %c0_79], %76 {strides = array<i32>} : memref<1x16x16x128xf32, #tpu.memory_space<vmem>>, vector<1x16x16x128xf32>,
    %cst_80 = arith.constant dense<0.000000e+00> : vector<128xf32>
    %78 = vector.multi_reduction <add>, %75, %cst_80 [0] : vector<256x128xf32> to vector<128xf32>
    %79 = vector.shape_cast %78 : vector<128xf32> to vector<1x128xf32>
    %80 = vector.shape_cast %79 : vector<1x128xf32> to vector<1x1x128xf32>
    %c0_81 = arith.constant 0 : index
    %c0_82 = arith.constant 0 : index
    %c0_83 = arith.constant 0 : index
    %81 = vector.load %arg6[%c0_81, %c0_82, %c0_83] : memref<1x2x128xf32, #tpu.memory_space<vmem>>, vector<1x1x128xf32>
    tpu.vector_store %arg6[%c0_81, %c0_82, %c0_83], %80 {strides = array<i32>} : memref<1x2x128xf32, #tpu.memory_space<vmem>>, vector<1x1x128xf32>,
    %82 = arith.mulf %75, %75 : vector<256x128xf32>
    %cst_84 = arith.constant dense<0.000000e+00> : vector<128xf32>
    %83 = vector.multi_reduction <add>, %82, %cst_84 [0] : vector<256x128xf32> to vector<128xf32>
    %84 = vector.shape_cast %83 : vector<128xf32> to vector<1x128xf32>
    %85 = vector.shape_cast %84 : vector<1x128xf32> to vector<1x1x128xf32>
    %c0_85 = arith.constant 0 : index
    %c1_86 = arith.constant 1 : index
    %c0_87 = arith.constant 0 : index
    %86 = vector.load %arg6[%c0_85, %c1_86, %c0_87] : memref<1x2x128xf32, #tpu.memory_space<vmem>>, vector<1x1x128xf32>
    tpu.vector_store %arg6[%c0_85, %c1_86, %c0_87], %85 {strides = array<i32>} : memref<1x2x128xf32, #tpu.memory_space<vmem>>, vector<1x1x128xf32>,
    %c1_88 = arith.constant 1 : index
    %c1_89 = arith.constant 1 : index
    %c0_90 = arith.constant 0 : index
    %87 = vector.load %arg8[%c1_88, %c1_89, %c0_90] : memref<18x24x128xf32, #tpu.memory_space<vmem>>, vector<16x16x128xf32>
    %88 = vector.shape_cast %87 : vector<16x16x128xf32> to vector<256x128xf32>
    %89 = arith.truncf %88 : vector<256x128xf32> to vector<256x128xbf16>
    %c0_91 = arith.constant 0 : index
    %c0_92 = arith.constant 0 : index
    %90 = vector.load %arg3[%c0_91, %c0_92] : memref<128x128xbf16, #tpu.memory_space<vmem>>, vector<128x128xbf16>
    %cst_93 = arith.constant dense<0.000000e+00> : vector<256x128xf32>
    %91 = tpu.matmul %89, %90, %cst_93 {dimension_numbers = #tpu.dot_dimension_numbers<[1], [0], [0], [1], [0, 0, 1, 1], [], []>} : vector<256x128xbf16>, vector<128x128xbf16>, vector<256x128xf32> -> vector<256x128xf32>
    %92 = vector.shape_cast %91 : vector<256x128xf32> to vector<1x16x16x128xf32>
    %c0_94 = arith.constant 0 : index
    %c0_95 = arith.constant 0 : index
    %c0_96 = arith.constant 0 : index
    %c0_97 = arith.constant 0 : index
    %93 = vector.load %arg5[%c0_94, %c0_95, %c0_96, %c0_97] : memref<1x16x16x128xf32, #tpu.memory_space<vmem>>, vector<1x16x16x128xf32>
    tpu.vector_store %arg5[%c0_94, %c0_95, %c0_96, %c0_97], %92 {strides = array<i32>} : memref<1x16x16x128xf32, #tpu.memory_space<vmem>>, vector<1x16x16x128xf32>,
    %cst_98 = arith.constant dense<0.000000e+00> : vector<128xf32>
    %94 = vector.multi_reduction <add>, %91, %cst_98 [0] : vector<256x128xf32> to vector<128xf32>
    %95 = vector.shape_cast %94 : vector<128xf32> to vector<1x128xf32>
    %96 = vector.shape_cast %95 : vector<1x128xf32> to vector<1x1x128xf32>
    %c0_99 = arith.constant 0 : index
    %c0_100 = arith.constant 0 : index
    %c0_101 = arith.constant 0 : index
    %97 = vector.load %arg7[%c0_99, %c0_100, %c0_101] : memref<1x2x128xf32, #tpu.memory_space<vmem>>, vector<1x1x128xf32>
    tpu.vector_store %arg7[%c0_99, %c0_100, %c0_101], %96 {strides = array<i32>} : memref<1x2x128xf32, #tpu.memory_space<vmem>>, vector<1x1x128xf32>,
    %98 = arith.mulf %91, %91 : vector<256x128xf32>
    %cst_102 = arith.constant dense<0.000000e+00> : vector<128xf32>
    %99 = vector.multi_reduction <add>, %98, %cst_102 [0] : vector<256x128xf32> to vector<128xf32>
    %100 = vector.shape_cast %99 : vector<128xf32> to vector<1x128xf32>
    %101 = vector.shape_cast %100 : vector<1x128xf32> to vector<1x1x128xf32>
    %c0_103 = arith.constant 0 : index
    %c1_104 = arith.constant 1 : index
    %c0_105 = arith.constant 0 : index
    %102 = vector.load %arg7[%c0_103, %c1_104, %c0_105] : memref<1x2x128xf32, #tpu.memory_space<vmem>>, vector<1x1x128xf32>
    tpu.vector_store %arg7[%c0_103, %c1_104, %c0_105], %101 {strides = array<i32>} : memref<1x2x128xf32, #tpu.memory_space<vmem>>, vector<1x1x128xf32>,
    return
  }
  func.func @transform_0(%arg0: i32) -> (i32, i32, i32, i32) {
    %c0_i32 = arith.constant 0 : i32
    %c0_i32_0 = arith.constant 0 : i32
    %c0_i32_1 = arith.constant 0 : i32
    %c0_i32_2 = arith.constant 0 : i32
    return %arg0, %c0_i32, %c0_i32_0, %c0_i32_1 : i32, i32, i32, i32
  }
  func.func @transform_1(%arg0: i32) -> (i32, i32, i32) {
    %c0_i32 = arith.constant 0 : i32
    %c0_i32_0 = arith.constant 0 : i32
    %c0_i32_1 = arith.constant 0 : i32
    %c0_i32_2 = arith.constant 0 : i32
    return %c0_i32, %c0_i32_0, %c0_i32_1 : i32, i32, i32
  }
  func.func @transform_2(%arg0: i32) -> (i32, i32) {
    %c0_i32 = arith.constant 0 : i32
    %c0_i32_0 = arith.constant 0 : i32
    %c0_i32_1 = arith.constant 0 : i32
    return %c0_i32, %c0_i32_0 : i32, i32
  }
  func.func @transform_3(%arg0: i32) -> (i32, i32, i32, i32) {
    %c0_i32 = arith.constant 0 : i32
    %c0_i32_0 = arith.constant 0 : i32
    %c0_i32_1 = arith.constant 0 : i32
    %c0_i32_2 = arith.constant 0 : i32
    return %arg0, %c0_i32, %c0_i32_0, %c0_i32_1 : i32, i32, i32, i32
  }
  func.func @transform_4(%arg0: i32) -> (i32, i32, i32, i32) {
    %c0_i32 = arith.constant 0 : i32
    %c0_i32_0 = arith.constant 0 : i32
    %c0_i32_1 = arith.constant 0 : i32
    %c0_i32_2 = arith.constant 0 : i32
    return %arg0, %c0_i32, %c0_i32_0, %c0_i32_1 : i32, i32, i32, i32
  }
  func.func @transform_5(%arg0: i32) -> (i32, i32, i32) {
    %c0_i32 = arith.constant 0 : i32
    %c0_i32_0 = arith.constant 0 : i32
    %c0_i32_1 = arith.constant 0 : i32
    return %arg0, %c0_i32, %c0_i32_0 : i32, i32, i32
  }
  func.func @transform_6(%arg0: i32) -> (i32, i32, i32) {
    %c0_i32 = arith.constant 0 : i32
    %c0_i32_0 = arith.constant 0 : i32
    %c0_i32_1 = arith.constant 0 : i32
    return %arg0, %c0_i32, %c0_i32_0 : i32, i32, i32
  }
}

module attributes {stable_mosaic.version = 11 : i64} {
  func.func @kernel(%arg0: i32, %arg1: memref<1x16x16x128xf32, #tpu.memory_space<vmem>>, %arg2: memref<1x128xf32, #tpu.memory_space<vmem>>, %arg3: memref<1x128xf32, #tpu.memory_space<vmem>>, %arg4: memref<9x128x128xbf16, #tpu.memory_space<vmem>>, %arg5: memref<1x16x16x128xf32, #tpu.memory_space<vmem>>, %arg6: memref<1x2x128xf32, #tpu.memory_space<vmem>>, %arg7: memref<18x24x128xf32, #tpu.memory_space<vmem>>) attributes {dimension_semantics = [#tpu.dimension_semantics<parallel>], iteration_bounds = array<i64: 2>, scalar_prefetch = 0 : i64, scratch_operands = 1 : i64, tpu.core_type = #tpu.core_type<tc>, window_params = [{transform_indices = @transform_0, window_bounds = array<i64: 1, 16, 16, 128>}, {pipeline_mode = #tpu.pipeline_mode<synchronous>, transform_indices = @transform_1, window_bounds = array<i64: 1, 128>}, {pipeline_mode = #tpu.pipeline_mode<synchronous>, transform_indices = @transform_2, window_bounds = array<i64: 1, 128>}, {pipeline_mode = #tpu.pipeline_mode<synchronous>, transform_indices = @transform_3, window_bounds = array<i64: 9, 128, 128>}, {transform_indices = @transform_4, window_bounds = array<i64: 1, 16, 16, 128>}, {transform_indices = @transform_5, window_bounds = array<i64: 1, 2, 128>}]} {
    %c0 = arith.constant 0 : index
    %c0_0 = arith.constant 0 : index
    %c0_1 = arith.constant 0 : index
    %c0_2 = arith.constant 0 : index
    %0 = vector.load %arg1[%c0, %c0_0, %c0_1, %c0_2] : memref<1x16x16x128xf32, #tpu.memory_space<vmem>>, vector<1x16x16x128xf32>
    %1 = vector.shape_cast %0 : vector<1x16x16x128xf32> to vector<16x16x128xf32>
    %c0_3 = arith.constant 0 : index
    %c0_4 = arith.constant 0 : index
    %2 = vector.load %arg2[%c0_3, %c0_4] : memref<1x128xf32, #tpu.memory_space<vmem>>, vector<1x128xf32>
    %3 = vector.shape_cast %2 : vector<1x128xf32> to vector<128xf32>
    %4 = vector.shape_cast %3 : vector<128xf32> to vector<1x1x128xf32>
    %5 = vector.broadcast %4 : vector<1x1x128xf32> to vector<16x16x128xf32>
    %6 = arith.mulf %1, %5 : vector<16x16x128xf32>
    %c0_5 = arith.constant 0 : index
    %c0_6 = arith.constant 0 : index
    %7 = vector.load %arg3[%c0_5, %c0_6] : memref<1x128xf32, #tpu.memory_space<vmem>>, vector<1x128xf32>
    %8 = vector.shape_cast %7 : vector<1x128xf32> to vector<128xf32>
    %9 = vector.shape_cast %8 : vector<128xf32> to vector<1x1x128xf32>
    %10 = vector.broadcast %9 : vector<1x1x128xf32> to vector<16x16x128xf32>
    %11 = arith.addf %6, %10 : vector<16x16x128xf32>
    %cst = arith.constant 0.000000e+00 : f32
    %12 = vector.broadcast %cst : f32 to vector<16x16x128xf32>
    %13 = arith.maximumf %11, %12 : vector<16x16x128xf32>
    %cst_7 = arith.constant 0.000000e+00 : f32
    %14 = vector.broadcast %cst_7 : f32 to vector<1x24x128xf32>
    %c0_8 = arith.constant 0 : index
    %c0_9 = arith.constant 0 : index
    %c0_10 = arith.constant 0 : index
    %15 = vector.load %arg7[%c0_8, %c0_9, %c0_10] : memref<18x24x128xf32, #tpu.memory_space<vmem>>, vector<1x24x128xf32>
    tpu.vector_store %arg7[%c0_8, %c0_9, %c0_10], %14 {strides = array<i32>} : memref<18x24x128xf32, #tpu.memory_space<vmem>>, vector<1x24x128xf32>,
    %c17 = arith.constant 17 : index
    %c0_11 = arith.constant 0 : index
    %c0_12 = arith.constant 0 : index
    %16 = vector.load %arg7[%c17, %c0_11, %c0_12] : memref<18x24x128xf32, #tpu.memory_space<vmem>>, vector<1x24x128xf32>
    tpu.vector_store %arg7[%c17, %c0_11, %c0_12], %14 {strides = array<i32>} : memref<18x24x128xf32, #tpu.memory_space<vmem>>, vector<1x24x128xf32>,
    %cst_13 = arith.constant 0.000000e+00 : f32
    %17 = vector.broadcast %cst_13 : f32 to vector<16x1x128xf32>
    %c1 = arith.constant 1 : index
    %c0_14 = arith.constant 0 : index
    %c0_15 = arith.constant 0 : index
    %18 = vector.load %arg7[%c1, %c0_14, %c0_15] : memref<18x24x128xf32, #tpu.memory_space<vmem>>, vector<16x1x128xf32>
    tpu.vector_store %arg7[%c1, %c0_14, %c0_15], %17 {strides = array<i32>} : memref<18x24x128xf32, #tpu.memory_space<vmem>>, vector<16x1x128xf32>,
    %cst_16 = arith.constant 0.000000e+00 : f32
    %19 = vector.broadcast %cst_16 : f32 to vector<16x7x128xf32>
    %c1_17 = arith.constant 1 : index
    %c17_18 = arith.constant 17 : index
    %c0_19 = arith.constant 0 : index
    %20 = vector.load %arg7[%c1_17, %c17_18, %c0_19] : memref<18x24x128xf32, #tpu.memory_space<vmem>>, vector<16x7x128xf32>
    tpu.vector_store %arg7[%c1_17, %c17_18, %c0_19], %19 {strides = array<i32>} : memref<18x24x128xf32, #tpu.memory_space<vmem>>, vector<16x7x128xf32>,
    %c1_20 = arith.constant 1 : index
    %c1_21 = arith.constant 1 : index
    %c0_22 = arith.constant 0 : index
    %21 = vector.load %arg7[%c1_20, %c1_21, %c0_22] : memref<18x24x128xf32, #tpu.memory_space<vmem>>, vector<16x16x128xf32>
    tpu.vector_store %arg7[%c1_20, %c1_21, %c0_22], %13 {strides = array<i32>} : memref<18x24x128xf32, #tpu.memory_space<vmem>>, vector<16x16x128xf32>,
    %cst_23 = arith.constant 0.000000e+00 : f32
    %22 = vector.broadcast %cst_23 : f32 to vector<256x128xf32>
    %c0_24 = arith.constant 0 : index
    %c0_25 = arith.constant 0 : index
    %c0_26 = arith.constant 0 : index
    %23 = vector.load %arg7[%c0_24, %c0_25, %c0_26] : memref<18x24x128xf32, #tpu.memory_space<vmem>>, vector<16x16x128xf32>
    %24 = vector.shape_cast %23 : vector<16x16x128xf32> to vector<256x128xf32>
    %25 = arith.truncf %24 : vector<256x128xf32> to vector<256x128xbf16>
    %c0_27 = arith.constant 0 : index
    %c0_28 = arith.constant 0 : index
    %c0_29 = arith.constant 0 : index
    %26 = vector.load %arg4[%c0_27, %c0_28, %c0_29] : memref<9x128x128xbf16, #tpu.memory_space<vmem>>, vector<1x128x128xbf16>
    %27 = vector.shape_cast %26 : vector<1x128x128xbf16> to vector<128x128xbf16>
    %cst_30 = arith.constant dense<0.000000e+00> : vector<256x128xf32>
    %28 = tpu.matmul %25, %27, %cst_30 {dimension_numbers = #tpu.dot_dimension_numbers<[1], [0], [0], [1], [0, 0, 1, 1], [], []>} : vector<256x128xbf16>, vector<128x128xbf16>, vector<256x128xf32> -> vector<256x128xf32>
    %29 = arith.addf %22, %28 : vector<256x128xf32>
    %c0_31 = arith.constant 0 : index
    %c1_32 = arith.constant 1 : index
    %c0_33 = arith.constant 0 : index
    %30 = vector.load %arg7[%c0_31, %c1_32, %c0_33] : memref<18x24x128xf32, #tpu.memory_space<vmem>>, vector<16x16x128xf32>
    %31 = vector.shape_cast %30 : vector<16x16x128xf32> to vector<256x128xf32>
    %32 = arith.truncf %31 : vector<256x128xf32> to vector<256x128xbf16>
    %c1_34 = arith.constant 1 : index
    %c0_35 = arith.constant 0 : index
    %c0_36 = arith.constant 0 : index
    %33 = vector.load %arg4[%c1_34, %c0_35, %c0_36] : memref<9x128x128xbf16, #tpu.memory_space<vmem>>, vector<1x128x128xbf16>
    %34 = vector.shape_cast %33 : vector<1x128x128xbf16> to vector<128x128xbf16>
    %cst_37 = arith.constant dense<0.000000e+00> : vector<256x128xf32>
    %35 = tpu.matmul %32, %34, %cst_37 {dimension_numbers = #tpu.dot_dimension_numbers<[1], [0], [0], [1], [0, 0, 1, 1], [], []>} : vector<256x128xbf16>, vector<128x128xbf16>, vector<256x128xf32> -> vector<256x128xf32>
    %36 = arith.addf %29, %35 : vector<256x128xf32>
    %c0_38 = arith.constant 0 : index
    %c2 = arith.constant 2 : index
    %c0_39 = arith.constant 0 : index
    %37 = vector.load %arg7[%c0_38, %c2, %c0_39] : memref<18x24x128xf32, #tpu.memory_space<vmem>>, vector<16x16x128xf32>
    %38 = vector.shape_cast %37 : vector<16x16x128xf32> to vector<256x128xf32>
    %39 = arith.truncf %38 : vector<256x128xf32> to vector<256x128xbf16>
    %c2_40 = arith.constant 2 : index
    %c0_41 = arith.constant 0 : index
    %c0_42 = arith.constant 0 : index
    %40 = vector.load %arg4[%c2_40, %c0_41, %c0_42] : memref<9x128x128xbf16, #tpu.memory_space<vmem>>, vector<1x128x128xbf16>
    %41 = vector.shape_cast %40 : vector<1x128x128xbf16> to vector<128x128xbf16>
    %cst_43 = arith.constant dense<0.000000e+00> : vector<256x128xf32>
    %42 = tpu.matmul %39, %41, %cst_43 {dimension_numbers = #tpu.dot_dimension_numbers<[1], [0], [0], [1], [0, 0, 1, 1], [], []>} : vector<256x128xbf16>, vector<128x128xbf16>, vector<256x128xf32> -> vector<256x128xf32>
    %43 = arith.addf %36, %42 : vector<256x128xf32>
    %c1_44 = arith.constant 1 : index
    %c0_45 = arith.constant 0 : index
    %c0_46 = arith.constant 0 : index
    %44 = vector.load %arg7[%c1_44, %c0_45, %c0_46] : memref<18x24x128xf32, #tpu.memory_space<vmem>>, vector<16x16x128xf32>
    %45 = vector.shape_cast %44 : vector<16x16x128xf32> to vector<256x128xf32>
    %46 = arith.truncf %45 : vector<256x128xf32> to vector<256x128xbf16>
    %c3 = arith.constant 3 : index
    %c0_47 = arith.constant 0 : index
    %c0_48 = arith.constant 0 : index
    %47 = vector.load %arg4[%c3, %c0_47, %c0_48] : memref<9x128x128xbf16, #tpu.memory_space<vmem>>, vector<1x128x128xbf16>
    %48 = vector.shape_cast %47 : vector<1x128x128xbf16> to vector<128x128xbf16>
    %cst_49 = arith.constant dense<0.000000e+00> : vector<256x128xf32>
    %49 = tpu.matmul %46, %48, %cst_49 {dimension_numbers = #tpu.dot_dimension_numbers<[1], [0], [0], [1], [0, 0, 1, 1], [], []>} : vector<256x128xbf16>, vector<128x128xbf16>, vector<256x128xf32> -> vector<256x128xf32>
    %50 = arith.addf %43, %49 : vector<256x128xf32>
    %c1_50 = arith.constant 1 : index
    %c1_51 = arith.constant 1 : index
    %c0_52 = arith.constant 0 : index
    %51 = vector.load %arg7[%c1_50, %c1_51, %c0_52] : memref<18x24x128xf32, #tpu.memory_space<vmem>>, vector<16x16x128xf32>
    %52 = vector.shape_cast %51 : vector<16x16x128xf32> to vector<256x128xf32>
    %53 = arith.truncf %52 : vector<256x128xf32> to vector<256x128xbf16>
    %c4 = arith.constant 4 : index
    %c0_53 = arith.constant 0 : index
    %c0_54 = arith.constant 0 : index
    %54 = vector.load %arg4[%c4, %c0_53, %c0_54] : memref<9x128x128xbf16, #tpu.memory_space<vmem>>, vector<1x128x128xbf16>
    %55 = vector.shape_cast %54 : vector<1x128x128xbf16> to vector<128x128xbf16>
    %cst_55 = arith.constant dense<0.000000e+00> : vector<256x128xf32>
    %56 = tpu.matmul %53, %55, %cst_55 {dimension_numbers = #tpu.dot_dimension_numbers<[1], [0], [0], [1], [0, 0, 1, 1], [], []>} : vector<256x128xbf16>, vector<128x128xbf16>, vector<256x128xf32> -> vector<256x128xf32>
    %57 = arith.addf %50, %56 : vector<256x128xf32>
    %c1_56 = arith.constant 1 : index
    %c2_57 = arith.constant 2 : index
    %c0_58 = arith.constant 0 : index
    %58 = vector.load %arg7[%c1_56, %c2_57, %c0_58] : memref<18x24x128xf32, #tpu.memory_space<vmem>>, vector<16x16x128xf32>
    %59 = vector.shape_cast %58 : vector<16x16x128xf32> to vector<256x128xf32>
    %60 = arith.truncf %59 : vector<256x128xf32> to vector<256x128xbf16>
    %c5 = arith.constant 5 : index
    %c0_59 = arith.constant 0 : index
    %c0_60 = arith.constant 0 : index
    %61 = vector.load %arg4[%c5, %c0_59, %c0_60] : memref<9x128x128xbf16, #tpu.memory_space<vmem>>, vector<1x128x128xbf16>
    %62 = vector.shape_cast %61 : vector<1x128x128xbf16> to vector<128x128xbf16>
    %cst_61 = arith.constant dense<0.000000e+00> : vector<256x128xf32>
    %63 = tpu.matmul %60, %62, %cst_61 {dimension_numbers = #tpu.dot_dimension_numbers<[1], [0], [0], [1], [0, 0, 1, 1], [], []>} : vector<256x128xbf16>, vector<128x128xbf16>, vector<256x128xf32> -> vector<256x128xf32>
    %64 = arith.addf %57, %63 : vector<256x128xf32>
    %c2_62 = arith.constant 2 : index
    %c0_63 = arith.constant 0 : index
    %c0_64 = arith.constant 0 : index
    %65 = vector.load %arg7[%c2_62, %c0_63, %c0_64] : memref<18x24x128xf32, #tpu.memory_space<vmem>>, vector<16x16x128xf32>
    %66 = vector.shape_cast %65 : vector<16x16x128xf32> to vector<256x128xf32>
    %67 = arith.truncf %66 : vector<256x128xf32> to vector<256x128xbf16>
    %c6 = arith.constant 6 : index
    %c0_65 = arith.constant 0 : index
    %c0_66 = arith.constant 0 : index
    %68 = vector.load %arg4[%c6, %c0_65, %c0_66] : memref<9x128x128xbf16, #tpu.memory_space<vmem>>, vector<1x128x128xbf16>
    %69 = vector.shape_cast %68 : vector<1x128x128xbf16> to vector<128x128xbf16>
    %cst_67 = arith.constant dense<0.000000e+00> : vector<256x128xf32>
    %70 = tpu.matmul %67, %69, %cst_67 {dimension_numbers = #tpu.dot_dimension_numbers<[1], [0], [0], [1], [0, 0, 1, 1], [], []>} : vector<256x128xbf16>, vector<128x128xbf16>, vector<256x128xf32> -> vector<256x128xf32>
    %71 = arith.addf %64, %70 : vector<256x128xf32>
    %c2_68 = arith.constant 2 : index
    %c1_69 = arith.constant 1 : index
    %c0_70 = arith.constant 0 : index
    %72 = vector.load %arg7[%c2_68, %c1_69, %c0_70] : memref<18x24x128xf32, #tpu.memory_space<vmem>>, vector<16x16x128xf32>
    %73 = vector.shape_cast %72 : vector<16x16x128xf32> to vector<256x128xf32>
    %74 = arith.truncf %73 : vector<256x128xf32> to vector<256x128xbf16>
    %c7 = arith.constant 7 : index
    %c0_71 = arith.constant 0 : index
    %c0_72 = arith.constant 0 : index
    %75 = vector.load %arg4[%c7, %c0_71, %c0_72] : memref<9x128x128xbf16, #tpu.memory_space<vmem>>, vector<1x128x128xbf16>
    %76 = vector.shape_cast %75 : vector<1x128x128xbf16> to vector<128x128xbf16>
    %cst_73 = arith.constant dense<0.000000e+00> : vector<256x128xf32>
    %77 = tpu.matmul %74, %76, %cst_73 {dimension_numbers = #tpu.dot_dimension_numbers<[1], [0], [0], [1], [0, 0, 1, 1], [], []>} : vector<256x128xbf16>, vector<128x128xbf16>, vector<256x128xf32> -> vector<256x128xf32>
    %78 = arith.addf %71, %77 : vector<256x128xf32>
    %c2_74 = arith.constant 2 : index
    %c2_75 = arith.constant 2 : index
    %c0_76 = arith.constant 0 : index
    %79 = vector.load %arg7[%c2_74, %c2_75, %c0_76] : memref<18x24x128xf32, #tpu.memory_space<vmem>>, vector<16x16x128xf32>
    %80 = vector.shape_cast %79 : vector<16x16x128xf32> to vector<256x128xf32>
    %81 = arith.truncf %80 : vector<256x128xf32> to vector<256x128xbf16>
    %c8 = arith.constant 8 : index
    %c0_77 = arith.constant 0 : index
    %c0_78 = arith.constant 0 : index
    %82 = vector.load %arg4[%c8, %c0_77, %c0_78] : memref<9x128x128xbf16, #tpu.memory_space<vmem>>, vector<1x128x128xbf16>
    %83 = vector.shape_cast %82 : vector<1x128x128xbf16> to vector<128x128xbf16>
    %cst_79 = arith.constant dense<0.000000e+00> : vector<256x128xf32>
    %84 = tpu.matmul %81, %83, %cst_79 {dimension_numbers = #tpu.dot_dimension_numbers<[1], [0], [0], [1], [0, 0, 1, 1], [], []>} : vector<256x128xbf16>, vector<128x128xbf16>, vector<256x128xf32> -> vector<256x128xf32>
    %85 = arith.addf %78, %84 : vector<256x128xf32>
    %86 = vector.shape_cast %85 : vector<256x128xf32> to vector<1x16x16x128xf32>
    %c0_80 = arith.constant 0 : index
    %c0_81 = arith.constant 0 : index
    %c0_82 = arith.constant 0 : index
    %c0_83 = arith.constant 0 : index
    %87 = vector.load %arg5[%c0_80, %c0_81, %c0_82, %c0_83] : memref<1x16x16x128xf32, #tpu.memory_space<vmem>>, vector<1x16x16x128xf32>
    tpu.vector_store %arg5[%c0_80, %c0_81, %c0_82, %c0_83], %86 {strides = array<i32>} : memref<1x16x16x128xf32, #tpu.memory_space<vmem>>, vector<1x16x16x128xf32>,
    %cst_84 = arith.constant dense<0.000000e+00> : vector<128xf32>
    %88 = vector.multi_reduction <add>, %85, %cst_84 [0] : vector<256x128xf32> to vector<128xf32>
    %89 = vector.shape_cast %88 : vector<128xf32> to vector<1x128xf32>
    %90 = vector.shape_cast %89 : vector<1x128xf32> to vector<1x1x128xf32>
    %c0_85 = arith.constant 0 : index
    %c0_86 = arith.constant 0 : index
    %c0_87 = arith.constant 0 : index
    %91 = vector.load %arg6[%c0_85, %c0_86, %c0_87] : memref<1x2x128xf32, #tpu.memory_space<vmem>>, vector<1x1x128xf32>
    tpu.vector_store %arg6[%c0_85, %c0_86, %c0_87], %90 {strides = array<i32>} : memref<1x2x128xf32, #tpu.memory_space<vmem>>, vector<1x1x128xf32>,
    %92 = arith.mulf %85, %85 : vector<256x128xf32>
    %cst_88 = arith.constant dense<0.000000e+00> : vector<128xf32>
    %93 = vector.multi_reduction <add>, %92, %cst_88 [0] : vector<256x128xf32> to vector<128xf32>
    %94 = vector.shape_cast %93 : vector<128xf32> to vector<1x128xf32>
    %95 = vector.shape_cast %94 : vector<1x128xf32> to vector<1x1x128xf32>
    %c0_89 = arith.constant 0 : index
    %c1_90 = arith.constant 1 : index
    %c0_91 = arith.constant 0 : index
    %96 = vector.load %arg6[%c0_89, %c1_90, %c0_91] : memref<1x2x128xf32, #tpu.memory_space<vmem>>, vector<1x1x128xf32>
    tpu.vector_store %arg6[%c0_89, %c1_90, %c0_91], %95 {strides = array<i32>} : memref<1x2x128xf32, #tpu.memory_space<vmem>>, vector<1x1x128xf32>,
    return
  }
  func.func @transform_0(%arg0: i32) -> (i32, i32, i32, i32) {
    %c0_i32 = arith.constant 0 : i32
    %c0_i32_0 = arith.constant 0 : i32
    %c0_i32_1 = arith.constant 0 : i32
    %c0_i32_2 = arith.constant 0 : i32
    return %arg0, %c0_i32, %c0_i32_0, %c0_i32_1 : i32, i32, i32, i32
  }
  func.func @transform_1(%arg0: i32) -> (i32, i32) {
    %c0_i32 = arith.constant 0 : i32
    %c0_i32_0 = arith.constant 0 : i32
    %c0_i32_1 = arith.constant 0 : i32
    return %c0_i32, %c0_i32_0 : i32, i32
  }
  func.func @transform_2(%arg0: i32) -> (i32, i32) {
    %c0_i32 = arith.constant 0 : i32
    %c0_i32_0 = arith.constant 0 : i32
    %c0_i32_1 = arith.constant 0 : i32
    return %c0_i32, %c0_i32_0 : i32, i32
  }
  func.func @transform_3(%arg0: i32) -> (i32, i32, i32) {
    %c0_i32 = arith.constant 0 : i32
    %c0_i32_0 = arith.constant 0 : i32
    %c0_i32_1 = arith.constant 0 : i32
    %c0_i32_2 = arith.constant 0 : i32
    return %c0_i32, %c0_i32_0, %c0_i32_1 : i32, i32, i32
  }
  func.func @transform_4(%arg0: i32) -> (i32, i32, i32, i32) {
    %c0_i32 = arith.constant 0 : i32
    %c0_i32_0 = arith.constant 0 : i32
    %c0_i32_1 = arith.constant 0 : i32
    %c0_i32_2 = arith.constant 0 : i32
    return %arg0, %c0_i32, %c0_i32_0, %c0_i32_1 : i32, i32, i32, i32
  }
  func.func @transform_5(%arg0: i32) -> (i32, i32, i32) {
    %c0_i32 = arith.constant 0 : i32
    %c0_i32_0 = arith.constant 0 : i32
    %c0_i32_1 = arith.constant 0 : i32
    return %arg0, %c0_i32, %c0_i32_0 : i32, i32, i32
  }
}

module attributes {stable_mosaic.version = 11 : i64} {
  func.func @kernel(%arg0: i32, %arg1: memref<1x16x16x128xf32, #tpu.memory_space<vmem>>, %arg2: memref<1x128xf32, #tpu.memory_space<vmem>>, %arg3: memref<1x128xf32, #tpu.memory_space<vmem>>, %arg4: memref<1x16x16x128xf32, #tpu.memory_space<vmem>>, %arg5: memref<1x128xf32, #tpu.memory_space<vmem>>, %arg6: memref<1x128xf32, #tpu.memory_space<vmem>>, %arg7: memref<1x16x16x128xf32, #tpu.memory_space<vmem>>) attributes {dimension_semantics = [#tpu.dimension_semantics<parallel>], iteration_bounds = array<i64: 2>, scalar_prefetch = 0 : i64, scratch_operands = 0 : i64, tpu.core_type = #tpu.core_type<tc>, window_params = [{transform_indices = @transform_0, window_bounds = array<i64: 1, 16, 16, 128>}, {pipeline_mode = #tpu.pipeline_mode<synchronous>, transform_indices = @transform_1, window_bounds = array<i64: 1, 128>}, {pipeline_mode = #tpu.pipeline_mode<synchronous>, transform_indices = @transform_2, window_bounds = array<i64: 1, 128>}, {transform_indices = @transform_3, window_bounds = array<i64: 1, 16, 16, 128>}, {pipeline_mode = #tpu.pipeline_mode<synchronous>, transform_indices = @transform_4, window_bounds = array<i64: 1, 128>}, {pipeline_mode = #tpu.pipeline_mode<synchronous>, transform_indices = @transform_5, window_bounds = array<i64: 1, 128>}, {transform_indices = @transform_6, window_bounds = array<i64: 1, 16, 16, 128>}]} {
    %c0 = arith.constant 0 : index
    %c0_0 = arith.constant 0 : index
    %c0_1 = arith.constant 0 : index
    %c0_2 = arith.constant 0 : index
    %0 = vector.load %arg1[%c0, %c0_0, %c0_1, %c0_2] : memref<1x16x16x128xf32, #tpu.memory_space<vmem>>, vector<1x16x16x128xf32>
    %c0_3 = arith.constant 0 : index
    %c0_4 = arith.constant 0 : index
    %1 = vector.load %arg2[%c0_3, %c0_4] : memref<1x128xf32, #tpu.memory_space<vmem>>, vector<1x128xf32>
    %2 = vector.shape_cast %1 : vector<1x128xf32> to vector<128xf32>
    %3 = vector.shape_cast %2 : vector<128xf32> to vector<1x1x1x128xf32>
    %4 = vector.broadcast %3 : vector<1x1x1x128xf32> to vector<1x16x16x128xf32>
    %5 = arith.mulf %0, %4 : vector<1x16x16x128xf32>
    %c0_5 = arith.constant 0 : index
    %c0_6 = arith.constant 0 : index
    %6 = vector.load %arg3[%c0_5, %c0_6] : memref<1x128xf32, #tpu.memory_space<vmem>>, vector<1x128xf32>
    %7 = vector.shape_cast %6 : vector<1x128xf32> to vector<128xf32>
    %8 = vector.shape_cast %7 : vector<128xf32> to vector<1x1x1x128xf32>
    %9 = vector.broadcast %8 : vector<1x1x1x128xf32> to vector<1x16x16x128xf32>
    %10 = arith.addf %5, %9 : vector<1x16x16x128xf32>
    %c0_7 = arith.constant 0 : index
    %c0_8 = arith.constant 0 : index
    %c0_9 = arith.constant 0 : index
    %c0_10 = arith.constant 0 : index
    %11 = vector.load %arg4[%c0_7, %c0_8, %c0_9, %c0_10] : memref<1x16x16x128xf32, #tpu.memory_space<vmem>>, vector<1x16x16x128xf32>
    %c0_11 = arith.constant 0 : index
    %c0_12 = arith.constant 0 : index
    %12 = vector.load %arg5[%c0_11, %c0_12] : memref<1x128xf32, #tpu.memory_space<vmem>>, vector<1x128xf32>
    %13 = vector.shape_cast %12 : vector<1x128xf32> to vector<128xf32>
    %14 = vector.shape_cast %13 : vector<128xf32> to vector<1x1x1x128xf32>
    %15 = vector.broadcast %14 : vector<1x1x1x128xf32> to vector<1x16x16x128xf32>
    %16 = arith.mulf %11, %15 : vector<1x16x16x128xf32>
    %17 = arith.addf %10, %16 : vector<1x16x16x128xf32>
    %c0_13 = arith.constant 0 : index
    %c0_14 = arith.constant 0 : index
    %18 = vector.load %arg6[%c0_13, %c0_14] : memref<1x128xf32, #tpu.memory_space<vmem>>, vector<1x128xf32>
    %19 = vector.shape_cast %18 : vector<1x128xf32> to vector<128xf32>
    %20 = vector.shape_cast %19 : vector<128xf32> to vector<1x1x1x128xf32>
    %21 = vector.broadcast %20 : vector<1x1x1x128xf32> to vector<1x16x16x128xf32>
    %22 = arith.addf %17, %21 : vector<1x16x16x128xf32>
    %c0_15 = arith.constant 0 : index
    %c0_16 = arith.constant 0 : index
    %c0_17 = arith.constant 0 : index
    %c0_18 = arith.constant 0 : index
    %23 = vector.load %arg7[%c0_15, %c0_16, %c0_17, %c0_18] : memref<1x16x16x128xf32, #tpu.memory_space<vmem>>, vector<1x16x16x128xf32>
    tpu.vector_store %arg7[%c0_15, %c0_16, %c0_17, %c0_18], %22 {strides = array<i32>} : memref<1x16x16x128xf32, #tpu.memory_space<vmem>>, vector<1x16x16x128xf32>,
    return
  }
  func.func @transform_0(%arg0: i32) -> (i32, i32, i32, i32) {
    %c0_i32 = arith.constant 0 : i32
    %c0_i32_0 = arith.constant 0 : i32
    %c0_i32_1 = arith.constant 0 : i32
    %c0_i32_2 = arith.constant 0 : i32
    return %arg0, %c0_i32, %c0_i32_0, %c0_i32_1 : i32, i32, i32, i32
  }
  func.func @transform_1(%arg0: i32) -> (i32, i32) {
    %c0_i32 = arith.constant 0 : i32
    %c0_i32_0 = arith.constant 0 : i32
    %c0_i32_1 = arith.constant 0 : i32
    return %c0_i32, %c0_i32_0 : i32, i32
  }
  func.func @transform_2(%arg0: i32) -> (i32, i32) {
    %c0_i32 = arith.constant 0 : i32
    %c0_i32_0 = arith.constant 0 : i32
    %c0_i32_1 = arith.constant 0 : i32
    return %c0_i32, %c0_i32_0 : i32, i32
  }
  func.func @transform_3(%arg0: i32) -> (i32, i32, i32, i32) {
    %c0_i32 = arith.constant 0 : i32
    %c0_i32_0 = arith.constant 0 : i32
    %c0_i32_1 = arith.constant 0 : i32
    %c0_i32_2 = arith.constant 0 : i32
    return %arg0, %c0_i32, %c0_i32_0, %c0_i32_1 : i32, i32, i32, i32
  }
  func.func @transform_4(%arg0: i32) -> (i32, i32) {
    %c0_i32 = arith.constant 0 : i32
    %c0_i32_0 = arith.constant 0 : i32
    %c0_i32_1 = arith.constant 0 : i32
    return %c0_i32, %c0_i32_0 : i32, i32
  }
  func.func @transform_5(%arg0: i32) -> (i32, i32) {
    %c0_i32 = arith.constant 0 : i32
    %c0_i32_0 = arith.constant 0 : i32
    %c0_i32_1 = arith.constant 0 : i32
    return %c0_i32, %c0_i32_0 : i32, i32
  }
  func.func @transform_6(%arg0: i32) -> (i32, i32, i32, i32) {
    %c0_i32 = arith.constant 0 : i32
    %c0_i32_0 = arith.constant 0 : i32
    %c0_i32_1 = arith.constant 0 : i32
    %c0_i32_2 = arith.constant 0 : i32
    return %arg0, %c0_i32, %c0_i32_0, %c0_i32_1 : i32, i32, i32, i32
  }
}

</mosaic_0001>

<bundles_post_ra>
// kernel: basic_block_forward.5
= control target key start
LH: loop header
LB: loop body
LE: loop exit
PB: predicated region body
PF: predicated region fallthrough
CT: control target
= control target key end

     0   :  { %s694_s21 = smov 0   ;;  %s969_s0 = inlined_call_operand.vmem [shape: f32[2,16,16,128], index: 0, kind: input, shape index: {}]   ;;  %s970_s1 = inlined_call_operand.vmem [shape: f32[1,128], index: 1, kind: input, shape index: {}]   ;;  %s971_s2 = inlined_call_operand.vmem [shape: f32[1,128], index: 2, kind: input, shape index: {}]   ;;  %s972_s3 = inlined_call_operand.vmem [shape: f32[2,16,16,128], index: 3, kind: input, shape index: {}]   ;;  %s973_s4 = inlined_call_operand.vmem [shape: f32[1,128], index: 4, kind: input, shape index: {}]   ;;  %s974_s5 = inlined_call_operand.vmem [shape: f32[1,128], index: 5, kind: input, shape index: {}]   ;;  %s975_s6 = inlined_call_operand.vmem [shape: f32[2,16,16,128], index: 6, kind: output, shape index: {}]  }
   0x1 LB: > { %s623_s22 = sadd.s32 4294967295, %s657_s21   ;;  %p627_p0 = scmp.ge.s32.totalorder %s657_s21, 1  ;;  %s657_s21 = sphi %s694_s21, %s16_s21  }
   0x2   : > { %p222_p1 = scmp.lt.s32.totalorder %s657_s21, 3 }
   0x4   : > { %p223_p2 = pnand %p627_p0, %p222_p1 }
   0x5   : > { %p257_p3 = scmp.lt.s32.totalorder (!%p223_p2), %s623_s22, 1 }
   0x6   : > { %226 = sbr.rel (%p223_p2) target bundleno = 62 (0x3e), region = 44 }
   0xb   : > { %s977_s22 = smov (!%p257_p3, %s623_s22), 1  ;;  %v707_v0 = vld [vmem:[%s970_s1] ss:$0 sm:$0xff] }
   0xc   : > { %s702_s23 = sshll.u32 %s977_s22, 8  ;;  %v712_v1 = vld [vmem:[%s973_s4] ss:$0 sm:$0xff] }
   0xd   : > { %s718_s30 = scalar_lea.vmem %s969_s0, %s702_s23  ;;  %s724_s9 = scalar_lea.vmem %s972_s3, %s702_s23  ;;  %v729_v2 = vld [vmem:[%s971_s2] ss:$0 sm:$0xff] }
   0xe   : > { %v272_v3 = vld [vmem:[%s718_s30] sm:$0xff]  ;;  %v273_v5 = vld [vmem:[%s718_s30 + $0x8] sm:$0xff]  ;;  %v274_v10 = vld [vmem:[%s718_s30 + $0x10] sm:$0xff]  ;;  %s770_s16 = scalar_lea.vmem %s975_s6, %s702_s23 }
   0xf   : > { %v382_v4 = vld [vmem:[%s724_s9] sm:$0xff]  ;;  %v311_v6 = vmul.f32 %v707_v0, %v272_v3  ;;  %v312_v8 = vmul.f32 %v707_v0, %v273_v5  ;;  %v383_v9 = vld [vmem:[%s724_s9 + $0x8] sm:$0xff]  ;;  %v384_v11 = vld [vmem:[%s724_s9 + $0x10] sm:$0xff]  ;;  %v313_v13 = vmul.f32 %v707_v0, %v274_v10 }
  0x10   : > { %v421_v7 = vmul.f32 %v712_v1, %v382_v4  ;;  %v422_v12 = vmul.f32 %v712_v1, %v383_v9  ;;  %v423_v14 = vmul.f32 %v712_v1, %v384_v11  ;;  %v275_v15 = vld [vmem:[%s718_s30 + $0x18] sm:$0xff]  ;;  %v276_v17 = vld [vmem:[%s718_s30 + $0x20] sm:$0xff]  ;;  %v277_v23 = vld [vmem:[%s718_s30 + $0x28] sm:$0xff] }
  0x11   : > { %v385_v16 = vld [vmem:[%s724_s9 + $0x18] sm:$0xff]  ;;  %v350_v18 = vadd.f32 %v729_v2, %v311_v6  ;;  %v351_v19 = vadd.f32 %v729_v2, %v312_v8  ;;  %v314_v20 = vmul.f32 %v707_v0, %v275_v15  ;;  %v386_v22 = vld [vmem:[%s724_s9 + $0x20] sm:$0xff]  ;;  %v387_v24 = vld [vmem:[%s724_s9 + $0x28] sm:$0xff]  ;;  %v352_v26 = vadd.f32 %v729_v2, %v313_v13 }
  0x12   : > { %v424_v21 = vmul.f32 %v712_v1, %v385_v16  ;;  %v756_v25 = vld [vmem:[%s974_s5] ss:$0 sm:$0xff]  ;;  %v315_v27 = vmul.f32 %v707_v0, %v276_v17  ;;  %v425_v28 = vmul.f32 %v712_v1, %v386_v22  ;;  %v316_v29 = vmul.f32 %v707_v0, %v277_v23  ;;  %v278_v30 = vld [vmem:[%s718_s30 + $0x30] sm:$0xff]  ;;  %v279_v40 = vld [vmem:[%s718_s30 + $0x38] sm:$0xff] }
  0x13   : > { %v388_v31 = vld [vmem:[%s724_s9 + $0x30] sm:$0xff]  ;;  %v453_v32 = vadd.f32 %v421_v7, %v350_v18  ;;  %v454_v33 = vadd.f32 %v422_v12, %v351_v19  ;;  %v353_v34 = vadd.f32 %v729_v2, %v314_v20  ;;  %v426_v35 = vmul.f32 %v712_v1, %v387_v24  ;;  %v389_v41 = vld [vmem:[%s724_s9 + $0x38] sm:$0xff]  ;;  %v280_v42 = vld [vmem:[%s718_s30 + $0x40] sm:$0xff] }
  0x14   : > { %v455_v36 = vadd.f32 %v423_v14, %v352_v26  ;;  %v354_v37 = vadd.f32 %v729_v2, %v315_v27  ;;  %v355_v38 = vadd.f32 %v729_v2, %v316_v29  ;;  %v317_v39 = vmul.f32 %v707_v0, %v278_v30  ;;  %v390_v47 = vld [vmem:[%s724_s9 + $0x40] sm:$0xff]  ;;  %v281_v52 = vld [vmem:[%s718_s30 + $0x48] sm:$0xff]  ;;  %v282_v58 = vld [vmem:[%s718_s30 + $0x50] sm:$0xff] }
  0x15   : > { %v492_v43 = vadd.f32 %v756_v25, %v453_v32  ;;  %v493_v44 = vadd.f32 %v756_v25, %v454_v33  ;;  %v456_v45 = vadd.f32 %v424_v21, %v353_v34  ;;  %v427_v46 = vmul.f32 %v712_v1, %v388_v31  ;;  %v391_v53 = vld [vmem:[%s724_s9 + $0x48] sm:$0xff]  ;;  %v392_v59 = vld [vmem:[%s724_s9 + $0x50] sm:$0xff]  ;;  %v283_v60 = vld [vmem:[%s718_s30 + $0x58] sm:$0xff] }
  0x16   : > { %v494_v48 = vadd.f32 %v756_v25, %v455_v36  ;;  %v457_v49 = vadd.f32 %v425_v28, %v354_v37  ;;  %v458_v50 = vadd.f32 %v426_v35, %v355_v38  ;;  %v356_v51 = vadd.f32 %v729_v2, %v317_v39  ;;  %v393_v4 = vld [vmem:[%s724_s9 + $0x58] sm:$0xff]  ;;  %v284_v9 = vld [vmem:[%s718_s30 + $0x60] sm:$0xff]  ;;  %v285_v15 = vld [vmem:[%s718_s30 + $0x68] sm:$0xff] }
  0x17   : > { %524 = vst [vmem:[%s770_s16] sm:$0xff] %v492_v43  ;;  %525 = vst [vmem:[%s770_s16 + $0x8] sm:$0xff] %v493_v44  ;;  %v495_v54 = vadd.f32 %v756_v25, %v456_v45  ;;  %v318_v55 = vmul.f32 %v707_v0, %v279_v40  ;;  %v428_v56 = vmul.f32 %v712_v1, %v389_v41  ;;  %v394_v10 = vld [vmem:[%s724_s9 + $0x60] sm:$0xff]  ;;  %v395_v20 = vld [vmem:[%s724_s9 + $0x68] sm:$0xff] }
  0x18   : > { %v319_v57 = vmul.f32 %v707_v0, %v280_v42  ;;  %526 = vst [vmem:[%s770_s16 + $0x10] sm:$0xff] %v494_v48  ;;  %v496_v61 = vadd.f32 %v756_v25, %v457_v49  ;;  %v497_v62 = vadd.f32 %v756_v25, %v458_v50  ;;  %v459_v63 = vadd.f32 %v427_v46, %v356_v51  ;;  %v286_v26 = vld [vmem:[%s718_s30 + $0x70] sm:$0xff]  ;;  %v287_v32 = vld [vmem:[%s718_s30 + $0x78] sm:$0xff]  ;;  %v288_v38 = vld [vmem:[%s718_s30 + $0x80] sm:$0xff] }
  0x19   : > { %v429_v3 = vmul.f32 %v712_v1, %v390_v47  ;;  %527 = vst [vmem:[%s770_s16 + $0x18] sm:$0xff] %v495_v54  ;;  %v357_v5 = vadd.f32 %v729_v2, %v318_v55  ;;  %v320_v7 = vmul.f32 %v707_v0, %v281_v52  ;;  %v430_v8 = vmul.f32 %v712_v1, %v391_v53  ;;  %v396_v27 = vld [vmem:[%s724_s9 + $0x70] sm:$0xff]  ;;  %v397_v37 = vld [vmem:[%s724_s9 + $0x78] sm:$0xff]  ;;  %v398_v43 = vld [vmem:[%s724_s9 + $0x80] sm:$0xff] }
  0x1a   : > { %v358_v6 = vadd.f32 %v729_v2, %v319_v57  ;;  %528 = vst [vmem:[%s770_s16 + $0x20] sm:$0xff] %v496_v61  ;;  %529 = vst [vmem:[%s770_s16 + $0x28] sm:$0xff] %v497_v62  ;;  %v498_v11 = vadd.f32 %v756_v25, %v459_v63  ;;  %v321_v12 = vmul.f32 %v707_v0, %v282_v58  ;;  %v289_v44 = vld [vmem:[%s718_s30 + $0x88] sm:$0xff]  ;;  %v290_v54 = vld [vmem:[%s718_s30 + $0x90] sm:$0xff] }
  0x1b   : > { %v431_v13 = vmul.f32 %v712_v1, %v392_v59  ;;  %v322_v14 = vmul.f32 %v707_v0, %v283_v60  ;;  %v460_v16 = vadd.f32 %v428_v56, %v357_v5  ;;  %v359_v18 = vadd.f32 %v729_v2, %v320_v7  ;;  %v399_v49 = vld [vmem:[%s724_s9 + $0x88] sm:$0xff]  ;;  %v400_v55 = vld [vmem:[%s724_s9 + $0x90] sm:$0xff]  ;;  %v291_v60 = vld [vmem:[%s718_s30 + $0x98] sm:$0xff] }
  0x1c   : > { %v461_v17 = vadd.f32 %v429_v3, %v358_v6  ;;  %v432_v19 = vmul.f32 %v712_v1, %v393_v4  ;;  %530 = vst [vmem:[%s770_s16 + $0x30] sm:$0xff] %v498_v11  ;;  %v360_v21 = vadd.f32 %v729_v2, %v321_v12  ;;  %v323_v23 = vmul.f32 %v707_v0, %v284_v9  ;;  %v401_v61 = vld [vmem:[%s724_s9 + $0x98] sm:$0xff]  ;;  %v292_v5 = vld [vmem:[%s718_s30 + $0xa0] sm:$0xff]  ;;  %v293_v11 = vld [vmem:[%s718_s30 + $0xa8] sm:$0xff] }
  0x1d   : > { %v361_v22 = vadd.f32 %v729_v2, %v322_v14  ;;  %v433_v24 = vmul.f32 %v712_v1, %v394_v10  ;;  %v499_v28 = vadd.f32 %v756_v25, %v460_v16  ;;  %v462_v30 = vadd.f32 %v430_v8, %v359_v18  ;;  %v402_v10 = vld [vmem:[%s724_s9 + $0xa0] sm:$0xff]  ;;  %v403_v16 = vld [vmem:[%s724_s9 + $0xa8] sm:$0xff] }
  0x1e   : > { %v500_v29 = vadd.f32 %v756_v25, %v461_v17  ;;  %v324_v31 = vmul.f32 %v707_v0, %v285_v15  ;;  %v463_v33 = vadd.f32 %v431_v13, %v360_v21  ;;  %v362_v35 = vadd.f32 %v729_v2, %v323_v23  ;;  %v294_v21 = vld [vmem:[%s718_s30 + $0xb0] sm:$0xff] }
  0x1f   : > { %v464_v34 = vadd.f32 %v432_v19, %v361_v22  ;;  %v434_v36 = vmul.f32 %v712_v1, %v395_v20  ;;  %531 = vst [vmem:[%s770_s16 + $0x38] sm:$0xff] %v499_v28  ;;  %v501_v39 = vadd.f32 %v756_v25, %v462_v30  ;;  %v325_v41 = vmul.f32 %v707_v0, %v286_v26  ;;  %v404_v22 = vld [vmem:[%s724_s9 + $0xb0] sm:$0xff]  ;;  %v295_v28 = vld [vmem:[%s718_s30 + $0xb8] sm:$0xff] }
  0x20   : > { %532 = vst [vmem:[%s770_s16 + $0x40] sm:$0xff] %v500_v29  ;;  %v363_v40 = vadd.f32 %v729_v2, %v324_v31  ;;  %v435_v42 = vmul.f32 %v712_v1, %v396_v27  ;;  %v502_v45 = vadd.f32 %v756_v25, %v463_v33  ;;  %v465_v47 = vadd.f32 %v433_v24, %v362_v35  ;;  %v405_v29 = vld [vmem:[%s724_s9 + $0xb8] sm:$0xff] }
  0x21   : > { %v503_v46 = vadd.f32 %v756_v25, %v464_v34  ;;  %v326_v48 = vmul.f32 %v707_v0, %v287_v32  ;;  %533 = vst [vmem:[%s770_s16 + $0x48] sm:$0xff] %v501_v39  ;;  %v364_v51 = vadd.f32 %v729_v2, %v325_v41  ;;  %v436_v52 = vmul.f32 %v712_v1, %v397_v37  ;;  %v296_v34 = vld [vmem:[%s718_s30 + $0xc0] sm:$0xff] }
  0x22   : > { %v466_v50 = vadd.f32 %v434_v36, %v363_v40  ;;  %v327_v53 = vmul.f32 %v707_v0, %v288_v38  ;;  %534 = vst [vmem:[%s770_s16 + $0x50] sm:$0xff] %v502_v45  ;;  %v504_v56 = vadd.f32 %v756_v25, %v465_v47  ;;  %v437_v58 = vmul.f32 %v712_v1, %v398_v43  ;;  %v406_v39 = vld [vmem:[%s724_s9 + $0xc0] sm:$0xff]  ;;  %v297_v40 = vld [vmem:[%s718_s30 + $0xc8] sm:$0xff] }
  0x23   : > { %535 = vst [vmem:[%s770_s16 + $0x58] sm:$0xff] %v503_v46  ;;  %v365_v57 = vadd.f32 %v729_v2, %v326_v48  ;;  %v328_v59 = vmul.f32 %v707_v0, %v289_v44  ;;  %v467_v63 = vadd.f32 %v435_v42, %v364_v51  ;;  %v438_v4 = vmul.f32 %v712_v1, %v399_v49  ;;  %v407_v45 = vld [vmem:[%s724_s9 + $0xc8] sm:$0xff]  ;;  %v408_v51 = vld [vmem:[%s724_s9 + $0xd0] sm:$0xff] }
  0x24   : > { %v505_v62 = vadd.f32 %v756_v25, %v466_v50  ;;  %v366_v3 = vadd.f32 %v729_v2, %v327_v53  ;;  %536 = vst [vmem:[%s770_s16 + $0x60] sm:$0xff] %v504_v56  ;;  %v329_v8 = vmul.f32 %v707_v0, %v290_v54  ;;  %v439_v9 = vmul.f32 %v712_v1, %v400_v55  ;;  %v298_v50 = vld [vmem:[%s718_s30 + $0xd0] sm:$0xff]  ;;  %v299_v56 = vld [vmem:[%s718_s30 + $0xd8] sm:$0xff] }
  0x25   : > { %v468_v6 = vadd.f32 %v436_v52, %v365_v57  ;;  %v367_v7 = vadd.f32 %v729_v2, %v328_v59  ;;  %v506_v12 = vadd.f32 %v756_v25, %v467_v63  ;;  %v330_v14 = vmul.f32 %v707_v0, %v291_v60  ;;  %v409_v57 = vld [vmem:[%s724_s9 + $0xd8] sm:$0xff] }
  0x26   : > { %537 = vst [vmem:[%s770_s16 + $0x68] sm:$0xff] %v505_v62  ;;  %v469_v13 = vadd.f32 %v437_v58, %v366_v3  ;;  %v440_v15 = vmul.f32 %v712_v1, %v401_v61  ;;  %v368_v19 = vadd.f32 %v729_v2, %v329_v8  ;;  %v331_v20 = vmul.f32 %v707_v0, %v292_v5  ;;  %v300_v62 = vld [vmem:[%s718_s30 + $0xe0] sm:$0xff] }
  0x27   : > { %v507_v17 = vadd.f32 %v756_v25, %v468_v6  ;;  %v470_v18 = vadd.f32 %v438_v4, %v367_v7  ;;  %538 = vst [vmem:[%s770_s16 + $0x70] sm:$0xff] %v506_v12  ;;  %v369_v24 = vadd.f32 %v729_v2, %v330_v14  ;;  %v441_v26 = vmul.f32 %v712_v1, %v402_v10  ;;  %v410_v6 = vld [vmem:[%s724_s9 + $0xe0] sm:$0xff]  ;;  %v301_v7 = vld [vmem:[%s718_s30 + $0xe8] sm:$0xff] }
  0x28   : > { %v508_v23 = vadd.f32 %v756_v25, %v469_v13  ;;  %v332_v27 = vmul.f32 %v707_v0, %v293_v11  ;;  %v471_v31 = vadd.f32 %v439_v9, %v368_v19  ;;  %v370_v32 = vadd.f32 %v729_v2, %v331_v20  ;;  %v411_v12 = vld [vmem:[%s724_s9 + $0xe8] sm:$0xff] }
  0x29   : > { %539 = vst [vmem:[%s770_s16 + $0x78] sm:$0xff] %v507_v17  ;;  %v509_v30 = vadd.f32 %v756_v25, %v470_v18  ;;  %v442_v33 = vmul.f32 %v712_v1, %v403_v16  ;;  %v472_v35 = vadd.f32 %v440_v15, %v369_v24  ;;  %v333_v37 = vmul.f32 %v707_v0, %v294_v21  ;;  %v302_v17 = vld [vmem:[%s718_s30 + $0xf0] sm:$0xff]  ;;  %v413_v24 = vld [vmem:[%s724_s9 + $0xf8] sm:$0xff] }
  0x2a   : > { %540 = vst [vmem:[%s770_s16 + $0x80] sm:$0xff] %v508_v23  ;;  %v371_v36 = vadd.f32 %v729_v2, %v332_v27  ;;  %v443_v38 = vmul.f32 %v712_v1, %v404_v22  ;;  %v510_v41 = vadd.f32 %v756_v25, %v471_v31  ;;  %v473_v42 = vadd.f32 %v441_v26, %v370_v32  ;;  %v412_v18 = vld [vmem:[%s724_s9 + $0xf0] sm:$0xff]  ;;  %v303_v23 = vld [vmem:[%s718_s30 + $0xf8] sm:$0xff] }
  0x2b   : > { %541 = vst [vmem:[%s770_s16 + $0x88] sm:$0xff] %v509_v30  ;;  %v334_v43 = vmul.f32 %v707_v0, %v295_v28  ;;  %v444_v44 = vmul.f32 %v712_v1, %v405_v29  ;;  %v511_v46 = vadd.f32 %v756_v25, %v472_v35  ;;  %v372_v48 = vadd.f32 %v729_v2, %v333_v37 }
  0x2c   : > { %v474_v47 = vadd.f32 %v442_v33, %v371_v36  ;;  %v335_v49 = vmul.f32 %v707_v0, %v296_v34  ;;  %542 = vst [vmem:[%s770_s16 + $0x90] sm:$0xff] %v510_v41  ;;  %v512_v52 = vadd.f32 %v756_v25, %v473_v42  ;;  %v445_v54 = vmul.f32 %v712_v1, %v406_v39 }
  0x2d   : > { %v373_v53 = vadd.f32 %v729_v2, %v334_v43  ;;  %v336_v55 = vmul.f32 %v707_v0, %v297_v40  ;;  %543 = vst [vmem:[%s770_s16 + $0x98] sm:$0xff] %v511_v46  ;;  %v475_v59 = vadd.f32 %v443_v38, %v372_v48  ;;  %v446_v61 = vmul.f32 %v712_v1, %v407_v45 }
  0x2e   : > { %v513_v58 = vadd.f32 %v756_v25, %v474_v47  ;;  %v374_v60 = vadd.f32 %v729_v2, %v335_v49  ;;  %544 = vst [vmem:[%s770_s16 + $0xa0] sm:$0xff] %v512_v52  ;;  %v337_v4 = vmul.f32 %v707_v0, %v298_v50  ;;  %v447_v5 = vmul.f32 %v712_v1, %v408_v51 }
  0x2f   : > { %v476_v63 = vadd.f32 %v444_v44, %v373_v53  ;;  %v375_v3 = vadd.f32 %v729_v2, %v336_v55  ;;  %v514_v8 = vadd.f32 %v756_v25, %v475_v59  ;;  %v338_v10 = vmul.f32 %v707_v0, %v299_v56 }
  0x30   : > { %545 = vst [vmem:[%s770_s16 + $0xa8] sm:$0xff] %v513_v58  ;;  %v477_v9 = vadd.f32 %v445_v54, %v374_v60  ;;  %v448_v11 = vmul.f32 %v712_v1, %v409_v57  ;;  %v376_v15 = vadd.f32 %v729_v2, %v337_v4  ;;  %v339_v16 = vmul.f32 %v707_v0, %v300_v62 }
  0x31   : > { %v515_v13 = vadd.f32 %v756_v25, %v476_v63  ;;  %v478_v14 = vadd.f32 %v446_v61, %v375_v3  ;;  %546 = vst [vmem:[%s770_s16 + $0xb0] sm:$0xff] %v514_v8  ;;  %v377_v20 = vadd.f32 %v729_v2, %v338_v10  ;;  %v449_v21 = vmul.f32 %v712_v1, %v410_v6 }
  0x32   : > { %v516_v19 = vadd.f32 %v756_v25, %v477_v9  ;;  %v340_v22 = vmul.f32 %v707_v0, %v301_v7  ;;  %v479_v27 = vadd.f32 %v447_v5, %v376_v15  ;;  %v378_v28 = vadd.f32 %v729_v2, %v339_v16 }
  0x33   : > { %547 = vst [vmem:[%s770_s16 + $0xb8] sm:$0xff] %v515_v13  ;;  %v517_v26 = vadd.f32 %v756_v25, %v478_v14  ;;  %v450_v29 = vmul.f32 %v712_v1, %v411_v12  ;;  %v480_v30 = vadd.f32 %v448_v11, %v377_v20  ;;  %v341_v32 = vmul.f32 %v707_v0, %v302_v17 }
  0x34   : > { %548 = vst [vmem:[%s770_s16 + $0xc0] sm:$0xff] %v516_v19  ;;  %v379_v31 = vadd.f32 %v729_v2, %v340_v22  ;;  %v451_v33 = vmul.f32 %v712_v1, %v412_v18  ;;  %v518_v34 = vadd.f32 %v756_v25, %v479_v27  ;;  %v481_v35 = vadd.f32 %v449_v21, %v378_v28 }
  0x35   : > { %549 = vst [vmem:[%s770_s16 + $0xc8] sm:$0xff] %v517_v26  ;;  %v342_v36 = vmul.f32 %v707_v0, %v303_v23  ;;  %v452_v37 = vmul.f32 %v712_v1, %v413_v24  ;;  %v519_v38 = vadd.f32 %v756_v25, %v480_v30  ;;  %v380_v40 = vadd.f32 %v729_v2, %v341_v32 }
  0x36   : > { %v482_v39 = vadd.f32 %v450_v29, %v379_v31  ;;  %550 = vst [vmem:[%s770_s16 + $0xd0] sm:$0xff] %v518_v34  ;;  %v520_v41 = vadd.f32 %v756_v25, %v481_v35 }
  0x37   : > { %v381_v42 = vadd.f32 %v729_v2, %v342_v36  ;;  %551 = vst [vmem:[%s770_s16 + $0xd8] sm:$0xff] %v519_v38  ;;  %v483_v44 = vadd.f32 %v451_v33, %v380_v40 }
  0x38   : > { %v521_v43 = vadd.f32 %v756_v25, %v482_v39  ;;  %552 = vst [vmem:[%s770_s16 + $0xe0] sm:$0xff] %v520_v41 }
  0x39   : > { %v484_v0 = vadd.f32 %v452_v37, %v381_v42  ;;  %v522_v1 = vadd.f32 %v756_v25, %v483_v44 }
  0x3a   : > { %553 = vst [vmem:[%s770_s16 + $0xe8] sm:$0xff] %v521_v43 }
  0x3b   : > { %v523_v45 = vadd.f32 %v756_v25, %v484_v0  ;;  %554 = vst [vmem:[%s770_s16 + $0xf0] sm:$0xff] %v522_v1 }
  0x3d   : > { %555 = vst [vmem:[%s770_s16 + $0xf8] sm:$0xff] %v523_v45 }
  0x3e PF: > { %s16_s21 = sadd.s32 1, %s657_s21  }
  0x3f   : > { %p13_p4 = scmp.ge.s32.totalorder %s16_s21, 4  }
  0x41   :  { %15 = sbr.rel (!%p13_p4) target bundleno = 1 (0x1), region = 77 }

// kernel: basic_block_forward.4
= control target key start
LH: loop header
LB: loop body
LE: loop exit
PB: predicated region body
PF: predicated region fallthrough
CT: control target
= control target key end

     0   :  { %s4369_s18 = smov 0   ;;  %s5605_s0 = inlined_call_operand.vmem [shape: f32[2,16,16,128], index: 0, kind: input, shape index: {}]   ;;  %s5606_s1 = inlined_call_operand.vmem [shape: f32[1,128], index: 1, kind: input, shape index: {}]   ;;  %s5607_s2 = inlined_call_operand.vmem [shape: f32[1,128], index: 2, kind: input, shape index: {}]   ;;  %s5608_s3 = inlined_call_operand.vmem [shape: bf16[9,128,128], index: 3, kind: input, shape index: {}]   ;;  %s5609_s4 = inlined_call_operand.vmem [shape: f32[2,16,16,128], index: 4, kind: output, shape index: {0}]   ;;  %s5610_s5 = inlined_call_operand.vmem [shape: f32[2,2,128], index: 5, kind: output, shape index: {1}]  }
   0x1 LB: > { %s3367_s19 = sadd.s32 4294967295, %s4335_s18   ;;  %p3371_p0 = scmp.ge.s32.totalorder %s4335_s18, 1  ;;  %s4335_s18 = sphi %s4369_s18, %s16_s18  }
   0x2   : > { %p190_p1 = scmp.lt.s32.totalorder %s4335_s18, 3 }
   0x4   : > { %p191_p2 = pnand %p3371_p0, %p190_p1 }
   0x6   : > { %194 = sbr.rel (%p191_p2) target bundleno = 549 (0x225), region = 36 }
   0xb   : > { %v4256_v0 = vld [vmem:[%s5608_s3 + $0x78] sm:$0xff]   ;;  %v4257_v1 = vld [vmem:[%s5608_s3 + $0x70] sm:$0xff]   ;;  %v4337_v2 = vmov 0.0   ;;  %p222_p3 = scmp.lt.s32.totalorder %s3367_s19, 1  ;;  %v4258_v3 = vld [vmem:[%s5608_s3 + $0x68] sm:$0xff]  }
   0xc   : > { %379 = vst [vmem:[#allocation2] sm:$0xff] %v4337_v2  ;;  %380 = vst [vmem:[#allocation2 + $0x8] sm:$0xff] %v4337_v2  ;;  %3799 = vmatprep.subr.bf16.mxu0 %v4256_v0  ;;  %4231 = vmatprep.subr.bf16.mxu1 %v4256_v0  ;;  %v4259_v4 = vld [vmem:[%s5608_s3 + $0x60] sm:$0xff]   ;;  %v4260_v21 = vld [vmem:[%s5608_s3 + $0x58] sm:$0xff]  }
   0xd   : > { %381 = vst [vmem:[#allocation2 + $0x10] sm:$0xff] %v4337_v2  ;;  %383 = vst [vmem:[#allocation2 + $0x198] sm:$0xff] %v4337_v2  ;;  %3800 = vmatpush3.bf16.msra.mxu0 %v4256_v0  ;;  %4239 = vmatpush3.bf16.msra.mxu1 %v4256_v0  ;;  %s5694_s19 = smov (!%p222_p3, %s3367_s19), 1  ;;  %v4408_v10 = vld [vmem:[%s5606_s1] ss:$0 sm:$0xff]  ;;  %v4261_v28 = vld [vmem:[%s5608_s3 + $0x50] sm:$0xff]  }
   0xe   : > { %384 = vst [vmem:[#allocation2 + $0x1a0] sm:$0xff] %v4337_v2  ;;  %385 = vst [vmem:[#allocation2 + $0x1a8] sm:$0xff] %v4337_v2  ;;  %3801 = vmatprep.subr.bf16.mxu0 %v4257_v1  ;;  %4232 = vmatprep.subr.bf16.mxu1 %v4257_v1  ;;  %s3581_s26 = sshll.u32 %s5694_s19, 8  ;;  %v4413_v11 = vld [vmem:[%s5607_s2] ss:$0 sm:$0xff]  ;;  %v4262_v55 = vld [vmem:[%s5608_s3 + $0x48] sm:$0xff]  }
   0xf   : > { %387 = vst [vmem:[#allocation2 + $0x18] sm:$0x1] %v4337_v2  ;;  %388 = vst [vmem:[#allocation2 + $0x30] sm:$0x1] %v4337_v2  ;;  %s4398_s29 = scalar_lea.vmem %s5605_s0, %s3581_s26  ;;  %v4501_v0 = vld [vmem:[%s5608_s3 + $0x40] sm:$0xff]   ;;  %s5478_s22 = scalar_lea.vmem %s5609_s4, %s3581_s26 }
  0x10   : > { %389 = vst [vmem:[#allocation2 + $0x48] sm:$0x1] %v4337_v2  ;;  %390 = vst [vmem:[#allocation2 + $0x60] sm:$0x1] %v4337_v2  ;;  %v251_v7 = vld [vmem:[%s4398_s29 + $0x70] sm:$0xff]  ;;  %v252_v9 = vld [vmem:[%s4398_s29 + $0x78] sm:$0xff] }
  0x11   : > { %391 = vst [vmem:[#allocation2 + $0x78] sm:$0x1] %v4337_v2  ;;  %392 = vst [vmem:[#allocation2 + $0x90] sm:$0x1] %v4337_v2  ;;  %3802 = vmatpush3.bf16.msra.mxu0 %v4257_v1  ;;  %4240 = vmatpush3.bf16.msra.mxu1 %v4257_v1  ;;  %v290_v12 = vmul.f32 %v4408_v10, %v251_v7  ;;  %v291_v13 = vmul.f32 %v4408_v10, %v252_v9  ;;  %v237_v14 = vld [vmem:[%s4398_s29] sm:$0xff]  ;;  %v238_v15 = vld [vmem:[%s4398_s29 + $0x8] sm:$0xff] }
  0x12   : > { %393 = vst [vmem:[#allocation2 + $0xa8] sm:$0x1] %v4337_v2  ;;  %394 = vst [vmem:[#allocation2 + $0xc0] sm:$0x1] %v4337_v2  ;;  %3803 = vmatprep.subr.bf16.mxu0 %v4258_v3  ;;  %4233 = vmatprep.subr.bf16.mxu1 %v4258_v3  ;;  %v253_v16 = vld [vmem:[%s4398_s29 + $0x80] sm:$0xff]  ;;  %v276_v17 = vmul.f32 %v4408_v10, %v237_v14  ;;  %v277_v18 = vmul.f32 %v4408_v10, %v238_v15  ;;  %v254_v19 = vld [vmem:[%s4398_s29 + $0x88] sm:$0xff] }
  0x13   : > { %395 = vst [vmem:[#allocation2 + $0xd8] sm:$0x1] %v4337_v2  ;;  %396 = vst [vmem:[#allocation2 + $0xf0] sm:$0x1] %v4337_v2  ;;  %v515_v5 = vld [vmem:[#allocation2 + $0x1] sm:$0xff]  ;;  %v292_v20 = vmul.f32 %v4408_v10, %v253_v16  ;;  %v329_v22 = vadd.f32 %v4413_v11, %v290_v12  ;;  %v330_v23 = vadd.f32 %v4413_v11, %v291_v13  ;;  %v239_v35 = vld [vmem:[%s4398_s29 + $0x10] sm:$0xff] }
  0x14   : > { %397 = vst [vmem:[#allocation2 + $0x108] sm:$0x1] %v4337_v2  ;;  %398 = vst [vmem:[#allocation2 + $0x120] sm:$0x1] %v4337_v2  ;;  %v516_v6 = vld [vmem:[#allocation2 + $0x9] sm:$0xff]  ;;  %v293_v24 = vmul.f32 %v4408_v10, %v254_v19  ;;  %v4431_v25 = vadd.f32 %v4413_v11, %v276_v17  ;;  %v4434_v26 = vadd.f32 %v4413_v11, %v277_v18  ;;  %v240_v38 = vld [vmem:[%s4398_s29 + $0x18] sm:$0xff] }
  0x15   : > { %399 = vst [vmem:[#allocation2 + $0x138] sm:$0x1] %v4337_v2  ;;  %400 = vst [vmem:[#allocation2 + $0x150] sm:$0x1] %v4337_v2  ;;  %v547_v8 = vpack.c.bf16 %v516_v6, %v515_v5  ;;  %3804 = vmatpush3.bf16.msra.mxu0 %v4258_v3  ;;  %4241 = vmatpush3.bf16.msra.mxu1 %v4258_v3  ;;  %v4437_v27 = vadd.f32 %v4413_v11, %v292_v20  ;;  %v361_v29 = vmax.f32 %v329_v22, 0.0  ;;  %v255_v40 = vld [vmem:[%s4398_s29 + $0x90] sm:$0xff] }
  0x16   : > { %401 = vst [vmem:[#allocation2 + $0x168] sm:$0x1] %v4337_v2  ;;  %402 = vst [vmem:[#allocation2 + $0x180] sm:$0x1] %v4337_v2  ;;  %3805 = vmatprep.subr.bf16.mxu0 %v4259_v4  ;;  %4234 = vmatprep.subr.bf16.mxu1 %v4259_v4  ;;  %v362_v30 = vmax.f32 %v330_v23, 0.0  ;;  %v4443_v31 = vadd.f32 %v4413_v11, %v293_v24  ;;  %v347_v32 = vmax.f32 %v4431_v25, 0.0 }
  0x17   : > { %403 = vst [vmem:[#allocation2 + $0x29] sm:$0x7f] %v4337_v2  ;;  %404 = vst [vmem:[#allocation2 + $0x41] sm:$0x7f] %v4337_v2  ;;  %3815 = vmatprep.mubr.bf16.mxu0 %v547_v8  ;;  %v348_v33 = vmax.f32 %v4434_v26, 0.0  ;;  %v363_v34 = vmax.f32 %v4437_v27, 0.0  ;;  %v278_v39 = vmul.f32 %v4408_v10, %v239_v35  ;;  %v279_v42 = vmul.f32 %v4408_v10, %v240_v38 }
  0x18   : > { %405 = vst [vmem:[#allocation2 + $0x59] sm:$0x7f] %v4337_v2  ;;  %406 = vst [vmem:[#allocation2 + $0x71] sm:$0x7f] %v4337_v2  ;;  %v555_v36 = vpack.c.bf16 %v362_v30, %v361_v29  ;;  %v364_v37 = vmax.f32 %v4443_v31, 0.0  ;;  %v256_v41 = vld [vmem:[%s4398_s29 + $0x98] sm:$0xff]  ;;  %v294_v43 = vmul.f32 %v4408_v10, %v255_v40 }
  0x19   : > { %407 = vst [vmem:[#allocation2 + $0x89] sm:$0x7f] %v4337_v2  ;;  %408 = vst [vmem:[#allocation2 + $0xa1] sm:$0x7f] %v4337_v2  ;;  %3806 = vmatpush3.bf16.msra.mxu0 %v4259_v4  ;;  %4242 = vmatpush3.bf16.msra.mxu1 %v4259_v4  ;;  %v295_v44 = vmul.f32 %v4408_v10, %v256_v41  ;;  %v241_v45 = vld [vmem:[%s4398_s29 + $0x20] sm:$0xff]  ;;  %v242_v46 = vld [vmem:[%s4398_s29 + $0x28] sm:$0xff]  ;;  %v4469_v48 = vadd.f32 %v4413_v11, %v278_v39 }
  0x1a   : > { %409 = vst [vmem:[#allocation2 + $0xb9] sm:$0x7f] %v4337_v2  ;;  %410 = vst [vmem:[#allocation2 + $0xd1] sm:$0x7f] %v4337_v2  ;;  %3807 = vmatprep.subr.bf16.mxu0 %v4260_v21  ;;  %4235 = vmatprep.subr.bf16.mxu1 %v4260_v21  ;;  %v257_v47 = vld [vmem:[%s4398_s29 + $0xa0] sm:$0xff]  ;;  %v280_v49 = vmul.f32 %v4408_v10, %v241_v45  ;;  %v281_v50 = vmul.f32 %v4408_v10, %v242_v46  ;;  %v258_v51 = vld [vmem:[%s4398_s29 + $0xa8] sm:$0xff] }
  0x1b   : > { %411 = vst [vmem:[#allocation2 + $0xe9] sm:$0x7f] %v4337_v2  ;;  %412 = vst [vmem:[#allocation2 + $0x101] sm:$0x7f] %v4337_v2  ;;  %3831 = vmatprep.mubr.bf16.mxu1 %v555_v36  ;;  %v4475_v52 = vadd.f32 %v4413_v11, %v279_v42  ;;  %v4478_v53 = vadd.f32 %v4413_v11, %v294_v43  ;;  %v4481_v54 = vadd.f32 %v4413_v11, %v295_v44  ;;  %v243_v4 = vld [vmem:[%s4398_s29 + $0x30] sm:$0xff]  ;;  %v244_v6 = vld [vmem:[%s4398_s29 + $0x38] sm:$0xff] }
  0x1c   : > { %413 = vst [vmem:[#allocation2 + $0x119] sm:$0x7f] %v4337_v2  ;;  %414 = vst [vmem:[#allocation2 + $0x131] sm:$0x7f] %v4337_v2  ;;  %v349_v56 = vmax.f32 %v4469_v48, 0.0  ;;  %v4488_v57 = vadd.f32 %v4413_v11, %v280_v49  ;;  %v4491_v58 = vadd.f32 %v4413_v11, %v281_v50  ;;  %v296_v59 = vmul.f32 %v4408_v10, %v257_v47  ;;  %v259_v7 = vld [vmem:[%s4398_s29 + $0xb0] sm:$0xff] }
  0x1d   : > { %415 = vst [vmem:[#allocation2 + $0x149] sm:$0x7f] %v4337_v2  ;;  %416 = vst [vmem:[#allocation2 + $0x161] sm:$0x7f] %v4337_v2  ;;  %3808 = vmatpush3.bf16.msra.mxu0 %v4260_v21  ;;  %4243 = vmatpush3.bf16.msra.mxu1 %v4260_v21  ;;  %v350_v60 = vmax.f32 %v4475_v52, 0.0  ;;  %v365_v61 = vmax.f32 %v4478_v53, 0.0  ;;  %v297_v63 = vmul.f32 %v4408_v10, %v258_v51 }
  0x1e   : > { %417 = vst [vmem:[#allocation2 + $0x179] sm:$0x7f] %v4337_v2  ;;  %418 = vst [vmem:[#allocation2 + $0x191] sm:$0x7f] %v4337_v2  ;;  %3809 = vmatprep.subr.bf16.mxu0 %v4261_v28  ;;  %4236 = vmatprep.subr.bf16.mxu1 %v4261_v28  ;;  %v366_v62 = vmax.f32 %v4481_v54, 0.0  ;;  %v351_v1 = vmax.f32 %v4488_v57, 0.0  ;;  %v4508_v3 = vadd.f32 %v4413_v11, %v296_v59 }
  0x1f   : > { %433 = vst [vmem:[#allocation2 + $0xc1] sm:$0xff] %v361_v29  ;;  %434 = vst [vmem:[#allocation2 + $0xc9] sm:$0xff] %v362_v30  ;;  %v352_v2 = vmax.f32 %v4491_v58, 0.0  ;;  %v4518_v5 = vadd.f32 %v4413_v11, %v297_v63  ;;  %v260_v8 = vld [vmem:[%s4398_s29 + $0xb8] sm:$0xff]  ;;  %v282_v12 = vmul.f32 %v4408_v10, %v243_v4  ;;  %v283_v13 = vmul.f32 %v4408_v10, %v244_v6  ;;  %v245_v14 = vld [vmem:[%s4398_s29 + $0x40] sm:$0xff]  ;;  %s3376_s26 = sshll.u32 %s5694_s19, 1 }
  0x20   : > { %419 = vst [vmem:[#allocation2 + $0x19] sm:$0xff] %v347_v32  ;;  %420 = vst [vmem:[#allocation2 + $0x21] sm:$0xff] %v348_v33  ;;  %v367_v9 = vmax.f32 %v4508_v3, 0.0  ;;  %v246_v15 = vld [vmem:[%s4398_s29 + $0x48] sm:$0xff]  ;;  %v261_v16 = vld [vmem:[%s4398_s29 + $0xc0] sm:$0xff]  ;;  %v298_v18 = vmul.f32 %v4408_v10, %v259_v7  ;;  %v299_v19 = vmul.f32 %v4408_v10, %v260_v8  ;;  %v284_v20 = vmul.f32 %v4408_v10, %v245_v14  ;;  %s235_s24 = scalar_lea.vmem %s5610_s5, %s3376_s26 }
  0x21   : > { %435 = vst [vmem:[#allocation2 + $0xd9] sm:$0xff] %v363_v34  ;;  %436 = vst [vmem:[#allocation2 + $0xe1] sm:$0xff] %v364_v37  ;;  %3810 = vmatpush3.bf16.msra.mxu0 %v4261_v28  ;;  %4244 = vmatpush3.bf16.msra.mxu1 %v4261_v28  ;;  %v368_v17 = vmax.f32 %v4518_v5, 0.0  ;;  %v4540_v21 = vadd.f32 %v4413_v11, %v282_v12  ;;  %v4543_v22 = vadd.f32 %v4413_v11, %v283_v13  ;;  %v262_v24 = vld [vmem:[%s4398_s29 + $0xc8] sm:$0xff]  ;;  %v4264_v25 = vld [vmem:[%s5608_s3 + $0x38] sm:$0xff]  }
  0x22   : > { %421 = vst [vmem:[#allocation2 + $0x31] sm:$0xff] %v349_v56  ;;  %422 = vst [vmem:[#allocation2 + $0x39] sm:$0xff] %v350_v60  ;;  %3811 = vmatprep.subr.bf16.mxu0 %v4262_v55  ;;  %4237 = vmatprep.subr.bf16.mxu1 %v4262_v55  ;;  %v285_v23 = vmul.f32 %v4408_v10, %v246_v15  ;;  %v300_v28 = vmul.f32 %v4408_v10, %v261_v16  ;;  %v4265_v26 = vld [vmem:[%s5608_s3 + $0xb8] sm:$0xff]   ;;  %v247_v43 = vld [vmem:[%s4398_s29 + $0x50] sm:$0xff] }
  0x23   : > { %437 = vst [vmem:[#allocation2 + $0xf1] sm:$0xff] %v365_v61  ;;  %438 = vst [vmem:[#allocation2 + $0xf9] sm:$0xff] %v366_v62  ;;  %v4552_v29 = vpack.c.bf16 %v348_v33, %v347_v32  ;;  %v4557_v30 = vadd.f32 %v4413_v11, %v298_v18  ;;  %v4560_v35 = vadd.f32 %v4413_v11, %v299_v19  ;;  %v353_v32 = vmax.f32 %v4540_v21, 0.0  ;;  %v248_v44 = vld [vmem:[%s4398_s29 + $0x58] sm:$0xff]  ;;  %v263_v50 = vld [vmem:[%s4398_s29 + $0xd0] sm:$0xff] }
  0x24   : > { %423 = vst [vmem:[#allocation2 + $0x49] sm:$0xff] %v351_v1  ;;  %424 = vst [vmem:[#allocation2 + $0x51] sm:$0xff] %v352_v2  ;;  %v354_v33 = vmax.f32 %v4543_v22, 0.0  ;;  %v4573_v36 = vadd.f32 %v4413_v11, %v284_v20  ;;  %v4576_v38 = vadd.f32 %v4413_v11, %v285_v23  ;;  %v301_v41 = vmul.f32 %v4408_v10, %v262_v24  ;;  %v264_v51 = vld [vmem:[%s4398_s29 + $0xd8] sm:$0xff]  ;;  %v249_v27 = vld [vmem:[%s4398_s29 + $0x60] sm:$0xff] }
  0x25   : > { %439 = vst [vmem:[#allocation2 + $0x109] sm:$0xff] %v367_v9  ;;  %3812 = vmatpush3.bf16.msra.mxu0 %v4262_v55  ;;  %4245 = vmatpush3.bf16.msra.mxu1 %v4262_v55  ;;  %440 = vst [vmem:[#allocation2 + $0x111] sm:$0xff] %v368_v17  ;;  %v369_v39 = vmax.f32 %v4557_v30, 0.0  ;;  %v370_v40 = vmax.f32 %v4560_v35, 0.0  ;;  %v4582_v42 = vadd.f32 %v4413_v11, %v300_v28  ;;  %v4266_v31 = vld [vmem:[%s5608_s3 + $0x30] sm:$0xff]   ;;  %v250_v63 = vld [vmem:[%s4398_s29 + $0x68] sm:$0xff] }
  0x26   : > { %3813 = vmatprep.subr.bf16.mxu0 %v4501_v0  ;;  %4238 = vmatprep.subr.bf16.mxu1 %v4501_v0  ;;  %v556_v45 = vpack.c.bf16 %v364_v37, %v363_v34  ;;  %425 = vst [vmem:[#allocation2 + $0x61] sm:$0xff] %v353_v32  ;;  %426 = vst [vmem:[#allocation2 + $0x69] sm:$0xff] %v354_v33  ;;  %v355_v46 = vmax.f32 %v4573_v36, 0.0  ;;  %v356_v47 = vmax.f32 %v4576_v38, 0.0  ;;  %v265_v48 = vld [vmem:[%s4398_s29 + $0xe0] sm:$0xff]  ;;  %v4267_v52 = vld [vmem:[%s5608_s3 + $0xb0] sm:$0xff]  }
  0x27   : > { %v286_v49 = vmul.f32 %v4408_v10, %v247_v43  ;;  %v4609_v34 = vpack.c.bf16 %v350_v60, %v349_v56  ;;  %441 = vst [vmem:[#allocation2 + $0x121] sm:$0xff] %v369_v39  ;;  %442 = vst [vmem:[#allocation2 + $0x129] sm:$0xff] %v370_v40  ;;  %v4616_v37 = vadd.f32 %v4413_v11, %v301_v41  ;;  %v371_v55 = vmax.f32 %v4582_v42, 0.0  ;;  %v4268_v16 = vld [vmem:[%s5608_s3 + $0x28] sm:$0xff]   ;;  %v4270_v57 = vld [vmem:[%s5608_s3 + $0x20] sm:$0xff]  }
  0x28   : > { %v287_v59 = vmul.f32 %v4408_v10, %v248_v44  ;;  %v557_v56 = vpack.c.bf16 %v366_v62, %v365_v61  ;;  %427 = vst [vmem:[#allocation2 + $0x79] sm:$0xff] %v355_v46  ;;  %428 = vst [vmem:[#allocation2 + $0x81] sm:$0xff] %v356_v47  ;;  %v303_v54 = vmul.f32 %v4408_v10, %v264_v51  ;;  %v266_v62 = vld [vmem:[%s4398_s29 + $0xe8] sm:$0xff]  ;;  %v4271_v58 = vld [vmem:[%s5608_s3 + $0xa0] sm:$0xff]  }
  0x29   : > { %3814 = vmatpush3.bf16.msra.mxu0 %v4501_v0  ;;  %4246 = vmatpush3.bf16.msra.mxu1 %v4501_v0  ;;  %v4634_v60 = vadd.f32 %v4413_v11, %v286_v49  ;;  %v302_v0 = vmul.f32 %v4408_v10, %v263_v50  ;;  %v372_v4 = vmax.f32 %v4616_v37, 0.0  ;;  %443 = vst [vmem:[#allocation2 + $0x139] sm:$0xff] %v371_v55  ;;  %v4269_v18 = vld [vmem:[%s5608_s3 + $0xa8] sm:$0xff]   ;;  %v4272_v5 = vld [vmem:[%s5608_s3 + $0x18] sm:$0xff]   ;;  %v4274_v22 = vld [vmem:[%s5608_s3 + $0x10] sm:$0xff]  }
  0x2a   : > { %3847 = vmatprep.subr.bf16.mxu1 %v4264_v25  ;;  %3895 = vmatprep.subr.bf16.mxu0 %v4265_v26  ;;  %v4641_v53 = vadd.f32 %v4413_v11, %v287_v59  ;;  %v288_v61 = vmul.f32 %v4408_v10, %v249_v27  ;;  %v289_v8 = vmul.f32 %v4408_v10, %v250_v63  ;;  %v4275_v30 = vld [vmem:[%s5608_s3 + $0x90] sm:$0xff]   ;;  %v4277_v36 = vld [vmem:[%s5608_s3 + $0x88] sm:$0xff]   ;;  %v453_v50 = vld [vmem:[#allocation2 + $0x18] sm:$0xff] }
  0x2b   : > { %v357_v6 = vmax.f32 %v4634_v60, 0.0  ;;  %v4649_v7 = vadd.f32 %v4413_v11, %v302_v0  ;;  %v304_v12 = vmul.f32 %v4408_v10, %v265_v48  ;;  %444 = vst [vmem:[#allocation2 + $0x141] sm:$0xff] %v372_v4  ;;  %v342_v14 = vadd.f32 %v4413_v11, %v303_v54  ;;  %v999_v42 = vld [vmem:[#allocation2 + $0xa] sm:$0xff]  ;;  %v454_v51 = vld [vmem:[#allocation2 + $0x20] sm:$0xff]  ;;  %v4280_v37 = vld [vmem:[%s5608_s3 + $0xf8] sm:$0xff]  }
  0x2c   : > { %3816 = vmatmul.mubr.bf16.vlgmr.msra.gmra.mxu0 %v4552_v29  ;;  %3832 = vmatmul.mubr.bf16.vlgmr.msra.gmra.mxu1 %v556_v45  ;;  %v358_v13 = vmax.f32 %v4641_v53, 0.0  ;;  %v4658_v15 = vadd.f32 %v4413_v11, %v288_v61  ;;  %v328_v20 = vadd.f32 %v4413_v11, %v289_v8  ;;  %v305_v23 = vmul.f32 %v4408_v10, %v266_v62  ;;  %v1000_v27 = vld [vmem:[#allocation2 + $0x1a] sm:$0xff]  ;;  %v455_v59 = vld [vmem:[#allocation2 + $0x30] sm:$0xff]  ;;  %v457_v54 = vld [vmem:[#allocation2 + $0x48] sm:$0xff] }
  0x2d   : > { %3848 = vmatpush3.bf16.msra.mxu1 %v4264_v25  ;;  %3896 = vmatpush3.bf16.msra.mxu0 %v4265_v26  ;;  %429 = vst [vmem:[#allocation2 + $0x91] sm:$0xff] %v357_v6  ;;  %v373_v19 = vmax.f32 %v4649_v7, 0.0  ;;  %v343_v24 = vadd.f32 %v4413_v11, %v304_v12  ;;  %v4675_v28 = vpack.c.bf16 %v352_v2, %v351_v1  ;;  %v374_v25 = vmax.f32 %v342_v14, 0.0  ;;  %v456_v63 = vld [vmem:[#allocation2 + $0x38] sm:$0xff]  ;;  %v458_v61 = vld [vmem:[#allocation2 + $0x50] sm:$0xff]  ;;  %v459_v12 = vld [vmem:[#allocation2 + $0x60] sm:$0xff] }
  0x2e   : > { %3849 = vmatprep.subr.bf16.mxu1 %v4266_v31  ;;  %3897 = vmatprep.subr.bf16.mxu0 %v4267_v52  ;;  %430 = vst [vmem:[#allocation2 + $0x99] sm:$0xff] %v358_v13  ;;  %v359_v26 = vmax.f32 %v4658_v15, 0.0  ;;  %v558_v41 = vpack.c.bf16 %v368_v17, %v367_v9  ;;  %v360_v43 = vmax.f32 %v328_v20, 0.0  ;;  %v344_v44 = vadd.f32 %v4413_v11, %v305_v23  ;;  %v4273_v9 = vld [vmem:[%s5608_s3 + $0x98] sm:$0xff]   ;;  %v1004_v62 = vld [vmem:[#allocation2 + $0x4a] sm:$0xff]  ;;  %v1006_v14 = vld [vmem:[#allocation2 + $0x62] sm:$0xff] }
  0x2f   : > { %3819 = vmatprep.mubr.bf16.mxu0 %v4609_v34  ;;  %3835 = vmatprep.mubr.bf16.mxu1 %v557_v56  ;;  %445 = vst [vmem:[#allocation2 + $0x151] sm:$0xff] %v373_v19  ;;  %v375_v45 = vmax.f32 %v343_v24, 0.0  ;;  %446 = vst [vmem:[#allocation2 + $0x159] sm:$0xff] %v374_v25  ;;  %v4693_v2 = vpack.c.bf16 %v354_v33, %v353_v32  ;;  %v4699_v3 = vpack.c.bf16 %v370_v40, %v369_v39  ;;  %v4276_v33 = vld [vmem:[%s5608_s3 + $0x8] sm:$0xff]   ;;  %v4338_v48 = vmov 0.0|0.0   ;;  %v1003_v56 = vld [vmem:[#allocation2 + $0x3a] sm:$0xff] }
  0x30   : > { %431 = vst [vmem:[#allocation2 + $0xa9] sm:$0xff] %v359_v26  ;;  %432 = vst [vmem:[#allocation2 + $0xb1] sm:$0xff] %v360_v43  ;;  %v376_v1 = vmax.f32 %v344_v44, 0.0  ;;  %v4714_v17 = vpack.c.bf16 %v356_v47, %v355_v46  ;;  %v4720_v21 = vpack.c.bf16 %v372_v4, %v371_v55  ;;  %v4728_v35 = vpack.c.bf16 %v358_v13, %v357_v6  ;;  %v998_v40 = vld [vmem:[#allocation2 + $0x2] sm:$0xff]  ;;  %v4281_v55 = vld [vmem:[%s5608_s3 + $0x138] sm:$0xff]  }
  0x31   : > { %3850 = vmatpush3.bf16.msra.mxu1 %v4266_v31  ;;  %3898 = vmatpush3.bf16.msra.mxu0 %v4267_v52  ;;  %447 = vst [vmem:[#allocation2 + $0x169] sm:$0xff] %v375_v45  ;;  %v4730_v32 = vpack.c.bf16 %v374_v25, %v373_v19  ;;  %v4742_v38 = vpack.c.bf16 %v360_v43, %v359_v26  ;;  %v4278_v46 = vld [vmem:[%s5608_s3] sm:$0xff]   ;;  %v1002_v52 = vld [vmem:[#allocation2 + $0x32] sm:$0xff]  ;;  %v460_v13 = vld [vmem:[#allocation2 + $0x68] sm:$0xff] }
  0x32   : > { %3851 = vmatprep.subr.bf16.mxu1 %v4268_v16  ;;  %3899 = vmatprep.subr.bf16.mxu0 %v4269_v18  ;;  %448 = vst [vmem:[#allocation2 + $0x171] sm:$0xff] %v376_v1  ;;  %v4744_v39 = vpack.c.bf16 %v376_v1, %v375_v45  ;;  %v4279_v47 = vld [vmem:[%s5608_s3 + $0x80] sm:$0xff]   ;;  %v1030_v49 = vpack.c.bf16 %v999_v42, %v998_v40  ;;  %v1005_v6 = vld [vmem:[#allocation2 + $0x52] sm:$0xff]  ;;  %v1007_v15 = vld [vmem:[#allocation2 + $0x6a] sm:$0xff] }
  0x33   : > { %v1001_v31 = vld [vmem:[#allocation2 + $0x22] sm:$0xff]  ;;  %v4760_v60 = vpack.c.bf16 %v454_v51, %v453_v50  ;;  %v4764_v4 = vpack.c.bf16 %v456_v63, %v455_v59  ;;  %v4766_v53 = vpack.c.bf16 %v1003_v56, %v1002_v52  ;;  %v4282_v7 = vld [vmem:[%s5608_s3 + $0xf0] sm:$0xff]   ;;  %v4784_v19 = vpack.c.bf16 %v458_v61, %v457_v54  ;;  %v461_v26 = vld [vmem:[#allocation2 + $0x78] sm:$0xff] }
  0x34   : > { %3820 = vmatmul.mubr.bf16.gmra.mxu0 %v4675_v28  ;;  %3836 = vmatmul.mubr.bf16.gmra.mxu1 %v558_v41  ;;  %v4762_v0 = vpack.c.bf16 %v1001_v31, %v1000_v27  ;;  %v4283_v8 = vld [vmem:[%s5608_s3 + $0x130] sm:$0xff]   ;;  %v4786_v20 = vpack.c.bf16 %v1005_v6, %v1004_v62  ;;  %v4788_v23 = vpack.c.bf16 %v460_v13, %v459_v12  ;;  %v4286_v25 = vld [vmem:[%s5608_s3 + $0xe0] sm:$0xff]   ;;  %v468_v31 = vld [vmem:[#allocation2 + $0xc8] sm:$0xff] }
  0x35   : > { %3852 = vmatpush3.bf16.msra.mxu1 %v4268_v16  ;;  %3900 = vmatpush3.bf16.msra.mxu0 %v4269_v18  ;;  %v4284_v16 = vld [vmem:[%s5608_s3 + $0xe8] sm:$0xff]   ;;  %v4790_v24 = vpack.c.bf16 %v1007_v15, %v1006_v14  ;;  %v462_v41 = vld [vmem:[#allocation2 + $0x80] sm:$0xff]  ;;  %v1010_v1 = vld [vmem:[#allocation2 + $0x92] sm:$0xff] }
  0x36   : > { %3853 = vmatprep.subr.bf16.mxu1 %v4270_v57  ;;  %3901 = vmatprep.subr.bf16.mxu0 %v4271_v58  ;;  %v4285_v18 = vld [vmem:[%s5608_s3 + $0x128] sm:$0xff]   ;;  %v1008_v43 = vld [vmem:[#allocation2 + $0x7a] sm:$0xff]  ;;  %v4291_v50 = vld [vmem:[%s5608_s3 + $0x110] sm:$0xff]  }
  0x37   : > { %3823 = vmatprep.mubr.bf16.mxu0 %v4693_v2  ;;  %3839 = vmatprep.mubr.bf16.mxu1 %v4699_v3  ;;  %v1009_v44 = vld [vmem:[#allocation2 + $0x82] sm:$0xff]  ;;  %v1013_v51 = vld [vmem:[#allocation2 + $0xb2] sm:$0xff] }
  0x38   : > { %v4287_v45 = vld [vmem:[%s5608_s3 + $0x120] sm:$0xff]   ;;  %v465_v42 = vld [vmem:[#allocation2 + $0xa8] sm:$0xff]  ;;  %v469_v62 = vld [vmem:[#allocation2 + $0xd8] sm:$0xff] }
  0x39   : > { %3854 = vmatpush3.bf16.msra.mxu1 %v4270_v57  ;;  %3902 = vmatpush3.bf16.msra.mxu0 %v4271_v58  ;;  %v463_v57 = vld [vmem:[#allocation2 + $0x90] sm:$0xff]  ;;  %v464_v58 = vld [vmem:[#allocation2 + $0x98] sm:$0xff]  ;;  %v467_v27 = vld [vmem:[#allocation2 + $0xc0] sm:$0xff] }
  0x3a   : > { %3855 = vmatprep.subr.bf16.mxu1 %v4272_v5  ;;  %3903 = vmatprep.subr.bf16.mxu0 %v4273_v9  ;;  %v4292_v59 = vld [vmem:[%s5608_s3 + $0xc8] sm:$0xff]   ;;  %v4836_v56 = vpack.c.bf16 %v468_v31, %v467_v27  ;;  %v4294_v61 = vld [vmem:[%s5608_s3 + $0xc0] sm:$0xff]   ;;  %v267_v13 = vld [vmem:[%s4398_s29 + $0xf0] sm:$0xff] }
  0x3b   : > { %v4293_v63 = vld [vmem:[%s5608_s3 + $0x108] sm:$0xff]   ;;  %v470_v6 = vld [vmem:[#allocation2 + $0xe0] sm:$0xff]  ;;  %v471_v14 = vld [vmem:[#allocation2 + $0xf0] sm:$0xff] }
  0x3c   : > { %3824 = vmatmul.mubr.bf16.gmra.mxu0 %v4714_v17  ;;  %3840 = vmatmul.mubr.bf16.gmra.mxu1 %v4720_v21  ;;  %v4295_v12 = vld [vmem:[%s5608_s3 + $0x100] sm:$0xff]   ;;  %v472_v15 = vld [vmem:[#allocation2 + $0xf8] sm:$0xff]  ;;  %v1023_v31 = vld [vmem:[#allocation2 + $0x12a] sm:$0xff] }
  0x3d   : > { %3856 = vmatpush3.bf16.msra.mxu1 %v4272_v5  ;;  %3904 = vmatpush3.bf16.msra.mxu0 %v4273_v9  ;;  %v1011_v5 = vld [vmem:[#allocation2 + $0x9a] sm:$0xff]  ;;  %v1022_v27 = vld [vmem:[#allocation2 + $0x122] sm:$0xff] }
  0x3e   : > { %3857 = vmatprep.subr.bf16.mxu1 %v4274_v22  ;;  %3905 = vmatprep.subr.bf16.mxu0 %v4275_v30  ;;  %v4288_v9 = vld [vmem:[%s5608_s3 + $0xd8] sm:$0xff]   ;;  %v4814_v40 = vpack.c.bf16 %v1011_v5, %v1010_v1  ;;  %v4870_v5 = vpack.c.bf16 %v472_v15, %v471_v14 }
  0x3f   : > { %3827 = vmatprep.mubr.bf16.mxu0 %v4728_v35  ;;  %3843 = vmatprep.mubr.bf16.mxu1 %v4730_v32  ;;  %v1027_v14 = vld [vmem:[#allocation2 + $0x15a] sm:$0xff] }
  0x41   : > { %3858 = vmatpush3.bf16.msra.mxu1 %v4274_v22  ;;  %3906 = vmatpush3.bf16.msra.mxu0 %v4275_v30  ;;  %v4289_v22 = vld [vmem:[%s5608_s3 + $0x118] sm:$0xff]   ;;  %v4808_v30 = vpack.c.bf16 %v462_v41, %v461_v26 }
  0x42   : > { %3859 = vmatprep.subr.bf16.mxu1 %v4276_v33  ;;  %3907 = vmatprep.subr.bf16.mxu0 %v4277_v36  ;;  %v1019_v26 = vld [vmem:[#allocation2 + $0xfa] sm:$0xff] }
  0x44   : > { %3828 = vmatmul.mubr.bf16.gmra.mxu0 %v4742_v38  ;;  %3844 = vmatmul.mubr.bf16.gmra.mxu1 %v4744_v39 }
  0x45   : > { %3860 = vmatpush3.bf16.msra.mxu1 %v4276_v33  ;;  %3908 = vmatpush3.bf16.msra.mxu0 %v4277_v36  ;;  %v4810_v33 = vpack.c.bf16 %v1009_v44, %v1008_v43  ;;  %v4812_v36 = vpack.c.bf16 %v464_v58, %v463_v57  ;;  %v4857_v43 = vld [vmem:[%s5608_s3 + $0x178] sm:$0xff]   ;;  %v4866_v58 = vpack.c.bf16 %v470_v6, %v469_v62  ;;  %v478_v62 = vld [vmem:[#allocation2 + $0x140] sm:$0xff] }
  0x46   : > { %3861 = vmatprep.subr.bf16.mxu1 %v4278_v46  ;;  %3909 = vmatprep.subr.bf16.mxu0 %v4279_v47  ;;  %v1024_v6 = vld [vmem:[#allocation2 + $0x13a] sm:$0xff] }
  0x47   : > { %3863 = vmatprep.mubr.bf16.mxu1 %v4338_v48  ;;  %3911 = vmatprep.mubr.bf16.mxu0 %v1030_v49  ;;  %v4290_v49 = vld [vmem:[%s5608_s3 + $0xd0] sm:$0xff]  }
  0x49   : > { %3862 = vmatpush3.bf16.msra.mxu1 %v4278_v46  ;;  %3910 = vmatpush3.bf16.msra.mxu0 %v4279_v47  ;;  %v466_v46 = vld [vmem:[#allocation2 + $0xb0] sm:$0xff] }
  0x4a   : > { %3943 = vmatprep.subr.bf16.mxu1 %v4280_v37  ;;  %3991 = vmatprep.subr.bf16.mxu0 %v4281_v55  ;;  %v1012_v47 = vld [vmem:[#allocation2 + $0xaa] sm:$0xff]  ;;  %v4832_v48 = vpack.c.bf16 %v466_v46, %v465_v42 }
  0x4b   : > { %v4834_v52 = vpack.c.bf16 %v1013_v51, %v1012_v47  ;;  %v473_v42 = vld [vmem:[#allocation2 + $0x108] sm:$0xff]  ;;  %v474_v46 = vld [vmem:[#allocation2 + $0x110] sm:$0xff] }
  0x4c   : > { %3864 = vmatmul.mubr.bf16.vlgmr.msra.gmra.mxu1 %v4760_v60  ;;  %3912 = vmatmul.mubr.bf16.vlgmr.msra.gmra.mxu0 %v4762_v0  ;;  %v1020_v47 = vld [vmem:[#allocation2 + $0x10a] sm:$0xff] }
  0x4d   : > { %3944 = vmatpush3.bf16.msra.mxu1 %v4280_v37  ;;  %3992 = vmatpush3.bf16.msra.mxu0 %v4281_v55  ;;  %v1014_v37 = vld [vmem:[#allocation2 + $0xc2] sm:$0xff]  ;;  %v1015_v55 = vld [vmem:[#allocation2 + $0xca] sm:$0xff] }
  0x4e   : > { %3867 = vmatprep.mubr.bf16.mxu1 %v4764_v4  ;;  %3915 = vmatprep.mubr.bf16.mxu0 %v4766_v53  ;;  %v4838_v54 = vpack.c.bf16 %v1015_v55, %v1014_v37  ;;  %v476_v51 = vld [vmem:[#allocation2 + $0x128] sm:$0xff]  ;;  %v4882_v37 = vpack.c.bf16 %v474_v46, %v473_v42  ;;  %v4298_v42 = vld [vmem:[%s5608_s3 + $0x170] sm:$0xff]  }
  0x4f   : > { %3945 = vmatprep.subr.bf16.mxu1 %v4282_v7  ;;  %3993 = vmatprep.subr.bf16.mxu0 %v4283_v8  ;;  %v4299_v46 = vld [vmem:[%s5608_s3 + $0x1b0] sm:$0xff]  }
  0x51   : > { %3946 = vmatpush3.bf16.msra.mxu1 %v4282_v7  ;;  %3994 = vmatpush3.bf16.msra.mxu0 %v4283_v8  ;;  %v1016_v7 = vld [vmem:[#allocation2 + $0xda] sm:$0xff]  ;;  %v1017_v8 = vld [vmem:[#allocation2 + $0xe2] sm:$0xff] }
  0x52   : > { %3947 = vmatprep.subr.bf16.mxu1 %v4284_v16  ;;  %3995 = vmatprep.subr.bf16.mxu0 %v4285_v18 }
  0x54   : > { %3868 = vmatmul.mubr.bf16.gmra.mxu1 %v4784_v19  ;;  %3916 = vmatmul.mubr.bf16.gmra.mxu0 %v4786_v20 }
  0x55   : > { %3871 = vmatprep.mubr.bf16.mxu1 %v4788_v23  ;;  %3919 = vmatprep.mubr.bf16.mxu0 %v4790_v24 }
  0x56   : > { %3948 = vmatpush3.bf16.msra.mxu1 %v4284_v16  ;;  %3996 = vmatpush3.bf16.msra.mxu0 %v4285_v18  ;;  %v1018_v16 = vld [vmem:[#allocation2 + $0xf2] sm:$0xff] }
  0x57   : > { %3949 = vmatprep.subr.bf16.mxu1 %v4286_v25  ;;  %3997 = vmatprep.subr.bf16.mxu0 %v4287_v45  ;;  %v268_v18 = vld [vmem:[%s4398_s29 + $0xf8] sm:$0xff] }
  0x58   : > { %v307_v41 = vmul.f32 %v4408_v10, %v268_v18 }
  0x5a   : > { %3950 = vmatpush3.bf16.msra.mxu1 %v4286_v25  ;;  %3998 = vmatpush3.bf16.msra.mxu0 %v4287_v45  ;;  %v306_v25 = vmul.f32 %v4408_v10, %v267_v13  ;;  %v4863_v45 = vld [vmem:[%s5608_s3 + $0x1b8] sm:$0xff]   ;;  %v346_v57 = vadd.f32 %v4413_v11, %v307_v41  ;;  %v4868_v10 = vpack.c.bf16 %v1017_v8, %v1016_v7  ;;  %v1025_v7 = vld [vmem:[#allocation2 + $0x142] sm:$0xff]  ;;  %v479_v8 = vld [vmem:[#allocation2 + $0x150] sm:$0xff] }
  0x5b   : > { %3951 = vmatprep.subr.bf16.mxu1 %v4288_v9  ;;  %3999 = vmatprep.subr.bf16.mxu0 %v4289_v22  ;;  %v1026_v13 = vld [vmem:[#allocation2 + $0x152] sm:$0xff] }
  0x5c   : > { %3872 = vmatmul.mubr.bf16.gmra.mxu1 %v4808_v30  ;;  %3920 = vmatmul.mubr.bf16.gmra.mxu0 %v4810_v33  ;;  %v345_v44 = vadd.f32 %v4413_v11, %v306_v25  ;;  %v4900_v25 = vpack.c.bf16 %v1027_v14, %v1026_v13  ;;  %v482_v41 = vld [vmem:[#allocation2 + $0x170] sm:$0xff]  ;;  %v4312_v13 = vld [vmem:[%s5608_s3 + $0x1f8] sm:$0xff]  }
  0x5d   : > { %3875 = vmatprep.mubr.bf16.mxu1 %v4812_v36  ;;  %3923 = vmatprep.mubr.bf16.mxu0 %v4814_v40  ;;  %v4313_v14 = vld [vmem:[%s5608_s3 + $0x238] sm:$0xff]  }
  0x5e   : > { %3952 = vmatpush3.bf16.msra.mxu1 %v4288_v9  ;;  %4000 = vmatpush3.bf16.msra.mxu0 %v4289_v22  ;;  %v377_v1 = vmax.f32 %v345_v44, 0.0  ;;  %v4872_v9 = vpack.c.bf16 %v1019_v26, %v1018_v16  ;;  %v378_v22 = vmax.f32 %v346_v57, 0.0  ;;  %v4896_v16 = vpack.c.bf16 %v1025_v7, %v1024_v6  ;;  %v481_v26 = vld [vmem:[#allocation2 + $0x168] sm:$0xff]  ;;  %v1029_v57 = vld [vmem:[#allocation2 + $0x172] sm:$0xff] }
  0x5f   : > { %3953 = vmatprep.subr.bf16.mxu1 %v4290_v49  ;;  %4001 = vmatprep.subr.bf16.mxu0 %v4291_v50  ;;  %v1028_v44 = vld [vmem:[#allocation2 + $0x16a] sm:$0xff]  ;;  %v1629_v7 = vld [vmem:[#allocation2 + $0xf9] sm:$0xff] }
  0x60   : > { %449 = vst [vmem:[#allocation2 + $0x181] sm:$0xff] %v377_v1  ;;  %450 = vst [vmem:[#allocation2 + $0x189] sm:$0xff] %v378_v22  ;;  %v4876_v11 = vpack.c.bf16 %v378_v22, %v377_v1  ;;  %v4906_v1 = vpack.c.bf16 %v482_v41, %v481_v26  ;;  %v4908_v22 = vpack.c.bf16 %v1029_v57, %v1028_v44  ;;  %v1628_v6 = vld [vmem:[#allocation2 + $0xf1] sm:$0xff] }
  0x61   : > { %v4984_v26 = vpack.c.bf16 %v1629_v7, %v1628_v6  ;;  %v2531_v7 = vld [vmem:[#allocation2 + $0x49] sm:$0xff] }
  0x62   : > { %3954 = vmatpush3.bf16.msra.mxu1 %v4290_v49  ;;  %4002 = vmatpush3.bf16.msra.mxu0 %v4291_v50  ;;  %v1021_v49 = vld [vmem:[#allocation2 + $0x112] sm:$0xff]  ;;  %v475_v50 = vld [vmem:[#allocation2 + $0x120] sm:$0xff] }
  0x63   : > { %3955 = vmatprep.subr.bf16.mxu1 %v4292_v59  ;;  %4003 = vmatprep.subr.bf16.mxu0 %v4293_v63  ;;  %v4884_v55 = vpack.c.bf16 %v1021_v49, %v1020_v47  ;;  %v1624_v47 = vld [vmem:[#allocation2 + $0xc1] sm:$0xff]  ;;  %v1625_v49 = vld [vmem:[#allocation2 + $0xc9] sm:$0xff] }
  0x64   : > { %3876 = vmatmul.mubr.bf16.gmra.mxu1 %v4832_v48  ;;  %3924 = vmatmul.mubr.bf16.gmra.mxu0 %v4834_v52 }
  0x65   : > { %3879 = vmatprep.mubr.bf16.mxu1 %v4836_v56  ;;  %3927 = vmatprep.mubr.bf16.mxu0 %v4838_v54 }
  0x66   : > { %3956 = vmatpush3.bf16.msra.mxu1 %v4292_v59  ;;  %4004 = vmatpush3.bf16.msra.mxu0 %v4293_v63  ;;  %v4886_v59 = vpack.c.bf16 %v476_v51, %v475_v50  ;;  %v4888_v63 = vpack.c.bf16 %v1023_v31, %v1022_v27  ;;  %v1626_v50 = vld [vmem:[#allocation2 + $0xd9] sm:$0xff]  ;;  %v1627_v51 = vld [vmem:[#allocation2 + $0xe1] sm:$0xff]  ;;  %v4964_v31 = vpack.c.bf16 %v1625_v49, %v1624_v47 }
  0x67   : > { %3957 = vmatprep.subr.bf16.mxu1 %v4294_v61  ;;  %4005 = vmatprep.subr.bf16.mxu0 %v4295_v12  ;;  %v4308_v27 = vld [vmem:[%s5608_s3 + $0x148] sm:$0xff]   ;;  %v1334_v44 = vld [vmem:[#allocation2 + $0x180] sm:$0xff] }
  0x68   : > { %v1335_v57 = vld [vmem:[#allocation2 + $0x188] sm:$0xff]  ;;  %v2836_v47 = vld [vmem:[#allocation2 + $0x3a] sm:$0xff] }
  0x6a   : > { %3958 = vmatpush3.bf16.msra.mxu1 %v4294_v61  ;;  %4006 = vmatpush3.bf16.msra.mxu0 %v4295_v12  ;;  %v477_v61 = vld [vmem:[#allocation2 + $0x138] sm:$0xff] }
  0x6b   : > { %4039 = vmatprep.subr.bf16.mxu1 %v4857_v43  ;;  %4087 = vmatprep.subr.bf16.mxu0 %v4863_v45  ;;  %v480_v12 = vld [vmem:[#allocation2 + $0x158] sm:$0xff]  ;;  %v4894_v15 = vpack.c.bf16 %v478_v62, %v477_v61  ;;  %v4966_v61 = vpack.c.bf16 %v1627_v51, %v1626_v50  ;;  %v4311_v62 = vld [vmem:[%s5608_s3 + $0x180] sm:$0xff]  }
  0x6c   : > { %3880 = vmatmul.mubr.bf16.gmra.mxu1 %v4866_v58  ;;  %3928 = vmatmul.mubr.bf16.gmra.mxu0 %v4868_v10  ;;  %v4898_v18 = vpack.c.bf16 %v480_v12, %v479_v8  ;;  %v1630_v8 = vld [vmem:[#allocation2 + $0x109] sm:$0xff]  ;;  %v1631_v12 = vld [vmem:[#allocation2 + $0x111] sm:$0xff] }
  0x6d   : > { %3883 = vmatprep.mubr.bf16.mxu1 %v4870_v5  ;;  %3931 = vmatprep.mubr.bf16.mxu0 %v4872_v9  ;;  %v4986_v41 = vpack.c.bf16 %v1631_v12, %v1630_v8  ;;  %v2532_v8 = vld [vmem:[#allocation2 + $0x51] sm:$0xff] }
  0x6e   : > { %v2837_v12 = vld [vmem:[#allocation2 + $0x4a] sm:$0xff] }
  0x74   : > { %3884 = vmatmul.mubr.bf16.gmra.mxu1 %v4882_v37  ;;  %3932 = vmatmul.mubr.bf16.gmra.mxu0 %v4884_v55 }
  0x75   : > { %3887 = vmatprep.mubr.bf16.mxu1 %v4886_v59  ;;  %3935 = vmatprep.mubr.bf16.mxu0 %v4888_v63 }
  0x7c   : > { %3888 = vmatmul.mubr.bf16.gmra.mxu1 %v4894_v15  ;;  %3936 = vmatmul.mubr.bf16.gmra.mxu0 %v4896_v16 }
  0x7d   : > { %3891 = vmatprep.mubr.bf16.mxu1 %v4898_v18  ;;  %3939 = vmatprep.mubr.bf16.mxu0 %v4900_v25 }
  0x84   : > { %3892 = vmatmul.mubr.bf16.gmra.mxu1 %v4906_v1  ;;  %3940 = vmatmul.mubr.bf16.gmra.mxu0 %v4908_v22 }
  0x85   : > { %3959 = vmatprep.mubr.bf16.mxu1 %v4760_v60  ;;  %4007 = vmatprep.mubr.bf16.mxu0 %v4552_v29  ;;  %v4300_v29 = vld [vmem:[%s5608_s3 + $0x168] sm:$0xff]  }
  0x86   : > { %v4301_v60 = vld [vmem:[%s5608_s3 + $0x1a8] sm:$0xff]  }
  0x8c   : > { %3960 = vmatmul.mubr.bf16.vlgmr.msra.gmra.mxu1 %v4764_v4  ;;  %4008 = vmatmul.mubr.bf16.vlgmr.msra.gmra.mxu0 %v4609_v34  ;;  %v4302_v34 = vld [vmem:[%s5608_s3 + $0x160] sm:$0xff]  }
  0x8d   : > { %4040 = vmatpush3.bf16.msra.mxu1 %v4857_v43  ;;  %4088 = vmatpush3.bf16.msra.mxu0 %v4863_v45  ;;  %v4304_v43 = vld [vmem:[%s5608_s3 + $0x158] sm:$0xff]  }
  0x8e   : > { %3963 = vmatprep.mubr.bf16.mxu1 %v4784_v19  ;;  %4011 = vmatprep.mubr.bf16.mxu0 %v4675_v28  ;;  %v4303_v28 = vld [vmem:[%s5608_s3 + $0x1a0] sm:$0xff]   ;;  %v4305_v45 = vld [vmem:[%s5608_s3 + $0x198] sm:$0xff]  }
  0x8f   : > { %4041 = vmatprep.subr.bf16.mxu1 %v4298_v42  ;;  %4089 = vmatprep.subr.bf16.mxu0 %v4299_v46 }
  0x91   : > { %4042 = vmatpush3.bf16.msra.mxu1 %v4298_v42  ;;  %4090 = vmatpush3.bf16.msra.mxu0 %v4299_v46  ;;  %v5000_v42 = vpack.c.bf16 %v1335_v57, %v1334_v44 }
  0x92   : > { %4043 = vmatprep.subr.bf16.mxu1 %v4300_v29  ;;  %4091 = vmatprep.subr.bf16.mxu0 %v4301_v60 }
  0x94   : > { %3964 = vmatmul.mubr.bf16.gmra.mxu1 %v4788_v23  ;;  %4012 = vmatmul.mubr.bf16.gmra.mxu0 %v4693_v2  ;;  %v4306_v2 = vld [vmem:[%s5608_s3 + $0x150] sm:$0xff]  }
  0x95   : > { %3967 = vmatprep.mubr.bf16.mxu1 %v4808_v30  ;;  %4015 = vmatprep.mubr.bf16.mxu0 %v4714_v17  ;;  %v4307_v17 = vld [vmem:[%s5608_s3 + $0x190] sm:$0xff]  }
  0x96   : > { %4044 = vmatpush3.bf16.msra.mxu1 %v4300_v29  ;;  %4092 = vmatpush3.bf16.msra.mxu0 %v4301_v60 }
  0x97   : > { %4045 = vmatprep.subr.bf16.mxu1 %v4302_v34  ;;  %4093 = vmatprep.subr.bf16.mxu0 %v4303_v28 }
  0x9a   : > { %4046 = vmatpush3.bf16.msra.mxu1 %v4302_v34  ;;  %4094 = vmatpush3.bf16.msra.mxu0 %v4303_v28 }
  0x9b   : > { %4047 = vmatprep.subr.bf16.mxu1 %v4304_v43  ;;  %4095 = vmatprep.subr.bf16.mxu0 %v4305_v45 }
  0x9c   : > { %3968 = vmatmul.mubr.bf16.gmra.mxu1 %v4812_v36  ;;  %4016 = vmatmul.mubr.bf16.gmra.mxu0 %v4728_v35  ;;  %v4309_v35 = vld [vmem:[%s5608_s3 + $0x188] sm:$0xff]  }
  0x9d   : > { %3971 = vmatprep.mubr.bf16.mxu1 %v4832_v48  ;;  %4019 = vmatprep.mubr.bf16.mxu0 %v4742_v38  ;;  %v4310_v38 = vld [vmem:[%s5608_s3 + $0x140] sm:$0xff]  }
  0x9e   : > { %4048 = vmatpush3.bf16.msra.mxu1 %v4304_v43  ;;  %4096 = vmatpush3.bf16.msra.mxu0 %v4305_v45 }
  0x9f   : > { %4049 = vmatprep.subr.bf16.mxu1 %v4306_v2  ;;  %4097 = vmatprep.subr.bf16.mxu0 %v4307_v17 }
  0xa2   : > { %4050 = vmatpush3.bf16.msra.mxu1 %v4306_v2  ;;  %4098 = vmatpush3.bf16.msra.mxu0 %v4307_v17  ;;  %v2530_v2 = vld [vmem:[#allocation2 + $0x39] sm:$0xff] }
  0xa3   : > { %4051 = vmatprep.subr.bf16.mxu1 %v4308_v27  ;;  %4099 = vmatprep.subr.bf16.mxu0 %v4309_v35  ;;  %v2835_v17 = vld [vmem:[#allocation2 + $0x32] sm:$0xff] }
  0xa4   : > { %3972 = vmatmul.mubr.bf16.gmra.mxu1 %v4836_v56  ;;  %4020 = vmatmul.mubr.bf16.gmra.mxu0 %v4964_v31 }
  0xa5   : > { %3975 = vmatprep.mubr.bf16.mxu1 %v4866_v58  ;;  %4023 = vmatprep.mubr.bf16.mxu0 %v4966_v61 }
  0xa6   : > { %4052 = vmatpush3.bf16.msra.mxu1 %v4308_v27  ;;  %4100 = vmatpush3.bf16.msra.mxu0 %v4309_v35  ;;  %v2867_v27 = vpack.c.bf16 %v2836_v47, %v2835_v17 }
  0xa7   : > { %4053 = vmatprep.subr.bf16.mxu1 %v4310_v38  ;;  %4101 = vmatprep.subr.bf16.mxu0 %v4311_v62 }
  0xaa   : > { %4054 = vmatpush3.bf16.msra.mxu1 %v4310_v38  ;;  %4102 = vmatpush3.bf16.msra.mxu0 %v4311_v62 }
  0xab   : > { %4135 = vmatprep.subr.bf16.mxu1 %v4312_v13  ;;  %4183 = vmatprep.subr.bf16.mxu0 %v4313_v14 }
  0xac   : > { %3976 = vmatmul.mubr.bf16.gmra.mxu1 %v4870_v5  ;;  %4024 = vmatmul.mubr.bf16.gmra.mxu0 %v4984_v26 }
  0xad   : > { %3979 = vmatprep.mubr.bf16.mxu1 %v4882_v37  ;;  %4027 = vmatprep.mubr.bf16.mxu0 %v4986_v41 }
  0xb4   : > { %3980 = vmatmul.mubr.bf16.gmra.mxu1 %v4886_v59  ;;  %4028 = vmatmul.mubr.bf16.gmra.mxu0 %v4699_v3  ;;  %v4314_v3 = vld [vmem:[%s5608_s3 + $0x1f0] sm:$0xff]  }
  0xb5   : > { %3983 = vmatprep.mubr.bf16.mxu1 %v4894_v15  ;;  %4031 = vmatprep.mubr.bf16.mxu0 %v4720_v21  ;;  %v4315_v21 = vld [vmem:[%s5608_s3 + $0x230] sm:$0xff]  }
  0xbc   : > { %3984 = vmatmul.mubr.bf16.gmra.mxu1 %v4898_v18  ;;  %4032 = vmatmul.mubr.bf16.gmra.mxu0 %v4730_v32  ;;  %v4316_v32 = vld [vmem:[%s5608_s3 + $0x1e8] sm:$0xff]  }
  0xbd   : > { %3987 = vmatprep.mubr.bf16.mxu1 %v4906_v1  ;;  %4035 = vmatprep.mubr.bf16.mxu0 %v4744_v39  ;;  %v4317_v39 = vld [vmem:[%s5608_s3 + $0x228] sm:$0xff]  }
  0xc4   : > { %3988 = vmatmul.mubr.bf16.gmra.mxu1 %v5000_v42  ;;  %4036 = vmatmul.mubr.bf16.gmra.mxu0 %v4876_v11 }
  0xc5   : > { %4055 = vmatprep.mubr.bf16.mxu1 %v4762_v0  ;;  %4103 = vmatprep.mubr.bf16.mxu0 %v4764_v4  ;;  %v4318_v0 = vld [vmem:[%s5608_s3 + $0x1e0] sm:$0xff]  }
  0xc6   : > { %v4319_v4 = vld [vmem:[%s5608_s3 + $0x220] sm:$0xff]  }
  0xcc   : > { %4056 = vmatmul.mubr.bf16.vlgmr.msra.gmra.mxu1 %v4766_v53  ;;  %4104 = vmatmul.mubr.bf16.vlgmr.msra.gmra.mxu0 %v4784_v19  ;;  %v4320_v53 = vld [vmem:[%s5608_s3 + $0x1d8] sm:$0xff]  }
  0xcd   : > { %4136 = vmatpush3.bf16.msra.mxu1 %v4312_v13  ;;  %4184 = vmatpush3.bf16.msra.mxu0 %v4313_v14  ;;  %v4321_v19 = vld [vmem:[%s5608_s3 + $0x218] sm:$0xff]   ;;  %v2533_v14 = vld [vmem:[#allocation2 + $0x61] sm:$0xff] }
  0xce   : > { %4059 = vmatprep.mubr.bf16.mxu1 %v4786_v20  ;;  %4107 = vmatprep.mubr.bf16.mxu0 %v4788_v23  ;;  %v4322_v20 = vld [vmem:[%s5608_s3 + $0x1d0] sm:$0xff]  }
  0xcf   : > { %4137 = vmatprep.subr.bf16.mxu1 %v4314_v3  ;;  %4185 = vmatprep.subr.bf16.mxu0 %v4315_v21  ;;  %v4323_v23 = vld [vmem:[%s5608_s3 + $0x210] sm:$0xff]  }
  0xd0   : > { %v2838_v13 = vld [vmem:[#allocation2 + $0x52] sm:$0xff] }
  0xd1   : > { %4138 = vmatpush3.bf16.msra.mxu1 %v4314_v3  ;;  %4186 = vmatpush3.bf16.msra.mxu0 %v4315_v21  ;;  %v2839_v3 = vld [vmem:[#allocation2 + $0x62] sm:$0xff]  ;;  %v2840_v21 = vld [vmem:[#allocation2 + $0x6a] sm:$0xff] }
  0xd2   : > { %4139 = vmatprep.subr.bf16.mxu1 %v4316_v32  ;;  %4187 = vmatprep.subr.bf16.mxu0 %v4317_v39 }
  0xd4   : > { %4060 = vmatmul.mubr.bf16.gmra.mxu1 %v4790_v24  ;;  %4108 = vmatmul.mubr.bf16.gmra.mxu0 %v4808_v30  ;;  %v4324_v24 = vld [vmem:[%s5608_s3 + $0x1c8] sm:$0xff]  }
  0xd5   : > { %4063 = vmatprep.mubr.bf16.mxu1 %v4810_v33  ;;  %4111 = vmatprep.mubr.bf16.mxu0 %v4812_v36  ;;  %v4325_v30 = vld [vmem:[%s5608_s3 + $0x208] sm:$0xff]   ;;  %v4326_v33 = vld [vmem:[%s5608_s3 + $0x1c0] sm:$0xff]  }
  0xd6   : > { %4140 = vmatpush3.bf16.msra.mxu1 %v4316_v32  ;;  %4188 = vmatpush3.bf16.msra.mxu0 %v4317_v39  ;;  %v4327_v36 = vld [vmem:[%s5608_s3 + $0x200] sm:$0xff]  }
  0xd7   : > { %4141 = vmatprep.subr.bf16.mxu1 %v4318_v0  ;;  %4189 = vmatprep.subr.bf16.mxu0 %v4319_v4 }
  0xda   : > { %4142 = vmatpush3.bf16.msra.mxu1 %v4318_v0  ;;  %4190 = vmatpush3.bf16.msra.mxu0 %v4319_v4  ;;  %v2562_v0 = vpack.c.bf16 %v2532_v8, %v2531_v7  ;;  %v2868_v4 = vpack.c.bf16 %v2838_v13, %v2837_v12 }
  0xdb   : > { %4143 = vmatprep.subr.bf16.mxu1 %v4320_v53  ;;  %4191 = vmatprep.subr.bf16.mxu0 %v4321_v19 }
  0xdc   : > { %4064 = vmatmul.mubr.bf16.gmra.mxu1 %v4814_v40  ;;  %4112 = vmatmul.mubr.bf16.gmra.mxu0 %v4832_v48 }
  0xdd   : > { %4067 = vmatprep.mubr.bf16.mxu1 %v4834_v52  ;;  %4115 = vmatprep.mubr.bf16.mxu0 %v4836_v56 }
  0xde   : > { %4144 = vmatpush3.bf16.msra.mxu1 %v4320_v53  ;;  %4192 = vmatpush3.bf16.msra.mxu0 %v4321_v19  ;;  %v2869_v19 = vpack.c.bf16 %v2840_v21, %v2839_v3 }
  0xdf   : > { %4145 = vmatprep.subr.bf16.mxu1 %v4322_v20  ;;  %4193 = vmatprep.subr.bf16.mxu0 %v4323_v23 }
  0xe2   : > { %4146 = vmatpush3.bf16.msra.mxu1 %v4322_v20  ;;  %4194 = vmatpush3.bf16.msra.mxu0 %v4323_v23 }
  0xe3   : > { %4147 = vmatprep.subr.bf16.mxu1 %v4324_v24  ;;  %4195 = vmatprep.subr.bf16.mxu0 %v4325_v30 }
  0xe4   : > { %4068 = vmatmul.mubr.bf16.gmra.mxu1 %v4838_v54  ;;  %4116 = vmatmul.mubr.bf16.gmra.mxu0 %v4866_v58 }
  0xe5   : > { %4071 = vmatprep.mubr.bf16.mxu1 %v4868_v10  ;;  %4119 = vmatprep.mubr.bf16.mxu0 %v4870_v5 }
  0xe6   : > { %4148 = vmatpush3.bf16.msra.mxu1 %v4324_v24  ;;  %4196 = vmatpush3.bf16.msra.mxu0 %v4325_v30 }
  0xe7   : > { %4149 = vmatprep.subr.bf16.mxu1 %v4326_v33  ;;  %4197 = vmatprep.subr.bf16.mxu0 %v4327_v36 }
  0xea   : > { %4150 = vmatpush3.bf16.msra.mxu1 %v4326_v33  ;;  %4198 = vmatpush3.bf16.msra.mxu0 %v4327_v36  ;;  %v2535_v33 = vld [vmem:[#allocation2 + $0x79] sm:$0xff]  ;;  %v2536_v36 = vld [vmem:[#allocation2 + $0x81] sm:$0xff] }
  0xeb   : > { %v2564_v13 = vpack.c.bf16 %v2536_v36, %v2535_v33  ;;  %v2845_v36 = vld [vmem:[#allocation2 + $0xaa] sm:$0xff] }
  0xec   : > { %v5064_v40 = vpop.f32.mrf.mxu0  ;;  %v5066_v48 = vpop.f32.mrf.mxu1  ;;  %4072 = vmatmul.mubr.bf16.gmra.mxu1 %v4872_v9  ;;  %4120 = vmatmul.mubr.bf16.gmra.mxu0 %v4882_v37 }
  0xed   : > { %4075 = vmatprep.mubr.bf16.mxu1 %v4884_v55  ;;  %4123 = vmatprep.mubr.bf16.mxu0 %v4886_v59 }
  0xee   : > { %v5072_v52 = vpop.f32.mrf.mxu0  ;;  %v5074_v56 = vpop.f32.mrf.mxu1 }
  0xf0   : > { %v5076_v54 = vpop.f32.mrf.mxu0  ;;  %v5078_v58 = vpop.f32.mrf.mxu1 }
  0xf2   : > { %v5080_v10 = vpop.f32.mrf.mxu0  ;;  %v5082_v5 = vpop.f32.mrf.mxu1 }
  0xf4   : > { %v5084_v46 = vpop.f32.mrf.mxu0  ;;  %v5086_v9 = vpop.f32.mrf.mxu1  ;;  %4076 = vmatmul.mubr.bf16.gmra.mxu1 %v4888_v63  ;;  %4124 = vmatmul.mubr.bf16.gmra.mxu0 %v4894_v15  ;;  %v1946_v15 = vld [vmem:[#allocation2 + $0x182] sm:$0xff] }
  0xf5   : > { %4079 = vmatprep.mubr.bf16.mxu1 %v4896_v16  ;;  %4127 = vmatprep.mubr.bf16.mxu0 %v4898_v18  ;;  %v1947_v16 = vld [vmem:[#allocation2 + $0x18a] sm:$0xff] }
  0xf6   : > { %v5092_v37 = vpop.f32.mrf.mxu0  ;;  %v5094_v55 = vpop.f32.mrf.mxu1  ;;  %v2529_v18 = vld [vmem:[#allocation2 + $0x31] sm:$0xff] }
  0xf7   : > { %v2561_v51 = vpack.c.bf16 %v2530_v2, %v2529_v18  ;;  %v2842_v18 = vld [vmem:[#allocation2 + $0x82] sm:$0xff]  ;;  %v2537_v2 = vld [vmem:[#allocation2 + $0x91] sm:$0xff] }
  0xf8   : > { %v5096_v59 = vpop.f32.mrf.mxu0  ;;  %v5098_v29 = vpop.f32.mrf.mxu1 }
  0xfa   : > { %v5100_v60 = vpop.f32.mrf.mxu0  ;;  %v5102_v34 = vpop.f32.mrf.mxu1 }
  0xfc   : > { %v5104_v28 = vpop.f32.mrf.mxu0  ;;  %v5106_v63 = vpop.f32.mrf.mxu1  ;;  %4080 = vmatmul.mubr.bf16.gmra.mxu1 %v4900_v25  ;;  %4128 = vmatmul.mubr.bf16.gmra.mxu0 %v4906_v1  ;;  %v5120_v25 = vpack.c.bf16 %v1947_v16, %v1946_v15  ;;  %v4328_v1 = vld [vmem:[#allocation2] sm:$0xff] }
  0xfd   : > { %4083 = vmatprep.mubr.bf16.mxu1 %v4908_v22  ;;  %4131 = vmatprep.mubr.bf16.mxu0 %v5000_v42  ;;  %v2270_v22 = vpack.c.bf16 %v4328_v1, %v4328_v1  ;;  %v2534_v42 = vld [vmem:[#allocation2 + $0x69] sm:$0xff]  ;;  %v2841_v16 = vld [vmem:[#allocation2 + $0x7a] sm:$0xff] }
  0xfe   : > { %v5112_v43 = vpop.f32.mrf.mxu0  ;;  %v5114_v45 = vpop.f32.mrf.mxu1  ;;  %v2563_v53 = vpack.c.bf16 %v2534_v42, %v2533_v14  ;;  %v2538_v1 = vld [vmem:[#allocation2 + $0x99] sm:$0xff]  ;;  %v2870_v14 = vpack.c.bf16 %v2842_v18, %v2841_v16 }
  0xff   : > { %v2565_v3 = vpack.c.bf16 %v2538_v1, %v2537_v2  ;;  %v2846_v16 = vld [vmem:[#allocation2 + $0xb2] sm:$0xff] }
 0x100   : > { %v5116_v49 = vpop.f32.mrf.mxu0  ;;  %v5118_v50 = vpop.f32.mrf.mxu1 }
 0x102   : > { %v5122_v35 = vpop.f32.mrf.mxu0  ;;  %v5124_v38 = vpop.f32.mrf.mxu1 }
 0x104   : > { %v5126_v62 = vpop.f32.mrf.mxu0  ;;  %v5128_v6 = vpop.f32.mrf.mxu1  ;;  %4084 = vmatmul.mubr.bf16.gmra.mxu1 %v5120_v25  ;;  %4132 = vmatmul.mubr.bf16.gmra.mxu0 %v2270_v22  ;;  %v2843_v22 = vld [vmem:[#allocation2 + $0x92] sm:$0xff] }
 0x105   : > { %4151 = vmatprep.mubr.bf16.mxu1 %v2561_v51  ;;  %4199 = vmatprep.mubr.bf16.mxu0 %v2867_v27  ;;  %v2844_v51 = vld [vmem:[#allocation2 + $0x9a] sm:$0xff] }
 0x106   : > { %v5131_v44 = vpop.f32.mrf.mxu0  ;;  %v5133_v57 = vpop.f32.mrf.mxu1  ;;  %v2871_v21 = vpack.c.bf16 %v2844_v51, %v2843_v22 }
 0x108   : > { %v5135_v32 = vpop.f32.mrf.mxu0  ;;  %v5137_v39 = vpop.f32.mrf.mxu1 }
 0x10a   : > { %v5139_v20 = vpop.f32.mrf.mxu0  ;;  %v5141_v23 = vpop.f32.mrf.mxu1 }
 0x10c   : > { %v3865_v24 = vpop.f32.mrf.mxu1  ;;  %v3913_v30 = vpop.f32.mrf.mxu0  ;;  %4152 = vmatmul.mubr.bf16.vlgmr.msra.gmra.mxu1 %v2562_v0  ;;  %4200 = vmatmul.mubr.bf16.vlgmr.msra.gmra.mxu0 %v2868_v4 }
 0x10d   : > { %v880_v15 = vadd.f32 %v3865_v24, %v5064_v40  ;;  %4155 = vmatprep.mubr.bf16.mxu1 %v2563_v53  ;;  %4203 = vmatprep.mubr.bf16.mxu0 %v2869_v19 }
 0x10e   : > { %v871_v17 = vpop.f32.mrf.mxu1  ;;  %v1145_v47 = vpop.f32.mrf.mxu0 }
 0x10f   : > { %v5144_v27 = vadd.f32 %v3913_v30, %v880_v15  ;;  %v872_v7 = vadd.f32 %v871_v17, %v5072_v52  ;;  %v2539_v52 = vld [vmem:[#allocation2 + $0xa9] sm:$0xff] }
 0x110   : > { %v3866_v8 = vpop.f32.mrf.mxu1  ;;  %v3914_v12 = vpop.f32.mrf.mxu0  ;;  %v2847_v17 = vld [vmem:[#allocation2 + $0xc2] sm:$0xff] }
 0x111   : > { %v5147_v42 = vadd.f32 %v1145_v47, %v872_v7  ;;  %v883_v40 = vadd.f32 %v3866_v8, %v5076_v54  ;;  %v2540_v54 = vld [vmem:[#allocation2 + $0xb1] sm:$0xff]  ;;  %v2872_v8 = vpack.c.bf16 %v2846_v16, %v2845_v36 }
 0x112   : > { %v874_v0 = vpop.f32.mrf.mxu1  ;;  %v1148_v4 = vpop.f32.mrf.mxu0  ;;  %v2848_v47 = vld [vmem:[#allocation2 + $0xca] sm:$0xff]  ;;  %v2566_v7 = vpack.c.bf16 %v2540_v54, %v2539_v52  ;;  %v2852_v54 = vld [vmem:[#allocation2 + $0xfa] sm:$0xff] }
 0x113   : > { %v5150_v53 = vadd.f32 %v3914_v12, %v883_v40  ;;  %v875_v19 = vadd.f32 %v874_v0, %v5080_v10 }
 0x114   : > { %v3869_v24 = vpop.f32.mrf.mxu1  ;;  %v3917_v30 = vpop.f32.mrf.mxu0  ;;  %4156 = vmatmul.mubr.bf16.gmra.mxu1 %v2564_v13  ;;  %4204 = vmatmul.mubr.bf16.gmra.mxu0 %v2870_v14  ;;  %v2873_v13 = vpack.c.bf16 %v2848_v47, %v2847_v17 }
 0x115   : > { %v5153_v15 = vadd.f32 %v1148_v4, %v875_v19  ;;  %v896_v33 = vadd.f32 %v3869_v24, %v5084_v46  ;;  %4159 = vmatprep.mubr.bf16.mxu1 %v2565_v3  ;;  %4207 = vmatprep.mubr.bf16.mxu0 %v2871_v21  ;;  %v2849_v24 = vld [vmem:[#allocation2 + $0xda] sm:$0xff] }
 0x116   : > { %v887_v18 = vpop.f32.mrf.mxu1  ;;  %v1161_v2 = vpop.f32.mrf.mxu0 }
 0x117   : > { %v5156_v1 = vadd.f32 %v3917_v30, %v896_v33  ;;  %v888_v10 = vadd.f32 %v887_v18, %v5092_v37  ;;  %v2851_v33 = vld [vmem:[#allocation2 + $0xf2] sm:$0xff] }
 0x118   : > { %v3870_v22 = vpop.f32.mrf.mxu1  ;;  %v3918_v51 = vpop.f32.mrf.mxu0  ;;  %v2875_v47 = vpack.c.bf16 %v2852_v54, %v2851_v33 }
 0x119   : > { %v5159_v12 = vadd.f32 %v1161_v2, %v888_v10  ;;  %v899_v46 = vadd.f32 %v3870_v22, %v5096_v59  ;;  %v2850_v59 = vld [vmem:[#allocation2 + $0xe2] sm:$0xff] }
 0x11a   : > { %v890_v14 = vpop.f32.mrf.mxu1  ;;  %v1164_v40 = vpop.f32.mrf.mxu0  ;;  %v2874_v2 = vpack.c.bf16 %v2850_v59, %v2849_v24 }
 0x11b   : > { %v5162_v3 = vadd.f32 %v3918_v51, %v899_v46  ;;  %v891_v21 = vadd.f32 %v890_v14, %v5100_v60  ;;  %v2549_v14 = vld [vmem:[#allocation2 + $0x121] sm:$0xff] }
 0x11c   : > { %v3873_v0 = vpop.f32.mrf.mxu1  ;;  %v3921_v4 = vpop.f32.mrf.mxu0  ;;  %4160 = vmatmul.mubr.bf16.gmra.mxu1 %v2566_v7  ;;  %4208 = vmatmul.mubr.bf16.gmra.mxu0 %v2872_v8 }
 0x11d   : > { %v5165_v37 = vadd.f32 %v1164_v40, %v891_v21  ;;  %v912_v19 = vadd.f32 %v3873_v0, %v5104_v28  ;;  %4163 = vmatprep.mubr.bf16.mxu1 %v4964_v31  ;;  %4211 = vmatprep.mubr.bf16.mxu0 %v2873_v13  ;;  %v2854_v13 = vld [vmem:[#allocation2 + $0x112] sm:$0xff]  ;;  %v2550_v0 = vld [vmem:[#allocation2 + $0x129] sm:$0xff] }
 0x11e   : > { %v903_v30 = vpop.f32.mrf.mxu1  ;;  %v1177_v52 = vpop.f32.mrf.mxu0 }
 0x11f   : > { %v5169_v36 = vadd.f32 %v3921_v4, %v912_v19  ;;  %v904_v60 = vadd.f32 %v903_v30, %v5112_v43  ;;  %v2855_v4 = vld [vmem:[#allocation2 + $0x122] sm:$0xff] }
 0x120   : > { %v3874_v16 = vpop.f32.mrf.mxu1  ;;  %v3922_v18 = vpop.f32.mrf.mxu0 }
 0x121   : > { %v5172_v17 = vadd.f32 %v1177_v52, %v904_v60  ;;  %v915_v28 = vadd.f32 %v3874_v16, %v5116_v49  ;;  %v2853_v49 = vld [vmem:[#allocation2 + $0x10a] sm:$0xff] }
 0x122   : > { %v906_v31 = vpop.f32.mrf.mxu1  ;;  %v1180_v10 = vpop.f32.mrf.mxu0  ;;  %v2876_v30 = vpack.c.bf16 %v2854_v13, %v2853_v49  ;;  %v2554_v49 = vld [vmem:[#allocation2 + $0x159] sm:$0xff] }
 0x123   : > { %v5175_v22 = vadd.f32 %v3922_v18, %v915_v28  ;;  %v907_v51 = vadd.f32 %v906_v31, %v5122_v35  ;;  %v2856_v35 = vld [vmem:[#allocation2 + $0x12a] sm:$0xff]  ;;  %v2860_v13 = vld [vmem:[#allocation2 + $0x15a] sm:$0xff] }
 0x124   : > { %v3877_v7 = vpop.f32.mrf.mxu1  ;;  %v3925_v8 = vpop.f32.mrf.mxu0  ;;  %4164 = vmatmul.mubr.bf16.gmra.mxu1 %v4966_v61  ;;  %4212 = vmatmul.mubr.bf16.gmra.mxu0 %v2874_v2  ;;  %v2877_v33 = vpack.c.bf16 %v2856_v35, %v2855_v4 }
 0x125   : > { %v5179_v43 = vadd.f32 %v1180_v10, %v907_v51  ;;  %v928_v46 = vadd.f32 %v3877_v7, %v5126_v62  ;;  %4167 = vmatprep.mubr.bf16.mxu1 %v4984_v26  ;;  %4215 = vmatprep.mubr.bf16.mxu0 %v2875_v47  ;;  %v2571_v62 = vpack.c.bf16 %v2550_v0, %v2549_v14  ;;  %v2552_v47 = vld [vmem:[#allocation2 + $0x141] sm:$0xff]  ;;  %v2553_v7 = vld [vmem:[#allocation2 + $0x151] sm:$0xff] }
 0x126   : > { %v919_v40 = vpop.f32.mrf.mxu1  ;;  %v1193_v21 = vpop.f32.mrf.mxu0  ;;  %v2858_v51 = vld [vmem:[#allocation2 + $0x142] sm:$0xff] }
 0x127   : > { %v5183_v19 = vadd.f32 %v3925_v8, %v928_v46  ;;  %v920_v61 = vadd.f32 %v919_v40, %v5131_v44  ;;  %v2551_v44 = vld [vmem:[#allocation2 + $0x139] sm:$0xff] }
 0x128   : > { %v3878_v24 = vpop.f32.mrf.mxu1  ;;  %v3926_v59 = vpop.f32.mrf.mxu0  ;;  %v2572_v0 = vpack.c.bf16 %v2552_v47, %v2551_v44 }
 0x129   : > { %v5186_v52 = vadd.f32 %v1193_v21, %v920_v61  ;;  %v931_v26 = vadd.f32 %v3878_v24, %v5135_v32  ;;  %v2857_v32 = vld [vmem:[#allocation2 + $0x13a] sm:$0xff]  ;;  %v2573_v61 = vpack.c.bf16 %v2554_v49, %v2553_v7 }
 0x12a   : > { %v922_v54 = vpop.f32.mrf.mxu1  ;;  %v1196_v60 = vpop.f32.mrf.mxu0  ;;  %v2878_v4 = vpack.c.bf16 %v2858_v51, %v2857_v32 }
 0x12b   : > { %v5189_v16 = vadd.f32 %v3926_v59, %v931_v26  ;;  %v923_v18 = vadd.f32 %v922_v54, %v5139_v20  ;;  %v2859_v20 = vld [vmem:[#allocation2 + $0x152] sm:$0xff] }
 0x12c   : > { %v3881_v2 = vpop.f32.mrf.mxu1  ;;  %v3929_v28 = vpop.f32.mrf.mxu0  ;;  %4168 = vmatmul.mubr.bf16.gmra.mxu1 %v4986_v41  ;;  %4216 = vmatmul.mubr.bf16.gmra.mxu0 %v2876_v30  ;;  %v2879_v24 = vpack.c.bf16 %v2860_v13, %v2859_v20 }
 0x12d   : > { %v5193_v31 = vadd.f32 %v1196_v60, %v923_v18  ;;  %v944_v10 = vadd.f32 %v3881_v2, %v5066_v48  ;;  %4171 = vmatprep.mubr.bf16.mxu1 %v2571_v62  ;;  %4219 = vmatprep.mubr.bf16.mxu0 %v2877_v33  ;;  %v2861_v2 = vld [vmem:[#allocation2 + $0x16a] sm:$0xff] }
 0x12e   : > { %v935_v8 = vpop.f32.mrf.mxu1  ;;  %v1209_v46 = vpop.f32.mrf.mxu0 }
 0x12f   : > { %v5196_v14 = vadd.f32 %v3929_v28, %v944_v10  ;;  %v936_v41 = vadd.f32 %v935_v8, %v5074_v56  ;;  %v2555_v56 = vld [vmem:[#allocation2 + $0x169] sm:$0xff]  ;;  %v2862_v28 = vld [vmem:[#allocation2 + $0x172] sm:$0xff] }
 0x130   : > { %v3882_v40 = vpop.f32.mrf.mxu1  ;;  %v3930_v21 = vpop.f32.mrf.mxu0  ;;  %v2880_v8 = vpack.c.bf16 %v2862_v28, %v2861_v2 }
 0x131   : > { %v5199_v35 = vadd.f32 %v1209_v46, %v936_v41  ;;  %v947_v48 = vadd.f32 %v3882_v40, %v5078_v58  ;;  %v2556_v58 = vld [vmem:[#allocation2 + $0x171] sm:$0xff] }
 0x132   : > { %v938_v59 = vpop.f32.mrf.mxu1  ;;  %v1212_v30 = vpop.f32.mrf.mxu0  ;;  %v2574_v7 = vpack.c.bf16 %v2556_v58, %v2555_v56 }
 0x133   : > { %v5202_v26 = vadd.f32 %v3930_v21, %v947_v48  ;;  %v939_v62 = vadd.f32 %v938_v59, %v5082_v5  ;;  %v2865_v48 = vld [vmem:[#allocation2 + $0x19a] sm:$0xff] }
 0x134   : > { %v3885_v33 = vpop.f32.mrf.mxu1  ;;  %v3933_v54 = vpop.f32.mrf.mxu0  ;;  %4172 = vmatmul.mubr.bf16.gmra.mxu1 %v2572_v0  ;;  %4220 = vmatmul.mubr.bf16.gmra.mxu0 %v2878_v4  ;;  %v2559_v0 = vld [vmem:[#allocation2 + $0x199] sm:$0xff] }
 0x135   : > { %v5205_v60 = vadd.f32 %v1212_v30, %v939_v62  ;;  %v960_v18 = vadd.f32 %v3885_v33, %v5086_v9  ;;  %4175 = vmatprep.mubr.bf16.mxu1 %v2573_v61  ;;  %4223 = vmatprep.mubr.bf16.mxu0 %v2879_v24  ;;  %v2866_v61 = vld [vmem:[#allocation2 + $0x1a2] sm:$0xff] }
 0x136   : > { %v951_v44 = vpop.f32.mrf.mxu1  ;;  %v1225_v47 = vpop.f32.mrf.mxu0  ;;  %v2882_v56 = vpack.c.bf16 %v2866_v61, %v2865_v48 }
 0x137   : > { %v5208_v10 = vadd.f32 %v3933_v54, %v960_v18  ;;  %v952_v5 = vadd.f32 %v951_v44, %v5094_v55 }
 0x138   : > { %v3886_v32 = vpop.f32.mrf.mxu1  ;;  %v3934_v51 = vpop.f32.mrf.mxu0 }
 0x139   : > { %v5211_v46 = vadd.f32 %v1225_v47, %v952_v5  ;;  %v963_v49 = vadd.f32 %v3886_v32, %v5098_v29  ;;  %v2560_v29 = vld [vmem:[#allocation2 + $0x1a1] sm:$0xff] }
 0x13a   : > { %v954_v9 = vpop.f32.mrf.mxu1  ;;  %v1228_v20 = vpop.f32.mrf.mxu0  ;;  %v2576_v54 = vpack.c.bf16 %v2560_v29, %v2559_v0 }
 0x13b   : > { %v5214_v13 = vadd.f32 %v3934_v51, %v963_v49  ;;  %v955_v41 = vadd.f32 %v954_v9, %v5102_v34 }
 0x13c   : > { %v3889_v40 = vpop.f32.mrf.mxu1  ;;  %v3937_v21 = vpop.f32.mrf.mxu0  ;;  %4176 = vmatmul.mubr.bf16.gmra.mxu1 %v2574_v7  ;;  %4224 = vmatmul.mubr.bf16.gmra.mxu0 %v2880_v8 }
 0x13d   : > { %v5217_v55 = vadd.f32 %v1228_v20, %v955_v41  ;;  %v976_v4 = vadd.f32 %v3889_v40, %v5106_v63  ;;  %4179 = vmatprep.mubr.bf16.mxu1 %v4876_v11  ;;  %4227 = vmatprep.mubr.bf16.mxu0 %v5120_v25 }
 0x13e   : > { %v967_v24 = vpop.f32.mrf.mxu1  ;;  %v1241_v59 = vpop.f32.mrf.mxu0 }
 0x13f   : > { %v5222_v30 = vadd.f32 %v3937_v21, %v976_v4  ;;  %v968_v34 = vadd.f32 %v967_v24, %v5114_v45 }
 0x140   : > { %v3890_v62 = vpop.f32.mrf.mxu1  ;;  %v3938_v33 = vpop.f32.mrf.mxu0 }
 0x141   : > { %v5225_v18 = vadd.f32 %v1241_v59, %v968_v34  ;;  %v979_v63 = vadd.f32 %v3890_v62, %v5118_v50 }
 0x142   : > { %v970_v11 = vpop.f32.mrf.mxu1  ;;  %v1244_v58 = vpop.f32.mrf.mxu0 }
 0x143   : > { %v5228_v25 = vadd.f32 %v3938_v33, %v979_v63  ;;  %v971_v2 = vadd.f32 %v970_v11, %v5124_v38 }
 0x144   : > { %v3893_v28 = vpop.f32.mrf.mxu1  ;;  %v3941_v44 = vpop.f32.mrf.mxu0  ;;  %4180 = vmatmul.mubr.bf16.gmra.mxu1 %v2576_v54  ;;  %4228 = vmatmul.mubr.bf16.gmra.mxu0 %v2882_v56 }
 0x145   : > { %v5231_v47 = vadd.f32 %v1244_v58, %v971_v2  ;;  %v992_v45 = vadd.f32 %v3893_v28, %v5128_v6 }
 0x146   : > { %v983_v5 = vpop.f32.mrf.mxu1  ;;  %v1257_v32 = vpop.f32.mrf.mxu0 }
 0x147   : > { %v5234_v51 = vadd.f32 %v3941_v44, %v992_v45  ;;  %v984_v50 = vadd.f32 %v983_v5, %v5133_v57 }
 0x148   : > { %v3894_v7 = vpop.f32.mrf.mxu1  ;;  %v3942_v8 = vpop.f32.mrf.mxu0 }
 0x149   : > { %v5237_v49 = vadd.f32 %v1257_v32, %v984_v50  ;;  %v995_v38 = vadd.f32 %v3894_v7, %v5137_v39 }
 0x14a   : > { %v986_v9 = vpop.f32.mrf.mxu1  ;;  %v1260_v20 = vpop.f32.mrf.mxu0 }
 0x14b   : > { %v5240_v41 = vadd.f32 %v3942_v8, %v995_v38  ;;  %v987_v40 = vadd.f32 %v986_v9, %v5141_v23 }
 0x14c   : > { %v3961_v21 = vpop.f32.mrf.mxu1  ;;  %v4009_v6 = vpop.f32.mrf.mxu0 }
 0x14d   : > { %v5243_v0 = vadd.f32 %v1260_v20, %v987_v40  ;;  %v1580_v4 = vadd.f32 %v3961_v21, %v5144_v27 }
 0x14e   : > { %v1451_v29 = vpop.f32.mrf.mxu1  ;;  %v1757_v57 = vpop.f32.mrf.mxu0 }
 0x14f   : > { %v5246_v48 = vadd.f32 %v4009_v6, %v1580_v4  ;;  %v1578_v61 = vadd.f32 %v1451_v29, %v5147_v42 }
 0x150   : > { %v3962_v24 = vpop.f32.mrf.mxu1  ;;  %v4010_v39 = vpop.f32.mrf.mxu0 }
 0x151   : > { %v5249_v59 = vadd.f32 %v1757_v57, %v1578_v61  ;;  %v1581_v34 = vadd.f32 %v3962_v24, %v5150_v53 }
 0x152   : > { %v1454_v62 = vpop.f32.mrf.mxu1  ;;  %v1760_v23 = vpop.f32.mrf.mxu0 }
 0x153   : > { %v5252_v33 = vadd.f32 %v4010_v39, %v1581_v34  ;;  %v1579_v54 = vadd.f32 %v1454_v62, %v5153_v15 }
 0x154   : > { %v3965_v56 = vpop.f32.mrf.mxu1  ;;  %v4013_v27 = vpop.f32.mrf.mxu0 }
 0x155   : > { %v5255_v63 = vadd.f32 %v1760_v23, %v1579_v54  ;;  %v1584_v11 = vadd.f32 %v3965_v56, %v5156_v1 }
 0x156   : > { %v1467_v58 = vpop.f32.mrf.mxu1  ;;  %v1773_v42 = vpop.f32.mrf.mxu0 }
 0x157   : > { %v5258_v2 = vadd.f32 %v4013_v27, %v1584_v11  ;;  %v1582_v28 = vadd.f32 %v1467_v58, %v5159_v12 }
 0x158   : > { %v3966_v44 = vpop.f32.mrf.mxu1  ;;  %v4014_v53 = vpop.f32.mrf.mxu0 }
 0x159   : > { %v5261_v45 = vadd.f32 %v1773_v42, %v1582_v28  ;;  %v1585_v5 = vadd.f32 %v3966_v44, %v5162_v3 }
 0x15a   : > { %v1470_v32 = vpop.f32.mrf.mxu1  ;;  %v1776_v15 = vpop.f32.mrf.mxu0 }
 0x15b   : > { %v5264_v50 = vadd.f32 %v4014_v53, %v1585_v5  ;;  %v1583_v7 = vadd.f32 %v1470_v32, %v5165_v37 }
 0x15c   : > { %v3969_v8 = vpop.f32.mrf.mxu1  ;;  %v4017_v1 = vpop.f32.mrf.mxu0 }
 0x15d   : > { %v5267_v38 = vadd.f32 %v1776_v15, %v1583_v7  ;;  %v1588_v9 = vadd.f32 %v3969_v8, %v5169_v36 }
 0x15e   : > { %v1483_v20 = vpop.f32.mrf.mxu1  ;;  %v1789_v12 = vpop.f32.mrf.mxu0 }
 0x15f   : > { %v5270_v40 = vadd.f32 %v4017_v1, %v1588_v9  ;;  %v1586_v21 = vadd.f32 %v1483_v20, %v5172_v17 }
 0x160   : > { %v3970_v6 = vpop.f32.mrf.mxu1  ;;  %v4018_v3 = vpop.f32.mrf.mxu0 }
 0x161   : > { %v5273_v4 = vadd.f32 %v1789_v12, %v1586_v21  ;;  %v1589_v29 = vadd.f32 %v3970_v6, %v5175_v22 }
 0x162   : > { %v1486_v57 = vpop.f32.mrf.mxu1  ;;  %v1792_v37 = vpop.f32.mrf.mxu0 }
 0x163   : > { %v5276_v61 = vadd.f32 %v4018_v3, %v1589_v29  ;;  %v1587_v24 = vadd.f32 %v1486_v57, %v5179_v43 }
 0x164   : > { %v3973_v39 = vpop.f32.mrf.mxu1  ;;  %v4021_v36 = vpop.f32.mrf.mxu0 }
 0x165   : > { %v5279_v34 = vadd.f32 %v1792_v37, %v1587_v24  ;;  %v1592_v62 = vadd.f32 %v3973_v39, %v5183_v19 }
 0x166   : > { %v1499_v23 = vpop.f32.mrf.mxu1  ;;  %v1805_v17 = vpop.f32.mrf.mxu0 }
 0x167   : > { %v5282_v54 = vadd.f32 %v4021_v36, %v1592_v62  ;;  %v1590_v56 = vadd.f32 %v1499_v23, %v5186_v52 }
 0x168   : > { %v3974_v27 = vpop.f32.mrf.mxu1  ;;  %v4022_v22 = vpop.f32.mrf.mxu0 }
 0x169   : > { %v5285_v11 = vadd.f32 %v1805_v17, %v1590_v56  ;;  %v1593_v58 = vadd.f32 %v3974_v27, %v5189_v16 }
 0x16a   : > { %v1502_v42 = vpop.f32.mrf.mxu1  ;;  %v1808_v43 = vpop.f32.mrf.mxu0 }
 0x16b   : > { %v5288_v28 = vadd.f32 %v4022_v22, %v1593_v58  ;;  %v1591_v44 = vadd.f32 %v1502_v42, %v5193_v31 }
 0x16c   : > { %v3977_v53 = vpop.f32.mrf.mxu1  ;;  %v4025_v19 = vpop.f32.mrf.mxu0 }
 0x16d   : > { %v5291_v5 = vadd.f32 %v1808_v43, %v1591_v44  ;;  %v1596_v32 = vadd.f32 %v3977_v53, %v5196_v14 }
 0x16e   : > { %v1515_v15 = vpop.f32.mrf.mxu1  ;;  %v1821_v52 = vpop.f32.mrf.mxu0 }
 0x16f   : > { %v5294_v7 = vadd.f32 %v4025_v19, %v1596_v32  ;;  %v1594_v8 = vadd.f32 %v1515_v15, %v5199_v35 }
 0x170   : > { %v3978_v1 = vpop.f32.mrf.mxu1  ;;  %v4026_v16 = vpop.f32.mrf.mxu0 }
 0x171   : > { %v5297_v9 = vadd.f32 %v1821_v52, %v1594_v8  ;;  %v1597_v20 = vadd.f32 %v3978_v1, %v5202_v26 }
 0x172   : > { %v1518_v12 = vpop.f32.mrf.mxu1  ;;  %v1824_v31 = vpop.f32.mrf.mxu0 }
 0x173   : > { %v5300_v21 = vadd.f32 %v4026_v16, %v1597_v20  ;;  %v1595_v6 = vadd.f32 %v1518_v12, %v5205_v60 }
 0x174   : > { %v3981_v3 = vpop.f32.mrf.mxu1  ;;  %v4029_v14 = vpop.f32.mrf.mxu0 }
 0x175   : > { %5611 = vst [vmem:[#allocation3_spill] sm:$0xff] %v5300_v21  ;;  %v5303_v29 = vadd.f32 %v1824_v31, %v1595_v6  ;;  %v1600_v57 = vadd.f32 %v3981_v3, %v5208_v10 }
 0x176   : > { %v1531_v37 = vpop.f32.mrf.mxu1  ;;  %v1837_v35 = vpop.f32.mrf.mxu0 }
 0x177   : > { %5612 = vst [vmem:[#allocation4_spill] sm:$0xff] %v5303_v29  ;;  %v5306_v24 = vadd.f32 %v4029_v14, %v1600_v57  ;;  %v1598_v39 = vadd.f32 %v1531_v37, %v5211_v46 }
 0x178   : > { %v3982_v36 = vpop.f32.mrf.mxu1  ;;  %v4030_v26 = vpop.f32.mrf.mxu0 }
 0x179   : > { %5613 = vst [vmem:[#allocation5_spill] sm:$0xff] %v5306_v24  ;;  %v5309_v62 = vadd.f32 %v1837_v35, %v1598_v39  ;;  %v1601_v23 = vadd.f32 %v3982_v36, %v5214_v13 }
 0x17a   : > { %v1534_v17 = vpop.f32.mrf.mxu1  ;;  %v1840_v60 = vpop.f32.mrf.mxu0 }
 0x17b   : > { %5614 = vst [vmem:[#allocation6_spill] sm:$0xff] %v5309_v62  ;;  %v5312_v56 = vadd.f32 %v4030_v26, %v1601_v23  ;;  %v1599_v27 = vadd.f32 %v1534_v17, %v5217_v55 }
 0x17c   : > { %v3985_v22 = vpop.f32.mrf.mxu1  ;;  %v4033_v10 = vpop.f32.mrf.mxu0 }
 0x17d   : > { %5615 = vst [vmem:[#allocation7_spill] sm:$0xff] %v5312_v56  ;;  %v5315_v58 = vadd.f32 %v1840_v60, %v1599_v27  ;;  %v1604_v42 = vadd.f32 %v3985_v22, %v5222_v30 }
 0x17e   : > { %v1547_v43 = vpop.f32.mrf.mxu1  ;;  %v1853_v46 = vpop.f32.mrf.mxu0 }
 0x17f   : > { %5616 = vst [vmem:[#allocation8_spill] sm:$0xff] %v5315_v58  ;;  %v5318_v44 = vadd.f32 %v4033_v10, %v1604_v42  ;;  %v1602_v53 = vadd.f32 %v1547_v43, %v5225_v18 }
 0x180   : > { %v3986_v19 = vpop.f32.mrf.mxu1  ;;  %v4034_v13 = vpop.f32.mrf.mxu0 }
 0x181   : > { %5617 = vst [vmem:[#allocation9_spill] sm:$0xff] %v5318_v44  ;;  %v5321_v32 = vadd.f32 %v1853_v46, %v1602_v53  ;;  %v1605_v15 = vadd.f32 %v3986_v19, %v5228_v25 }
 0x182   : > { %v1550_v52 = vpop.f32.mrf.mxu1  ;;  %v1856_v55 = vpop.f32.mrf.mxu0 }
 0x183   : > { %5618 = vst [vmem:[#allocation10_spill] sm:$0xff] %v5321_v32  ;;  %v5324_v8 = vadd.f32 %v4034_v13, %v1605_v15  ;;  %v1603_v1 = vadd.f32 %v1550_v52, %v5231_v47 }
 0x184   : > { %v3989_v16 = vpop.f32.mrf.mxu1  ;;  %v4037_v30 = vpop.f32.mrf.mxu0 }
 0x185   : > { %5619 = vst [vmem:[#allocation11_spill] sm:$0xff] %v5324_v8  ;;  %v5327_v20 = vadd.f32 %v1856_v55, %v1603_v1  ;;  %v1608_v12 = vadd.f32 %v3989_v16, %v5234_v51 }
 0x186   : > { %v1563_v31 = vpop.f32.mrf.mxu1  ;;  %v1869_v18 = vpop.f32.mrf.mxu0 }
 0x187   : > { %5620 = vst [vmem:[#allocation12_spill] sm:$0xff] %v5327_v20  ;;  %v5330_v6 = vadd.f32 %v4037_v30, %v1608_v12  ;;  %v1606_v3 = vadd.f32 %v1563_v31, %v5237_v49 }
 0x188   : > { %v3990_v14 = vpop.f32.mrf.mxu1  ;;  %v4038_v25 = vpop.f32.mrf.mxu0 }
 0x189   : > { %5621 = vst [vmem:[#allocation13_spill] sm:$0xff] %v5330_v6  ;;  %v5333_v57 = vadd.f32 %v1869_v18, %v1606_v3  ;;  %v1609_v37 = vadd.f32 %v3990_v14, %v5240_v41 }
 0x18a   : > { %v1566_v35 = vpop.f32.mrf.mxu1  ;;  %v1872_v47 = vpop.f32.mrf.mxu0 }
 0x18b   : > { %5622 = vst [vmem:[#allocation14_spill] sm:$0xff] %v5333_v57  ;;  %v5336_v39 = vadd.f32 %v4038_v25, %v1609_v37  ;;  %v1607_v36 = vadd.f32 %v1566_v35, %v5243_v0 }
 0x18c   : > { %v4057_v26 = vpop.f32.mrf.mxu1  ;;  %v5339_v51 = vpop.f32.mrf.mxu0 }
 0x18d   : > { %5623 = vst [vmem:[#allocation15_spill] sm:$0xff] %v5336_v39  ;;  %v5341_v23 = vadd.f32 %v1872_v47, %v1607_v36 }
 0x18e   : > { %v2063_v17 = vpop.f32.mrf.mxu1  ;;  %v5343_v60 = vpop.f32.mrf.mxu0 }
 0x18f   : > { %5624 = vst [vmem:[#allocation16_spill] sm:$0xff] %v5341_v23 }
 0x190   : > { %v5345_v49 = vpop.f32.mrf.mxu1  ;;  %v5347_v27 = vpop.f32.mrf.mxu0 }
 0x192   : > { %v5349_v22 = vpop.f32.mrf.mxu1  ;;  %v5351_v41 = vpop.f32.mrf.mxu0 }
 0x194   : > { %v5353_v10 = vpop.f32.mrf.mxu1  ;;  %v5355_v42 = vpop.f32.mrf.mxu0 }
 0x196   : > { %v5357_v0 = vpop.f32.mrf.mxu1  ;;  %v5359_v43 = vpop.f32.mrf.mxu0 }
 0x198   : > { %v5361_v46 = vpop.f32.mrf.mxu1  ;;  %v5363_v53 = vpop.f32.mrf.mxu0 }
 0x19a   : > { %v5365_v19 = vpop.f32.mrf.mxu1  ;;  %v5367_v13 = vpop.f32.mrf.mxu0 }
 0x19c   : > { %v5369_v15 = vpop.f32.mrf.mxu1  ;;  %v5371_v52 = vpop.f32.mrf.mxu0 }
 0x19e   : > { %v5373_v55 = vpop.f32.mrf.mxu1  ;;  %v5375_v1 = vpop.f32.mrf.mxu0 }
 0x1a0   : > { %v5377_v16 = vpop.f32.mrf.mxu1  ;;  %v5379_v30 = vpop.f32.mrf.mxu0 }
 0x1a2   : > { %v5381_v12 = vpop.f32.mrf.mxu1  ;;  %v5383_v31 = vpop.f32.mrf.mxu0 }
 0x1a4   : > { %v5385_v18 = vpop.f32.mrf.mxu1  ;;  %v5387_v3 = vpop.f32.mrf.mxu0 }
 0x1a6   : > { %v5389_v14 = vpop.f32.mrf.mxu1  ;;  %v5391_v25 = vpop.f32.mrf.mxu0 }
 0x1a8   : > { %v5393_v37 = vpop.f32.mrf.mxu1  ;;  %v5395_v35 = vpop.f32.mrf.mxu0 }
 0x1aa   : > { %v5397_v47 = vpop.f32.mrf.mxu1  ;;  %v5399_v36 = vpop.f32.mrf.mxu0 }
 0x1ac   : > { %v5401_v23 = vpop.f32.mrf.mxu1  ;;  %v5403_v39 = vpop.f32.mrf.mxu0 }
 0x1ae   : > { %v5405_v57 = vpop.f32.mrf.mxu1  ;;  %v5407_v6 = vpop.f32.mrf.mxu0 }
 0x1af   : > { %5625 = vst [vmem:[#allocation17_spill] sm:$0xff] %v5407_v6 }
 0x1b0   : > { %v5409_v20 = vpop.f32.mrf.mxu1  ;;  %v5411_v8 = vpop.f32.mrf.mxu0 }
 0x1b1   : > { %5626 = vst [vmem:[#allocation18_spill] sm:$0xff] %v5409_v20  ;;  %5627 = vst [vmem:[#allocation19_spill] sm:$0xff] %v5411_v8 }
 0x1b2   : > { %v5413_v32 = vpop.f32.mrf.mxu1  ;;  %v5415_v44 = vpop.f32.mrf.mxu0 }
 0x1b3   : > { %5628 = vst [vmem:[#allocation20_spill] sm:$0xff] %v5413_v32  ;;  %5629 = vst [vmem:[#allocation21_spill] sm:$0xff] %v5415_v44 }
 0x1b4   : > { %v5417_v58 = vpop.f32.mrf.mxu1  ;;  %v5419_v56 = vpop.f32.mrf.mxu0 }
 0x1b5   : > { %5630 = vst [vmem:[#allocation22_spill] sm:$0xff] %v5417_v58  ;;  %5631 = vst [vmem:[#allocation23_spill] sm:$0xff] %v5419_v56 }
 0x1b6   : > { %v5421_v62 = vpop.f32.mrf.mxu1  ;;  %v5423_v24 = vpop.f32.mrf.mxu0 }
 0x1b7   : > { %5632 = vst [vmem:[#allocation24_spill] sm:$0xff] %v5421_v62  ;;  %5633 = vst [vmem:[#allocation25_spill] sm:$0xff] %v5423_v24 }
 0x1b8   : > { %v5425_v29 = vpop.f32.mrf.mxu1  ;;  %v5427_v21 = vpop.f32.mrf.mxu0 }
 0x1b9   : > { %5634 = vst [vmem:[#allocation26_spill] sm:$0xff] %v5425_v29  ;;  %5635 = vst [vmem:[#allocation27_spill] sm:$0xff] %v5427_v21 }
 0x1ba   : > { %v5429_v6 = vpop.f32.mrf.mxu1  ;;  %v5431_v20 = vpop.f32.mrf.mxu0 }
 0x1bb   : > { %5636 = vst [vmem:[#allocation28_spill] sm:$0xff] %v5429_v6  ;;  %5637 = vst [vmem:[#allocation29_spill] sm:$0xff] %v5431_v20 }
 0x1bc   : > { %v5433_v8 = vpop.f32.mrf.mxu1  ;;  %v5435_v32 = vpop.f32.mrf.mxu0 }
 0x1bd   : > { %5638 = vst [vmem:[#allocation30_spill] sm:$0xff] %v5433_v8  ;;  %5639 = vst [vmem:[#allocation31_spill] sm:$0xff] %v5435_v32 }
 0x1be   : > { %v5437_v44 = vpop.f32.mrf.mxu1  ;;  %v5439_v58 = vpop.f32.mrf.mxu0 }
 0x1bf   : > { %5640 = vst [vmem:[#allocation32_spill] sm:$0xff] %v5437_v44  ;;  %5641 = vst [vmem:[#allocation33_spill] sm:$0xff] %v5439_v58  ;;  %v2192_v44 = vadd.f32 %v4057_v26, %v5246_v48  ;;  %v2191_v48 = vadd.f32 %v5349_v22, %v5255_v63 }
 0x1c0   : > { %v5441_v56 = vpop.f32.mrf.mxu1  ;;  %v5443_v62 = vpop.f32.mrf.mxu0 }
 0x1c1   : > { %5642 = vst [vmem:[#allocation34_spill] sm:$0xff] %v5441_v56  ;;  %5643 = vst [vmem:[#allocation35_spill] sm:$0xff] %v5443_v62  ;;  %v2190_v62 = vadd.f32 %v2063_v17, %v5249_v59 }
 0x1c2   : > { %v5445_v24 = vpop.f32.mrf.mxu1  ;;  %v5447_v29 = vpop.f32.mrf.mxu0 }
 0x1c3   : > { %5644 = vst [vmem:[#allocation36_spill] sm:$0xff] %v5445_v24  ;;  %5645 = vst [vmem:[#allocation37_spill] sm:$0xff] %v5447_v29 }
 0x1c4   : > { %v5449_v21 = vpop.f32.mrf.mxu1  ;;  %v5451_v6 = vpop.f32.mrf.mxu0 }
 0x1c5   : > { %5646 = vst [vmem:[#allocation38_spill] sm:$0xff] %v5449_v21  ;;  %5647 = vst [vmem:[#allocation39_spill] sm:$0xff] %v5451_v6  ;;  %v2499_v21 = vadd.f32 %v5339_v51, %v2192_v44  ;;  %v2193_v6 = vadd.f32 %v5345_v49, %v5252_v33  ;;  %v2196_v51 = vadd.f32 %v5353_v10, %v5258_v2 }
 0x1c6   : > { %v5453_v20 = vpop.f32.mrf.mxu1  ;;  %v5455_v32 = vpop.f32.mrf.mxu0 }
 0x1c7   : > { %5648 = vst [vmem:[#allocation40_spill] sm:$0xff] %v5453_v20  ;;  %5649 = vst [vmem:[#allocation41_spill] sm:$0xff] %v5455_v32  ;;  %v2497_v32 = vadd.f32 %v5343_v60, %v2190_v62  ;;  %v2500_v33 = vadd.f32 %v5347_v27, %v2193_v6  ;;  %v2503_v6 = vadd.f32 %v5355_v42, %v2196_v51 }
 0x1c8   : > { %v5458_v58 = vpop.f32.mrf.mxu1  ;;  %v5460_v56 = vpop.f32.mrf.mxu0  ;;  %v2195_v27 = vadd.f32 %v5365_v19, %v5267_v38  ;;  %v2200_v42 = vadd.f32 %v5369_v15, %v5270_v40 }
 0x1c9   : > { %5650 = vst [vmem:[#allocation42_spill] sm:$0xff] %v5460_v56 }
 0x1ca   : > { %v5463_v24 = vpop.f32.mrf.mxu1  ;;  %v5465_v29 = vpop.f32.mrf.mxu0  ;;  %v2502_v19 = vadd.f32 %v5367_v13, %v2195_v27  ;;  %v2507_v15 = vadd.f32 %v5371_v52, %v2200_v42 }
 0x1cb   : > { %5651 = vst [vmem:[#allocation43_spill] sm:$0xff] %v5465_v29 }
 0x1cc   : > { %v4153_v20 = vpop.f32.mrf.mxu1  ;;  %v4201_v8 = vpop.f32.mrf.mxu0 }
 0x1cd   : > { %v2805_v26 = vadd.f32 %v4153_v20, %v2499_v21  ;;  %v2498_v21 = vadd.f32 %v5351_v41, %v2191_v48  ;;  %v2194_v20 = vadd.f32 %v5357_v0, %v5261_v45 }
 0x1ce   : > { %v2676_v59 = vpop.f32.mrf.mxu1  ;;  %v2982_v44 = vpop.f32.mrf.mxu0 }
 0x1cf   : > { %v3111_v62 = vadd.f32 %v4201_v8, %v2805_v26  ;;  %v2803_v17 = vadd.f32 %v2676_v59, %v2497_v32  ;;  %v2197_v32 = vadd.f32 %v5361_v46, %v5264_v50  ;;  %v2501_v45 = vadd.f32 %v5359_v43, %v2194_v20 }
 0x1d0   : > { %v4154_v60 = vpop.f32.mrf.mxu1  ;;  %v4202_v63 = vpop.f32.mrf.mxu0 }
 0x1d1   : > { %3143 = vst [vmem:[%s5478_s22 + $0x10] sm:$0xff] %v3111_v62  ;;  %v3109_v49 = vadd.f32 %v2982_v44, %v2803_v17  ;;  %v2806_v22 = vadd.f32 %v4154_v60, %v2500_v33  ;;  %v2504_v38 = vadd.f32 %v5363_v53, %v2197_v32  ;;  %v3213_v51 = vmul.f32 %v3111_v62, %v3111_v62 }
 0x1d2   : > { %v2679_v29 = vpop.f32.mrf.mxu1  ;;  %v2985_v56 = vpop.f32.mrf.mxu0 }
 0x1d3   : > { %3141 = vst [vmem:[%s5478_s22] sm:$0xff] %v3109_v49  ;;  %v3112_v2 = vadd.f32 %v4202_v63, %v2806_v22  ;;  %v2804_v8 = vadd.f32 %v2679_v29, %v2498_v21  ;;  %v3211_v26 = vmul.f32 %v3109_v49, %v3109_v49  ;;  %v2198_v63 = vadd.f32 %v5373_v55, %v5273_v4 }
 0x1d4   : > { %v4157_v41 = vpop.f32.mrf.mxu1  ;;  %v4205_v10 = vpop.f32.mrf.mxu0  ;;  %v2201_v21 = vadd.f32 %v5377_v16, %v5276_v61 }
 0x1d5   : > { %3144 = vst [vmem:[%s5478_s22 + $0x18] sm:$0xff] %v3112_v2  ;;  %v3110_v0 = vadd.f32 %v2985_v56, %v2804_v8  ;;  %v2809_v48 = vadd.f32 %v4157_v41, %v2503_v6  ;;  %v3214_v13 = vmul.f32 %v3112_v2, %v3112_v2  ;;  %v2199_v8 = vadd.f32 %v5381_v12, %v5279_v34 }
 0x1d6   : > { %v2692_v59 = vpop.f32.mrf.mxu1  ;;  %v2998_v29 = vpop.f32.mrf.mxu0 }
 0x1d7   : > { %3142 = vst [vmem:[%s5478_s22 + $0x8] sm:$0xff] %v3110_v0  ;;  %v3173_v44 = vadd.f32 %v3110_v0, %v3109_v49  ;;  %v3212_v50 = vmul.f32 %v3110_v0, %v3110_v0  ;;  %v3115_v46 = vadd.f32 %v4205_v10, %v2809_v48  ;;  %v2807_v33 = vadd.f32 %v2692_v59, %v2501_v45 }
 0x1d8   : > { %v4158_v43 = vpop.f32.mrf.mxu1  ;;  %v4206_v56 = vpop.f32.mrf.mxu0  ;;  %v2505_v10 = vadd.f32 %v5375_v1, %v2198_v63  ;;  %v2508_v45 = vadd.f32 %v5379_v30, %v2201_v21  ;;  %v2204_v59 = vadd.f32 %v5385_v18, %v5282_v54 }
 0x1d9   : > { %v3174_v17 = vadd.f32 %v3173_v44, %v3111_v62  ;;  %v3243_v60 = vadd.f32 %v3212_v50, %v3211_v26  ;;  %3147 = vst [vmem:[%s5478_s22 + $0x30] sm:$0xff] %v3115_v46  ;;  %v3113_v40 = vadd.f32 %v2998_v29, %v2807_v33  ;;  %v2810_v20 = vadd.f32 %v4158_v43, %v2504_v38 }
 0x1da   : > { %v2695_v53 = vpop.f32.mrf.mxu1  ;;  %v3001_v49 = vpop.f32.mrf.mxu0  ;;  %v2506_v26 = vadd.f32 %v5383_v31, %v2199_v8  ;;  %v2202_v29 = vadd.f32 %v5389_v14, %v5285_v11  ;;  %v3217_v50 = vmul.f32 %v3115_v46, %v3115_v46  ;;  %v2205_v43 = vadd.f32 %v5393_v37, %v5288_v28 }
 0x1db   : > { %v3244_v22 = vadd.f32 %v3243_v60, %v3213_v51  ;;  %3145 = vst [vmem:[%s5478_s22 + $0x20] sm:$0xff] %v3113_v40  ;;  %v3175_v6 = vadd.f32 %v3174_v17, %v3112_v2  ;;  %v2808_v62 = vadd.f32 %v2695_v53, %v2502_v19  ;;  %v3215_v52 = vmul.f32 %v3113_v40, %v3113_v40 }
 0x1dc   : > { %v3116_v32 = vadd.f32 %v4206_v56, %v2810_v20  ;;  %v4161_v27 = vpop.f32.mrf.mxu1  ;;  %v4209_v4 = vpop.f32.mrf.mxu0  ;;  %v2511_v60 = vadd.f32 %v5387_v3, %v2204_v59  ;;  %v2512_v20 = vadd.f32 %v5395_v35, %v2205_v43  ;;  %v2203_v53 = vadd.f32 %v5397_v47, %v5291_v5 }
 0x1dd   : > { %v3176_v55 = vadd.f32 %v3175_v6, %v3113_v40  ;;  %v3245_v41 = vadd.f32 %v3244_v22, %v3214_v13  ;;  %v3114_v61 = vadd.f32 %v3001_v49, %v2808_v62  ;;  %v2813_v16 = vadd.f32 %v4161_v27, %v2507_v15 }
 0x1de   : > { %3148 = vst [vmem:[%s5478_s22 + $0x38] sm:$0xff] %v3116_v32  ;;  %v2708_v0 = vpop.f32.mrf.mxu1  ;;  %v3014_v2 = vpop.f32.mrf.mxu0  ;;  %v3218_v56 = vmul.f32 %v3116_v32, %v3116_v32  ;;  %v2509_v40 = vadd.f32 %v5391_v25, %v2202_v29  ;;  %v2208_v49 = vadd.f32 %v5401_v23, %v5294_v7 }
 0x1df   : > { %v3246_v48 = vadd.f32 %v3245_v41, %v3215_v52  ;;  %3146 = vst [vmem:[%s5478_s22 + $0x28] sm:$0xff] %v3114_v61  ;;  %v3177_v42 = vadd.f32 %v3176_v55, %v3114_v61  ;;  %v3216_v34 = vmul.f32 %v3114_v61, %v3114_v61  ;;  %v3119_v12 = vadd.f32 %v4209_v4, %v2813_v16  ;;  %v5652_v61 = vld [vmem:[#allocation3_spill] sm:$0xff]  ;;  %v5653_v16 = vld [vmem:[#allocation18_spill] sm:$0xff] }
 0x1e0   : > { %v2811_v1 = vadd.f32 %v2708_v0, %v2505_v10  ;;  %v4162_v44 = vpop.f32.mrf.mxu1  ;;  %v4210_v30 = vpop.f32.mrf.mxu0  ;;  %v2206_v52 = vadd.f32 %v5405_v57, %v5297_v9  ;;  %v2510_v55 = vadd.f32 %v5399_v36, %v2203_v53  ;;  %v2515_v41 = vadd.f32 %v5403_v39, %v2208_v49  ;;  %v5663_v49 = vld [vmem:[#allocation7_spill] sm:$0xff] }
 0x1e1   : > { %v3178_v33 = vadd.f32 %v3177_v42, %v3115_v46  ;;  %v3247_v38 = vadd.f32 %v3246_v48, %v3216_v34  ;;  %3151 = vst [vmem:[%s5478_s22 + $0x50] sm:$0xff] %v3119_v12  ;;  %v2814_v19 = vadd.f32 %v4162_v44, %v2508_v45  ;;  %v2209_v10 = vadd.f32 %v5653_v16, %v5652_v61  ;;  %v5654_v42 = vld [vmem:[#allocation17_spill] sm:$0xff]  ;;  %v5667_v16 = vld [vmem:[#allocation8_spill] sm:$0xff] }
 0x1e2   : > { %v3117_v31 = vadd.f32 %v3014_v2, %v2811_v1  ;;  %v2711_v51 = vpop.f32.mrf.mxu1  ;;  %v3017_v54 = vpop.f32.mrf.mxu0  ;;  %v2513_v34 = vadd.f32 %v5654_v42, %v2206_v52  ;;  %v5665_v52 = vld [vmem:[#allocation23_spill] sm:$0xff] }
 0x1e3   : > { %v3248_v18 = vadd.f32 %v3247_v38, %v3217_v50  ;;  %v3179_v17 = vadd.f32 %v3178_v33, %v3116_v32  ;;  %v3120_v11 = vadd.f32 %v4210_v30, %v2814_v19  ;;  %v2812_v14 = vadd.f32 %v2711_v51, %v2506_v26  ;;  %v5656_v26 = vld [vmem:[#allocation20_spill] sm:$0xff]  ;;  %v5657_v33 = vld [vmem:[#allocation19_spill] sm:$0xff]  ;;  %v5659_v51 = vld [vmem:[#allocation22_spill] sm:$0xff] }
 0x1e4   : > { %3149 = vst [vmem:[%s5478_s22 + $0x40] sm:$0xff] %v3117_v31  ;;  %v4165_v46 = vpop.f32.mrf.mxu1  ;;  %v4213_v15 = vpop.f32.mrf.mxu0  ;;  %v3219_v21 = vmul.f32 %v3117_v31, %v3117_v31  ;;  %v3221_v32 = vmul.f32 %v3119_v12, %v3119_v12  ;;  %v2516_v38 = vadd.f32 %v5657_v33, %v2209_v10  ;;  %v5668_v10 = vld [vmem:[#allocation28_spill] sm:$0xff] }
 0x1e5   : > { %v3180_v63 = vadd.f32 %v3179_v17, %v3117_v31  ;;  %v3249_v28 = vadd.f32 %v3248_v18, %v3218_v56  ;;  %3152 = vst [vmem:[%s5478_s22 + $0x58] sm:$0xff] %v3120_v11  ;;  %v3118_v37 = vadd.f32 %v3017_v54, %v2812_v14  ;;  %v2817_v3 = vadd.f32 %v4165_v46, %v2511_v60  ;;  %v5658_v31 = vld [vmem:[#allocation5_spill] sm:$0xff] }
 0x1e6   : > { %v2724_v13 = vpop.f32.mrf.mxu1  ;;  %v3030_v25 = vpop.f32.mrf.mxu0  ;;  %v3222_v57 = vmul.f32 %v3120_v11, %v3120_v11  ;;  %v2212_v54 = vadd.f32 %v5659_v51, %v5658_v31 }
 0x1e7   : > { %v3250_v22 = vadd.f32 %v3249_v28, %v3219_v21  ;;  %3150 = vst [vmem:[%s5478_s22 + $0x48] sm:$0xff] %v3118_v37  ;;  %v3181_v6 = vadd.f32 %v3180_v63, %v3118_v37  ;;  %v3220_v62 = vmul.f32 %v3118_v37, %v3118_v37  ;;  %v2815_v8 = vadd.f32 %v2724_v13, %v2509_v40  ;;  %v5661_v21 = vld [vmem:[#allocation6_spill] sm:$0xff]  ;;  %v5662_v28 = vld [vmem:[#allocation24_spill] sm:$0xff] }
 0x1e8   : > { %v3123_v35 = vadd.f32 %v4213_v15, %v2817_v3  ;;  %v4166_v27 = vpop.f32.mrf.mxu1  ;;  %v4214_v5 = vpop.f32.mrf.mxu0  ;;  %v5660_v15 = vld [vmem:[#allocation21_spill] sm:$0xff]  ;;  %v2210_v37 = vadd.f32 %v5662_v28, %v5661_v21  ;;  %v5664_v3 = vld [vmem:[#allocation26_spill] sm:$0xff]  ;;  %v5677_v21 = vld [vmem:[#allocation31_spill] sm:$0xff] }
 0x1e9   : > { %v3182_v47 = vadd.f32 %v3181_v6, %v3119_v12  ;;  %v3251_v4 = vadd.f32 %v3250_v22, %v3220_v62  ;;  %v3121_v7 = vadd.f32 %v3030_v25, %v2815_v8  ;;  %v2818_v23 = vadd.f32 %v4166_v27, %v2512_v20  ;;  %v5655_v12 = vld [vmem:[#allocation4_spill] sm:$0xff] }
 0x1ea   : > { %3155 = vst [vmem:[%s5478_s22 + $0x70] sm:$0xff] %v3123_v35  ;;  %v2727_v45 = vpop.f32.mrf.mxu1  ;;  %v3033_v9 = vpop.f32.mrf.mxu0  ;;  %v2207_v59 = vadd.f32 %v5656_v26, %v5655_v12  ;;  %v2213_v13 = vadd.f32 %v5664_v3, %v5663_v49  ;;  %v3225_v25 = vmul.f32 %v3123_v35, %v3123_v35 }
 0x1eb   : > { %v3252_v0 = vadd.f32 %v3251_v4, %v3221_v32  ;;  %3153 = vst [vmem:[%s5478_s22 + $0x60] sm:$0xff] %v3121_v7  ;;  %v3183_v2 = vadd.f32 %v3182_v47, %v3120_v11  ;;  %v3124_v48 = vadd.f32 %v4214_v5, %v2818_v23  ;;  %v2816_v36 = vadd.f32 %v2727_v45, %v2510_v55 }
 0x1ec   : > { %v4169_v39 = vpop.f32.mrf.mxu1  ;;  %v4217_v29 = vpop.f32.mrf.mxu0  ;;  %v3223_v44 = vmul.f32 %v3121_v7, %v3121_v7  ;;  %v2514_v63 = vadd.f32 %v5660_v15, %v2207_v59  ;;  %v2519_v32 = vadd.f32 %v5665_v52, %v2212_v54  ;;  %v2211_v45 = vadd.f32 %v5668_v10, %v5667_v16  ;;  %v5670_v59 = vld [vmem:[#allocation9_spill] sm:$0xff] }
 0x1ed   : > { %v3184_v1 = vadd.f32 %v3183_v2, %v3121_v7  ;;  %v3253_v30 = vadd.f32 %v3252_v0, %v3222_v57  ;;  %3156 = vst [vmem:[%s5478_s22 + $0x78] sm:$0xff] %v3124_v48  ;;  %v2821_v50 = vadd.f32 %v4169_v39, %v2515_v41  ;;  %v3122_v19 = vadd.f32 %v3033_v9, %v2816_v36  ;;  %v5666_v41 = vld [vmem:[#allocation25_spill] sm:$0xff]  ;;  %v5669_v57 = vld [vmem:[#allocation27_spill] sm:$0xff] }
 0x1ee   : > { %v2740_v43 = vpop.f32.mrf.mxu1  ;;  %v3046_v56 = vpop.f32.mrf.mxu0  ;;  %v3226_v47 = vmul.f32 %v3124_v48, %v3124_v48  ;;  %v2517_v61 = vadd.f32 %v5666_v41, %v2210_v37  ;;  %v2520_v0 = vadd.f32 %v5669_v57, %v2213_v13 }
 0x1ef   : > { %v3254_v18 = vadd.f32 %v3253_v30, %v3223_v44  ;;  %v3127_v17 = vadd.f32 %v4217_v29, %v2821_v50  ;;  %v2819_v11 = vadd.f32 %v2740_v43, %v2513_v34  ;;  %3154 = vst [vmem:[%s5478_s22 + $0x68] sm:$0xff] %v3122_v19  ;;  %v3185_v14 = vadd.f32 %v3184_v1, %v3122_v19  ;;  %v5673_v43 = vld [vmem:[#allocation10_spill] sm:$0xff] }
 0x1f0   : > { %v3224_v60 = vmul.f32 %v3122_v19, %v3122_v19  ;;  %v4170_v40 = vpop.f32.mrf.mxu1  ;;  %v4218_v46 = vpop.f32.mrf.mxu0 }
 0x1f1   : > { %3159 = vst [vmem:[%s5478_s22 + $0x90] sm:$0xff] %v3127_v17  ;;  %v3125_v20 = vadd.f32 %v3046_v56, %v2819_v11  ;;  %v2822_v53 = vadd.f32 %v4170_v40, %v2516_v38  ;;  %v3186_v22 = vadd.f32 %v3185_v14, %v3123_v35  ;;  %v5672_v38 = vld [vmem:[#allocation29_spill] sm:$0xff]  ;;  %v5674_v56 = vld [vmem:[#allocation32_spill] sm:$0xff]  ;;  %v5676_v11 = vld [vmem:[#allocation34_spill] sm:$0xff] }
 0x1f2   : > { %v3255_v6 = vadd.f32 %v3254_v18, %v3224_v60  ;;  %v2743_v62 = vpop.f32.mrf.mxu1  ;;  %v3049_v8 = vpop.f32.mrf.mxu0  ;;  %v2518_v19 = vadd.f32 %v5672_v38, %v2211_v45  ;;  %v2214_v31 = vadd.f32 %v5674_v56, %v5673_v43  ;;  %v5675_v18 = vld [vmem:[#allocation11_spill] sm:$0xff]  ;;  %v3229_v60 = vmul.f32 %v3127_v17, %v3127_v17 }
 0x1f3   : > { %3157 = vst [vmem:[%s5478_s22 + $0x80] sm:$0xff] %v3125_v20  ;;  %v3128_v27 = vadd.f32 %v4218_v46, %v2822_v53  ;;  %v2820_v5 = vadd.f32 %v2743_v62, %v2514_v63  ;;  %v3187_v7 = vadd.f32 %v3186_v22, %v3124_v48  ;;  %v3227_v42 = vmul.f32 %v3125_v20, %v3125_v20  ;;  %v5671_v48 = vld [vmem:[#allocation30_spill] sm:$0xff]  ;;  %v5678_v22 = vld [vmem:[#allocation33_spill] sm:$0xff]  ;;  %v5679_v62 = vld [vmem:[#allocation12_spill] sm:$0xff] }
 0x1f4   : > { %v3256_v4 = vadd.f32 %v3255_v6, %v3225_v25  ;;  %v4173_v23 = vpop.f32.mrf.mxu1  ;;  %v4221_v55 = vpop.f32.mrf.mxu0  ;;  %v2216_v36 = vadd.f32 %v5671_v48, %v5670_v59  ;;  %v2217_v14 = vadd.f32 %v5676_v11, %v5675_v18  ;;  %v2521_v6 = vadd.f32 %v5678_v22, %v2214_v31 }
 0x1f5   : > { %3160 = vst [vmem:[%s5478_s22 + $0x98] sm:$0xff] %v3128_v27  ;;  %v3126_v35 = vadd.f32 %v3049_v8, %v2820_v5  ;;  %v2825_v9 = vadd.f32 %v4173_v23, %v2519_v32  ;;  %v3188_v2 = vadd.f32 %v3187_v7, %v3125_v20  ;;  %v3230_v53 = vmul.f32 %v3128_v27, %v3128_v27  ;;  %v5680_v8 = vld [vmem:[#allocation36_spill] sm:$0xff]  ;;  %v5681_v5 = vld [vmem:[#allocation35_spill] sm:$0xff] }
 0x1f6   : > { %v3257_v34 = vadd.f32 %v3256_v4, %v3226_v47  ;;  %v2756_v12 = vpop.f32.mrf.mxu1  ;;  %v3062_v26 = vpop.f32.mrf.mxu0  ;;  %v2523_v28 = vadd.f32 %v5677_v21, %v2216_v36  ;;  %v2215_v52 = vadd.f32 %v5680_v8, %v5679_v62  ;;  %v2524_v47 = vadd.f32 %v5681_v5, %v2217_v14  ;;  %v5692_v8 = vld [vmem:[#allocation43_spill] sm:$0xff] }
 0x1f7   : > { %3158 = vst [vmem:[%s5478_s22 + $0x88] sm:$0xff] %v3126_v35  ;;  %v3228_v39 = vmul.f32 %v3126_v35, %v3126_v35  ;;  %v3131_v29 = vadd.f32 %v4221_v55, %v2825_v9  ;;  %v2823_v1 = vadd.f32 %v2756_v12, %v2517_v61  ;;  %v3189_v30 = vadd.f32 %v3188_v2, %v3126_v35  ;;  %v5682_v61 = vld [vmem:[#allocation13_spill] sm:$0xff]  ;;  %v5685_v12 = vld [vmem:[#allocation14_spill] sm:$0xff] }
 0x1f8   : > { %v3258_v44 = vadd.f32 %v3257_v34, %v3227_v42  ;;  %v4174_v50 = vpop.f32.mrf.mxu1  ;;  %v4222_v33 = vpop.f32.mrf.mxu0  ;;  %v5684_v42 = vld [vmem:[#allocation37_spill] sm:$0xff] }
 0x1f9   : > { %3163 = vst [vmem:[%s5478_s22 + $0xb0] sm:$0xff] %v3131_v29  ;;  %v3129_v51 = vadd.f32 %v3062_v26, %v2823_v1  ;;  %v2826_v54 = vadd.f32 %v4174_v50, %v2520_v0  ;;  %v3190_v40 = vadd.f32 %v3189_v30, %v3127_v17  ;;  %v2522_v34 = vadd.f32 %v5684_v42, %v2215_v52  ;;  %v5686_v26 = vld [vmem:[#allocation40_spill] sm:$0xff] }
 0x1fa   : > { %v3259_v46 = vadd.f32 %v3258_v44, %v3228_v39  ;;  %v2759_v15 = vpop.f32.mrf.mxu1  ;;  %v3065_v63 = vpop.f32.mrf.mxu0  ;;  %v2218_v59 = vadd.f32 %v5686_v26, %v5685_v12  ;;  %v3233_v39 = vmul.f32 %v3131_v29, %v3131_v29 }
 0x1fb   : > { %3161 = vst [vmem:[%s5478_s22 + $0xa0] sm:$0xff] %v3129_v51  ;;  %v3132_v37 = vadd.f32 %v4222_v33, %v2826_v54  ;;  %v2824_v20 = vadd.f32 %v2759_v15, %v2518_v19  ;;  %v3191_v3 = vadd.f32 %v3190_v40, %v3128_v27  ;;  %v3231_v7 = vmul.f32 %v3129_v51, %v3129_v51  ;;  %v5683_v27 = vld [vmem:[#allocation38_spill] sm:$0xff]  ;;  %v5687_v33 = vld [vmem:[#allocation39_spill] sm:$0xff]  ;;  %v5690_v40 = vld [vmem:[#allocation16_spill] sm:$0xff] }
 0x1fc   : > { %v3260_v49 = vadd.f32 %v3259_v46, %v3229_v60  ;;  %v4177_v13 = vpop.f32.mrf.mxu1  ;;  %v4225_v25 = vpop.f32.mrf.mxu0  ;;  %v2220_v16 = vadd.f32 %v5683_v27, %v5682_v61  ;;  %v5688_v19 = vld [vmem:[#allocation15_spill] sm:$0xff]  ;;  %v5689_v60 = vld [vmem:[#allocation41_spill] sm:$0xff]  ;;  %v2219_v46 = vadd.f32 %v5463_v24, %v5690_v40 }
 0x1fd   : > { %3164 = vst [vmem:[%s5478_s22 + $0xb8] sm:$0xff] %v3132_v37  ;;  %v3130_v17 = vadd.f32 %v3065_v63, %v2824_v20  ;;  %v2829_v32 = vadd.f32 %v4177_v13, %v2523_v28  ;;  %v3192_v4 = vadd.f32 %v3191_v3, %v3129_v51  ;;  %v2221_v43 = vadd.f32 %v5458_v58, %v5688_v19 }
 0x1fe   : > { %v3261_v23 = vadd.f32 %v3260_v49, %v3230_v53  ;;  %v2772_v55 = vpop.f32.mrf.mxu1  ;;  %v3078_v41 = vpop.f32.mrf.mxu0  ;;  %v2527_v38 = vadd.f32 %v5687_v33, %v2220_v16  ;;  %v3234_v51 = vmul.f32 %v3132_v37, %v3132_v37  ;;  %v5691_v49 = vld [vmem:[#allocation42_spill] sm:$0xff]  ;;  %v2526_v52 = vadd.f32 %v5692_v8, %v2219_v46 }
 0x1ff   : > { %3162 = vst [vmem:[%s5478_s22 + $0xa8] sm:$0xff] %v3130_v17  ;;  %v3232_v10 = vmul.f32 %v3130_v17, %v3130_v17  ;;  %v3135_v45 = vadd.f32 %v4225_v25, %v2829_v32  ;;  %v2827_v35 = vadd.f32 %v2772_v55, %v2521_v6  ;;  %v3193_v57 = vadd.f32 %v3192_v4, %v3130_v17 }
 0x200   : > { %v3262_v9 = vadd.f32 %v3261_v23, %v3231_v7  ;;  %v4178_v0 = vpop.f32.mrf.mxu1  ;;  %v4226_v2 = vpop.f32.mrf.mxu0  ;;  %v2528_v3 = vadd.f32 %v5691_v49, %v2221_v43 }
 0x201   : > { %3167 = vst [vmem:[%s5478_s22 + $0xd0] sm:$0xff] %v3135_v45  ;;  %v3133_v48 = vadd.f32 %v3078_v41, %v2827_v35  ;;  %v2830_v36 = vadd.f32 %v4178_v0, %v2524_v47  ;;  %v3194_v1 = vadd.f32 %v3193_v57, %v3131_v29  ;;  %v2525_v29 = vadd.f32 %v5689_v60, %v2218_v59 }
 0x202   : > { %v3263_v44 = vadd.f32 %v3262_v9, %v3232_v10  ;;  %v2775_v30 = vpop.f32.mrf.mxu1  ;;  %v3081_v50 = vpop.f32.mrf.mxu0  ;;  %v3237_v5 = vmul.f32 %v3135_v45, %v3135_v45 }
 0x203   : > { %3165 = vst [vmem:[%s5478_s22 + $0xc0] sm:$0xff] %v3133_v48  ;;  %v3136_v56 = vadd.f32 %v4226_v2, %v2830_v36  ;;  %v2828_v31 = vadd.f32 %v2775_v30, %v2522_v34  ;;  %v3195_v18 = vadd.f32 %v3194_v1, %v3132_v37  ;;  %v3235_v58 = vmul.f32 %v3133_v48, %v3133_v48 }
 0x204   : > { %v3264_v54 = vadd.f32 %v3263_v44, %v3233_v39  ;;  %v4181_v11 = vpop.f32.mrf.mxu1  ;;  %v4229_v14 = vpop.f32.mrf.mxu0 }
 0x205   : > { %3168 = vst [vmem:[%s5478_s22 + $0xd8] sm:$0xff] %v3136_v56  ;;  %v3134_v15 = vadd.f32 %v3081_v50, %v2828_v31  ;;  %v2833_v63 = vadd.f32 %v4181_v11, %v2527_v38  ;;  %v3196_v21 = vadd.f32 %v3195_v18, %v3133_v48  ;;  %v3238_v41 = vmul.f32 %v3136_v56, %v3136_v56 }
 0x206   : > { %v3265_v28 = vadd.f32 %v3264_v54, %v3234_v51  ;;  %v2788_v20 = vpop.f32.mrf.mxu1  ;;  %v3094_v53 = vpop.f32.mrf.mxu0 }
 0x207   : > { %3166 = vst [vmem:[%s5478_s22 + $0xc8] sm:$0xff] %v3134_v15  ;;  %v3236_v37 = vmul.f32 %v3134_v15, %v3134_v15  ;;  %v3139_v13 = vadd.f32 %v4229_v14, %v2833_v63  ;;  %v2831_v25 = vadd.f32 %v2788_v20, %v2525_v29  ;;  %v3197_v6 = vadd.f32 %v3196_v21, %v3134_v15 }
 0x208   : > { %v3266_v22 = vadd.f32 %v3265_v28, %v3235_v58  ;;  %v4182_v62 = vpop.f32.mrf.mxu1  ;;  %v4230_v24 = vpop.f32.mrf.mxu0 }
 0x209   : > { %3171 = vst [vmem:[%s5478_s22 + $0xf0] sm:$0xff] %v3139_v13  ;;  %v3137_v17 = vadd.f32 %v3094_v53, %v2831_v25  ;;  %v2834_v32 = vadd.f32 %v4182_v62, %v2528_v3  ;;  %v3198_v47 = vadd.f32 %v3197_v6, %v3135_v45  ;;  %v3241_v45 = vmul.f32 %v3139_v13, %v3139_v13 }
 0x20a   : > { %v3267_v4 = vadd.f32 %v3266_v22, %v3236_v37  ;;  %v2791_v7 = vpop.f32.mrf.mxu1  ;;  %v3097_v16 = vpop.f32.mrf.mxu0 }
 0x20b   : > { %3169 = vst [vmem:[%s5478_s22 + $0xe0] sm:$0xff] %v3137_v17  ;;  %v3140_v23 = vadd.f32 %v4230_v24, %v2834_v32  ;;  %v2832_v55 = vadd.f32 %v2791_v7, %v2526_v52  ;;  %v3199_v27 = vadd.f32 %v3198_v47, %v3136_v56  ;;  %v3239_v9 = vmul.f32 %v3137_v17, %v3137_v17 }
 0x20c   : > { %v3268_v61 = vadd.f32 %v3267_v4, %v3237_v5 }
 0x20d   : > { %3172 = vst [vmem:[%s5478_s22 + $0xf8] sm:$0xff] %v3140_v23  ;;  %v3138_v10 = vadd.f32 %v3097_v16, %v2832_v55  ;;  %v3200_v35 = vadd.f32 %v3199_v27, %v3137_v17  ;;  %v3242_v26 = vmul.f32 %v3140_v23, %v3140_v23 }
 0x20e   : > { %v3269_v57 = vadd.f32 %v3268_v61, %v3238_v41 }
 0x20f   : > { %3170 = vst [vmem:[%s5478_s22 + $0xe8] sm:$0xff] %v3138_v10  ;;  %v3240_v0 = vmul.f32 %v3138_v10, %v3138_v10  ;;  %v3201_v42 = vadd.f32 %v3200_v35, %v3138_v10 }
 0x210   : > { %v3270_v2 = vadd.f32 %v3269_v57, %v3239_v9 }
 0x211   : > { %v3202_v34 = vadd.f32 %v3201_v42, %v3139_v13 }
 0x212   : > { %v3271_v12 = vadd.f32 %v3270_v2, %v3240_v0 }
 0x213   : > { %v3203_v59 = vadd.f32 %v3202_v34, %v3140_v23 }
 0x214   : > { %v3272_v48 = vadd.f32 %v3271_v12, %v3241_v45 }
 0x215   : > { %v3204_v36 = vrot.slane %v3203_v59, 4 }
 0x216   : > { %v3273_v39 = vadd.f32 %v3272_v48, %v3242_v26 }
 0x217   : > { %v3205_v1 = vadd.f32 %v3204_v36, %v3203_v59 }
 0x218   : > { %v3274_v44 = vrot.slane %v3273_v39, 4 }
 0x219   : > { %v3206_v30 = vrot.slane %v3205_v1, 2 }
 0x21a   : > { %v3275_v50 = vadd.f32 %v3274_v44, %v3273_v39 }
 0x21b   : > { %v3207_v33 = vadd.f32 %v3206_v30, %v3205_v1 }
 0x21c   : > { %v3276_v38 = vrot.slane %v3275_v50, 2 }
 0x21d   : > { %v3208_v19 = vrot.slane %v3207_v33, 1 }
 0x21e   : > { %v3277_v43 = vadd.f32 %v3276_v38, %v3275_v50 }
 0x21f   : > { %v3209_v56 = vadd.f32 %v3208_v19, %v3207_v33 }
 0x220   : > { %v3278_v31 = vrot.slane %v3277_v43, 1 }
 0x221   : > { %3210 = vst [vmem:[%s235_s24] sm:$0x1] %v3209_v56 }
 0x222   : > { %v3279_v51 = vadd.f32 %v3278_v31, %v3277_v43 }
 0x224   : > { %3280 = vst [vmem:[%s235_s24 + $0x1] sm:$0x1] %v3279_v51 }
 0x225 PF: > { %s16_s18 = sadd.s32 1, %s4335_s18  }
 0x226   : > { %p13_p4 = scmp.ge.s32.totalorder %s16_s18, 4  }
 0x228   :  { %15 = sbr.rel (!%p13_p4) target bundleno = 1 (0x1), region = 89 }

// kernel: basic_block_forward.3
= control target key start
LH: loop header
LB: loop body
LE: loop exit
PB: predicated region body
PF: predicated region fallthrough
CT: control target
= control target key end

     0   :  { %s4896_s21 = smov 0   ;;  %s6215_s0 = inlined_call_operand.vmem [shape: f32[2,16,16,128], index: 0, kind: input, shape index: {}]   ;;  %s6216_s1 = inlined_call_operand.vmem [shape: bf16[9,128,128], index: 1, kind: input, shape index: {}]   ;;  %s6217_s2 = inlined_call_operand.vmem [shape: bf16[128,128], index: 2, kind: input, shape index: {}]   ;;  %s6218_s3 = inlined_call_operand.vmem [shape: f32[2,16,16,128], index: 3, kind: output, shape index: {0}]   ;;  %s6219_s4 = inlined_call_operand.vmem [shape: f32[2,16,16,128], index: 4, kind: output, shape index: {1}]   ;;  %s6220_s5 = inlined_call_operand.vmem [shape: f32[2,2,128], index: 5, kind: output, shape index: {2}]   ;;  %s6221_s6 = inlined_call_operand.vmem [shape: f32[2,2,128], index: 6, kind: output, shape index: {3}]  }
   0x1 LB: > { %s3815_s22 = sadd.s32 4294967295, %s4857_s21   ;;  %p3819_p0 = scmp.ge.s32.totalorder %s4857_s21, 1  ;;  %s4857_s21 = sphi %s4896_s21, %s17_s21  }
   0x2   : > { %p219_p1 = scmp.lt.s32.totalorder %s4857_s21, 3 }
   0x4   : > { %p220_p2 = pnand %p3819_p0, %p219_p1 }
   0x6   : > { %223 = sbr.rel (%p220_p2) target bundleno = 578 (0x242), region = 32 }
   0xb   : > { %v4770_v0 = vld [vmem:[%s6216_s1 + $0x78] sm:$0xff]   ;;  %v4859_v2 = vmov 0.0   ;;  %v4772_v3 = vld [vmem:[%s6216_s1 + $0x70] sm:$0xff]   ;;  %p262_p3 = scmp.lt.s32.totalorder %s3815_s22, 1  ;;  %v4774_v5 = vld [vmem:[%s6216_s1 + $0x68] sm:$0xff]   ;;  %v4860_v7 = vmov 0.0|0.0  }
   0xc   : > { %v4771_v1 = vld [vmem:[%s6216_s1 + $0x38] sm:$0xff]   ;;  %350 = vst [vmem:[#allocation2] sm:$0xff] %v4859_v2  ;;  %351 = vst [vmem:[#allocation2 + $0x8] sm:$0xff] %v4859_v2  ;;  %4281 = vmatprep.subr.bf16.mxu0 %v4770_v0  ;;  %v4773_v4 = vld [vmem:[%s6216_s1 + $0x30] sm:$0xff]   ;;  %4345 = vmatprep.mubr.bf16.mxu1 %v4860_v7 }
   0xd   : > { %352 = vst [vmem:[#allocation2 + $0x10] sm:$0xff] %v4859_v2  ;;  %354 = vst [vmem:[#allocation2 + $0x198] sm:$0xff] %v4859_v2  ;;  %4329 = vmatprep.subr.bf16.mxu1 %v4771_v1  ;;  %4282 = vmatpush3.bf16.msra.mxu0 %v4770_v0  ;;  %v4775_v6 = vld [vmem:[%s6216_s1 + $0x28] sm:$0xff]   ;;  %s6297_s22 = smov (!%p262_p3, %s3815_s22), 1  ;;  %v4776_v8 = vld [vmem:[%s6216_s1 + $0x60] sm:$0xff]  }
   0xe   : > { %355 = vst [vmem:[#allocation2 + $0x1a0] sm:$0xff] %v4859_v2  ;;  %356 = vst [vmem:[#allocation2 + $0x1a8] sm:$0xff] %v4859_v2  ;;  %4330 = vmatpush3.bf16.msra.mxu1 %v4771_v1  ;;  %4283 = vmatprep.subr.bf16.mxu0 %v4772_v3  ;;  %v4777_v9 = vld [vmem:[%s6216_s1 + $0x20] sm:$0xff]   ;;  %s4935_s15 = sshll.u32 %s6297_s22, 8  ;;  %v4778_v10 = vld [vmem:[%s6216_s1 + $0x58] sm:$0xff]  }
   0xf   : > { %358 = vst [vmem:[#allocation2 + $0x18] sm:$0x1] %v4859_v2  ;;  %359 = vst [vmem:[#allocation2 + $0x30] sm:$0x1] %v4859_v2  ;;  %4331 = vmatprep.subr.bf16.mxu1 %v4773_v4  ;;  %v4779_v11 = vld [vmem:[%s6216_s1 + $0x18] sm:$0xff]   ;;  %s4947_s24 = scalar_lea.vmem %s6215_s0, %s4935_s15  ;;  %v4780_v12 = vld [vmem:[%s6216_s1 + $0x50] sm:$0xff]   ;;  %s5999_s19 = scalar_lea.vmem %s6219_s4, %s4935_s15 }
  0x10   : > { %360 = vst [vmem:[#allocation2 + $0x48] sm:$0x1] %v4859_v2  ;;  %361 = vst [vmem:[#allocation2 + $0x60] sm:$0x1] %v4859_v2  ;;  %v4781_v13 = vld [vmem:[%s6216_s1 + $0x10] sm:$0xff]   ;;  %v4956_v16 = vld [vmem:[%s4947_s24] sm:$0xff]  ;;  %s6011_s25 = scalar_lea.vmem %s6218_s3, %s4935_s15 }
  0x11   : > { %362 = vst [vmem:[#allocation2 + $0x78] sm:$0x1] %v4859_v2  ;;  %363 = vst [vmem:[#allocation2 + $0x90] sm:$0x1] %v4859_v2  ;;  %4284 = vmatpush3.bf16.msra.mxu0 %v4772_v3  ;;  %v287_v18 = vld [vmem:[%s4947_s24 + $0x8] sm:$0xff]  ;;  %v318_v19 = vmax.f32 %v4956_v16, 0.0 }
  0x12   : > { %364 = vst [vmem:[#allocation2 + $0xa8] sm:$0x1] %v4859_v2  ;;  %365 = vst [vmem:[#allocation2 + $0xc0] sm:$0x1] %v4859_v2  ;;  %4332 = vmatpush3.bf16.msra.mxu1 %v4773_v4  ;;  %4285 = vmatprep.subr.bf16.mxu0 %v4774_v5  ;;  %v319_v20 = vmax.f32 %v287_v18, 0.0  ;;  %v4782_v21 = vld [vmem:[%s6216_s1 + $0x48] sm:$0xff]  }
  0x13   : > { %366 = vst [vmem:[#allocation2 + $0xd8] sm:$0x1] %v4859_v2  ;;  %367 = vst [vmem:[#allocation2 + $0xf0] sm:$0x1] %v4859_v2  ;;  %4333 = vmatprep.subr.bf16.mxu1 %v4775_v6  ;;  %v486_v14 = vld [vmem:[#allocation2 + $0x1] sm:$0xff]  ;;  %v4964_v22 = vld [vmem:[%s4947_s24 + $0x10] sm:$0xff] }
  0x14   : > { %368 = vst [vmem:[#allocation2 + $0x108] sm:$0x1] %v4859_v2  ;;  %369 = vst [vmem:[#allocation2 + $0x120] sm:$0x1] %v4859_v2  ;;  %v487_v15 = vld [vmem:[#allocation2 + $0x9] sm:$0xff]  ;;  %v4967_v23 = vld [vmem:[%s4947_s24 + $0x18] sm:$0xff]  ;;  %v5040_v53 = vpack.c.bf16 %v319_v20, %v318_v19 }
  0x15   : > { %370 = vst [vmem:[#allocation2 + $0x138] sm:$0x1] %v4859_v2  ;;  %371 = vst [vmem:[#allocation2 + $0x150] sm:$0x1] %v4859_v2  ;;  %4286 = vmatpush3.bf16.msra.mxu0 %v4774_v5  ;;  %v518_v17 = vpack.c.bf16 %v487_v15, %v486_v14  ;;  %v320_v24 = vmax.f32 %v4964_v22, 0.0  ;;  %v321_v25 = vmax.f32 %v4967_v23, 0.0 }
  0x16   : > { %372 = vst [vmem:[#allocation2 + $0x168] sm:$0x1] %v4859_v2  ;;  %373 = vst [vmem:[#allocation2 + $0x180] sm:$0x1] %v4859_v2  ;;  %4334 = vmatpush3.bf16.msra.mxu1 %v4775_v6  ;;  %4287 = vmatprep.subr.bf16.mxu0 %v4776_v8  ;;  %v4972_v26 = vld [vmem:[%s4947_s24 + $0x20] sm:$0xff]  ;;  %v4975_v27 = vld [vmem:[%s4947_s24 + $0x28] sm:$0xff] }
  0x17   : > { %374 = vst [vmem:[#allocation2 + $0x29] sm:$0x7f] %v4859_v2  ;;  %375 = vst [vmem:[#allocation2 + $0x41] sm:$0x7f] %v4859_v2  ;;  %4335 = vmatprep.subr.bf16.mxu1 %v4777_v9  ;;  %4297 = vmatprep.mubr.bf16.mxu0 %v518_v17  ;;  %v4783_v28 = vld [vmem:[%s6216_s1 + $0x8] sm:$0xff]   ;;  %v322_v29 = vmax.f32 %v4972_v26, 0.0  ;;  %v5053_v58 = vpack.c.bf16 %v321_v25, %v320_v24 }
  0x18   : > { %376 = vst [vmem:[#allocation2 + $0x59] sm:$0x7f] %v4859_v2  ;;  %377 = vst [vmem:[#allocation2 + $0x71] sm:$0x7f] %v4859_v2  ;;  %v323_v30 = vmax.f32 %v4975_v27, 0.0  ;;  %v4784_v31 = vld [vmem:[%s6216_s1 + $0x40] sm:$0xff]  }
  0x19   : > { %378 = vst [vmem:[#allocation2 + $0x89] sm:$0x7f] %v4859_v2  ;;  %379 = vst [vmem:[#allocation2 + $0xa1] sm:$0x7f] %v4859_v2  ;;  %4288 = vmatpush3.bf16.msra.mxu0 %v4776_v8  ;;  %v4986_v32 = vld [vmem:[%s4947_s24 + $0x30] sm:$0xff]  ;;  %v4993_v33 = vld [vmem:[%s4947_s24 + $0x38] sm:$0xff] }
  0x1a   : > { %380 = vst [vmem:[#allocation2 + $0xb9] sm:$0x7f] %v4859_v2  ;;  %381 = vst [vmem:[#allocation2 + $0xd1] sm:$0x7f] %v4859_v2  ;;  %4336 = vmatpush3.bf16.msra.mxu1 %v4777_v9  ;;  %4289 = vmatprep.subr.bf16.mxu0 %v4778_v10  ;;  %v324_v34 = vmax.f32 %v4986_v32, 0.0  ;;  %v4997_v35 = vld [vmem:[%s4947_s24 + $0x40] sm:$0xff]  ;;  %v5105_v14 = vpack.c.bf16 %v323_v30, %v322_v29 }
  0x1b   : > { %382 = vst [vmem:[#allocation2 + $0xe9] sm:$0x7f] %v4859_v2  ;;  %383 = vst [vmem:[#allocation2 + $0x101] sm:$0x7f] %v4859_v2  ;;  %4337 = vmatprep.subr.bf16.mxu1 %v4779_v11  ;;  %v5000_v36 = vld [vmem:[%s4947_s24 + $0x48] sm:$0xff]  ;;  %v4785_v37 = vld [vmem:[%s6216_s1] sm:$0xff]  }
  0x1c   : > { %384 = vst [vmem:[#allocation2 + $0x119] sm:$0x7f] %v4859_v2  ;;  %385 = vst [vmem:[#allocation2 + $0x131] sm:$0x7f] %v4859_v2  ;;  %v325_v38 = vmax.f32 %v4993_v33, 0.0  ;;  %v326_v39 = vmax.f32 %v4997_v35, 0.0 }
  0x1d   : > { %386 = vst [vmem:[#allocation2 + $0x149] sm:$0x7f] %v4859_v2  ;;  %387 = vst [vmem:[#allocation2 + $0x161] sm:$0x7f] %v4859_v2  ;;  %4290 = vmatpush3.bf16.msra.mxu0 %v4778_v10  ;;  %v327_v40 = vmax.f32 %v5000_v36, 0.0  ;;  %v4786_v41 = vld [vmem:[%s6216_s1 + $0xb8] sm:$0xff]  }
  0x1e   : > { %388 = vst [vmem:[#allocation2 + $0x179] sm:$0x7f] %v4859_v2  ;;  %389 = vst [vmem:[#allocation2 + $0x191] sm:$0x7f] %v4859_v2  ;;  %4338 = vmatpush3.bf16.msra.mxu1 %v4779_v11  ;;  %4291 = vmatprep.subr.bf16.mxu0 %v4780_v12  ;;  %v5020_v42 = vld [vmem:[%s4947_s24 + $0x50] sm:$0xff]  ;;  %v5023_v44 = vld [vmem:[%s4947_s24 + $0x58] sm:$0xff] }
  0x1f   : > { %390 = vst [vmem:[#allocation2 + $0x19] sm:$0xff] %v318_v19  ;;  %391 = vst [vmem:[#allocation2 + $0x21] sm:$0xff] %v319_v20  ;;  %4339 = vmatprep.subr.bf16.mxu1 %v4781_v13  ;;  %v328_v45 = vmax.f32 %v5020_v42, 0.0  ;;  %v5027_v46 = vld [vmem:[%s4947_s24 + $0x60] sm:$0xff]  ;;  %v329_v48 = vmax.f32 %v5023_v44, 0.0  ;;  %v5031_v49 = vld [vmem:[%s4947_s24 + $0x68] sm:$0xff]  ;;  %v5120_v19 = vpack.c.bf16 %v325_v38, %v324_v34 }
  0x20   : > { %392 = vst [vmem:[#allocation2 + $0x31] sm:$0xff] %v320_v24  ;;  %393 = vst [vmem:[#allocation2 + $0x39] sm:$0xff] %v321_v25  ;;  %v330_v50 = vmax.f32 %v5027_v46, 0.0  ;;  %v4787_v51 = vld [vmem:[%s6216_s1 + $0xf8] sm:$0xff]   ;;  %v331_v52 = vmax.f32 %v5031_v49, 0.0  ;;  %v5051_v57 = vld [vmem:[%s4947_s24 + $0x70] sm:$0xff] }
  0x21   : > { %4292 = vmatpush3.bf16.msra.mxu0 %v4780_v12  ;;  %394 = vst [vmem:[#allocation2 + $0x49] sm:$0xff] %v322_v29  ;;  %395 = vst [vmem:[#allocation2 + $0x51] sm:$0xff] %v323_v30  ;;  %v5056_v59 = vld [vmem:[%s4947_s24 + $0x78] sm:$0xff]  ;;  %v332_v60 = vmax.f32 %v5051_v57, 0.0  ;;  %v5060_v61 = vld [vmem:[%s4947_s24 + $0x80] sm:$0xff]  ;;  %v5192_v36 = vpack.c.bf16 %v329_v48, %v328_v45  ;;  %s3826_s15 = sshll.u32 %s6297_s22, 1 }
  0x22   : > { %4340 = vmatpush3.bf16.msra.mxu1 %v4781_v13  ;;  %4293 = vmatprep.subr.bf16.mxu0 %v4782_v21  ;;  %396 = vst [vmem:[#allocation2 + $0x61] sm:$0xff] %v324_v34  ;;  %397 = vst [vmem:[#allocation2 + $0x69] sm:$0xff] %v325_v38  ;;  %v4788_v63 = vld [vmem:[%s6216_s1 + $0xb0] sm:$0xff]   ;;  %v333_v1 = vmax.f32 %v5056_v59, 0.0  ;;  %v334_v2 = vmax.f32 %v5060_v61, 0.0  ;;  %v4790_v3 = vld [vmem:[%s6216_s1 + $0xa8] sm:$0xff]   ;;  %s284_s28 = scalar_lea.vmem %s6221_s6, %s3826_s15  ;;  %s280_s7 = scalar_lea.vmem %s6220_s5, %s3826_s15 }
  0x23   : > { %4341 = vmatprep.subr.bf16.mxu1 %v4783_v28  ;;  %398 = vst [vmem:[#allocation2 + $0x79] sm:$0xff] %v326_v39  ;;  %399 = vst [vmem:[#allocation2 + $0x81] sm:$0xff] %v327_v40  ;;  %v4789_v0 = vld [vmem:[%s6216_s1 + $0xf0] sm:$0xff]   ;;  %v5079_v4 = vld [vmem:[%s4947_s24 + $0x88] sm:$0xff] }
  0x24   : > { %400 = vst [vmem:[#allocation2 + $0x91] sm:$0xff] %v328_v45  ;;  %401 = vst [vmem:[#allocation2 + $0x99] sm:$0xff] %v329_v48  ;;  %v4791_v5 = vld [vmem:[%s6216_s1 + $0xe8] sm:$0xff]   ;;  %v335_v6 = vmax.f32 %v5079_v4, 0.0  ;;  %v5092_v9 = vld [vmem:[%s4947_s24 + $0x90] sm:$0xff] }
  0x25   : > { %4294 = vmatpush3.bf16.msra.mxu0 %v4782_v21  ;;  %402 = vst [vmem:[#allocation2 + $0xa9] sm:$0xff] %v330_v50  ;;  %403 = vst [vmem:[#allocation2 + $0xb1] sm:$0xff] %v331_v52  ;;  %v5098_v12 = vld [vmem:[%s4947_s24 + $0x98] sm:$0xff]  ;;  %v336_v13 = vmax.f32 %v5092_v9, 0.0  ;;  %v5109_v16 = vld [vmem:[%s4947_s24 + $0xa0] sm:$0xff] }
  0x26   : > { %v424_v43 = vld [vmem:[#allocation2 + $0x18] sm:$0xff]  ;;  %4342 = vmatpush3.bf16.msra.mxu1 %v4783_v28  ;;  %4295 = vmatprep.subr.bf16.mxu0 %v4784_v31  ;;  %v425_v47 = vld [vmem:[#allocation2 + $0x20] sm:$0xff]  ;;  %404 = vst [vmem:[#allocation2 + $0xc1] sm:$0xff] %v332_v60  ;;  %405 = vst [vmem:[#allocation2 + $0xc9] sm:$0xff] %v333_v1  ;;  %v337_v15 = vmax.f32 %v5098_v12, 0.0  ;;  %v338_v20 = vmax.f32 %v5109_v16, 0.0 }
  0x27   : > { %4343 = vmatprep.subr.bf16.mxu1 %v4785_v37  ;;  %v426_v54 = vld [vmem:[#allocation2 + $0x30] sm:$0xff]  ;;  %v427_v55 = vld [vmem:[#allocation2 + $0x38] sm:$0xff]  ;;  %v5046_v56 = vpack.c.bf16 %v425_v47, %v424_v43  ;;  %406 = vst [vmem:[#allocation2 + $0xd9] sm:$0xff] %v334_v2  ;;  %407 = vst [vmem:[#allocation2 + $0xe1] sm:$0xff] %v335_v6  ;;  %v5171_v43 = vpack.c.bf16 %v327_v40, %v326_v39 }
  0x28   : > { %v5062_v62 = vpack.c.bf16 %v427_v55, %v426_v54  ;;  %v428_v7 = vld [vmem:[#allocation2 + $0x48] sm:$0xff]  ;;  %v429_v8 = vld [vmem:[#allocation2 + $0x50] sm:$0xff]  ;;  %408 = vst [vmem:[#allocation2 + $0xf1] sm:$0xff] %v336_v13  ;;  %409 = vst [vmem:[#allocation2 + $0xf9] sm:$0xff] %v337_v15 }
  0x29   : > { %4296 = vmatpush3.bf16.msra.mxu0 %v4784_v31  ;;  %v430_v10 = vld [vmem:[#allocation2 + $0x60] sm:$0xff]  ;;  %v431_v11 = vld [vmem:[#allocation2 + $0x68] sm:$0xff]  ;;  %v5114_v18 = vpack.c.bf16 %v429_v8, %v428_v7  ;;  %410 = vst [vmem:[#allocation2 + $0x109] sm:$0xff] %v338_v20  ;;  %v5141_v25 = vld [vmem:[%s4947_s24 + $0xb0] sm:$0xff] }
  0x2a   : > { %4344 = vmatpush3.bf16.msra.mxu1 %v4785_v37  ;;  %4377 = vmatprep.subr.bf16.mxu0 %v4786_v41  ;;  %v5112_v17 = vld [vmem:[%s4947_s24 + $0xa8] sm:$0xff]  ;;  %v5126_v22 = vpack.c.bf16 %v431_v11, %v430_v10  ;;  %v4792_v23 = vld [vmem:[%s6216_s1 + $0xa0] sm:$0xff]   ;;  %v432_v26 = vld [vmem:[#allocation2 + $0x78] sm:$0xff]  ;;  %v340_v29 = vmax.f32 %v5141_v25, 0.0  ;;  %v5231_v11 = vpack.c.bf16 %v331_v52, %v330_v50 }
  0x2b   : > { %4425 = vmatprep.subr.bf16.mxu1 %v4787_v51  ;;  %v339_v21 = vmax.f32 %v5112_v17, 0.0  ;;  %v4793_v24 = vld [vmem:[%s6216_s1 + $0xe0] sm:$0xff]   ;;  %v5145_v28 = vld [vmem:[%s4947_s24 + $0xb8] sm:$0xff]  ;;  %v5155_v32 = vld [vmem:[%s4947_s24 + $0xc8] sm:$0xff] }
  0x2c   : > { %4298 = vmatmul.mubr.bf16.vlgmr.msra.gmra.mxu0 %v5040_v53  ;;  %v433_v27 = vld [vmem:[#allocation2 + $0x80] sm:$0xff]  ;;  %v341_v30 = vmax.f32 %v5145_v28, 0.0  ;;  %v434_v33 = vld [vmem:[#allocation2 + $0x90] sm:$0xff]  ;;  %v4794_v34 = vld [vmem:[%s6216_s1 + $0x98] sm:$0xff]   ;;  %412 = vst [vmem:[#allocation2 + $0x121] sm:$0xff] %v340_v29  ;;  %v343_v38 = vmax.f32 %v5155_v32, 0.0 }
  0x2d   : > { %4346 = vmatmul.mubr.bf16.vlgmr.msra.gmra.mxu1 %v5046_v56  ;;  %4378 = vmatpush3.bf16.msra.mxu0 %v4786_v41  ;;  %411 = vst [vmem:[#allocation2 + $0x111] sm:$0xff] %v339_v21  ;;  %v5152_v31 = vld [vmem:[%s4947_s24 + $0xc0] sm:$0xff]  ;;  %v435_v41 = vld [vmem:[#allocation2 + $0x98] sm:$0xff]  ;;  %v5186_v35 = vpack.c.bf16 %v433_v27, %v432_v26  ;;  %v4796_v42 = vld [vmem:[%s6216_s1 + $0x90] sm:$0xff]   ;;  %v5242_v26 = vpack.c.bf16 %v333_v1, %v332_v60 }
  0x2e   : > { %4426 = vmatpush3.bf16.msra.mxu1 %v4787_v51  ;;  %4301 = vmatprep.mubr.bf16.mxu0 %v5053_v58  ;;  %v342_v37 = vmax.f32 %v5152_v31, 0.0  ;;  %413 = vst [vmem:[#allocation2 + $0x129] sm:$0xff] %v341_v30  ;;  %v4795_v47 = vld [vmem:[%s6216_s1 + $0xd8] sm:$0xff]   ;;  %415 = vst [vmem:[#allocation2 + $0x141] sm:$0xff] %v343_v38  ;;  %v5181_v51 = vld [vmem:[%s4947_s24 + $0xd0] sm:$0xff]  ;;  %v5265_v1 = vpack.c.bf16 %v335_v6, %v334_v2  ;;  %v5292_v9 = vpack.c.bf16 %v339_v21, %v338_v20 }
  0x2f   : > { %4349 = vmatprep.mubr.bf16.mxu1 %v5062_v62  ;;  %4379 = vmatprep.subr.bf16.mxu0 %v4788_v63  ;;  %v5184_v54 = vld [vmem:[%s4947_s24 + $0xd8] sm:$0xff]  ;;  %v344_v39 = vmax.f32 %v5181_v51, 0.0  ;;  %v5197_v55 = vld [vmem:[%s4947_s24 + $0xe0] sm:$0xff]  ;;  %v4797_v44 = vld [vmem:[%s6216_s1 + $0xd0] sm:$0xff]  }
  0x30   : > { %4427 = vmatprep.subr.bf16.mxu1 %v4789_v0  ;;  %414 = vst [vmem:[#allocation2 + $0x139] sm:$0xff] %v342_v37  ;;  %v345_v40 = vmax.f32 %v5184_v54, 0.0  ;;  %v436_v45 = vld [vmem:[#allocation2 + $0xa8] sm:$0xff]  ;;  %v437_v48 = vld [vmem:[#allocation2 + $0xb0] sm:$0xff]  ;;  %v438_v7 = vld [vmem:[#allocation2 + $0xc0] sm:$0xff]  ;;  %v5312_v25 = vpack.c.bf16 %v343_v38, %v342_v37 }
  0x31   : > { %4380 = vmatpush3.bf16.msra.mxu0 %v4788_v63  ;;  %v5200_v63 = vld [vmem:[%s4947_s24 + $0xe8] sm:$0xff]  ;;  %416 = vst [vmem:[#allocation2 + $0x151] sm:$0xff] %v344_v39  ;;  %v4800_v46 = vld [vmem:[%s6216_s1 + $0x80] sm:$0xff]   ;;  %v440_v50 = vld [vmem:[#allocation2 + $0xd8] sm:$0xff] }
  0x32   : > { %4428 = vmatpush3.bf16.msra.mxu1 %v4789_v0  ;;  %4381 = vmatprep.subr.bf16.mxu0 %v4790_v3  ;;  %v5202_v0 = vpack.c.bf16 %v435_v41, %v434_v33  ;;  %417 = vst [vmem:[#allocation2 + $0x159] sm:$0xff] %v345_v40  ;;  %v439_v8 = vld [vmem:[#allocation2 + $0xc8] sm:$0xff]  ;;  %v4801_v49 = vld [vmem:[%s6216_s1 + $0xc0] sm:$0xff]   ;;  %v442_v57 = vld [vmem:[#allocation2 + $0xf0] sm:$0xff]  ;;  %v5278_v41 = vpack.c.bf16 %v337_v15, %v336_v13 }
  0x33   : > { %4429 = vmatprep.subr.bf16.mxu1 %v4791_v5  ;;  %v4798_v10 = vld [vmem:[%s6216_s1 + $0x88] sm:$0xff]   ;;  %v5244_v27 = vpack.c.bf16 %v439_v8, %v438_v7  ;;  %v441_v52 = vld [vmem:[#allocation2 + $0xe0] sm:$0xff]  ;;  %v443_v59 = vld [vmem:[#allocation2 + $0xf8] sm:$0xff]  ;;  %v5300_v13 = vpack.c.bf16 %v341_v30, %v340_v29 }
  0x34   : > { %4302 = vmatmul.mubr.bf16.gmra.mxu0 %v5105_v14  ;;  %v5259_v60 = vld [vmem:[%s6216_s1 + $0x138] sm:$0xff]   ;;  %v444_v61 = vld [vmem:[#allocation2 + $0x108] sm:$0xff]  ;;  %v445_v2 = vld [vmem:[#allocation2 + $0x110] sm:$0xff] }
  0x35   : > { %4350 = vmatmul.mubr.bf16.gmra.mxu1 %v5114_v18  ;;  %4305 = vmatprep.mubr.bf16.mxu0 %v5120_v19  ;;  %v5270_v33 = vld [vmem:[%s6216_s1 + $0x178] sm:$0xff]   ;;  %v446_v4 = vld [vmem:[#allocation2 + $0x120] sm:$0xff]  ;;  %v447_v6 = vld [vmem:[#allocation2 + $0x128] sm:$0xff]  ;;  %v5294_v12 = vpack.c.bf16 %v445_v2, %v444_v61 }
  0x36   : > { %4353 = vmatprep.mubr.bf16.mxu1 %v5126_v22  ;;  %4382 = vmatpush3.bf16.msra.mxu0 %v4790_v3  ;;  %v346_v3 = vmax.f32 %v5197_v55, 0.0  ;;  %v5302_v15 = vpack.c.bf16 %v447_v6, %v446_v4  ;;  %v316_v28 = vld [vmem:[%s4947_s24 + $0xf0] sm:$0xff]  ;;  %v317_v29 = vld [vmem:[%s4947_s24 + $0xf8] sm:$0xff]  ;;  %v969_v31 = vld [vmem:[#allocation2 + $0x2] sm:$0xff] }
  0x37   : > { %4430 = vmatpush3.bf16.msra.mxu1 %v4791_v5  ;;  %4383 = vmatprep.subr.bf16.mxu0 %v4792_v23  ;;  %v347_v5 = vmax.f32 %v5200_v63, 0.0  ;;  %v448_v16 = vld [vmem:[#allocation2 + $0x138] sm:$0xff]  ;;  %v449_v17 = vld [vmem:[#allocation2 + $0x140] sm:$0xff]  ;;  %v970_v32 = vld [vmem:[#allocation2 + $0xa] sm:$0xff] }
  0x38   : > { %4431 = vmatprep.subr.bf16.mxu1 %v4793_v24  ;;  %418 = vst [vmem:[#allocation2 + $0x169] sm:$0xff] %v346_v3  ;;  %v450_v20 = vld [vmem:[#allocation2 + $0x150] sm:$0xff]  ;;  %v5316_v30 = vpack.c.bf16 %v449_v17, %v448_v16  ;;  %v971_v7 = vld [vmem:[#allocation2 + $0x1a] sm:$0xff]  ;;  %v972_v8 = vld [vmem:[#allocation2 + $0x22] sm:$0xff] }
  0x39   : > { %419 = vst [vmem:[#allocation2 + $0x171] sm:$0xff] %v347_v5  ;;  %v451_v21 = vld [vmem:[#allocation2 + $0x158] sm:$0xff]  ;;  %v5336_v54 = vpack.c.bf16 %v347_v5, %v346_v3  ;;  %v4804_v63 = vld [vmem:[%s6216_s1 + $0x130] sm:$0xff]   ;;  %v4809_v61 = vld [vmem:[%s6216_s1 + $0x160] sm:$0xff]  }
  0x3a   : > { %4384 = vmatpush3.bf16.msra.mxu0 %v4792_v23  ;;  %v4799_v23 = vld [vmem:[%s6216_s1 + $0xc8] sm:$0xff]   ;;  %v4805_v3 = vld [vmem:[%s6216_s1 + $0x170] sm:$0xff]   ;;  %v982_v4 = vld [vmem:[#allocation2 + $0x9a] sm:$0xff] }
  0x3b   : > { %4432 = vmatpush3.bf16.msra.mxu1 %v4793_v24  ;;  %4385 = vmatprep.subr.bf16.mxu0 %v4794_v34  ;;  %v5236_v24 = vpack.c.bf16 %v437_v48, %v436_v45  ;;  %v349_v45 = vmax.f32 %v317_v29, 0.0  ;;  %v5324_v48 = vpack.c.bf16 %v451_v21, %v450_v20  ;;  %v976_v5 = vld [vmem:[#allocation2 + $0x52] sm:$0xff]  ;;  %v985_v29 = vld [vmem:[#allocation2 + $0xc2] sm:$0xff] }
  0x3c   : > { %4306 = vmatmul.mubr.bf16.gmra.mxu0 %v5171_v43  ;;  %4433 = vmatprep.subr.bf16.mxu1 %v4795_v47  ;;  %v981_v2 = vld [vmem:[#allocation2 + $0x92] sm:$0xff] }
  0x3d   : > { %4354 = vmatmul.mubr.bf16.gmra.mxu1 %v5186_v35  ;;  %4309 = vmatprep.mubr.bf16.mxu0 %v5192_v36  ;;  %421 = vst [vmem:[#allocation2 + $0x189] sm:$0xff] %v349_v45  ;;  %v4810_v6 = vld [vmem:[%s6216_s1 + $0x118] sm:$0xff]   ;;  %v5387_v20 = vpack.c.bf16 %v982_v4, %v981_v2 }
  0x3e   : > { %4357 = vmatprep.mubr.bf16.mxu1 %v5202_v0  ;;  %4386 = vmatpush3.bf16.msra.mxu0 %v4794_v34  ;;  %v5272_v34 = vpack.c.bf16 %v441_v52, %v440_v50  ;;  %v978_v50 = vld [vmem:[#allocation2 + $0x6a] sm:$0xff]  ;;  %v4811_v17 = vld [vmem:[%s6216_s1 + $0x158] sm:$0xff]  }
  0x3f   : > { %4434 = vmatpush3.bf16.msra.mxu1 %v4795_v47  ;;  %4387 = vmatprep.subr.bf16.mxu0 %v4796_v42  ;;  %v5280_v47 = vpack.c.bf16 %v443_v59, %v442_v57  ;;  %v452_v37 = vld [vmem:[#allocation2 + $0x168] sm:$0xff]  ;;  %v984_v21 = vld [vmem:[#allocation2 + $0xb2] sm:$0xff] }
  0x40   : > { %4435 = vmatprep.subr.bf16.mxu1 %v4797_v44  ;;  %v453_v38 = vld [vmem:[#allocation2 + $0x170] sm:$0xff]  ;;  %v4806_v52 = vld [vmem:[%s6216_s1 + $0x128] sm:$0xff]  }
  0x42   : > { %4388 = vmatpush3.bf16.msra.mxu0 %v4796_v42  ;;  %v5322_v42 = vpack.c.bf16 %v345_v40, %v344_v39  ;;  %v5338_v39 = vpack.c.bf16 %v453_v38, %v452_v37  ;;  %v1001_v40 = vpack.c.bf16 %v970_v32, %v969_v31  ;;  %v4815_v32 = vld [vmem:[%s6216_s1 + $0x148] sm:$0xff]   ;;  %v987_v38 = vld [vmem:[#allocation2 + $0xda] sm:$0xff] }
  0x43   : > { %4436 = vmatpush3.bf16.msra.mxu1 %v4797_v44  ;;  %4389 = vmatprep.subr.bf16.mxu0 %v4798_v10  ;;  %v348_v44 = vmax.f32 %v316_v28, 0.0  ;;  %v4813_v28 = vld [vmem:[%s6216_s1 + $0x150] sm:$0xff]  }
  0x44   : > { %4310 = vmatmul.mubr.bf16.gmra.mxu0 %v5231_v11  ;;  %4437 = vmatprep.subr.bf16.mxu1 %v4799_v23 }
  0x45   : > { %4358 = vmatmul.mubr.bf16.gmra.mxu1 %v5236_v24  ;;  %4313 = vmatprep.mubr.bf16.mxu0 %v5242_v26  ;;  %420 = vst [vmem:[#allocation2 + $0x181] sm:$0xff] %v348_v44  ;;  %v5330_v51 = vpack.c.bf16 %v349_v45, %v348_v44  ;;  %v986_v44 = vld [vmem:[#allocation2 + $0xca] sm:$0xff] }
  0x46   : > { %4361 = vmatprep.mubr.bf16.mxu1 %v5244_v27  ;;  %4390 = vmatpush3.bf16.msra.mxu0 %v4798_v10  ;;  %v973_v10 = vld [vmem:[#allocation2 + $0x32] sm:$0xff]  ;;  %v4814_v45 = vld [vmem:[%s6216_s1 + $0x108] sm:$0xff]   ;;  %v5407_v37 = vpack.c.bf16 %v986_v44, %v985_v29  ;;  %v2198_v29 = vld [vmem:[#allocation2 + $0x60] sm:$0xff] }
  0x47   : > { %4438 = vmatpush3.bf16.msra.mxu1 %v4799_v23  ;;  %4391 = vmatprep.subr.bf16.mxu0 %v4800_v46  ;;  %v974_v23 = vld [vmem:[#allocation2 + $0x3a] sm:$0xff]  ;;  %v2199_v44 = vld [vmem:[#allocation2 + $0x68] sm:$0xff] }
  0x48   : > { %4439 = vmatprep.subr.bf16.mxu1 %v4801_v49  ;;  %v5345_v55 = vpack.c.bf16 %v974_v23, %v973_v10  ;;  %v4818_v10 = vld [vmem:[%s6216_s1 + $0x1b8] sm:$0xff]  }
  0x4a   : > { %4392 = vmatpush3.bf16.msra.mxu0 %v4800_v46  ;;  %v5343_v46 = vpack.c.bf16 %v972_v8, %v971_v7  ;;  %v989_v7 = vld [vmem:[#allocation2 + $0xf2] sm:$0xff]  ;;  %v990_v8 = vld [vmem:[#allocation2 + $0xfa] sm:$0xff] }
  0x4b   : > { %4440 = vmatpush3.bf16.msra.mxu1 %v4801_v49  ;;  %4473 = vmatprep.subr.bf16.mxu0 %v5259_v60  ;;  %v977_v49 = vld [vmem:[#allocation2 + $0x62] sm:$0xff] }
  0x4c   : > { %4314 = vmatmul.mubr.bf16.gmra.mxu0 %v5265_v1  ;;  %4521 = vmatprep.subr.bf16.mxu1 %v5270_v33  ;;  %v5367_v59 = vpack.c.bf16 %v978_v50, %v977_v49  ;;  %v1306_v2 = vld [vmem:[#allocation2 + $0x188] sm:$0xff] }
  0x4d   : > { %4362 = vmatmul.mubr.bf16.gmra.mxu1 %v5272_v34  ;;  %4317 = vmatprep.mubr.bf16.mxu0 %v5278_v41 }
  0x4e   : > { %4365 = vmatprep.mubr.bf16.mxu1 %v5280_v47 }
  0x54   : > { %4318 = vmatmul.mubr.bf16.gmra.mxu0 %v5292_v9 }
  0x55   : > { %4366 = vmatmul.mubr.bf16.gmra.mxu1 %v5294_v12  ;;  %4321 = vmatprep.mubr.bf16.mxu0 %v5300_v13 }
  0x56   : > { %4369 = vmatprep.mubr.bf16.mxu1 %v5302_v15 }
  0x5c   : > { %4322 = vmatmul.mubr.bf16.gmra.mxu0 %v5312_v25 }
  0x5d   : > { %4370 = vmatmul.mubr.bf16.gmra.mxu1 %v5316_v30  ;;  %4325 = vmatprep.mubr.bf16.mxu0 %v5322_v42 }
  0x5e   : > { %4373 = vmatprep.mubr.bf16.mxu1 %v5324_v48 }
  0x64   : > { %4326 = vmatmul.mubr.bf16.gmra.mxu0 %v5336_v54 }
  0x65   : > { %4374 = vmatmul.mubr.bf16.gmra.mxu1 %v5338_v39  ;;  %4393 = vmatprep.mubr.bf16.mxu0 %v1001_v40  ;;  %v988_v40 = vld [vmem:[#allocation2 + $0xe2] sm:$0xff] }
  0x66   : > { %4441 = vmatprep.mubr.bf16.mxu1 %v5046_v56  ;;  %v975_v56 = vld [vmem:[#allocation2 + $0x4a] sm:$0xff]  ;;  %v5422_v23 = vpack.c.bf16 %v988_v40, %v987_v38 }
  0x67   : > { %v5365_v57 = vpack.c.bf16 %v976_v5, %v975_v56  ;;  %v993_v56 = vld [vmem:[#allocation2 + $0x122] sm:$0xff]  ;;  %v994_v5 = vld [vmem:[#allocation2 + $0x12a] sm:$0xff] }
  0x68   : > { %v5435_v50 = vpack.c.bf16 %v994_v5, %v993_v56  ;;  %v4836_v38 = vld [vmem:[%s6216_s1 + $0x230] sm:$0xff]   ;;  %v2203_v5 = vld [vmem:[#allocation2 + $0x98] sm:$0xff] }
  0x69   : > { %v2202_v56 = vld [vmem:[#allocation2 + $0x90] sm:$0xff] }
  0x6c   : > { %4394 = vmatmul.mubr.bf16.vlgmr.msra.gmra.mxu0 %v5343_v46 }
  0x6d   : > { %4442 = vmatmul.mubr.bf16.vlgmr.msra.gmra.mxu1 %v5062_v62  ;;  %4474 = vmatpush3.bf16.msra.mxu0 %v5259_v60  ;;  %v4807_v62 = vld [vmem:[%s6216_s1 + $0x168] sm:$0xff]   ;;  %v979_v60 = vld [vmem:[#allocation2 + $0x7a] sm:$0xff] }
  0x6e   : > { %4522 = vmatpush3.bf16.msra.mxu1 %v5270_v33  ;;  %4397 = vmatprep.mubr.bf16.mxu0 %v5345_v55  ;;  %v980_v33 = vld [vmem:[#allocation2 + $0x82] sm:$0xff] }
  0x6f   : > { %4445 = vmatprep.mubr.bf16.mxu1 %v5114_v18  ;;  %4475 = vmatprep.subr.bf16.mxu0 %v4804_v63  ;;  %v4808_v18 = vld [vmem:[%s6216_s1 + $0x120] sm:$0xff]   ;;  %v5382_v16 = vpack.c.bf16 %v980_v33, %v979_v60 }
  0x70   : > { %4523 = vmatprep.subr.bf16.mxu1 %v4805_v3  ;;  %v998_v60 = vld [vmem:[#allocation2 + $0x15a] sm:$0xff] }
  0x71   : > { %4476 = vmatpush3.bf16.msra.mxu0 %v4804_v63  ;;  %v5427_v63 = vpack.c.bf16 %v990_v8, %v989_v7  ;;  %v2200_v7 = vld [vmem:[#allocation2 + $0x78] sm:$0xff]  ;;  %v4837_v8 = vld [vmem:[%s6217_s2 + $0x30] sm:$0xff]  }
  0x72   : > { %4524 = vmatpush3.bf16.msra.mxu1 %v4805_v3  ;;  %4477 = vmatprep.subr.bf16.mxu0 %v4806_v52  ;;  %v992_v3 = vld [vmem:[#allocation2 + $0x112] sm:$0xff] }
  0x73   : > { %4525 = vmatprep.subr.bf16.mxu1 %v4807_v62 }
  0x74   : > { %4398 = vmatmul.mubr.bf16.gmra.mxu0 %v5365_v57 }
  0x75   : > { %4446 = vmatmul.mubr.bf16.gmra.mxu1 %v5126_v22  ;;  %4401 = vmatprep.mubr.bf16.mxu0 %v5367_v59  ;;  %v983_v22 = vld [vmem:[#allocation2 + $0xaa] sm:$0xff] }
  0x76   : > { %4449 = vmatprep.mubr.bf16.mxu1 %v5186_v35  ;;  %4478 = vmatpush3.bf16.msra.mxu0 %v4806_v52  ;;  %v4812_v35 = vld [vmem:[%s6216_s1 + $0x110] sm:$0xff]   ;;  %v5402_v31 = vpack.c.bf16 %v984_v21, %v983_v22  ;;  %v995_v52 = vld [vmem:[#allocation2 + $0x13a] sm:$0xff] }
  0x77   : > { %4526 = vmatpush3.bf16.msra.mxu1 %v4807_v62  ;;  %4479 = vmatprep.subr.bf16.mxu0 %v4808_v18  ;;  %v997_v62 = vld [vmem:[#allocation2 + $0x152] sm:$0xff] }
  0x78   : > { %4527 = vmatprep.subr.bf16.mxu1 %v4809_v61 }
  0x7a   : > { %4480 = vmatpush3.bf16.msra.mxu0 %v4808_v18  ;;  %v999_v18 = vld [vmem:[#allocation2 + $0x16a] sm:$0xff] }
  0x7b   : > { %4528 = vmatpush3.bf16.msra.mxu1 %v4809_v61  ;;  %4481 = vmatprep.subr.bf16.mxu0 %v4810_v6  ;;  %v1305_v61 = vld [vmem:[#allocation2 + $0x180] sm:$0xff] }
  0x7c   : > { %4402 = vmatmul.mubr.bf16.gmra.mxu0 %v5382_v16  ;;  %4529 = vmatprep.subr.bf16.mxu1 %v4811_v17 }
  0x7d   : > { %4450 = vmatmul.mubr.bf16.gmra.mxu1 %v5202_v0  ;;  %4405 = vmatprep.mubr.bf16.mxu0 %v5387_v20  ;;  %v4816_v0 = vld [vmem:[%s6216_s1 + $0x100] sm:$0xff]  }
  0x7e   : > { %4453 = vmatprep.mubr.bf16.mxu1 %v5236_v24  ;;  %4482 = vmatpush3.bf16.msra.mxu0 %v4810_v6  ;;  %v4817_v24 = vld [vmem:[%s6216_s1 + $0x140] sm:$0xff]  }
  0x7f   : > { %4530 = vmatpush3.bf16.msra.mxu1 %v4811_v17  ;;  %4483 = vmatprep.subr.bf16.mxu0 %v4812_v35  ;;  %v4833_v6 = vld [vmem:[%s6216_s1 + $0x1c0] sm:$0xff]   ;;  %v2195_v17 = vld [vmem:[#allocation2 + $0x38] sm:$0xff] }
  0x80   : > { %4531 = vmatprep.subr.bf16.mxu1 %v4813_v28 }
  0x82   : > { %4484 = vmatpush3.bf16.msra.mxu0 %v4812_v35 }
  0x83   : > { %4532 = vmatpush3.bf16.msra.mxu1 %v4813_v28  ;;  %4485 = vmatprep.subr.bf16.mxu0 %v4814_v45  ;;  %v2503_v28 = vld [vmem:[#allocation2 + $0x51] sm:$0xff] }
  0x84   : > { %4406 = vmatmul.mubr.bf16.gmra.mxu0 %v5402_v31  ;;  %4533 = vmatprep.subr.bf16.mxu1 %v4815_v32 }
  0x85   : > { %4454 = vmatmul.mubr.bf16.gmra.mxu1 %v5244_v27  ;;  %4409 = vmatprep.mubr.bf16.mxu0 %v5407_v37  ;;  %v4819_v27 = vld [vmem:[%s6216_s1 + $0x1f8] sm:$0xff]  }
  0x86   : > { %4457 = vmatprep.mubr.bf16.mxu1 %v5272_v34  ;;  %4486 = vmatpush3.bf16.msra.mxu0 %v4814_v45  ;;  %v991_v34 = vld [vmem:[#allocation2 + $0x10a] sm:$0xff] }
  0x87   : > { %4534 = vmatpush3.bf16.msra.mxu1 %v4815_v32  ;;  %4487 = vmatprep.subr.bf16.mxu0 %v4816_v0  ;;  %v5433_v49 = vpack.c.bf16 %v992_v3, %v991_v34  ;;  %v2505_v32 = vld [vmem:[#allocation2 + $0x69] sm:$0xff] }
  0x88   : > { %4535 = vmatprep.subr.bf16.mxu1 %v4817_v24 }
  0x8a   : > { %4488 = vmatpush3.bf16.msra.mxu0 %v4816_v0  ;;  %v2228_v0 = vpack.c.bf16 %v2199_v44, %v2198_v29 }
  0x8b   : > { %4536 = vmatpush3.bf16.msra.mxu1 %v4817_v24  ;;  %4569 = vmatprep.subr.bf16.mxu0 %v4818_v10 }
  0x8c   : > { %4410 = vmatmul.mubr.bf16.gmra.mxu0 %v5422_v23  ;;  %4617 = vmatprep.subr.bf16.mxu1 %v4819_v27 }
  0x8d   : > { %4458 = vmatmul.mubr.bf16.gmra.mxu1 %v5280_v47  ;;  %4413 = vmatprep.mubr.bf16.mxu0 %v5427_v63  ;;  %v996_v47 = vld [vmem:[#allocation2 + $0x142] sm:$0xff] }
  0x8e   : > { %4461 = vmatprep.mubr.bf16.mxu1 %v5294_v12  ;;  %v5441_v33 = vpack.c.bf16 %v996_v47, %v995_v52  ;;  %v5443_v12 = vpack.c.bf16 %v998_v60, %v997_v62  ;;  %v2508_v52 = vld [vmem:[#allocation2 + $0x91] sm:$0xff]  ;;  %v2509_v47 = vld [vmem:[#allocation2 + $0x99] sm:$0xff]  ;;  %v4839_v62 = vld [vmem:[%s6217_s2 + $0x28] sm:$0xff]  }
  0x94   : > { %4414 = vmatmul.mubr.bf16.gmra.mxu0 %v5433_v49 }
  0x95   : > { %4462 = vmatmul.mubr.bf16.gmra.mxu1 %v5302_v15  ;;  %4417 = vmatprep.mubr.bf16.mxu0 %v5435_v50  ;;  %v1000_v15 = vld [vmem:[#allocation2 + $0x172] sm:$0xff] }
  0x96   : > { %4465 = vmatprep.mubr.bf16.mxu1 %v5316_v30  ;;  %v5449_v4 = vpack.c.bf16 %v1000_v15, %v999_v18  ;;  %v5451_v30 = vpack.c.bf16 %v1306_v2, %v1305_v61  ;;  %v2230_v61 = vpack.c.bf16 %v2203_v5, %v2202_v56  ;;  %v2516_v5 = vld [vmem:[#allocation2 + $0xf1] sm:$0xff] }
  0x9c   : > { %4418 = vmatmul.mubr.bf16.gmra.mxu0 %v5441_v33 }
  0x9d   : > { %4466 = vmatmul.mubr.bf16.gmra.mxu1 %v5324_v48  ;;  %4421 = vmatprep.mubr.bf16.mxu0 %v5443_v12  ;;  %v4820_v48 = vld [vmem:[%s6216_s1 + $0x1b0] sm:$0xff]  }
  0x9e   : > { %4469 = vmatprep.mubr.bf16.mxu1 %v5338_v39  ;;  %v4821_v39 = vld [vmem:[%s6216_s1 + $0x1f0] sm:$0xff]  }
  0xa4   : > { %4422 = vmatmul.mubr.bf16.gmra.mxu0 %v5449_v4 }
  0xa5   : > { %4470 = vmatmul.mubr.bf16.gmra.mxu1 %v5451_v30  ;;  %4489 = vmatprep.mubr.bf16.mxu0 %v5040_v53  ;;  %v4822_v53 = vld [vmem:[%s6216_s1 + $0x1a8] sm:$0xff]  }
  0xa6   : > { %4537 = vmatprep.mubr.bf16.mxu1 %v5343_v46  ;;  %v4825_v46 = vld [vmem:[%s6216_s1 + $0x1e0] sm:$0xff]  }
  0xac   : > { %4490 = vmatmul.mubr.bf16.vlgmr.msra.gmra.mxu0 %v5053_v58  ;;  %v4823_v58 = vld [vmem:[%s6216_s1 + $0x1e8] sm:$0xff]  }
  0xad   : > { %4538 = vmatmul.mubr.bf16.vlgmr.msra.gmra.mxu1 %v5345_v55  ;;  %4570 = vmatpush3.bf16.msra.mxu0 %v4818_v10  ;;  %v4826_v55 = vld [vmem:[%s6216_s1 + $0x198] sm:$0xff]  }
  0xae   : > { %4618 = vmatpush3.bf16.msra.mxu1 %v4819_v27  ;;  %4493 = vmatprep.mubr.bf16.mxu0 %v5105_v14  ;;  %v4824_v14 = vld [vmem:[%s6216_s1 + $0x1a0] sm:$0xff]  }
  0xaf   : > { %4541 = vmatprep.mubr.bf16.mxu1 %v5365_v57  ;;  %4571 = vmatprep.subr.bf16.mxu0 %v4820_v48  ;;  %v4829_v57 = vld [vmem:[%s6216_s1 + $0x1d0] sm:$0xff]   ;;  %v2506_v27 = vld [vmem:[#allocation2 + $0x79] sm:$0xff] }
  0xb0   : > { %4619 = vmatprep.subr.bf16.mxu1 %v4821_v39 }
  0xb1   : > { %4572 = vmatpush3.bf16.msra.mxu0 %v4820_v48  ;;  %v5563_v48 = vpack.c.bf16 %v2509_v47, %v2508_v52 }
  0xb2   : > { %4620 = vmatpush3.bf16.msra.mxu1 %v4821_v39  ;;  %4573 = vmatprep.subr.bf16.mxu0 %v4822_v53 }
  0xb3   : > { %4621 = vmatprep.subr.bf16.mxu1 %v4823_v58 }
  0xb4   : > { %4494 = vmatmul.mubr.bf16.gmra.mxu0 %v5120_v19  ;;  %v4827_v19 = vld [vmem:[%s6216_s1 + $0x1d8] sm:$0xff]  }
  0xb5   : > { %4542 = vmatmul.mubr.bf16.gmra.mxu1 %v5367_v59  ;;  %4497 = vmatprep.mubr.bf16.mxu0 %v5171_v43  ;;  %v4828_v43 = vld [vmem:[%s6216_s1 + $0x190] sm:$0xff]   ;;  %v4830_v59 = vld [vmem:[%s6216_s1 + $0x188] sm:$0xff]  }
  0xb6   : > { %4545 = vmatprep.mubr.bf16.mxu1 %v5382_v16  ;;  %4574 = vmatpush3.bf16.msra.mxu0 %v4822_v53  ;;  %v4834_v16 = vld [vmem:[%s6216_s1 + $0x238] sm:$0xff]   ;;  %v4840_v53 = vld [vmem:[%s6216_s1 + $0x220] sm:$0xff]  }
  0xb7   : > { %4622 = vmatpush3.bf16.msra.mxu1 %v4823_v58  ;;  %4575 = vmatprep.subr.bf16.mxu0 %v4824_v14 }
  0xb8   : > { %4623 = vmatprep.subr.bf16.mxu1 %v4825_v46 }
  0xba   : > { %4576 = vmatpush3.bf16.msra.mxu0 %v4824_v14 }
  0xbb   : > { %4624 = vmatpush3.bf16.msra.mxu1 %v4825_v46  ;;  %4577 = vmatprep.subr.bf16.mxu0 %v4826_v55  ;;  %v4841_v46 = vld [vmem:[%s6217_s2 + $0x20] sm:$0xff]  }
  0xbc   : > { %4498 = vmatmul.mubr.bf16.gmra.mxu0 %v5192_v36  ;;  %4625 = vmatprep.subr.bf16.mxu1 %v4827_v19  ;;  %v4831_v36 = vld [vmem:[%s6216_s1 + $0x1c8] sm:$0xff]  }
  0xbd   : > { %4546 = vmatmul.mubr.bf16.gmra.mxu1 %v5387_v20  ;;  %4501 = vmatprep.mubr.bf16.mxu0 %v5231_v11  ;;  %v4832_v11 = vld [vmem:[%s6216_s1 + $0x180] sm:$0xff]   ;;  %v2500_v20 = vld [vmem:[#allocation2 + $0x31] sm:$0xff] }
  0xbe   : > { %4549 = vmatprep.mubr.bf16.mxu1 %v5402_v31  ;;  %4578 = vmatpush3.bf16.msra.mxu0 %v4826_v55  ;;  %v2504_v31 = vld [vmem:[#allocation2 + $0x61] sm:$0xff] }
  0xbf   : > { %4626 = vmatpush3.bf16.msra.mxu1 %v4827_v19  ;;  %4579 = vmatprep.subr.bf16.mxu0 %v4828_v43  ;;  %v5539_v24 = vpack.c.bf16 %v2505_v32, %v2504_v31  ;;  %v2204_v19 = vld [vmem:[#allocation2 + $0xa8] sm:$0xff] }
  0xc0   : > { %4627 = vmatprep.subr.bf16.mxu1 %v4829_v57 }
  0xc2   : > { %4580 = vmatpush3.bf16.msra.mxu0 %v4828_v43  ;;  %v2205_v43 = vld [vmem:[#allocation2 + $0xb0] sm:$0xff] }
  0xc3   : > { %4628 = vmatpush3.bf16.msra.mxu1 %v4829_v57  ;;  %4581 = vmatprep.subr.bf16.mxu0 %v4830_v59  ;;  %v2510_v57 = vld [vmem:[#allocation2 + $0xa9] sm:$0xff] }
  0xc4   : > { %4502 = vmatmul.mubr.bf16.gmra.mxu0 %v5242_v26  ;;  %4629 = vmatprep.subr.bf16.mxu1 %v4831_v36  ;;  %v4835_v26 = vld [vmem:[%s6217_s2 + $0x38] sm:$0xff]  }
  0xc5   : > { %4550 = vmatmul.mubr.bf16.gmra.mxu1 %v5407_v37  ;;  %4505 = vmatprep.mubr.bf16.mxu0 %v5265_v1  ;;  %v1917_v1 = vld [vmem:[#allocation2 + $0x182] sm:$0xff] }
  0xc6   : > { %4553 = vmatprep.mubr.bf16.mxu1 %v5422_v23  ;;  %4582 = vmatpush3.bf16.msra.mxu0 %v4830_v59  ;;  %v2201_v23 = vld [vmem:[#allocation2 + $0x80] sm:$0xff] }
  0xc7   : > { %4630 = vmatpush3.bf16.msra.mxu1 %v4831_v36  ;;  %4583 = vmatprep.subr.bf16.mxu0 %v4832_v11 }
  0xc8   : > { %4631 = vmatprep.subr.bf16.mxu1 %v4833_v6 }
  0xca   : > { %4584 = vmatpush3.bf16.msra.mxu0 %v4832_v11  ;;  %v2511_v11 = vld [vmem:[#allocation2 + $0xb1] sm:$0xff] }
  0xcb   : > { %4632 = vmatpush3.bf16.msra.mxu1 %v4833_v6  ;;  %4665 = vmatprep.subr.bf16.mxu0 %v4834_v16  ;;  %v2206_v6 = vld [vmem:[#allocation2 + $0xc0] sm:$0xff] }
  0xcc   : > { %4506 = vmatmul.mubr.bf16.gmra.mxu0 %v5278_v41  ;;  %4713 = vmatprep.subr.bf16.mxu1 %v4835_v26  ;;  %v1918_v41 = vld [vmem:[#allocation2 + $0x18a] sm:$0xff] }
  0xcd   : > { %4554 = vmatmul.mubr.bf16.gmra.mxu1 %v5427_v63  ;;  %4509 = vmatprep.mubr.bf16.mxu0 %v5292_v9  ;;  %v2194_v9 = vld [vmem:[#allocation2 + $0x30] sm:$0xff]  ;;  %v1934_v22 = vpack.c.bf16 %v1918_v41, %v1917_v1  ;;  %v2507_v63 = vld [vmem:[#allocation2 + $0x81] sm:$0xff] }
  0xce   : > { %4557 = vmatprep.mubr.bf16.mxu1 %v5433_v49  ;;  %v2226_v21 = vpack.c.bf16 %v2195_v17, %v2194_v9  ;;  %v4838_v49 = vld [vmem:[%s6216_s1 + $0x228] sm:$0xff]   ;;  %v5559_v15 = vpack.c.bf16 %v2507_v63, %v2506_v27  ;;  %v4842_v9 = vld [vmem:[%s6216_s1 + $0x218] sm:$0xff]   ;;  %v2210_v63 = vld [vmem:[#allocation2 + $0xf0] sm:$0xff] }
  0xcf   : > { %v2512_v1 = vld [vmem:[#allocation2 + $0xc1] sm:$0xff]  ;;  %v2513_v41 = vld [vmem:[#allocation2 + $0xc9] sm:$0xff] }
  0xd0   : > { %v5589_v29 = vpack.c.bf16 %v2513_v41, %v2512_v1  ;;  %v2515_v27 = vld [vmem:[#allocation2 + $0xe1] sm:$0xff]  ;;  %v2519_v1 = vld [vmem:[#allocation2 + $0x111] sm:$0xff] }
  0xd1   : > { %v2214_v41 = vld [vmem:[#allocation2 + $0x120] sm:$0xff] }
  0xd4   : > { %4510 = vmatmul.mubr.bf16.gmra.mxu0 %v5300_v13  ;;  %v2501_v13 = vld [vmem:[#allocation2 + $0x39] sm:$0xff] }
  0xd5   : > { %4558 = vmatmul.mubr.bf16.gmra.mxu1 %v5435_v50  ;;  %4513 = vmatprep.mubr.bf16.mxu0 %v5312_v25  ;;  %v5533_v35 = vpack.c.bf16 %v2501_v13, %v2500_v20  ;;  %v2196_v25 = vld [vmem:[#allocation2 + $0x48] sm:$0xff]  ;;  %v2231_v13 = vpack.c.bf16 %v2205_v43, %v2204_v19  ;;  %v4849_v43 = vld [vmem:[%s6217_s2] sm:$0xff]  }
  0xd6   : > { %4561 = vmatprep.mubr.bf16.mxu1 %v5441_v33 }
  0xdc   : > { %4514 = vmatmul.mubr.bf16.gmra.mxu0 %v5322_v42  ;;  %v2197_v42 = vld [vmem:[#allocation2 + $0x50] sm:$0xff] }
  0xdd   : > { %4562 = vmatmul.mubr.bf16.gmra.mxu1 %v5443_v12  ;;  %4517 = vmatprep.mubr.bf16.mxu0 %v5336_v54  ;;  %v2502_v54 = vld [vmem:[#allocation2 + $0x49] sm:$0xff]  ;;  %v2227_v45 = vpack.c.bf16 %v2197_v42, %v2196_v25  ;;  %v2229_v12 = vpack.c.bf16 %v2201_v23, %v2200_v7  ;;  %v5585_v25 = vpack.c.bf16 %v2511_v11, %v2510_v57  ;;  %v2209_v7 = vld [vmem:[#allocation2 + $0xe0] sm:$0xff] }
  0xde   : > { %4565 = vmatprep.mubr.bf16.mxu1 %v5449_v4  ;;  %v5537_v37 = vpack.c.bf16 %v2503_v28, %v2502_v54  ;;  %v2213_v11 = vld [vmem:[#allocation2 + $0x110] sm:$0xff] }
  0xe4   : > { %4518 = vmatmul.mubr.bf16.gmra.mxu0 %v5330_v51 }
  0xe5   : > { %4566 = vmatmul.mubr.bf16.gmra.mxu1 %v1934_v22  ;;  %4585 = vmatprep.mubr.bf16.mxu0 %v2226_v21  ;;  %v4843_v22 = vld [vmem:[%s6217_s2 + $0x18] sm:$0xff]  }
  0xe6   : > { %4633 = vmatprep.mubr.bf16.mxu1 %v5533_v35 }
  0xec   : > { %v4299_v40 = vpop.f32.mrf.mxu0  ;;  %4586 = vmatmul.mubr.bf16.vlgmr.msra.gmra.mxu0 %v2227_v45  ;;  %v4844_v45 = vld [vmem:[%s6216_s1 + $0x210] sm:$0xff]  }
  0xed   : > { %v4347_v10 = vpop.f32.mrf.mxu1  ;;  %4634 = vmatmul.mubr.bf16.vlgmr.msra.gmra.mxu1 %v5537_v37  ;;  %4666 = vmatpush3.bf16.msra.mxu0 %v4834_v16  ;;  %v2207_v16 = vld [vmem:[#allocation2 + $0xc8] sm:$0xff] }
  0xee   : > { %v5548_v34 = vadd.f32 %v4347_v10, %v4299_v40  ;;  %v633_v3 = vpop.f32.mrf.mxu0  ;;  %4714 = vmatpush3.bf16.msra.mxu1 %v4835_v26  ;;  %4589 = vmatprep.mubr.bf16.mxu0 %v2228_v0  ;;  %v2232_v42 = vpack.c.bf16 %v2207_v16, %v2206_v6  ;;  %v4845_v0 = vld [vmem:[%s6217_s2 + $0x10] sm:$0xff]   ;;  %v2208_v40 = vld [vmem:[#allocation2 + $0xd8] sm:$0xff] }
  0xef   : > { %v842_v50 = vpop.f32.mrf.mxu1  ;;  %4637 = vmatprep.mubr.bf16.mxu1 %v5539_v24  ;;  %4667 = vmatprep.subr.bf16.mxu0 %v4836_v38  ;;  %v2518_v6 = vld [vmem:[#allocation2 + $0x109] sm:$0xff] }
  0xf0   : > { %v5557_v60 = vadd.f32 %v842_v50, %v633_v3  ;;  %v4300_v33 = vpop.f32.mrf.mxu0  ;;  %4715 = vmatprep.subr.bf16.mxu1 %v4837_v8  ;;  %v2211_v3 = vld [vmem:[#allocation2 + $0xf8] sm:$0xff]  ;;  %v4846_v50 = vld [vmem:[%s6216_s1 + $0x208] sm:$0xff]  }
  0xf1   : > { %v4348_v18 = vpop.f32.mrf.mxu1  ;;  %4668 = vmatpush3.bf16.msra.mxu0 %v4836_v38 }
  0xf2   : > { %v5561_v2 = vadd.f32 %v4348_v18, %v4300_v33  ;;  %v636_v4 = vpop.f32.mrf.mxu0  ;;  %4716 = vmatpush3.bf16.msra.mxu1 %v4837_v8  ;;  %4669 = vmatprep.subr.bf16.mxu0 %v4838_v49  ;;  %v2514_v8 = vld [vmem:[#allocation2 + $0xd9] sm:$0xff]  ;;  %v4847_v33 = vld [vmem:[%s6217_s2 + $0x8] sm:$0xff]  }
  0xf3   : > { %v845_v39 = vpop.f32.mrf.mxu1  ;;  %4717 = vmatprep.subr.bf16.mxu1 %v4839_v62  ;;  %v5611_v18 = vpack.c.bf16 %v2515_v27, %v2514_v8 }
  0xf4   : > { %v5568_v58 = vadd.f32 %v845_v39, %v636_v4  ;;  %v4303_v14 = vpop.f32.mrf.mxu0  ;;  %4590 = vmatmul.mubr.bf16.gmra.mxu0 %v2229_v12 }
  0xf5   : > { %v4351_v55 = vpop.f32.mrf.mxu1  ;;  %4638 = vmatmul.mubr.bf16.gmra.mxu1 %v5559_v15  ;;  %4593 = vmatprep.mubr.bf16.mxu0 %v2230_v61  ;;  %v2234_v61 = vpack.c.bf16 %v2211_v3, %v2210_v63  ;;  %v2216_v63 = vld [vmem:[#allocation2 + $0x138] sm:$0xff]  ;;  %v2217_v3 = vld [vmem:[#allocation2 + $0x140] sm:$0xff] }
  0xf6   : > { %v5574_v59 = vadd.f32 %v4351_v55, %v4303_v14  ;;  %v649_v36 = vpop.f32.mrf.mxu0  ;;  %4641 = vmatprep.mubr.bf16.mxu1 %v5563_v48  ;;  %4670 = vmatpush3.bf16.msra.mxu0 %v4838_v49  ;;  %v2517_v49 = vld [vmem:[#allocation2 + $0xf9] sm:$0xff] }
  0xf7   : > { %v858_v26 = vpop.f32.mrf.mxu1  ;;  %4718 = vmatpush3.bf16.msra.mxu1 %v4839_v62  ;;  %4671 = vmatprep.subr.bf16.mxu0 %v4840_v53  ;;  %v2233_v62 = vpack.c.bf16 %v2209_v7, %v2208_v40 }
  0xf8   : > { %v5580_v17 = vadd.f32 %v858_v26, %v649_v36  ;;  %v4304_v20 = vpop.f32.mrf.mxu0  ;;  %4719 = vmatprep.subr.bf16.mxu1 %v4841_v46  ;;  %v2212_v36 = vld [vmem:[#allocation2 + $0x108] sm:$0xff] }
  0xf9   : > { %v4352_v21 = vpop.f32.mrf.mxu1 }
  0xfa   : > { %v5587_v54 = vadd.f32 %v4352_v21, %v4304_v20  ;;  %v652_v28 = vpop.f32.mrf.mxu0  ;;  %4672 = vmatpush3.bf16.msra.mxu0 %v4840_v53  ;;  %v5615_v53 = vpack.c.bf16 %v2517_v49, %v2516_v5 }
  0xfb   : > { %v861_v44 = vpop.f32.mrf.mxu1  ;;  %4720 = vmatpush3.bf16.msra.mxu1 %v4841_v46  ;;  %4673 = vmatprep.subr.bf16.mxu0 %v4842_v9  ;;  %v4848_v46 = vld [vmem:[%s6216_s1 + $0x200] sm:$0xff]  }
  0xfc   : > { %v5594_v31 = vadd.f32 %v861_v44, %v652_v28  ;;  %v4307_v32 = vpop.f32.mrf.mxu0  ;;  %4594 = vmatmul.mubr.bf16.gmra.mxu0 %v2231_v13  ;;  %4721 = vmatprep.subr.bf16.mxu1 %v4843_v22  ;;  %v2520_v13 = vld [vmem:[#allocation2 + $0x121] sm:$0xff]  ;;  %v2235_v28 = vpack.c.bf16 %v2213_v11, %v2212_v36 }
  0xfd   : > { %v4355_v38 = vpop.f32.mrf.mxu1  ;;  %4642 = vmatmul.mubr.bf16.gmra.mxu1 %v5585_v25  ;;  %4597 = vmatprep.mubr.bf16.mxu0 %v2232_v42 }
  0xfe   : > { %v5600_v10 = vadd.f32 %v4355_v38, %v4307_v32  ;;  %v665_v23 = vpop.f32.mrf.mxu0  ;;  %4645 = vmatprep.mubr.bf16.mxu1 %v5589_v29  ;;  %4674 = vmatpush3.bf16.msra.mxu0 %v4842_v9  ;;  %v2215_v9 = vld [vmem:[#allocation2 + $0x128] sm:$0xff] }
  0xff   : > { %v874_v56 = vpop.f32.mrf.mxu1  ;;  %4722 = vmatpush3.bf16.msra.mxu1 %v4843_v22  ;;  %4675 = vmatprep.subr.bf16.mxu0 %v4844_v45  ;;  %v2521_v22 = vld [vmem:[#allocation2 + $0x129] sm:$0xff]  ;;  %v2236_v32 = vpack.c.bf16 %v2215_v9, %v2214_v41 }
 0x100   : > { %v5606_v52 = vadd.f32 %v874_v56, %v665_v23  ;;  %v4308_v47 = vpop.f32.mrf.mxu0  ;;  %4723 = vmatprep.subr.bf16.mxu1 %v4845_v0  ;;  %v5635_v40 = vpack.c.bf16 %v2521_v22, %v2520_v13  ;;  %v2522_v56 = vld [vmem:[#allocation2 + $0x139] sm:$0xff]  ;;  %v2221_v13 = vld [vmem:[#allocation2 + $0x170] sm:$0xff] }
 0x101   : > { %v4356_v12 = vpop.f32.mrf.mxu1 }
 0x102   : > { %v5613_v4 = vadd.f32 %v4356_v12, %v4308_v47  ;;  %v668_v39 = vpop.f32.mrf.mxu0  ;;  %4676 = vmatpush3.bf16.msra.mxu0 %v4844_v45  ;;  %v5631_v45 = vpack.c.bf16 %v2519_v1, %v2518_v6  ;;  %v2218_v47 = vld [vmem:[#allocation2 + $0x150] sm:$0xff] }
 0x103   : > { %v877_v14 = vpop.f32.mrf.mxu1  ;;  %4724 = vmatpush3.bf16.msra.mxu1 %v4845_v0  ;;  %4677 = vmatprep.subr.bf16.mxu0 %v4846_v50  ;;  %v2524_v12 = vld [vmem:[#allocation2 + $0x151] sm:$0xff] }
 0x104   : > { %v5620_v55 = vadd.f32 %v877_v14, %v668_v39  ;;  %v4311_v19 = vpop.f32.mrf.mxu0  ;;  %4598 = vmatmul.mubr.bf16.gmra.mxu0 %v2233_v62  ;;  %4725 = vmatprep.subr.bf16.mxu1 %v4847_v33  ;;  %v2219_v62 = vld [vmem:[#allocation2 + $0x158] sm:$0xff] }
 0x105   : > { %v4359_v57 = vpop.f32.mrf.mxu1  ;;  %4646 = vmatmul.mubr.bf16.gmra.mxu1 %v5611_v18  ;;  %4601 = vmatprep.mubr.bf16.mxu0 %v2234_v61  ;;  %v2525_v61 = vld [vmem:[#allocation2 + $0x159] sm:$0xff] }
 0x106   : > { %v5626_v16 = vadd.f32 %v4359_v57, %v4311_v19  ;;  %v681_v26 = vpop.f32.mrf.mxu0  ;;  %4649 = vmatprep.mubr.bf16.mxu1 %v5615_v53  ;;  %4678 = vmatpush3.bf16.msra.mxu0 %v4846_v50  ;;  %v2523_v50 = vld [vmem:[#allocation2 + $0x141] sm:$0xff]  ;;  %v2238_v57 = vpack.c.bf16 %v2219_v62, %v2218_v47  ;;  %v5649_v6 = vpack.c.bf16 %v2525_v61, %v2524_v12 }
 0x107   : > { %v890_v20 = vpop.f32.mrf.mxu1  ;;  %4726 = vmatpush3.bf16.msra.mxu1 %v4847_v33  ;;  %4679 = vmatprep.subr.bf16.mxu0 %v4848_v46 }
 0x108   : > { %v5629_v21 = vadd.f32 %v890_v20, %v681_v26  ;;  %v4312_v42 = vpop.f32.mrf.mxu0  ;;  %4727 = vmatprep.subr.bf16.mxu1 %v4849_v43  ;;  %v2220_v20 = vld [vmem:[#allocation2 + $0x168] sm:$0xff] }
 0x109   : > { %v4360_v44 = vpop.f32.mrf.mxu1 }
 0x10a   : > { %v5633_v0 = vadd.f32 %v4360_v44, %v4312_v42  ;;  %v684_v38 = vpop.f32.mrf.mxu0  ;;  %4680 = vmatpush3.bf16.msra.mxu0 %v4848_v46  ;;  %v2237_v46 = vpack.c.bf16 %v2217_v3, %v2216_v63  ;;  %v2527_v44 = vld [vmem:[#allocation2 + $0x171] sm:$0xff] }
 0x10b   : > { %v893_v7 = vpop.f32.mrf.mxu1  ;;  %4728 = vmatpush3.bf16.msra.mxu1 %v4849_v43  ;;  %v5645_v43 = vpack.c.bf16 %v2523_v50, %v2522_v56 }
 0x10c   : > { %v5637_v8 = vadd.f32 %v893_v7, %v684_v38  ;;  %v4315_v23 = vpop.f32.mrf.mxu0  ;;  %4602 = vmatmul.mubr.bf16.gmra.mxu0 %v2235_v28  ;;  %v2526_v28 = vld [vmem:[#allocation2 + $0x169] sm:$0xff] }
 0x10d   : > { %v4363_v27 = vpop.f32.mrf.mxu1  ;;  %4650 = vmatmul.mubr.bf16.gmra.mxu1 %v5631_v45  ;;  %4605 = vmatprep.mubr.bf16.mxu0 %v2236_v32  ;;  %v5659_v63 = vpack.c.bf16 %v2527_v44, %v2526_v28 }
 0x10e   : > { %v5640_v5 = vadd.f32 %v4363_v27, %v4315_v23  ;;  %v697_v49 = vpop.f32.mrf.mxu0  ;;  %4653 = vmatprep.mubr.bf16.mxu1 %v5635_v40  ;;  %v2239_v23 = vpack.c.bf16 %v2221_v13, %v2220_v20  ;;  %v4850_v20 = vld [vmem:[#allocation2] sm:$0xff] }
 0x10f   : > { %v906_v33 = vpop.f32.mrf.mxu1  ;;  %v2241_v13 = vpack.c.bf16 %v4850_v20, %v4850_v20 }
 0x110   : > { %v5643_v39 = vadd.f32 %v906_v33, %v697_v49  ;;  %v4316_v14 = vpop.f32.mrf.mxu0  ;;  %v2530_v33 = vld [vmem:[#allocation2 + $0x199] sm:$0xff] }
 0x111   : > { %v4364_v19 = vpop.f32.mrf.mxu1 }
 0x112   : > { %v5647_v36 = vadd.f32 %v4364_v19, %v4316_v14  ;;  %v700_v11 = vpop.f32.mrf.mxu0  ;;  %v2531_v14 = vld [vmem:[#allocation2 + $0x1a1] sm:$0xff] }
 0x113   : > { %v909_v26 = vpop.f32.mrf.mxu1  ;;  %v2807_v19 = vld [vmem:[#allocation2 + $0x3a] sm:$0xff]  ;;  %v2547_v28 = vpack.c.bf16 %v2531_v14, %v2530_v33  ;;  %v2810_v33 = vld [vmem:[#allocation2 + $0x62] sm:$0xff]  ;;  %v2811_v14 = vld [vmem:[#allocation2 + $0x6a] sm:$0xff] }
 0x114   : > { %v5651_v1 = vadd.f32 %v909_v26, %v700_v11  ;;  %v4319_v41 = vpop.f32.mrf.mxu0  ;;  %4606 = vmatmul.mubr.bf16.gmra.mxu0 %v2237_v46  ;;  %v2806_v46 = vld [vmem:[#allocation2 + $0x32] sm:$0xff]  ;;  %v3253_v26 = vld [vmem:[#allocation2 + $0x21] sm:$0xff] }
 0x115   : > { %v4367_v9 = vpop.f32.mrf.mxu1  ;;  %4654 = vmatmul.mubr.bf16.gmra.mxu1 %v5645_v43  ;;  %4609 = vmatprep.mubr.bf16.mxu0 %v2238_v57  ;;  %v3252_v11 = vld [vmem:[#allocation2 + $0x19] sm:$0xff] }
 0x116   : > { %v5654_v22 = vadd.f32 %v4367_v9, %v4319_v41  ;;  %v713_v42 = vpop.f32.mrf.mxu0  ;;  %4657 = vmatprep.mubr.bf16.mxu1 %v5649_v6 }
 0x117   : > { %v922_v32 = vpop.f32.mrf.mxu1 }
 0x118   : > { %v5657_v38 = vadd.f32 %v922_v32, %v713_v42  ;;  %v4320_v7 = vpop.f32.mrf.mxu0 }
 0x119   : > { %v4368_v27 = vpop.f32.mrf.mxu1 }
 0x11a   : > { %v5661_v3 = vadd.f32 %v4368_v27, %v4320_v7  ;;  %v716_v56 = vpop.f32.mrf.mxu0  ;;  %v3284_v7 = vpack.c.bf16 %v3253_v26, %v3252_v11 }
 0x11b   : > { %v925_v49 = vpop.f32.mrf.mxu1 }
 0x11c   : > { %v5663_v50 = vadd.f32 %v925_v49, %v716_v56  ;;  %v4323_v47 = vpop.f32.mrf.mxu0  ;;  %4610 = vmatmul.mubr.bf16.gmra.mxu0 %v2239_v23  ;;  %v2808_v49 = vld [vmem:[#allocation2 + $0x4a] sm:$0xff] }
 0x11d   : > { %v4371_v62 = vpop.f32.mrf.mxu1  ;;  %4658 = vmatmul.mubr.bf16.gmra.mxu1 %v5659_v63  ;;  %4613 = vmatprep.mubr.bf16.mxu0 %v5451_v30  ;;  %v2838_v30 = vpack.c.bf16 %v2807_v19, %v2806_v46 }
 0x11e   : > { %v5667_v12 = vadd.f32 %v4371_v62, %v4323_v47  ;;  %v729_v61 = vpop.f32.mrf.mxu0  ;;  %4661 = vmatprep.mubr.bf16.mxu1 %v5330_v51  ;;  %v2809_v47 = vld [vmem:[#allocation2 + $0x52] sm:$0xff] }
 0x11f   : > { %v938_v57 = vpop.f32.mrf.mxu1  ;;  %v2839_v11 = vpack.c.bf16 %v2809_v47, %v2808_v49  ;;  %v2814_v49 = vld [vmem:[#allocation2 + $0x92] sm:$0xff]  ;;  %v2815_v47 = vld [vmem:[#allocation2 + $0x9a] sm:$0xff] }
 0x120   : > { %v5670_v41 = vadd.f32 %v938_v57, %v729_v61  ;;  %v4324_v9 = vpop.f32.mrf.mxu0 }
 0x121   : > { %v4372_v42 = vpop.f32.mrf.mxu1 }
 0x122   : > { %v5672_v44 = vadd.f32 %v4372_v42, %v4324_v9  ;;  %v732_v32 = vpop.f32.mrf.mxu0  ;;  %v2840_v9 = vpack.c.bf16 %v2811_v14, %v2810_v33 }
 0x123   : > { %v941_v23 = vpop.f32.mrf.mxu1 }
 0x124   : > { %v5674_v51 = vadd.f32 %v941_v23, %v732_v32  ;;  %v4327_v27 = vpop.f32.mrf.mxu0  ;;  %4614 = vmatmul.mubr.bf16.gmra.mxu0 %v2241_v13  ;;  %v2812_v23 = vld [vmem:[#allocation2 + $0x7a] sm:$0xff] }
 0x125   : > { %v4375_v56 = vpop.f32.mrf.mxu1  ;;  %4662 = vmatmul.mubr.bf16.gmra.mxu1 %v2547_v28  ;;  %4681 = vmatprep.mubr.bf16.mxu0 %v2838_v30 }
 0x126   : > { %v5676_v62 = vadd.f32 %v4375_v56, %v4327_v27  ;;  %v745_v61 = vpop.f32.mrf.mxu0  ;;  %4729 = vmatprep.mubr.bf16.mxu1 %v3284_v7  ;;  %v2813_v27 = vld [vmem:[#allocation2 + $0x82] sm:$0xff] }
 0x127   : > { %v954_v46 = vpop.f32.mrf.mxu1 }
 0x128   : > { %v5678_v19 = vadd.f32 %v954_v46, %v745_v61  ;;  %v4328_v57 = vpop.f32.mrf.mxu0 }
 0x129   : > { %v4376_v26 = vpop.f32.mrf.mxu1 }
 0x12a   : > { %v5680_v20 = vadd.f32 %v4376_v26, %v4328_v57  ;;  %v748_v13 = vpop.f32.mrf.mxu0  ;;  %v2841_v57 = vpack.c.bf16 %v2813_v27, %v2812_v23  ;;  %v2842_v26 = vpack.c.bf16 %v2815_v47, %v2814_v49  ;;  %v2816_v23 = vld [vmem:[#allocation2 + $0xaa] sm:$0xff] }
 0x12b   : > { %v957_v42 = vpop.f32.mrf.mxu1  ;;  %v2819_v49 = vld [vmem:[#allocation2 + $0xca] sm:$0xff] }
 0x12c   : > { %v5682_v28 = vadd.f32 %v957_v42, %v748_v13  ;;  %v4395_v30 = vpop.f32.mrf.mxu0  ;;  %4682 = vmatmul.mubr.bf16.vlgmr.msra.gmra.mxu0 %v2839_v11 }
 0x12d   : > { %v1245_v32 = vadd.f32 %v4395_v30, %v5548_v34  ;;  %v4443_v7 = vpop.f32.mrf.mxu1  ;;  %4730 = vmatmul.mubr.bf16.vlgmr.msra.gmra.mxu1 %v5533_v35  ;;  %4685 = vmatprep.mubr.bf16.mxu0 %v2840_v9 }
 0x12e   : > { %v1116_v56 = vpop.f32.mrf.mxu0  ;;  %4733 = vmatprep.mubr.bf16.mxu1 %v5537_v37 }
 0x12f   : > { %v5687_v61 = vadd.f32 %v4443_v7, %v1245_v32  ;;  %v1243_v33 = vadd.f32 %v1116_v56, %v5557_v60  ;;  %v1422_v14 = vpop.f32.mrf.mxu1  ;;  %v2818_v56 = vld [vmem:[#allocation2 + $0xc2] sm:$0xff] }
 0x130   : > { %v4396_v46 = vpop.f32.mrf.mxu0 }
 0x131   : > { %v5690_v11 = vadd.f32 %v1422_v14, %v1243_v33  ;;  %v1246_v34 = vadd.f32 %v4396_v46, %v5561_v2  ;;  %v4444_v35 = vpop.f32.mrf.mxu1  ;;  %v2817_v2 = vld [vmem:[#allocation2 + $0xb2] sm:$0xff] }
 0x132   : > { %v1119_v9 = vpop.f32.mrf.mxu0  ;;  %v2843_v46 = vpack.c.bf16 %v2817_v2, %v2816_v23  ;;  %v2822_v23 = vld [vmem:[#allocation2 + $0xf2] sm:$0xff]  ;;  %v2823_v2 = vld [vmem:[#allocation2 + $0xfa] sm:$0xff] }
 0x133   : > { %v5693_v13 = vadd.f32 %v4444_v35, %v1246_v34  ;;  %v1244_v37 = vadd.f32 %v1119_v9, %v5568_v58  ;;  %v1425_v42 = vpop.f32.mrf.mxu1  ;;  %v2844_v34 = vpack.c.bf16 %v2819_v49, %v2818_v56 }
 0x134   : > { %v4399_v30 = vpop.f32.mrf.mxu0  ;;  %4686 = vmatmul.mubr.bf16.gmra.mxu0 %v2841_v57 }
 0x135   : > { %v5696_v32 = vadd.f32 %v1425_v42, %v1244_v37  ;;  %v1249_v60 = vadd.f32 %v4399_v30, %v5574_v59  ;;  %v4447_v7 = vpop.f32.mrf.mxu1  ;;  %4734 = vmatmul.mubr.bf16.gmra.mxu1 %v5539_v24  ;;  %4689 = vmatprep.mubr.bf16.mxu0 %v2842_v26 }
 0x136   : > { %v1132_v27 = vpop.f32.mrf.mxu0  ;;  %4737 = vmatprep.mubr.bf16.mxu1 %v5559_v15 }
 0x137   : > { %v5701_v47 = vadd.f32 %v4447_v7, %v1249_v60  ;;  %v1247_v58 = vadd.f32 %v1132_v27, %v5580_v17  ;;  %v1438_v33 = vpop.f32.mrf.mxu1  ;;  %v2820_v60 = vld [vmem:[#allocation2 + $0xda] sm:$0xff] }
 0x138   : > { %v4400_v14 = vpop.f32.mrf.mxu0 }
 0x139   : > { %v5704_v57 = vadd.f32 %v1438_v33, %v1247_v58  ;;  %v1250_v59 = vadd.f32 %v4400_v14, %v5587_v54  ;;  %v4448_v24 = vpop.f32.mrf.mxu1  ;;  %v2821_v54 = vld [vmem:[#allocation2 + $0xe2] sm:$0xff]  ;;  %v2846_v14 = vpack.c.bf16 %v2823_v2, %v2822_v23 }
 0x13a   : > { %v1135_v35 = vpop.f32.mrf.mxu0  ;;  %v2845_v58 = vpack.c.bf16 %v2821_v54, %v2820_v60 }
 0x13b   : > { %v5707_v26 = vadd.f32 %v4448_v24, %v1250_v59  ;;  %v1248_v15 = vadd.f32 %v1135_v35, %v5594_v31  ;;  %v1441_v9 = vpop.f32.mrf.mxu1 }
 0x13c   : > { %v4403_v37 = vpop.f32.mrf.mxu0  ;;  %4690 = vmatmul.mubr.bf16.gmra.mxu0 %v2843_v46 }
 0x13d   : > { %v5710_v42 = vadd.f32 %v1441_v9, %v1248_v15  ;;  %v1253_v17 = vadd.f32 %v4403_v37, %v5600_v10  ;;  %v4451_v30 = vpop.f32.mrf.mxu1  ;;  %4738 = vmatmul.mubr.bf16.gmra.mxu1 %v5563_v48  ;;  %4693 = vmatprep.mubr.bf16.mxu0 %v2844_v34  ;;  %v2824_v9 = vld [vmem:[#allocation2 + $0x10a] sm:$0xff] }
 0x13e   : > { %v1148_v7 = vpop.f32.mrf.mxu0  ;;  %4741 = vmatprep.mubr.bf16.mxu1 %v5585_v25 }
 0x13f   : > { %v5715_v27 = vadd.f32 %v4451_v30, %v1253_v17  ;;  %v1251_v31 = vadd.f32 %v1148_v7, %v5606_v52  ;;  %v1454_v56 = vpop.f32.mrf.mxu1  ;;  %v2826_v17 = vld [vmem:[#allocation2 + $0x122] sm:$0xff]  ;;  %v2827_v30 = vld [vmem:[#allocation2 + $0x12a] sm:$0xff] }
 0x140   : > { %v4404_v49 = vpop.f32.mrf.mxu0 }
 0x141   : > { %v5718_v33 = vadd.f32 %v1454_v56, %v1251_v31  ;;  %v1254_v10 = vadd.f32 %v4404_v49, %v5613_v4  ;;  %v4452_v48 = vpop.f32.mrf.mxu1  ;;  %v2825_v4 = vld [vmem:[#allocation2 + $0x112] sm:$0xff]  ;;  %v2848_v31 = vpack.c.bf16 %v2827_v30, %v2826_v17 }
 0x142   : > { %v1151_v46 = vpop.f32.mrf.mxu0  ;;  %v2847_v23 = vpack.c.bf16 %v2825_v4, %v2824_v9 }
 0x143   : > { %v5721_v59 = vadd.f32 %v4452_v48, %v1254_v10  ;;  %v1252_v25 = vadd.f32 %v1151_v46, %v5620_v55  ;;  %v1457_v24 = vpop.f32.mrf.mxu1  ;;  %v2828_v46 = vld [vmem:[#allocation2 + $0x13a] sm:$0xff] }
 0x144   : > { %v4407_v34 = vpop.f32.mrf.mxu0  ;;  %4694 = vmatmul.mubr.bf16.gmra.mxu0 %v2845_v58 }
 0x145   : > { %v5724_v35 = vadd.f32 %v1457_v24, %v1252_v25  ;;  %v1257_v52 = vadd.f32 %v4407_v34, %v5626_v16  ;;  %v4455_v15 = vpop.f32.mrf.mxu1  ;;  %4742 = vmatmul.mubr.bf16.gmra.mxu1 %v5589_v29  ;;  %4697 = vmatprep.mubr.bf16.mxu0 %v2846_v14  ;;  %v2830_v24 = vld [vmem:[#allocation2 + $0x152] sm:$0xff]  ;;  %v2831_v34 = vld [vmem:[#allocation2 + $0x15a] sm:$0xff] }
 0x146   : > { %v1164_v37 = vpop.f32.mrf.mxu0  ;;  %4745 = vmatprep.mubr.bf16.mxu1 %v5611_v18  ;;  %v2850_v17 = vpack.c.bf16 %v2831_v34, %v2830_v24 }
 0x147   : > { %v5729_v60 = vadd.f32 %v4455_v15, %v1257_v52  ;;  %v1255_v55 = vadd.f32 %v1164_v37, %v5629_v21  ;;  %v1470_v54 = vpop.f32.mrf.mxu1 }
 0x148   : > { %v4408_v7 = vpop.f32.mrf.mxu0 }
 0x149   : > { %v5732_v2 = vadd.f32 %v1470_v54, %v1255_v55  ;;  %v1258_v16 = vadd.f32 %v4408_v7, %v5633_v0  ;;  %v4456_v29 = vpop.f32.mrf.mxu1  ;;  %v2829_v0 = vld [vmem:[#allocation2 + $0x142] sm:$0xff] }
 0x14a   : > { %v1167_v56 = vpop.f32.mrf.mxu0  ;;  %v2849_v4 = vpack.c.bf16 %v2829_v0, %v2828_v46 }
 0x14b   : > { %v5735_v49 = vadd.f32 %v4456_v29, %v1258_v16  ;;  %v1256_v18 = vadd.f32 %v1167_v56, %v5637_v8  ;;  %v1473_v58 = vpop.f32.mrf.mxu1  ;;  %v2832_v29 = vld [vmem:[#allocation2 + $0x16a] sm:$0xff]  ;;  %v2834_v56 = vld [vmem:[#allocation2 + $0x182] sm:$0xff] }
 0x14c   : > { %v4411_v10 = vpop.f32.mrf.mxu0  ;;  %4698 = vmatmul.mubr.bf16.gmra.mxu0 %v2847_v23 }
 0x14d   : > { %v5738_v48 = vadd.f32 %v1473_v58, %v1256_v18  ;;  %v1261_v21 = vadd.f32 %v4411_v10, %v5640_v5  ;;  %v4459_v14 = vpop.f32.mrf.mxu1  ;;  %4746 = vmatmul.mubr.bf16.gmra.mxu1 %v5615_v53  ;;  %4701 = vmatprep.mubr.bf16.mxu0 %v2848_v31  ;;  %v2835_v18 = vld [vmem:[#allocation2 + $0x18a] sm:$0xff] }
 0x14e   : > { %v1180_v25 = vpop.f32.mrf.mxu0  ;;  %4749 = vmatprep.mubr.bf16.mxu1 %v5631_v45  ;;  %v2852_v0 = vpack.c.bf16 %v2835_v18, %v2834_v56 }
 0x14f   : > { %v5743_v52 = vadd.f32 %v4459_v14, %v1261_v21  ;;  %v1259_v8 = vadd.f32 %v1180_v25, %v5643_v39  ;;  %v1486_v15 = vpop.f32.mrf.mxu1 }
 0x150   : > { %v4412_v9 = vpop.f32.mrf.mxu0 }
 0x151   : > { %v5746_v37 = vadd.f32 %v1486_v15, %v1259_v8  ;;  %v1262_v5 = vadd.f32 %v4412_v9, %v5647_v36  ;;  %v4460_v53 = vpop.f32.mrf.mxu1  ;;  %v2833_v36 = vld [vmem:[#allocation2 + $0x172] sm:$0xff] }
 0x152   : > { %v1183_v30 = vpop.f32.mrf.mxu0  ;;  %v2851_v14 = vpack.c.bf16 %v2833_v36, %v2832_v29 }
 0x153   : > { %v5749_v55 = vadd.f32 %v4460_v53, %v1262_v5  ;;  %v1260_v45 = vadd.f32 %v1183_v30, %v5651_v1  ;;  %v1489_v54 = vpop.f32.mrf.mxu1  ;;  %v3282_v53 = vld [vmem:[#allocation2 + $0x181] sm:$0xff] }
 0x154   : > { %v4415_v7 = vpop.f32.mrf.mxu0  ;;  %4702 = vmatmul.mubr.bf16.gmra.mxu0 %v2849_v4  ;;  %v2836_v4 = vld [vmem:[#allocation2 + $0x19a] sm:$0xff] }
 0x155   : > { %v5752_v23 = vadd.f32 %v1489_v54, %v1260_v45  ;;  %v1265_v39 = vadd.f32 %v4415_v7, %v5654_v22  ;;  %v4463_v16 = vpop.f32.mrf.mxu1  ;;  %4750 = vmatmul.mubr.bf16.gmra.mxu1 %v5635_v40  ;;  %4705 = vmatprep.mubr.bf16.mxu0 %v2850_v17  ;;  %v3283_v17 = vld [vmem:[#allocation2 + $0x189] sm:$0xff] }
 0x156   : > { %v1196_v31 = vpop.f32.mrf.mxu0  ;;  %4753 = vmatprep.mubr.bf16.mxu1 %v5645_v43 }
 0x157   : > { %v5757_v58 = vadd.f32 %v4463_v16, %v1265_v39  ;;  %v1263_v1 = vadd.f32 %v1196_v31, %v5657_v38  ;;  %v1502_v10 = vpop.f32.mrf.mxu1  ;;  %v3299_v16 = vpack.c.bf16 %v3283_v17, %v3282_v53 }
 0x158   : > { %v4416_v21 = vpop.f32.mrf.mxu0 }
 0x159   : > { %v5760_v46 = vadd.f32 %v1502_v10, %v1263_v1  ;;  %v1266_v22 = vadd.f32 %v4416_v21, %v5661_v3  ;;  %v4464_v40 = vpop.f32.mrf.mxu1  ;;  %v2837_v3 = vld [vmem:[#allocation2 + $0x1a2] sm:$0xff] }
 0x15a   : > { %v1199_v25 = vpop.f32.mrf.mxu0  ;;  %v2853_v7 = vpack.c.bf16 %v2837_v3, %v2836_v4 }
 0x15b   : > { %v5763_v24 = vadd.f32 %v4464_v40, %v1266_v22  ;;  %v1264_v43 = vadd.f32 %v1199_v25, %v5663_v50  ;;  %v1505_v34 = vpop.f32.mrf.mxu1 }
 0x15c   : > { %v4419_v8 = vpop.f32.mrf.mxu0  ;;  %4706 = vmatmul.mubr.bf16.gmra.mxu0 %v2851_v14 }
 0x15d   : > { %v5766_v15 = vadd.f32 %v1505_v34, %v1264_v43  ;;  %v1269_v38 = vadd.f32 %v4419_v8, %v5667_v12  ;;  %v4467_v9 = vpop.f32.mrf.mxu1  ;;  %4754 = vmatmul.mubr.bf16.gmra.mxu1 %v5649_v6  ;;  %4709 = vmatprep.mubr.bf16.mxu0 %v2852_v0 }
 0x15e   : > { %v1212_v5 = vpop.f32.mrf.mxu0  ;;  %4757 = vmatprep.mubr.bf16.mxu1 %v5659_v63 }
 0x15f   : > { %v5771_v30 = vadd.f32 %v4467_v9, %v1269_v38  ;;  %v1267_v50 = vadd.f32 %v1212_v5, %v5670_v41  ;;  %v1518_v45 = vpop.f32.mrf.mxu1 }
 0x160   : > { %v4420_v54 = vpop.f32.mrf.mxu0 }
 0x161   : > { %v5774_v39 = vadd.f32 %v1518_v45, %v1267_v50  ;;  %v1270_v12 = vadd.f32 %v4420_v54, %v5672_v44  ;;  %v4468_v6 = vpop.f32.mrf.mxu1 }
 0x162   : > { %v1215_v29 = vpop.f32.mrf.mxu0 }
 0x163   : > { %v5777_v36 = vadd.f32 %v4468_v6, %v1270_v12  ;;  %v1268_v63 = vadd.f32 %v1215_v29, %v5674_v51  ;;  %v1521_v31 = vpop.f32.mrf.mxu1 }
 0x164   : > { %v4423_v56 = vpop.f32.mrf.mxu0  ;;  %4710 = vmatmul.mubr.bf16.gmra.mxu0 %v2853_v7 }
 0x165   : > { %v5780_v18 = vadd.f32 %v1521_v31, %v1268_v63  ;;  %v1273_v41 = vadd.f32 %v4423_v56, %v5676_v62  ;;  %v4471_v1 = vpop.f32.mrf.mxu1  ;;  %4758 = vmatmul.mubr.bf16.gmra.mxu1 %v3299_v16 }
 0x166   : > { %v1228_v10 = vpop.f32.mrf.mxu0 }
 0x167   : > { %v5783_v21 = vadd.f32 %v4471_v1, %v1273_v41  ;;  %v1271_v44 = vadd.f32 %v1228_v10, %v5678_v19  ;;  %v1534_v14 = vpop.f32.mrf.mxu1 }
 0x168   : > { %v4424_v22 = vpop.f32.mrf.mxu0 }
 0x169   : > { %v5786_v40 = vadd.f32 %v1534_v14, %v1271_v44  ;;  %v1274_v51 = vadd.f32 %v4424_v22, %v5680_v20  ;;  %v4472_v0 = vpop.f32.mrf.mxu1 }
 0x16a   : > { %v1231_v25 = vpop.f32.mrf.mxu0 }
 0x16b   : > { %v5789_v43 = vadd.f32 %v4472_v0, %v1274_v51  ;;  %v1272_v34 = vadd.f32 %v1231_v25, %v5682_v28  ;;  %v1537_v62 = vpop.f32.mrf.mxu1 }
 0x16c   : > { %v4491_v8 = vpop.f32.mrf.mxu0 }
 0x16d   : > { %v5792_v38 = vadd.f32 %v1537_v62, %v1272_v34  ;;  %v1857_v9 = vadd.f32 %v4491_v8, %v5687_v61  ;;  %v4539_v4 = vpop.f32.mrf.mxu1 }
 0x16e   : > { %v1728_v19 = vpop.f32.mrf.mxu0 }
 0x16f   : > { %v5795_v3 = vadd.f32 %v4539_v4, %v1857_v9  ;;  %v1855_v5 = vadd.f32 %v1728_v19, %v5690_v11  ;;  %v2034_v53 = vpop.f32.mrf.mxu1 }
 0x170   : > { %v4492_v20 = vpop.f32.mrf.mxu0 }
 0x171   : > { %v5798_v17 = vadd.f32 %v2034_v53, %v1855_v5  ;;  %v1858_v50 = vadd.f32 %v4492_v20, %v5693_v13  ;;  %v4540_v45 = vpop.f32.mrf.mxu1 }
 0x172   : > { %v1731_v28 = vpop.f32.mrf.mxu0 }
 0x173   : > { %v5801_v54 = vadd.f32 %v4540_v45, %v1858_v50  ;;  %v1856_v7 = vadd.f32 %v1731_v28, %v5696_v32  ;;  %v2037_v12 = vpop.f32.mrf.mxu1 }
 0x174   : > { %v4495_v61 = vpop.f32.mrf.mxu0 }
 0x175   : > { %v5804_v6 = vadd.f32 %v2037_v12, %v1856_v7  ;;  %v1861_v16 = vadd.f32 %v4495_v61, %v5701_v47  ;;  %v4543_v29 = vpop.f32.mrf.mxu1 }
 0x176   : > { %v1744_v11 = vpop.f32.mrf.mxu0 }
 0x177   : > { %v5807_v63 = vadd.f32 %v4543_v29, %v1861_v16  ;;  %v1859_v31 = vadd.f32 %v1744_v11, %v5704_v57  ;;  %v2050_v56 = vpop.f32.mrf.mxu1 }
 0x178   : > { %v4496_v13 = vpop.f32.mrf.mxu0 }
 0x179   : > { %v5810_v41 = vadd.f32 %v2050_v56, %v1859_v31  ;;  %v1862_v1 = vadd.f32 %v4496_v13, %v5707_v26  ;;  %v4544_v10 = vpop.f32.mrf.mxu1 }
 0x17a   : > { %v1747_v32 = vpop.f32.mrf.mxu0 }
 0x17b   : > { %v5813_v44 = vadd.f32 %v4544_v10, %v1862_v1  ;;  %v1860_v14 = vadd.f32 %v1747_v32, %v5710_v42  ;;  %v2053_v22 = vpop.f32.mrf.mxu1 }
 0x17c   : > { %v4499_v47 = vpop.f32.mrf.mxu0 }
 0x17d   : > { %v5816_v51 = vadd.f32 %v2053_v22, %v1860_v14  ;;  %v1865_v0 = vadd.f32 %v4499_v47, %v5715_v27  ;;  %v4547_v25 = vpop.f32.mrf.mxu1 }
 0x17e   : > { %v1760_v57 = vpop.f32.mrf.mxu0 }
 0x17f   : > { %v5819_v34 = vadd.f32 %v4547_v25, %v1865_v0  ;;  %v1863_v62 = vadd.f32 %v1760_v57, %v5718_v33  ;;  %v2066_v8 = vpop.f32.mrf.mxu1 }
 0x180   : > { %v4500_v26 = vpop.f32.mrf.mxu0 }
 0x181   : > { %v5822_v9 = vadd.f32 %v2066_v8, %v1863_v62  ;;  %v1866_v4 = vadd.f32 %v4500_v26, %v5721_v59  ;;  %v4548_v19 = vpop.f32.mrf.mxu1 }
 0x182   : > { %v1763_v42 = vpop.f32.mrf.mxu0 }
 0x183   : > { %v5825_v5 = vadd.f32 %v4548_v19, %v1866_v4  ;;  %v1864_v53 = vadd.f32 %v1763_v42, %v5724_v35  ;;  %v2069_v20 = vpop.f32.mrf.mxu1 }
 0x184   : > { %v4503_v27 = vpop.f32.mrf.mxu0 }
 0x185   : > { %v5828_v50 = vadd.f32 %v2069_v20, %v1864_v53  ;;  %v1869_v45 = vadd.f32 %v4503_v27, %v5729_v60  ;;  %v4551_v28 = vpop.f32.mrf.mxu1 }
 0x186   : > { %v1776_v33 = vpop.f32.mrf.mxu0 }
 0x187   : > { %v5831_v7 = vadd.f32 %v4551_v28, %v1869_v45  ;;  %v1867_v12 = vadd.f32 %v1776_v33, %v5732_v2  ;;  %v2082_v61 = vpop.f32.mrf.mxu1 }
 0x188   : > { %v4504_v59 = vpop.f32.mrf.mxu0 }
 0x189   : > { %v5834_v16 = vadd.f32 %v2082_v61, %v1867_v12  ;;  %v1870_v29 = vadd.f32 %v4504_v59, %v5735_v49  ;;  %v4552_v11 = vpop.f32.mrf.mxu1 }
 0x18a   : > { %v1779_v35 = vpop.f32.mrf.mxu0 }
 0x18b   : > { %v5837_v31 = vadd.f32 %v4552_v11, %v1870_v29  ;;  %v1868_v56 = vadd.f32 %v1779_v35, %v5738_v48  ;;  %v2085_v13 = vpop.f32.mrf.mxu1 }
 0x18c   : > { %v4507_v60 = vpop.f32.mrf.mxu0 }
 0x18d   : > { %v5840_v1 = vadd.f32 %v2085_v13, %v1868_v56  ;;  %v1873_v10 = vadd.f32 %v4507_v60, %v5743_v52  ;;  %v4555_v32 = vpop.f32.mrf.mxu1 }
 0x18e   : > { %v1792_v2 = vpop.f32.mrf.mxu0 }
 0x18f   : > { %v5843_v14 = vadd.f32 %v4555_v32, %v1873_v10  ;;  %v1871_v22 = vadd.f32 %v1792_v2, %v5746_v37  ;;  %v2098_v47 = vpop.f32.mrf.mxu1 }
 0x190   : > { %v4508_v49 = vpop.f32.mrf.mxu0 }
 0x191   : > { %v5846_v0 = vadd.f32 %v2098_v47, %v1871_v22  ;;  %v1874_v25 = vadd.f32 %v4508_v49, %v5749_v55  ;;  %v4556_v57 = vpop.f32.mrf.mxu1 }
 0x192   : > { %v1795_v48 = vpop.f32.mrf.mxu0 }
 0x193   : > { %v5849_v62 = vadd.f32 %v4556_v57, %v1874_v25  ;;  %v1872_v8 = vadd.f32 %v1795_v48, %v5752_v23  ;;  %v2101_v26 = vpop.f32.mrf.mxu1 }
 0x194   : > { %v4511_v52 = vpop.f32.mrf.mxu0 }
 0x195   : > { %v5852_v4 = vadd.f32 %v2101_v26, %v1872_v8  ;;  %v1877_v19 = vadd.f32 %v4511_v52, %v5757_v58  ;;  %v4559_v42 = vpop.f32.mrf.mxu1 }
 0x196   : > { %v1808_v37 = vpop.f32.mrf.mxu0 }
 0x197   : > { %6222 = vst [vmem:[#allocation3_spill] sm:$0xff] %v5852_v4  ;;  %v5855_v53 = vadd.f32 %v4559_v42, %v1877_v19  ;;  %v1875_v20 = vadd.f32 %v1808_v37, %v5760_v46  ;;  %v2114_v27 = vpop.f32.mrf.mxu1 }
 0x198   : > { %v4512_v55 = vpop.f32.mrf.mxu0 }
 0x199   : > { %6223 = vst [vmem:[#allocation4_spill] sm:$0xff] %v5855_v53  ;;  %v5858_v45 = vadd.f32 %v2114_v27, %v1875_v20  ;;  %v1878_v28 = vadd.f32 %v4512_v55, %v5763_v24  ;;  %v4560_v33 = vpop.f32.mrf.mxu1 }
 0x19a   : > { %v1811_v23 = vpop.f32.mrf.mxu0 }
 0x19b   : > { %6224 = vst [vmem:[#allocation5_spill] sm:$0xff] %v5858_v45  ;;  %v5861_v12 = vadd.f32 %v4560_v33, %v1878_v28  ;;  %v1876_v61 = vadd.f32 %v1811_v23, %v5766_v15  ;;  %v2117_v59 = vpop.f32.mrf.mxu1 }
 0x19c   : > { %v4515_v58 = vpop.f32.mrf.mxu0 }
 0x19d   : > { %6225 = vst [vmem:[#allocation6_spill] sm:$0xff] %v5861_v12  ;;  %v5864_v29 = vadd.f32 %v2117_v59, %v1876_v61  ;;  %v1881_v11 = vadd.f32 %v4515_v58, %v5771_v30  ;;  %v4563_v35 = vpop.f32.mrf.mxu1 }
 0x19e   : > { %v1824_v46 = vpop.f32.mrf.mxu0 }
 0x19f   : > { %6226 = vst [vmem:[#allocation7_spill] sm:$0xff] %v5864_v29  ;;  %v5867_v56 = vadd.f32 %v4563_v35, %v1881_v11  ;;  %v1879_v13 = vadd.f32 %v1824_v46, %v5774_v39  ;;  %v2130_v60 = vpop.f32.mrf.mxu1 }
 0x1a0   : > { %v4516_v24 = vpop.f32.mrf.mxu0 }
 0x1a1   : > { %6227 = vst [vmem:[#allocation8_spill] sm:$0xff] %v5867_v56  ;;  %v5870_v10 = vadd.f32 %v2130_v60, %v1879_v13  ;;  %v1882_v32 = vadd.f32 %v4516_v24, %v5777_v36  ;;  %v4564_v2 = vpop.f32.mrf.mxu1 }
 0x1a2   : > { %v1827_v15 = vpop.f32.mrf.mxu0 }
 0x1a3   : > { %6228 = vst [vmem:[#allocation9_spill] sm:$0xff] %v5870_v10  ;;  %v5873_v22 = vadd.f32 %v4564_v2, %v1882_v32  ;;  %v1880_v47 = vadd.f32 %v1827_v15, %v5780_v18  ;;  %v2133_v49 = vpop.f32.mrf.mxu1 }
 0x1a4   : > { %v4519_v30 = vpop.f32.mrf.mxu0 }
 0x1a5   : > { %6229 = vst [vmem:[#allocation10_spill] sm:$0xff] %v5873_v22  ;;  %v5876_v25 = vadd.f32 %v2133_v49, %v1880_v47  ;;  %v1885_v57 = vadd.f32 %v4519_v30, %v5783_v21  ;;  %v4567_v48 = vpop.f32.mrf.mxu1 }
 0x1a6   : > { %v1840_v39 = vpop.f32.mrf.mxu0 }
 0x1a7   : > { %6230 = vst [vmem:[#allocation11_spill] sm:$0xff] %v5876_v25  ;;  %v5879_v8 = vadd.f32 %v4567_v48, %v1885_v57  ;;  %v1883_v26 = vadd.f32 %v1840_v39, %v5786_v40  ;;  %v2146_v52 = vpop.f32.mrf.mxu1 }
 0x1a8   : > { %v4520_v36 = vpop.f32.mrf.mxu0 }
 0x1a9   : > { %6231 = vst [vmem:[#allocation12_spill] sm:$0xff] %v5879_v8  ;;  %v5882_v19 = vadd.f32 %v2146_v52, %v1883_v26  ;;  %v1886_v42 = vadd.f32 %v4520_v36, %v5789_v43  ;;  %v4568_v37 = vpop.f32.mrf.mxu1 }
 0x1aa   : > { %v1843_v18 = vpop.f32.mrf.mxu0 }
 0x1ab   : > { %6232 = vst [vmem:[#allocation13_spill] sm:$0xff] %v5882_v19  ;;  %v5885_v20 = vadd.f32 %v4568_v37, %v1886_v42  ;;  %v1884_v27 = vadd.f32 %v1843_v18, %v5792_v38  ;;  %v2149_v55 = vpop.f32.mrf.mxu1 }
 0x1ac   : > { %v4587_v21 = vpop.f32.mrf.mxu0 }
 0x1ad   : > { %6233 = vst [vmem:[#allocation14_spill] sm:$0xff] %v5885_v20  ;;  %v5888_v28 = vadd.f32 %v2149_v55, %v1884_v27  ;;  %v5890_v33 = vpop.f32.mrf.mxu1 }
 0x1ae   : > { %v2341_v23 = vpop.f32.mrf.mxu0 }
 0x1af   : > { %6234 = vst [vmem:[#allocation15_spill] sm:$0xff] %v5888_v28  ;;  %v5892_v40 = vpop.f32.mrf.mxu1 }
 0x1b0   : > { %v4588_v61 = vpop.f32.mrf.mxu0 }
 0x1b1   : > { %v5894_v59 = vpop.f32.mrf.mxu1 }
 0x1b2   : > { %v2344_v58 = vpop.f32.mrf.mxu0 }
 0x1b3   : > { %v5896_v43 = vpop.f32.mrf.mxu1 }
 0x1b4   : > { %v4591_v11 = vpop.f32.mrf.mxu0 }
 0x1b5   : > { %v5898_v35 = vpop.f32.mrf.mxu1 }
 0x1b6   : > { %v5900_v46 = vpop.f32.mrf.mxu0 }
 0x1b7   : > { %v5902_v38 = vpop.f32.mrf.mxu1 }
 0x1b8   : > { %v5904_v13 = vpop.f32.mrf.mxu0 }
 0x1b9   : > { %v5906_v60 = vpop.f32.mrf.mxu1 }
 0x1ba   : > { %v2360_v24 = vpop.f32.mrf.mxu0 }
 0x1bb   : > { %v5908_v32 = vpop.f32.mrf.mxu1 }
 0x1bc   : > { %v4595_v2 = vpop.f32.mrf.mxu0 }
 0x1bd   : > { %v5910_v15 = vpop.f32.mrf.mxu1 }
 0x1be   : > { %v2373_v47 = vpop.f32.mrf.mxu0 }
 0x1bf   : > { %v5912_v49 = vpop.f32.mrf.mxu1 }
 0x1c0   : > { %v4596_v30 = vpop.f32.mrf.mxu0 }
 0x1c1   : > { %v5914_v57 = vpop.f32.mrf.mxu1 }
 0x1c2   : > { %v2376_v48 = vpop.f32.mrf.mxu0 }
 0x1c3   : > { %v5916_v39 = vpop.f32.mrf.mxu1 }
 0x1c4   : > { %v4599_v26 = vpop.f32.mrf.mxu0 }
 0x1c5   : > { %v5918_v52 = vpop.f32.mrf.mxu1 }
 0x1c6   : > { %v2389_v36 = vpop.f32.mrf.mxu0 }
 0x1c7   : > { %v5920_v42 = vpop.f32.mrf.mxu1 }
 0x1c8   : > { %v4600_v37 = vpop.f32.mrf.mxu0 }
 0x1c9   : > { %v5922_v18 = vpop.f32.mrf.mxu1 }
 0x1ca   : > { %v2392_v27 = vpop.f32.mrf.mxu0 }
 0x1cb   : > { %v5924_v55 = vpop.f32.mrf.mxu1 }
 0x1cc   : > { %6235 = vst [vmem:[#allocation16_spill] sm:$0xff] %v5924_v55  ;;  %v4603_v28 = vpop.f32.mrf.mxu0 }
 0x1cd   : > { %v5926_v20 = vpop.f32.mrf.mxu1 }
 0x1ce   : > { %6236 = vst [vmem:[#allocation17_spill] sm:$0xff] %v5926_v20  ;;  %v2405_v19 = vpop.f32.mrf.mxu0 }
 0x1cf   : > { %v5928_v8 = vpop.f32.mrf.mxu1 }
 0x1d0   : > { %6237 = vst [vmem:[#allocation18_spill] sm:$0xff] %v5928_v8  ;;  %v5930_v25 = vpop.f32.mrf.mxu0 }
 0x1d1   : > { %v5932_v22 = vpop.f32.mrf.mxu1 }
 0x1d2   : > { %6238 = vst [vmem:[#allocation19_spill] sm:$0xff] %v5932_v22  ;;  %v5934_v10 = vpop.f32.mrf.mxu0 }
 0x1d3   : > { %6239 = vst [vmem:[#allocation20_spill] sm:$0xff] %v5934_v10  ;;  %v5936_v56 = vpop.f32.mrf.mxu1 }
 0x1d4   : > { %6240 = vst [vmem:[#allocation21_spill] sm:$0xff] %v5936_v56  ;;  %v5938_v29 = vpop.f32.mrf.mxu0 }
 0x1d5   : > { %6241 = vst [vmem:[#allocation22_spill] sm:$0xff] %v5938_v29  ;;  %v5940_v12 = vpop.f32.mrf.mxu1 }
 0x1d6   : > { %6242 = vst [vmem:[#allocation23_spill] sm:$0xff] %v5940_v12  ;;  %v5942_v45 = vpop.f32.mrf.mxu0 }
 0x1d7   : > { %6243 = vst [vmem:[#allocation24_spill] sm:$0xff] %v5942_v45  ;;  %v5944_v53 = vpop.f32.mrf.mxu1 }
 0x1d8   : > { %6244 = vst [vmem:[#allocation25_spill] sm:$0xff] %v5944_v53  ;;  %v5946_v4 = vpop.f32.mrf.mxu0 }
 0x1d9   : > { %6245 = vst [vmem:[#allocation26_spill] sm:$0xff] %v5946_v4  ;;  %v5948_v20 = vpop.f32.mrf.mxu1 }
 0x1da   : > { %6246 = vst [vmem:[#allocation27_spill] sm:$0xff] %v5948_v20  ;;  %v5950_v8 = vpop.f32.mrf.mxu0 }
 0x1db   : > { %6247 = vst [vmem:[#allocation28_spill] sm:$0xff] %v5950_v8  ;;  %v5952_v55 = vpop.f32.mrf.mxu1 }
 0x1dc   : > { %v5954_v22 = vpop.f32.mrf.mxu0 }
 0x1dd   : > { %6248 = vst [vmem:[#allocation29_spill] sm:$0xff] %v5954_v22  ;;  %v5956_v10 = vpop.f32.mrf.mxu1 }
 0x1de   : > { %6249 = vst [vmem:[#allocation30_spill] sm:$0xff] %v5956_v10  ;;  %v5958_v56 = vpop.f32.mrf.mxu0  ;;  %v2470_v10 = vadd.f32 %v4587_v21, %v5795_v3  ;;  %v2476_v21 = vadd.f32 %v2373_v47, %v5822_v9  ;;  %v2481_v9 = vadd.f32 %v2392_v27, %v5840_v1 }
 0x1df   : > { %6250 = vst [vmem:[#allocation31_spill] sm:$0xff] %v5958_v56  ;;  %v5960_v29 = vpop.f32.mrf.mxu1  ;;  %v2468_v56 = vadd.f32 %v2341_v23, %v5798_v17 }
 0x1e0   : > { %6251 = vst [vmem:[#allocation32_spill] sm:$0xff] %v5960_v29  ;;  %v5962_v12 = vpop.f32.mrf.mxu0  ;;  %v2471_v29 = vadd.f32 %v4588_v61, %v5801_v54  ;;  %v2483_v61 = vadd.f32 %v4600_v37, %v5837_v31 }
 0x1e1   : > { %6252 = vst [vmem:[#allocation33_spill] sm:$0xff] %v5962_v12  ;;  %v5964_v45 = vpop.f32.mrf.mxu1  ;;  %v2469_v12 = vadd.f32 %v2344_v58, %v5804_v6  ;;  %v2774_v3 = vadd.f32 %v5892_v40, %v2468_v56  ;;  %v2473_v56 = vadd.f32 %v2360_v24, %v5816_v51  ;;  %v2482_v51 = vadd.f32 %v4599_v26, %v5831_v7 }
 0x1e2   : > { %6253 = vst [vmem:[#allocation34_spill] sm:$0xff] %v5964_v45  ;;  %v5966_v53 = vpop.f32.mrf.mxu0  ;;  %v2777_v17 = vadd.f32 %v5894_v59, %v2471_v29  ;;  %v2478_v29 = vadd.f32 %v4595_v2, %v5819_v34  ;;  %v2480_v34 = vadd.f32 %v2389_v36, %v5834_v16 }
 0x1e3   : > { %6254 = vst [vmem:[#allocation35_spill] sm:$0xff] %v5966_v53  ;;  %v5968_v4 = vpop.f32.mrf.mxu1  ;;  %v2775_v54 = vadd.f32 %v5896_v43, %v2469_v12  ;;  %v6028_v16 = vadd.f32 %v5908_v32, %v2473_v56  ;;  %v6260_v32 = vld [vmem:[#allocation17_spill] sm:$0xff] }
 0x1e4   : > { %6255 = vst [vmem:[#allocation36_spill] sm:$0xff] %v5968_v4  ;;  %v5970_v20 = vpop.f32.mrf.mxu0  ;;  %v6031_v31 = vadd.f32 %v5910_v15, %v2478_v29  ;;  %v6261_v15 = vld [vmem:[#allocation18_spill] sm:$0xff] }
 0x1e5   : > { %6256 = vst [vmem:[#allocation37_spill] sm:$0xff] %v5970_v20  ;;  %v5972_v8 = vpop.f32.mrf.mxu1 }
 0x1e6   : > { %6257 = vst [vmem:[#allocation38_spill] sm:$0xff] %v5972_v8  ;;  %v5974_v22 = vpop.f32.mrf.mxu0  ;;  %v2474_v8 = vadd.f32 %v4591_v11, %v5807_v63  ;;  %v2472_v63 = vadd.f32 %v5900_v46, %v5810_v41  ;;  %v2477_v41 = vadd.f32 %v2376_v48, %v5828_v50  ;;  %v2484_v50 = vadd.f32 %v2405_v19, %v5846_v0  ;;  %v6263_v48 = vld [vmem:[#allocation20_spill] sm:$0xff] }
 0x1e7   : > { %6258 = vst [vmem:[#allocation39_spill] sm:$0xff] %v5974_v22  ;;  %v5980_v45 = vpop.f32.mrf.mxu1  ;;  %v2776_v22 = vadd.f32 %v5890_v33, %v2470_v10  ;;  %v2475_v10 = vadd.f32 %v5904_v13, %v5813_v44  ;;  %v2479_v33 = vadd.f32 %v4596_v30, %v5825_v5  ;;  %v2486_v5 = vadd.f32 %v4603_v28, %v5843_v14 }
 0x1e8   : > { %v5982_v53 = vpop.f32.mrf.mxu0  ;;  %v2780_v44 = vadd.f32 %v5898_v35, %v2474_v8  ;;  %v2778_v8 = vadd.f32 %v5902_v38, %v2472_v63  ;;  %v6035_v14 = vadd.f32 %v5912_v49, %v2476_v21  ;;  %v6041_v19 = vadd.f32 %v5916_v39, %v2477_v41 }
 0x1e9   : > { %v5984_v4 = vpop.f32.mrf.mxu1  ;;  %v2781_v7 = vadd.f32 %v5906_v60, %v2475_v10  ;;  %v6038_v0 = vadd.f32 %v5914_v57, %v2479_v33  ;;  %v6045_v11 = vadd.f32 %v5918_v52, %v2482_v51  ;;  %v6048_v35 = vadd.f32 %v5920_v42, %v2480_v34  ;;  %v6259_v60 = vld [vmem:[#allocation16_spill] sm:$0xff]  ;;  %v6262_v57 = vld [vmem:[#allocation3_spill] sm:$0xff]  ;;  %v6265_v51 = vld [vmem:[#allocation21_spill] sm:$0xff] }
 0x1ea   : > { %v5987_v20 = vpop.f32.mrf.mxu0  ;;  %v6051_v46 = vadd.f32 %v5922_v18, %v2483_v61  ;;  %v2487_v38 = vadd.f32 %v5930_v25, %v5849_v62  ;;  %v6057_v24 = vadd.f32 %v6259_v60, %v2481_v9  ;;  %v6060_v2 = vadd.f32 %v6260_v32, %v2486_v5 }
 0x1eb   : > { %v5993_v6 = vpop.f32.mrf.mxu1  ;;  %v6063_v47 = vadd.f32 %v6261_v15, %v2484_v50  ;;  %v2485_v39 = vadd.f32 %v6263_v48, %v6262_v57 }
 0x1ec   : > { %v4683_v12 = vpop.f32.mrf.mxu0 }
 0x1ed   : > { %v3082_v23 = vadd.f32 %v4683_v12, %v2776_v22  ;;  %v4731_v40 = vpop.f32.mrf.mxu1  ;;  %v6076_v34 = vadd.f32 %v6265_v51, %v2485_v39 }
 0x1ee   : > { %3527 = vst [vmem:[%s5999_s19 + $0x10] sm:$0xff] %v4731_v40  ;;  %v2953_v59 = vpop.f32.mrf.mxu0 }
 0x1ef   : > { %3114 = vst [vmem:[%s6011_s25 + $0x10] sm:$0xff] %v3082_v23  ;;  %v3080_v22 = vadd.f32 %v2953_v59, %v2774_v3  ;;  %v3398_v58 = vpop.f32.mrf.mxu1  ;;  %v6264_v3 = vld [vmem:[#allocation19_spill] sm:$0xff]  ;;  %v3184_v29 = vmul.f32 %v3082_v23, %v3082_v23 }
 0x1f0   : > { %3525 = vst [vmem:[%s5999_s19] sm:$0xff] %v3398_v58  ;;  %v4684_v1 = vpop.f32.mrf.mxu0  ;;  %v3595_v62 = vmul.f32 %v3398_v58, %v3398_v58 }
 0x1f1   : > { %3112 = vst [vmem:[%s6011_s25] sm:$0xff] %v3080_v22  ;;  %v3083_v28 = vadd.f32 %v4684_v1, %v2777_v17  ;;  %v4732_v43 = vpop.f32.mrf.mxu1  ;;  %v3182_v36 = vmul.f32 %v3080_v22, %v3080_v22  ;;  %v6071_v17 = vadd.f32 %v6264_v3, %v2487_v38 }
 0x1f2   : > { %3528 = vst [vmem:[%s5999_s19 + $0x18] sm:$0xff] %v4732_v43  ;;  %v2956_v13 = vpop.f32.mrf.mxu0 }
 0x1f3   : > { %3115 = vst [vmem:[%s6011_s25 + $0x18] sm:$0xff] %v3083_v28  ;;  %v3081_v49 = vadd.f32 %v2956_v13, %v2775_v54  ;;  %v3401_v30 = vpop.f32.mrf.mxu1  ;;  %v3597_v54 = vmul.f32 %v4731_v40, %v4731_v40 }
 0x1f4   : > { %3526 = vst [vmem:[%s5999_s19 + $0x8] sm:$0xff] %v3401_v30  ;;  %v3557_v25 = vadd.f32 %v3401_v30, %v3398_v58  ;;  %v3596_v26 = vmul.f32 %v3401_v30, %v3401_v30  ;;  %v4687_v52 = vpop.f32.mrf.mxu0  ;;  %v6266_v58 = vld [vmem:[#allocation4_spill] sm:$0xff] }
 0x1f5   : > { %3113 = vst [vmem:[%s6011_s25 + $0x8] sm:$0xff] %v3081_v49  ;;  %v3144_v42 = vadd.f32 %v3081_v49, %v3080_v22  ;;  %v3183_v37 = vmul.f32 %v3081_v49, %v3081_v49  ;;  %v3086_v18 = vadd.f32 %v4687_v52, %v2780_v44  ;;  %v4735_v27 = vpop.f32.mrf.mxu1  ;;  %v3598_v44 = vmul.f32 %v4732_v43, %v4732_v43 }
 0x1f6   : > { %v3558_v63 = vadd.f32 %v4731_v40, %v3557_v25  ;;  %v3627_v10 = vadd.f32 %v3596_v26, %v3595_v62  ;;  %3531 = vst [vmem:[%s5999_s19 + $0x30] sm:$0xff] %v4735_v27  ;;  %v2969_v56 = vpop.f32.mrf.mxu0  ;;  %v3185_v40 = vmul.f32 %v3083_v28, %v3083_v28 }
 0x1f7   : > { %v3145_v12 = vadd.f32 %v3144_v42, %v3082_v23  ;;  %v3214_v21 = vadd.f32 %v3183_v37, %v3182_v36  ;;  %3118 = vst [vmem:[%s6011_s25 + $0x30] sm:$0xff] %v3086_v18  ;;  %v3084_v33 = vadd.f32 %v2969_v56, %v2778_v8  ;;  %v3414_v41 = vpop.f32.mrf.mxu1  ;;  %v6267_v8 = vld [vmem:[#allocation22_spill] sm:$0xff] }
 0x1f8   : > { %v3628_v61 = vadd.f32 %v3627_v10, %v3597_v54  ;;  %3529 = vst [vmem:[%s5999_s19 + $0x20] sm:$0xff] %v3414_v41  ;;  %v3559_v59 = vadd.f32 %v4732_v43, %v3558_v63  ;;  %v4688_v9 = vpop.f32.mrf.mxu0  ;;  %v2490_v1 = vadd.f32 %v6267_v8, %v6266_v58  ;;  %v3599_v13 = vmul.f32 %v3414_v41, %v3414_v41  ;;  %v6270_v54 = vld [vmem:[#allocation23_spill] sm:$0xff]  ;;  %v6273_v8 = vld [vmem:[#allocation26_spill] sm:$0xff] }
 0x1f9   : > { %v3215_v5 = vadd.f32 %v3214_v21, %v3184_v29  ;;  %3116 = vst [vmem:[%s6011_s25 + $0x20] sm:$0xff] %v3084_v33  ;;  %v3146_v50 = vadd.f32 %v3145_v12, %v3083_v28  ;;  %v3087_v22 = vadd.f32 %v4688_v9, %v2781_v7  ;;  %v4736_v23 = vpop.f32.mrf.mxu1  ;;  %v3186_v43 = vmul.f32 %v3084_v33, %v3084_v33  ;;  %v6268_v28 = vld [vmem:[#allocation5_spill] sm:$0xff]  ;;  %v6269_v7 = vld [vmem:[#allocation24_spill] sm:$0xff] }
 0x1fa   : > { %v3560_v38 = vadd.f32 %v3559_v59, %v3414_v41  ;;  %v3629_v60 = vadd.f32 %v3628_v61, %v3598_v44  ;;  %3532 = vst [vmem:[%s5999_s19 + $0x38] sm:$0xff] %v4736_v23  ;;  %v2972_v32 = vpop.f32.mrf.mxu0  ;;  %v2488_v48 = vadd.f32 %v6269_v7, %v6268_v28  ;;  %v3601_v63 = vmul.f32 %v4735_v27, %v4735_v27  ;;  %v6271_v44 = vld [vmem:[#allocation25_spill] sm:$0xff] }
 0x1fb   : > { %v3147_v15 = vadd.f32 %v3146_v50, %v3084_v33  ;;  %v3216_v49 = vadd.f32 %v3215_v5, %v3185_v40  ;;  %3119 = vst [vmem:[%s6011_s25 + $0x38] sm:$0xff] %v3087_v22  ;;  %v3085_v30 = vadd.f32 %v2972_v32, %v6028_v16  ;;  %v3417_v57 = vpop.f32.mrf.mxu1  ;;  %v6091_v16 = vadd.f32 %v6270_v54, %v2490_v1 }
 0x1fc   : > { %v3630_v39 = vadd.f32 %v3629_v60, %v3599_v13  ;;  %3530 = vst [vmem:[%s5999_s19 + $0x28] sm:$0xff] %v3417_v57  ;;  %v3561_v62 = vadd.f32 %v3560_v38, %v3417_v57  ;;  %v3600_v25 = vmul.f32 %v3417_v57, %v3417_v57  ;;  %v4691_v26 = vpop.f32.mrf.mxu0  ;;  %v3188_v12 = vmul.f32 %v3086_v18, %v3086_v18 }
 0x1fd   : > { %v3217_v52 = vadd.f32 %v3216_v49, %v3186_v43  ;;  %3117 = vst [vmem:[%s6011_s25 + $0x28] sm:$0xff] %v3085_v30  ;;  %v3148_v36 = vadd.f32 %v3147_v15, %v3085_v30  ;;  %v3187_v42 = vmul.f32 %v3085_v30, %v3085_v30  ;;  %v3090_v37 = vadd.f32 %v4691_v26, %v6031_v31  ;;  %v4739_v3 = vpop.f32.mrf.mxu1  ;;  %v6274_v30 = vld [vmem:[#allocation7_spill] sm:$0xff] }
 0x1fe   : > { %v3562_v10 = vadd.f32 %v4735_v27, %v3561_v62  ;;  %v3631_v56 = vadd.f32 %v3630_v39, %v3600_v25  ;;  %3535 = vst [vmem:[%s5999_s19 + $0x50] sm:$0xff] %v4739_v3  ;;  %v2985_v29 = vpop.f32.mrf.mxu0  ;;  %v6097_v31 = vadd.f32 %v6271_v44, %v2488_v48  ;;  %v3602_v61 = vmul.f32 %v4736_v23, %v4736_v23 }
 0x1ff   : > { %v3149_v21 = vadd.f32 %v3148_v36, %v3086_v18  ;;  %v3218_v33 = vadd.f32 %v3217_v52, %v3187_v42  ;;  %3122 = vst [vmem:[%s6011_s25 + $0x50] sm:$0xff] %v3090_v37  ;;  %v3088_v41 = vadd.f32 %v2985_v29, %v6035_v14  ;;  %v3430_v51 = vpop.f32.mrf.mxu1  ;;  %v3189_v40 = vmul.f32 %v3087_v22, %v3087_v22  ;;  %v6272_v14 = vld [vmem:[#allocation6_spill] sm:$0xff]  ;;  %v6276_v42 = vld [vmem:[#allocation27_spill] sm:$0xff] }
 0x200   : > { %v3632_v59 = vadd.f32 %v3631_v56, %v3601_v63  ;;  %3533 = vst [vmem:[%s5999_s19 + $0x40] sm:$0xff] %v3430_v51  ;;  %v3563_v9 = vadd.f32 %v4736_v23, %v3562_v10  ;;  %v4692_v27 = vpop.f32.mrf.mxu0  ;;  %v2491_v1 = vadd.f32 %v6273_v8, %v6272_v14  ;;  %v3603_v13 = vmul.f32 %v3430_v51, %v3430_v51 }
 0x201   : > { %v3219_v5 = vadd.f32 %v3218_v33, %v3188_v12  ;;  %3120 = vst [vmem:[%s6011_s25 + $0x40] sm:$0xff] %v3088_v41  ;;  %v3150_v50 = vadd.f32 %v3149_v21, %v3087_v22  ;;  %v3091_v18 = vadd.f32 %v4692_v27, %v6038_v0  ;;  %v4740_v58 = vpop.f32.mrf.mxu1  ;;  %v3190_v15 = vmul.f32 %v3088_v41, %v3088_v41  ;;  %v6275_v0 = vld [vmem:[#allocation28_spill] sm:$0xff] }
 0x202   : > { %v3564_v38 = vadd.f32 %v3563_v9, %v3430_v51  ;;  %v3633_v60 = vadd.f32 %v3632_v59, %v3602_v61  ;;  %3536 = vst [vmem:[%s5999_s19 + $0x58] sm:$0xff] %v4740_v58  ;;  %v2988_v32 = vpop.f32.mrf.mxu0  ;;  %v2489_v57 = vadd.f32 %v6275_v0, %v6274_v30  ;;  %v3605_v54 = vmul.f32 %v4739_v3, %v4739_v3 }
 0x203   : > { %v3151_v23 = vadd.f32 %v3150_v50, %v3088_v41  ;;  %v3220_v43 = vadd.f32 %v3219_v5, %v3189_v40  ;;  %3123 = vst [vmem:[%s6011_s25 + $0x58] sm:$0xff] %v3091_v18  ;;  %v3089_v49 = vadd.f32 %v2988_v32, %v6041_v19  ;;  %v3433_v22 = vpop.f32.mrf.mxu1  ;;  %v6113_v19 = vadd.f32 %v6276_v42, %v2491_v1  ;;  %v6278_v5 = vld [vmem:[#allocation29_spill] sm:$0xff] }
 0x204   : > { %v3634_v28 = vadd.f32 %v3633_v60, %v3603_v13  ;;  %3534 = vst [vmem:[%s5999_s19 + $0x48] sm:$0xff] %v3433_v22  ;;  %v3565_v7 = vadd.f32 %v3564_v38, %v3433_v22  ;;  %v3604_v48 = vmul.f32 %v3433_v22, %v3433_v22  ;;  %v4695_v39 = vpop.f32.mrf.mxu0  ;;  %v3192_v29 = vmul.f32 %v3090_v37, %v3090_v37  ;;  %v6279_v32 = vld [vmem:[#allocation9_spill] sm:$0xff] }
 0x205   : > { %v3221_v62 = vadd.f32 %v3220_v43, %v3190_v15  ;;  %3121 = vst [vmem:[%s6011_s25 + $0x48] sm:$0xff] %v3089_v49  ;;  %v3152_v25 = vadd.f32 %v3151_v23, %v3089_v49  ;;  %v3191_v26 = vmul.f32 %v3089_v49, %v3089_v49  ;;  %v3094_v52 = vadd.f32 %v4695_v39, %v6045_v11  ;;  %v4743_v36 = vpop.f32.mrf.mxu1 }
 0x206   : > { %v3566_v63 = vadd.f32 %v4739_v3, %v3565_v7  ;;  %v3635_v10 = vadd.f32 %v3634_v28, %v3604_v48  ;;  %3539 = vst [vmem:[%s5999_s19 + $0x70] sm:$0xff] %v4743_v36  ;;  %v3001_v56 = vpop.f32.mrf.mxu0  ;;  %v6119_v11 = vadd.f32 %v5952_v55, %v2489_v57  ;;  %v3606_v51 = vmul.f32 %v4740_v58, %v4740_v58  ;;  %v6281_v48 = vld [vmem:[#allocation30_spill] sm:$0xff] }
 0x207   : > { %v3153_v12 = vadd.f32 %v3152_v25, %v3090_v37  ;;  %v3222_v21 = vadd.f32 %v3221_v62, %v3191_v26  ;;  %3126 = vst [vmem:[%s6011_s25 + $0x70] sm:$0xff] %v3094_v52  ;;  %v3092_v33 = vadd.f32 %v3001_v56, %v6048_v35  ;;  %v3446_v41 = vpop.f32.mrf.mxu1  ;;  %v3193_v59 = vmul.f32 %v3091_v18, %v3091_v18  ;;  %v6277_v35 = vld [vmem:[#allocation8_spill] sm:$0xff] }
 0x208   : > { %v3636_v44 = vadd.f32 %v3635_v10, %v3605_v54  ;;  %3537 = vst [vmem:[%s5999_s19 + $0x60] sm:$0xff] %v3446_v41  ;;  %v3567_v61 = vadd.f32 %v4740_v58, %v3566_v63  ;;  %v4696_v3 = vpop.f32.mrf.mxu0  ;;  %v2494_v50 = vadd.f32 %v6278_v5, %v6277_v35  ;;  %v3607_v14 = vmul.f32 %v3446_v41, %v3446_v41 }
 0x209   : > { %v3223_v9 = vadd.f32 %v3222_v21, %v3192_v29  ;;  %3124 = vst [vmem:[%s6011_s25 + $0x60] sm:$0xff] %v3092_v33  ;;  %v3154_v27 = vadd.f32 %v3153_v12, %v3091_v18  ;;  %v3095_v37 = vadd.f32 %v4696_v3, %v6051_v46  ;;  %v4744_v40 = vpop.f32.mrf.mxu1  ;;  %v3194_v38 = vmul.f32 %v3092_v33, %v3092_v33  ;;  %v6280_v46 = vld [vmem:[#allocation31_spill] sm:$0xff]  ;;  %v6282_v29 = vld [vmem:[#allocation32_spill] sm:$0xff]  ;;  %v6284_v3 = vld [vmem:[#allocation33_spill] sm:$0xff] }
 0x20a   : > { %v3568_v55 = vadd.f32 %v3567_v61, %v3446_v41  ;;  %v3637_v8 = vadd.f32 %v3636_v44, %v3606_v51  ;;  %3540 = vst [vmem:[%s5999_s19 + $0x78] sm:$0xff] %v4744_v40  ;;  %v3004_v1 = vpop.f32.mrf.mxu0  ;;  %v2492_v23 = vadd.f32 %v6280_v46, %v6279_v32  ;;  %v3609_v39 = vmul.f32 %v4743_v36, %v4743_v36 }
 0x20b   : > { %v3155_v58 = vadd.f32 %v3154_v27, %v3092_v33  ;;  %v3224_v13 = vadd.f32 %v3223_v9, %v3193_v59  ;;  %3127 = vst [vmem:[%s6011_s25 + $0x78] sm:$0xff] %v3095_v37  ;;  %v3093_v60 = vadd.f32 %v3004_v1, %v6057_v24  ;;  %v3449_v18 = vpop.f32.mrf.mxu1  ;;  %v6135_v24 = vadd.f32 %v6281_v48, %v2494_v50 }
 0x20c   : > { %v3638_v15 = vadd.f32 %v3637_v8, %v3607_v14  ;;  %3538 = vst [vmem:[%s5999_s19 + $0x68] sm:$0xff] %v3449_v18  ;;  %v3569_v43 = vadd.f32 %v3568_v55, %v3449_v18  ;;  %v3608_v49 = vmul.f32 %v3449_v18, %v3449_v18  ;;  %v4699_v22 = vpop.f32.mrf.mxu0  ;;  %v3196_v42 = vmul.f32 %v3094_v52, %v3094_v52  ;;  %v6285_v8 = vld [vmem:[#allocation11_spill] sm:$0xff] }
 0x20d   : > { %v3225_v30 = vadd.f32 %v3224_v13, %v3194_v38  ;;  %3125 = vst [vmem:[%s6011_s25 + $0x68] sm:$0xff] %v3093_v60  ;;  %v3156_v0 = vadd.f32 %v3155_v58, %v3093_v60  ;;  %v3195_v57 = vmul.f32 %v3093_v60, %v3093_v60  ;;  %v3098_v28 = vadd.f32 %v4699_v22, %v6060_v2  ;;  %v4747_v7 = vpop.f32.mrf.mxu1 }
 0x20e   : > { %v3570_v62 = vadd.f32 %v4743_v36, %v3569_v43  ;;  %v3639_v25 = vadd.f32 %v3638_v15, %v3608_v49  ;;  %3543 = vst [vmem:[%s5999_s19 + $0x90] sm:$0xff] %v4747_v7  ;;  %v3017_v26 = vpop.f32.mrf.mxu0  ;;  %v6141_v2 = vadd.f32 %v6282_v29, %v2492_v23  ;;  %v3610_v12 = vmul.f32 %v4744_v40, %v4744_v40  ;;  %v6287_v43 = vld [vmem:[#allocation34_spill] sm:$0xff] }
 0x20f   : > { %v3157_v54 = vadd.f32 %v3156_v0, %v3094_v52  ;;  %v3226_v63 = vadd.f32 %v3225_v30, %v3195_v57  ;;  %3130 = vst [vmem:[%s6011_s25 + $0x90] sm:$0xff] %v3098_v28  ;;  %v3096_v10 = vadd.f32 %v3017_v26, %v6063_v47  ;;  %v3462_v56 = vpop.f32.mrf.mxu1  ;;  %v3197_v41 = vmul.f32 %v3095_v37, %v3095_v37  ;;  %v6283_v47 = vld [vmem:[#allocation10_spill] sm:$0xff]  ;;  %v6288_v26 = vld [vmem:[#allocation36_spill] sm:$0xff] }
 0x210   : > { %v3640_v21 = vadd.f32 %v3639_v25, %v3609_v39  ;;  %3541 = vst [vmem:[%s5999_s19 + $0x80] sm:$0xff] %v3462_v56  ;;  %v3571_v33 = vadd.f32 %v4744_v40, %v3570_v62  ;;  %v4700_v36 = vpop.f32.mrf.mxu0  ;;  %v2495_v59 = vadd.f32 %v6284_v3, %v6283_v47  ;;  %v3611_v27 = vmul.f32 %v3462_v56, %v3462_v56 }
 0x211   : > { %v3227_v51 = vadd.f32 %v3226_v63, %v3196_v42  ;;  %3128 = vst [vmem:[%s6011_s25 + $0x80] sm:$0xff] %v3096_v10  ;;  %v3158_v44 = vadd.f32 %v3157_v54, %v3095_v37  ;;  %v3099_v52 = vadd.f32 %v4700_v36, %v6071_v17  ;;  %v4748_v61 = vpop.f32.mrf.mxu1  ;;  %v3198_v50 = vmul.f32 %v3096_v10, %v3096_v10  ;;  %v6286_v17 = vld [vmem:[#allocation35_spill] sm:$0xff] }
 0x212   : > { %v3572_v9 = vadd.f32 %v3571_v33, %v3462_v56  ;;  %v3641_v35 = vadd.f32 %v3640_v21, %v3610_v12  ;;  %3544 = vst [vmem:[%s5999_s19 + $0x98] sm:$0xff] %v4748_v61  ;;  %v3020_v5 = vpop.f32.mrf.mxu0  ;;  %v2493_v1 = vadd.f32 %v6286_v17, %v6285_v8  ;;  %v3613_v49 = vmul.f32 %v4747_v7, %v4747_v7  ;;  %v6290_v21 = vld [vmem:[#allocation37_spill] sm:$0xff] }
 0x213   : > { %v3159_v40 = vadd.f32 %v3158_v44, %v3096_v10  ;;  %v3228_v55 = vadd.f32 %v3227_v51, %v3197_v41  ;;  %3131 = vst [vmem:[%s6011_s25 + $0x98] sm:$0xff] %v3099_v52  ;;  %v3097_v14 = vadd.f32 %v3020_v5, %v6076_v34  ;;  %v3465_v37 = vpop.f32.mrf.mxu1  ;;  %v6157_v34 = vadd.f32 %v6287_v43, %v2495_v59 }
 0x214   : > { %v3642_v58 = vadd.f32 %v3641_v35, %v3611_v27  ;;  %3542 = vst [vmem:[%s5999_s19 + $0x88] sm:$0xff] %v3465_v37  ;;  %v3573_v38 = vadd.f32 %v3572_v9, %v3465_v37  ;;  %v3612_v13 = vmul.f32 %v3465_v37, %v3465_v37  ;;  %v4703_v60 = vpop.f32.mrf.mxu0  ;;  %v3200_v57 = vmul.f32 %v3098_v28, %v3098_v28  ;;  %v6291_v9 = vld [vmem:[#allocation13_spill] sm:$0xff] }
 0x215   : > { %v3229_v18 = vadd.f32 %v3228_v55, %v3198_v50  ;;  %3129 = vst [vmem:[%s6011_s25 + $0x88] sm:$0xff] %v3097_v14  ;;  %v3160_v32 = vadd.f32 %v3159_v40, %v3097_v14  ;;  %v3199_v46 = vmul.f32 %v3097_v14, %v3097_v14  ;;  %v3102_v23 = vadd.f32 %v4703_v60, %v6091_v16  ;;  %v4751_v15 = vpop.f32.mrf.mxu1 }
 0x216   : > { %v3574_v22 = vadd.f32 %v4747_v7, %v3573_v38  ;;  %v3643_v30 = vadd.f32 %v3642_v58, %v3612_v13  ;;  %3547 = vst [vmem:[%s5999_s19 + $0xb0] sm:$0xff] %v4751_v15  ;;  %v3033_v0 = vpop.f32.mrf.mxu0  ;;  %v6163_v16 = vadd.f32 %v6288_v26, %v2493_v1  ;;  %v3614_v42 = vmul.f32 %v4748_v61, %v4748_v61  ;;  %v6293_v1 = vld [vmem:[#allocation38_spill] sm:$0xff] }
 0x217   : > { %v3161_v48 = vadd.f32 %v3160_v32, %v3098_v28  ;;  %v3230_v39 = vadd.f32 %v3229_v18, %v3199_v46  ;;  %3134 = vst [vmem:[%s6011_s25 + $0xb0] sm:$0xff] %v3102_v23  ;;  %v3100_v62 = vadd.f32 %v3033_v0, %v6097_v31  ;;  %v3478_v25 = vpop.f32.mrf.mxu1  ;;  %v3201_v10 = vmul.f32 %v3099_v52, %v3099_v52  ;;  %v6289_v31 = vld [vmem:[#allocation12_spill] sm:$0xff] }
 0x218   : > { %v3644_v54 = vadd.f32 %v3643_v30, %v3613_v49  ;;  %3545 = vst [vmem:[%s5999_s19 + $0xa0] sm:$0xff] %v3478_v25  ;;  %v3575_v63 = vadd.f32 %v4748_v61, %v3574_v22  ;;  %v4704_v7 = vpop.f32.mrf.mxu0  ;;  %v2498_v33 = vadd.f32 %v6290_v21, %v6289_v31  ;;  %v3615_v41 = vmul.f32 %v3478_v25, %v3478_v25 }
 0x219   : > { %v3231_v56 = vadd.f32 %v3230_v39, %v3200_v57  ;;  %3132 = vst [vmem:[%s6011_s25 + $0xa0] sm:$0xff] %v3100_v62  ;;  %v3162_v29 = vadd.f32 %v3161_v48, %v3099_v52  ;;  %v3103_v28 = vadd.f32 %v4704_v7, %v6113_v19  ;;  %v4752_v12 = vpop.f32.mrf.mxu1  ;;  %v3202_v47 = vmul.f32 %v3100_v62, %v3100_v62  ;;  %v6292_v19 = vld [vmem:[#allocation39_spill] sm:$0xff] }
 0x21a   : > { %v3576_v36 = vadd.f32 %v3575_v63, %v3478_v25  ;;  %v3645_v51 = vadd.f32 %v3644_v54, %v3614_v42  ;;  %3548 = vst [vmem:[%s5999_s19 + $0xb8] sm:$0xff] %v4752_v12  ;;  %v3036_v44 = vpop.f32.mrf.mxu0  ;;  %v2496_v27 = vadd.f32 %v6292_v19, %v6291_v9  ;;  %v3617_v58 = vmul.f32 %v4751_v15, %v4751_v15  ;;  %v6294_v25 = vld [vmem:[#allocation14_spill] sm:$0xff] }
 0x21b   : > { %v3163_v61 = vadd.f32 %v3162_v29, %v3100_v62  ;;  %v3232_v3 = vadd.f32 %v3231_v56, %v3201_v10  ;;  %3135 = vst [vmem:[%s6011_s25 + $0xb8] sm:$0xff] %v3103_v28  ;;  %v3101_v59 = vadd.f32 %v3036_v44, %v6119_v11  ;;  %v3481_v52 = vpop.f32.mrf.mxu1  ;;  %v2804_v11 = vadd.f32 %v6293_v1, %v2498_v33 }
 0x21c   : > { %v3646_v35 = vadd.f32 %v3645_v51, %v3615_v41  ;;  %3546 = vst [vmem:[%s5999_s19 + $0xa8] sm:$0xff] %v3481_v52  ;;  %v3577_v5 = vadd.f32 %v3576_v36, %v3481_v52  ;;  %v3616_v40 = vmul.f32 %v3481_v52, %v3481_v52  ;;  %v4707_v50 = vpop.f32.mrf.mxu0  ;;  %v3204_v18 = vmul.f32 %v3102_v23, %v3102_v23 }
 0x21d   : > { %v3233_v55 = vadd.f32 %v3232_v3, %v3202_v47  ;;  %3133 = vst [vmem:[%s6011_s25 + $0xa8] sm:$0xff] %v3101_v59  ;;  %v3164_v14 = vadd.f32 %v3163_v61, %v3101_v59  ;;  %v3203_v37 = vmul.f32 %v3101_v59, %v3101_v59  ;;  %v3106_v8 = vadd.f32 %v4707_v50, %v6135_v24  ;;  %v4755_v17 = vpop.f32.mrf.mxu1 }
 0x21e   : > { %v3578_v38 = vadd.f32 %v4751_v15, %v3577_v5  ;;  %v3647_v13 = vadd.f32 %v3646_v35, %v3616_v40  ;;  %3551 = vst [vmem:[%s5999_s19 + $0xd0] sm:$0xff] %v4755_v17  ;;  %v3049_v60 = vpop.f32.mrf.mxu0  ;;  %v2802_v22 = vadd.f32 %v5980_v45, %v2496_v27  ;;  %v3618_v24 = vmul.f32 %v4752_v12, %v4752_v12 }
 0x21f   : > { %v3165_v32 = vadd.f32 %v3164_v14, %v3102_v23  ;;  %v3234_v46 = vadd.f32 %v3233_v55, %v3203_v37  ;;  %3138 = vst [vmem:[%s6011_s25 + $0xd0] sm:$0xff] %v3106_v8  ;;  %v3104_v43 = vadd.f32 %v3049_v60, %v6141_v2  ;;  %v3494_v49 = vpop.f32.mrf.mxu1  ;;  %v3205_v15 = vmul.f32 %v3103_v28, %v3103_v28 }
 0x220   : > { %v3648_v30 = vadd.f32 %v3647_v13, %v3617_v58  ;;  %3549 = vst [vmem:[%s5999_s19 + $0xc0] sm:$0xff] %v3494_v49  ;;  %v3579_v0 = vadd.f32 %v4752_v12, %v3578_v38  ;;  %v4708_v57 = vpop.f32.mrf.mxu0  ;;  %v2499_v2 = vadd.f32 %v5982_v53, %v6294_v25  ;;  %v3619_v45 = vmul.f32 %v3494_v49, %v3494_v49 }
 0x221   : > { %v3235_v48 = vadd.f32 %v3234_v46, %v3204_v18  ;;  %3136 = vst [vmem:[%s6011_s25 + $0xc0] sm:$0xff] %v3104_v43  ;;  %v3166_v39 = vadd.f32 %v3165_v32, %v3103_v28  ;;  %v3107_v23 = vadd.f32 %v4708_v57, %v6157_v34  ;;  %v4756_v62 = vpop.f32.mrf.mxu1  ;;  %v3206_v7 = vmul.f32 %v3104_v43, %v3104_v43  ;;  %v6295_v28 = vld [vmem:[#allocation15_spill] sm:$0xff] }
 0x222   : > { %v3580_v26 = vadd.f32 %v3579_v0, %v3494_v49  ;;  %v3649_v42 = vadd.f32 %v3648_v30, %v3618_v24  ;;  %3552 = vst [vmem:[%s5999_s19 + $0xd8] sm:$0xff] %v4756_v62  ;;  %v3052_v54 = vpop.f32.mrf.mxu0  ;;  %v2497_v34 = vadd.f32 %v5987_v20, %v6295_v28  ;;  %v3621_v61 = vmul.f32 %v4755_v17, %v4755_v17 }
 0x223   : > { %v3167_v63 = vadd.f32 %v3166_v39, %v3104_v43  ;;  %v3236_v10 = vadd.f32 %v3235_v48, %v3205_v15  ;;  %3139 = vst [vmem:[%s6011_s25 + $0xd8] sm:$0xff] %v3107_v23  ;;  %v3105_v56 = vadd.f32 %v3052_v54, %v6163_v16  ;;  %v3497_v29 = vpop.f32.mrf.mxu1  ;;  %v2805_v16 = vadd.f32 %v5984_v4, %v2499_v2 }
 0x224   : > { %v3650_v12 = vadd.f32 %v3649_v42, %v3619_v45  ;;  %3550 = vst [vmem:[%s5999_s19 + $0xc8] sm:$0xff] %v3497_v29  ;;  %v3581_v53 = vadd.f32 %v3580_v26, %v3497_v29  ;;  %v3620_v31 = vmul.f32 %v3497_v29, %v3497_v29  ;;  %v4711_v21 = vpop.f32.mrf.mxu0  ;;  %v3208_v59 = vmul.f32 %v3106_v8, %v3106_v8 }
 0x225   : > { %v3237_v33 = vadd.f32 %v3236_v10, %v3206_v7  ;;  %3137 = vst [vmem:[%s6011_s25 + $0xc8] sm:$0xff] %v3105_v56  ;;  %v3168_v36 = vadd.f32 %v3167_v63, %v3105_v56  ;;  %v3207_v41 = vmul.f32 %v3105_v56, %v3105_v56  ;;  %v3110_v51 = vadd.f32 %v4711_v21, %v2804_v11  ;;  %v4759_v44 = vpop.f32.mrf.mxu1 }
 0x226   : > { %v3582_v47 = vadd.f32 %v4755_v17, %v3581_v53  ;;  %v3651_v3 = vadd.f32 %v3650_v12, %v3620_v31  ;;  %3555 = vst [vmem:[%s5999_s19 + $0xf0] sm:$0xff] %v4759_v44  ;;  %v3065_v20 = vpop.f32.mrf.mxu0  ;;  %v2803_v35 = vadd.f32 %v5993_v6, %v2497_v34  ;;  %v3622_v5 = vmul.f32 %v4756_v62, %v4756_v62 }
 0x227   : > { %v3169_v52 = vadd.f32 %v3168_v36, %v3106_v8  ;;  %v3238_v9 = vadd.f32 %v3237_v33, %v3207_v41  ;;  %3142 = vst [vmem:[%s6011_s25 + $0xf0] sm:$0xff] %v3110_v51  ;;  %v3108_v19 = vadd.f32 %v3065_v20, %v2802_v22  ;;  %v3510_v27 = vpop.f32.mrf.mxu1  ;;  %v3209_v55 = vmul.f32 %v3107_v23, %v3107_v23 }
 0x228   : > { %v3652_v40 = vadd.f32 %v3651_v3, %v3621_v61  ;;  %3553 = vst [vmem:[%s5999_s19 + $0xe0] sm:$0xff] %v3510_v27  ;;  %v3583_v50 = vadd.f32 %v4756_v62, %v3582_v47  ;;  %v4712_v4 = vpop.f32.mrf.mxu0  ;;  %v3623_v11 = vmul.f32 %v3510_v27, %v3510_v27  ;;  %v3625_v0 = vmul.f32 %v4759_v44, %v4759_v44 }
 0x229   : > { %v3239_v14 = vadd.f32 %v3238_v9, %v3208_v59  ;;  %3140 = vst [vmem:[%s6011_s25 + $0xe0] sm:$0xff] %v3108_v19  ;;  %v3170_v37 = vadd.f32 %v3169_v52, %v3107_v23  ;;  %v3111_v17 = vadd.f32 %v4712_v4, %v2805_v16  ;;  %v4760_v8 = vpop.f32.mrf.mxu1  ;;  %v3210_v13 = vmul.f32 %v3108_v19, %v3108_v19 }
 0x22a   : > { %v3584_v1 = vadd.f32 %v3583_v50, %v3510_v27  ;;  %v3653_v58 = vadd.f32 %v3652_v40, %v3622_v5  ;;  %3556 = vst [vmem:[%s5999_s19 + $0xf8] sm:$0xff] %v4760_v8  ;;  %v3068_v38 = vpop.f32.mrf.mxu0  ;;  %v3212_v48 = vmul.f32 %v3110_v51, %v3110_v51  ;;  %v3626_v62 = vmul.f32 %v4760_v8, %v4760_v8 }
 0x22b   : > { %v3171_v6 = vadd.f32 %v3170_v37, %v3108_v19  ;;  %v3240_v60 = vadd.f32 %v3239_v14, %v3209_v55  ;;  %3143 = vst [vmem:[%s6011_s25 + $0xf8] sm:$0xff] %v3111_v17  ;;  %v3109_v18 = vadd.f32 %v3068_v38, %v2803_v35  ;;  %v3513_v32 = vpop.f32.mrf.mxu1  ;;  %v3213_v26 = vmul.f32 %v3111_v17, %v3111_v17 }
 0x22c   : > { %v3654_v46 = vadd.f32 %v3653_v58, %v3623_v11  ;;  %3554 = vst [vmem:[%s5999_s19 + $0xe8] sm:$0xff] %v3513_v32  ;;  %v3585_v43 = vadd.f32 %v3584_v1, %v3513_v32  ;;  %v3624_v49 = vmul.f32 %v3513_v32, %v3513_v32 }
 0x22d   : > { %v3241_v22 = vadd.f32 %v3240_v60, %v3210_v13  ;;  %3141 = vst [vmem:[%s6011_s25 + $0xe8] sm:$0xff] %v3109_v18  ;;  %v3172_v24 = vadd.f32 %v3171_v6, %v3109_v18  ;;  %v3211_v30 = vmul.f32 %v3109_v18, %v3109_v18 }
 0x22e   : > { %v3586_v57 = vadd.f32 %v4759_v44, %v3585_v43  ;;  %v3655_v15 = vadd.f32 %v3654_v46, %v3624_v49 }
 0x22f   : > { %v3173_v39 = vadd.f32 %v3172_v24, %v3110_v51  ;;  %v3242_v23 = vadd.f32 %v3241_v22, %v3211_v30 }
 0x230   : > { %v3587_v25 = vadd.f32 %v4760_v8, %v3586_v57  ;;  %v3656_v2 = vadd.f32 %v3655_v15, %v3625_v0 }
 0x231   : > { %v3174_v45 = vadd.f32 %v3173_v39, %v3111_v17  ;;  %v3243_v42 = vadd.f32 %v3242_v23, %v3212_v48 }
 0x232   : > { %v3588_v54 = vrot.slane %v3587_v25, 4  ;;  %v3657_v63 = vadd.f32 %v3656_v2, %v3626_v62 }
 0x233   : > { %v3175_v7 = vrot.slane %v3174_v45, 4  ;;  %v3244_v10 = vadd.f32 %v3243_v42, %v3213_v26 }
 0x234   : > { %v3589_v56 = vadd.f32 %v3588_v54, %v3587_v25  ;;  %v3658_v29 = vrot.slane %v3657_v63, 4 }
 0x235   : > { %v3176_v28 = vadd.f32 %v3175_v7, %v3174_v45  ;;  %v3245_v34 = vrot.slane %v3244_v10, 4 }
 0x236   : > { %v3590_v12 = vrot.slane %v3589_v56, 2  ;;  %v3659_v53 = vadd.f32 %v3658_v29, %v3657_v63 }
 0x237   : > { %v3177_v31 = vrot.slane %v3176_v28, 2  ;;  %v3246_v21 = vadd.f32 %v3245_v34, %v3244_v10 }
 0x238   : > { %v3591_v33 = vadd.f32 %v3590_v12, %v3589_v56  ;;  %v3660_v36 = vrot.slane %v3659_v53, 2 }
 0x239   : > { %v3178_v41 = vadd.f32 %v3177_v31, %v3176_v28  ;;  %v3247_v51 = vrot.slane %v3246_v21, 2 }
 0x23a   : > { %v3592_v44 = vrot.slane %v3591_v33, 1  ;;  %v3661_v16 = vadd.f32 %v3660_v36, %v3659_v53 }
 0x23b   : > { %v3179_v61 = vrot.slane %v3178_v41, 1  ;;  %v3248_v47 = vadd.f32 %v3247_v51, %v3246_v21 }
 0x23c   : > { %v3593_v3 = vadd.f32 %v3592_v44, %v3591_v33  ;;  %v3662_v20 = vrot.slane %v3661_v16, 1 }
 0x23d   : > { %v3180_v59 = vadd.f32 %v3179_v61, %v3178_v41  ;;  %v3249_v52 = vrot.slane %v3248_v47, 1 }
 0x23e   : > { %3594 = vst [vmem:[%s284_s28] sm:$0x1] %v3593_v3  ;;  %v3663_v9 = vadd.f32 %v3662_v20, %v3661_v16 }
 0x23f   : > { %v3250_v19 = vadd.f32 %v3249_v52, %v3248_v47  ;;  %3181 = vst [vmem:[%s280_s7] sm:$0x1] %v3180_v59 }
 0x240   : > { %3664 = vst [vmem:[%s284_s28 + $0x1] sm:$0x1] %v3663_v9 }
 0x241   : > { %3251 = vst [vmem:[%s280_s7 + $0x1] sm:$0x1] %v3250_v19 }
 0x242 PF: > { %s17_s21 = sadd.s32 1, %s4857_s21  }
 0x243   : > { %p14_p4 = scmp.ge.s32.totalorder %s17_s21, 4  }
 0x245   :  { %16 = sbr.rel (!%p14_p4) target bundleno = 1 (0x1), region = 109 }

</bundles_post_ra>
